<compile_context>
chip_gen: v7x
topology: tpu7x:2x2x1
jax: 0.10.0
libtpu: 0.0.40
codegen_flags: <defaults>
</compile_context>

<pallas_src>
import jax
import jax.numpy as jnp
from jax import lax
from jax.experimental import pallas as pl
from jax.experimental.pallas import tpu as pltpu


_TAPS = tuple((dy, dx) for dy in range(3) for dx in range(3))


def _default_vmem_limit_bytes():
    # Generation-aware VMEM budget (leave ~10% headroom for the compiler).
    try:
        cap = int(pltpu.get_tpu_info().vmem_capacity_bytes)
    except Exception:
        cap = 64 * 1024 * 1024          # conservative fallback (v7x-sized)
    return max(32 * 1024 * 1024, int(cap * 0.9))


def _make_fused_uv_head_kernel(L, B, R, cin0, chid, cout,
                               act_dtype=jnp.bfloat16):
    """L x (3x3 conv + bias + ReLU) over a block of B ROIs, one layer/grid step."""
    M = B * R * R

    def _zero_halo(buf, c):
        # Halo-only zeroing == the conv zero padding (interiors are always
        # rewritten, the border is never written afterwards).
        buf[:, 0:1, :, :] = jnp.zeros((B, 1, R + 2, c), act_dtype)
        buf[:, R + 1:R + 2, :, :] = jnp.zeros((B, 1, R + 2, c), act_dtype)
        buf[:, 1:R + 1, 0:1, :] = jnp.zeros((B, R, 1, c), act_dtype)
        buf[:, 1:R + 1, R + 1:R + 2, :] = jnp.zeros((B, R, 1, c), act_dtype)

    def _conv3x3(src, w_of_tap, cin, acc_ref, b_row):
        # Per-tap MXU accumulation (no materialized im2col): 9 matmuls with
        # M = B*R*R, K = cin, N = cout, accumulated in a f32 VMEM scratch.
        for t, (dy, dx) in enumerate(_TAPS):
            lhs = src[:, dy:dy + R, dx:dx + R, :].reshape(M, cin)
            part = jnp.dot(lhs, w_of_tap(t), preferred_element_type=jnp.float32)
            if t == 0:
                acc_ref[...] = part
            else:
                acc_ref[...] += part
        return jnp.maximum(acc_ref[...] + b_row, 0.0)        # bias + ReLU in f32

    def kernel(x_ref, w0_ref, wr_ref, b_ref, o_ref, act0, act_a, act_b, acc_ref):
        # x_ref : (B, R, R, cin0)        pooled ROI features (f32)
        # w0_ref: (9, cin0, cout)        layer-0 bf16 weights, tap-major (resident)
        # wr_ref: (1, 9, chid, cout)     this layer's bf16 weights (streamed)
        # b_ref : (1, 1, cout)           this layer's f32 bias
        # o_ref : (B, R, R, cout)        final-layer output
        # act0  : (B, R+2, R+2, cin0)    padded layer-0 input (bf16)
        # act_a/b:(B, R+2, R+2, chid)    ping-pong padded activations (bf16)
        # acc_ref:(B*R*R, cout) f32      matmul accumulator
        l = pl.program_id(1)
        last = pl.num_programs(1) - 1
        b_row = b_ref[0]                                      # (1, cout) f32

        def _emit(y, dst_scratch):
            @pl.when(l == last)
            def _():
                o_ref[...] = y.reshape(B, R, R, cout).astype(o_ref.dtype)
            if dst_scratch is not None:
                @pl.when(l < last)
                def _():
                    dst_scratch[:, 1:R + 1, 1:R + 1, :] = (
                        y.reshape(B, R, R, cout).astype(act_dtype))

        # ---- layer 0: unpadded K = cin0 path straight from the ROI block ----
        @pl.when(l == 0)
        def _():
            _zero_halo(act0, cin0)
            if L > 1:
                _zero_halo(act_a, chid)
            if L > 2:
                _zero_halo(act_b, chid)
            act0[:, 1:R + 1, 1:R + 1, :] = x_ref[...].astype(act_dtype)
            y = _conv3x3(act0, lambda t: w0_ref[t], cin0, acc_ref, b_row)
            _emit(y, act_a if L > 1 else None)

        # ---- layers 1,3,5,... : read act_a, write act_b (or the output) -----
        if L > 1:
            @pl.when(l % 2 == 1)
            def _():
                y = _conv3x3(act_a, lambda t: wr_ref[0, t], chid, acc_ref, b_row)
                _emit(y, act_b if L > 2 else None)

        # ---- layers 2,4,6,... : read act_b, write act_a (or the output) -----
        if L > 2:
            @pl.when(jnp.logical_and(l > 0, l % 2 == 0))
            def _():
                y = _conv3x3(act_b, lambda t: wr_ref[0, t], chid, acc_ref, b_row)
                _emit(y, act_a)

    return kernel


def uv_conv_head_nhwc(x_nhwc, w0_packed, wr_packed, b_packed, *, roi_block=8,
                      vmem_limit_bytes=None):
    """Fused L x (3x3 conv + bias + ReLU) head on NHWC ROI features.

    x_nhwc   : (N, R, R, cin0)              f32 pooled ROI features
    w0_packed: (9, cin0, cout)              bf16 layer-0 weights (tap-major)
    wr_packed: (max(L-1,1), 9, chid, cout)  bf16 layer>=1 weights (tap-major)
    b_packed : (L, 1, cout)                 f32 biases
    """
    N, R, R2, cin0 = x_nhwc.shape
    assert R == R2
    L = b_packed.shape[0]
    _, _, chid, cout = wr_packed.shape
    assert chid == cout == w0_packed.shape[-1]

    # >= 2 grid steps on the parallel ROI axis so both v7x TensorCores get
    # work; pad the ROI count up to a multiple of the ROI block.
    B = max(1, min(roi_block, (N + 1) // 2))
    pad_n = (-N) % B
    if pad_n:
        x_nhwc = jnp.pad(x_nhwc, ((0, pad_n), (0, 0), (0, 0), (0, 0)))
    n_total = N + pad_n

    if vmem_limit_bytes is None:
        vmem_limit_bytes = _default_vmem_limit_bytes()

    kernel = _make_fused_uv_head_kernel(L, B, R, cin0, chid, cout)

    out = pl.pallas_call(
        kernel,
        out_shape=jax.ShapeDtypeStruct((n_total, R, R, cout), x_nhwc.dtype),
        grid=(n_total // B, L),
        in_specs=[
            pl.BlockSpec((B, R, R, cin0), lambda n, l: (n, 0, 0, 0)),
            pl.BlockSpec((9, cin0, cout), lambda n, l: (0, 0, 0)),   # layer-0, resident
            # Layer >=1 weights streamed per layer; l==0 already prefetches the
            # layer-1 block so the first real fetch overlaps layer-0 compute.
            pl.BlockSpec((1, 9, chid, cout),
                         lambda n, l: (jnp.maximum(l - 1, 0), 0, 0, 0)),
            pl.BlockSpec((1, 1, cout), lambda n, l: (l, 0, 0)),
        ],
        out_specs=pl.BlockSpec((B, R, R, cout), lambda n, l: (n, 0, 0, 0)),
        scratch_shapes=[
            pltpu.VMEM((B, R + 2, R + 2, cin0), jnp.bfloat16),   # padded layer-0 input
            pltpu.VMEM((B, R + 2, R + 2, chid), jnp.bfloat16),   # ping
            pltpu.VMEM((B, R + 2, R + 2, chid), jnp.bfloat16),   # pong
            pltpu.VMEM((B * R * R, cout), jnp.float32),          # f32 accumulator
        ],
        compiler_params=pltpu.CompilerParams(
            dimension_semantics=("parallel", "arbitrary"),
            vmem_limit_bytes=vmem_limit_bytes,
        ),
    )(x_nhwc, w0_packed, wr_packed, b_packed)

    return out[:N] if pad_n else out


# -----------------------------------------------------------------------------
# The head: X stacked (conv3x3 + ReLU), GaussianFill init (std=0.01), zero bias
# -- mirrors roi_uv_head_v1convX._init_weights.
# -----------------------------------------------------------------------------
class RoiUVHeadV1ConvX:
    def __init__(self, dim_in, hidden_dim, num_stacked_convs, key, roi_block=8):
        assert num_stacked_convs >= 1
        self.dim_in = dim_in
        self.dim_out = hidden_dim
        self.roi_block = roi_block
        L = num_stacked_convs

        self.weights_hwio = []      # f32, also used by the pure-JAX reference
        self.biases = []
        cin = dim_in
        for _ in range(L):
            key, wkey = jax.random.split(key)
            # PyTorch Conv2d weight is (Cout, Cin, KH, KW), normal(std=0.01).
            w_oihw = 0.01 * jax.random.normal(
                wkey, (hidden_dim, cin, 3, 3), dtype=jnp.float32)
            self.weights_hwio.append(jnp.transpose(w_oihw, (2, 3, 1, 0)))  # HWIO
            self.biases.append(jnp.zeros((hidden_dim,), jnp.float32))
            cin = hidden_dim

        # Layer 0 gets its own, unpadded tap-major pack (K = cin0); remaining
        # layers are stacked tap-major for per-layer streaming.
        self.w0_packed = self.weights_hwio[0].reshape(
            9, dim_in, hidden_dim).astype(jnp.bfloat16)          # (9, Cin0, Cout)
        if L > 1:
            self.wr_packed = jnp.stack(
                [w.reshape(9, hidden_dim, hidden_dim)
                 for w in self.weights_hwio[1:]]).astype(jnp.bfloat16)
        else:
            self.wr_packed = jnp.zeros(
                (1, 9, hidden_dim, hidden_dim), jnp.bfloat16)    # unused dummy
        self.b_packed = jnp.stack(
            [b.reshape(1, hidden_dim) for b in self.biases])     # (L, 1, Cout)

    def __call__(self, x_nchw):
        # One layout change per head call (not per layer).
        x = jnp.transpose(x_nchw, (0, 2, 3, 1))                  # NCHW -> NHWC
        y = uv_conv_head_nhwc(x, self.w0_packed, self.wr_packed, self.b_packed,
                              roi_block=self.roi_block)
        return jnp.transpose(y, (0, 3, 1, 2))                    # NHWC -> NCHW


# Pure-JAX reference with matching numerics (bf16 MXU operands, f32 epilogue,
# bf16 inter-layer activations).
def ref_forward(x_nchw, weights_hwio, biases):
    L = len(weights_hwio)
    x = x_nchw
    for i, (w, b) in enumerate(zip(weights_hwio, biases)):
        y = lax.conv_general_dilated(
            x.astype(jnp.bfloat16), w.astype(jnp.bfloat16),
            window_strides=(1, 1), padding="SAME",
            dimension_numbers=("NCHW", "HWIO", "NCHW"),
            preferred_element_type=jnp.float32)
        x = jnp.maximum(y + b[None, :, None, None], 0.0)
        if i < L - 1:
            x = x.astype(jnp.bfloat16).astype(jnp.float32)
    return x


if __name__ == "__main__":
    key = jax.random.PRNGKey(0)
    key, xkey = jax.random.split(key)

    # Small config: 2 ROIs, dim_in=4, ROI_XFORM_RESOLUTION=16, 2 stacked convs.
    # hidden_dim=256 keeps the matmul N dimension a full MXU width on v6e/v7x.
    num_rois, dim_in, res = 2, 4, 16
    hidden_dim, num_stacked_convs = 256, 2

    x = jax.random.normal(xkey, (num_rois, dim_in, res, res), dtype=jnp.float32)

    head = RoiUVHeadV1ConvX(dim_in, hidden_dim, num_stacked_convs, key)

    out = jax.block_until_ready(head(x))
    ref = jax.block_until_ready(ref_forward(x, head.weights_hwio, head.biases))

    assert out.shape == (num_rois, hidden_dim, res, res), out.shape
    max_err = float(jnp.max(jnp.abs(out - ref)))
    assert jnp.allclose(out, ref, rtol=2e-2, atol=1e-3), max_err
    print("KERNEL_OK")
</pallas_src>

<mosaic_0001>
module attributes {stable_mosaic.version = 11 : i64} {
  func.func @kernel(%arg0: i32, %arg1: i32, %arg2: memref<1x16x16x4xf32, #tpu.memory_space<vmem>>, %arg3: memref<9x4x256xbf16, #tpu.memory_space<vmem>>, %arg4: memref<1x9x256x256xbf16, #tpu.memory_space<vmem>>, %arg5: memref<1x1x256xf32, #tpu.memory_space<vmem>>, %arg6: memref<1x16x16x256xf32, #tpu.memory_space<vmem>>, %arg7: memref<1x18x18x4xbf16, #tpu.memory_space<vmem>>, %arg8: memref<1x18x18x256xbf16, #tpu.memory_space<vmem>>, %arg9: memref<1x18x18x256xbf16, #tpu.memory_space<vmem>>, %arg10: memref<256x256xf32, #tpu.memory_space<vmem>>) attributes {dimension_semantics = [#tpu.dimension_semantics<parallel>, #tpu.dimension_semantics<arbitrary>], iteration_bounds = array<i64: 2, 2>, scalar_prefetch = 0 : i64, scratch_operands = 4 : i64, tpu.core_type = #tpu.core_type<tc>, window_params = [{transform_indices = @transform_0, window_bounds = array<i64: 1, 16, 16, 4>}, {pipeline_mode = #tpu.pipeline_mode<synchronous>, transform_indices = @transform_1, window_bounds = array<i64: 9, 4, 256>}, {transform_indices = @transform_2, window_bounds = array<i64: 1, 9, 256, 256>}, {transform_indices = @transform_3, window_bounds = array<i64: 1, 1, 256>}, {transform_indices = @transform_4, window_bounds = array<i64: 1, 16, 16, 256>}]} {
    %c0 = arith.constant 0 : index
    %c0_0 = arith.constant 0 : index
    %c0_1 = arith.constant 0 : index
    %0 = vector.load %arg5[%c0, %c0_0, %c0_1] : memref<1x1x256xf32, #tpu.memory_space<vmem>>, vector<1x1x256xf32>
    %1 = vector.shape_cast %0 : vector<1x1x256xf32> to vector<1x256xf32>
    %c0_i32 = arith.constant 0 : i32
    %2 = arith.cmpi eq, %arg1, %c0_i32 : i32
    %3 = arith.extui %2 : i1 to i32
    %c0_i32_2 = arith.constant 0 : i32
    %4 = arith.cmpi ne, %3, %c0_i32_2 : i32
    scf.if %4 {
      %cst = arith.constant 0.000000e+00 : bf16
      %18 = vector.broadcast %cst : bf16 to vector<1x1x18x4xbf16>
      %c0_9 = arith.constant 0 : index
      %c0_10 = arith.constant 0 : index
      %c0_11 = arith.constant 0 : index
      %c0_12 = arith.constant 0 : index
      %19 = vector.load %arg7[%c0_9, %c0_10, %c0_11, %c0_12] : memref<1x18x18x4xbf16, #tpu.memory_space<vmem>>, vector<1x1x18x4xbf16>
      tpu.vector_store %arg7[%c0_9, %c0_10, %c0_11, %c0_12], %18 {strides = array<i32>} : memref<1x18x18x4xbf16, #tpu.memory_space<vmem>>, vector<1x1x18x4xbf16>,
      %cst_13 = arith.constant 0.000000e+00 : bf16
      %20 = vector.broadcast %cst_13 : bf16 to vector<1x1x18x4xbf16>
      %c0_14 = arith.constant 0 : index
      %c17 = arith.constant 17 : index
      %c0_15 = arith.constant 0 : index
      %c0_16 = arith.constant 0 : index
      %21 = vector.load %arg7[%c0_14, %c17, %c0_15, %c0_16] : memref<1x18x18x4xbf16, #tpu.memory_space<vmem>>, vector<1x1x18x4xbf16>
      tpu.vector_store %arg7[%c0_14, %c17, %c0_15, %c0_16], %20 {strides = array<i32>} : memref<1x18x18x4xbf16, #tpu.memory_space<vmem>>, vector<1x1x18x4xbf16>,
      %cst_17 = arith.constant 0.000000e+00 : bf16
      %22 = vector.broadcast %cst_17 : bf16 to vector<1x16x1x4xbf16>
      %c0_18 = arith.constant 0 : index
      %c1 = arith.constant 1 : index
      %c0_19 = arith.constant 0 : index
      %c0_20 = arith.constant 0 : index
      %23 = vector.load %arg7[%c0_18, %c1, %c0_19, %c0_20] : memref<1x18x18x4xbf16, #tpu.memory_space<vmem>>, vector<1x16x1x4xbf16>
      tpu.vector_store %arg7[%c0_18, %c1, %c0_19, %c0_20], %22 {strides = array<i32>} : memref<1x18x18x4xbf16, #tpu.memory_space<vmem>>, vector<1x16x1x4xbf16>,
      %cst_21 = arith.constant 0.000000e+00 : bf16
      %24 = vector.broadcast %cst_21 : bf16 to vector<1x16x1x4xbf16>
      %c0_22 = arith.constant 0 : index
      %c1_23 = arith.constant 1 : index
      %c17_24 = arith.constant 17 : index
      %c0_25 = arith.constant 0 : index
      %25 = vector.load %arg7[%c0_22, %c1_23, %c17_24, %c0_25] : memref<1x18x18x4xbf16, #tpu.memory_space<vmem>>, vector<1x16x1x4xbf16>
      tpu.vector_store %arg7[%c0_22, %c1_23, %c17_24, %c0_25], %24 {strides = array<i32>} : memref<1x18x18x4xbf16, #tpu.memory_space<vmem>>, vector<1x16x1x4xbf16>,
      %cst_26 = arith.constant 0.000000e+00 : bf16
      %26 = vector.broadcast %cst_26 : bf16 to vector<1x1x18x256xbf16>
      %c0_27 = arith.constant 0 : index
      %c0_28 = arith.constant 0 : index
      %c0_29 = arith.constant 0 : index
      %c0_30 = arith.constant 0 : index
      %27 = vector.load %arg8[%c0_27, %c0_28, %c0_29, %c0_30] : memref<1x18x18x256xbf16, #tpu.memory_space<vmem>>, vector<1x1x18x256xbf16>
      tpu.vector_store %arg8[%c0_27, %c0_28, %c0_29, %c0_30], %26 {strides = array<i32>} : memref<1x18x18x256xbf16, #tpu.memory_space<vmem>>, vector<1x1x18x256xbf16>,
      %cst_31 = arith.constant 0.000000e+00 : bf16
      %28 = vector.broadcast %cst_31 : bf16 to vector<1x1x18x256xbf16>
      %c0_32 = arith.constant 0 : index
      %c17_33 = arith.constant 17 : index
      %c0_34 = arith.constant 0 : index
      %c0_35 = arith.constant 0 : index
      %29 = vector.load %arg8[%c0_32, %c17_33, %c0_34, %c0_35] : memref<1x18x18x256xbf16, #tpu.memory_space<vmem>>, vector<1x1x18x256xbf16>
      tpu.vector_store %arg8[%c0_32, %c17_33, %c0_34, %c0_35], %28 {strides = array<i32>} : memref<1x18x18x256xbf16, #tpu.memory_space<vmem>>, vector<1x1x18x256xbf16>,
      %cst_36 = arith.constant 0.000000e+00 : bf16
      %30 = vector.broadcast %cst_36 : bf16 to vector<1x16x1x256xbf16>
      %c0_37 = arith.constant 0 : index
      %c1_38 = arith.constant 1 : index
      %c0_39 = arith.constant 0 : index
      %c0_40 = arith.constant 0 : index
      %31 = vector.load %arg8[%c0_37, %c1_38, %c0_39, %c0_40] : memref<1x18x18x256xbf16, #tpu.memory_space<vmem>>, vector<1x16x1x256xbf16>
      tpu.vector_store %arg8[%c0_37, %c1_38, %c0_39, %c0_40], %30 {strides = array<i32>} : memref<1x18x18x256xbf16, #tpu.memory_space<vmem>>, vector<1x16x1x256xbf16>,
      %cst_41 = arith.constant 0.000000e+00 : bf16
      %32 = vector.broadcast %cst_41 : bf16 to vector<1x16x1x256xbf16>
      %c0_42 = arith.constant 0 : index
      %c1_43 = arith.constant 1 : index
      %c17_44 = arith.constant 17 : index
      %c0_45 = arith.constant 0 : index
      %33 = vector.load %arg8[%c0_42, %c1_43, %c17_44, %c0_45] : memref<1x18x18x256xbf16, #tpu.memory_space<vmem>>, vector<1x16x1x256xbf16>
      tpu.vector_store %arg8[%c0_42, %c1_43, %c17_44, %c0_45], %32 {strides = array<i32>} : memref<1x18x18x256xbf16, #tpu.memory_space<vmem>>, vector<1x16x1x256xbf16>,
      %c0_46 = arith.constant 0 : index
      %c0_47 = arith.constant 0 : index
      %c0_48 = arith.constant 0 : index
      %c0_49 = arith.constant 0 : index
      %34 = vector.load %arg2[%c0_46, %c0_47, %c0_48, %c0_49] : memref<1x16x16x4xf32, #tpu.memory_space<vmem>>, vector<1x16x16x4xf32>
      %35 = arith.truncf %34 : vector<1x16x16x4xf32> to vector<1x16x16x4xbf16>
      %c0_50 = arith.constant 0 : index
      %c1_51 = arith.constant 1 : index
      %c1_52 = arith.constant 1 : index
      %c0_53 = arith.constant 0 : index
      %36 = vector.load %arg7[%c0_50, %c1_51, %c1_52, %c0_53] : memref<1x18x18x4xbf16, #tpu.memory_space<vmem>>, vector<1x16x16x4xbf16>
      tpu.vector_store %arg7[%c0_50, %c1_51, %c1_52, %c0_53], %35 {strides = array<i32>} : memref<1x18x18x4xbf16, #tpu.memory_space<vmem>>, vector<1x16x16x4xbf16>,
      %c0_54 = arith.constant 0 : index
      %c0_55 = arith.constant 0 : index
      %c0_56 = arith.constant 0 : index
      %c0_57 = arith.constant 0 : index
      %37 = vector.load %arg7[%c0_54, %c0_55, %c0_56, %c0_57] : memref<1x18x18x4xbf16, #tpu.memory_space<vmem>>, vector<1x16x16x4xbf16>
      %38 = vector.shape_cast %37 : vector<1x16x16x4xbf16> to vector<256x4xbf16>
      %c0_58 = arith.constant 0 : index
      %c0_59 = arith.constant 0 : index
      %c0_60 = arith.constant 0 : index
      %39 = vector.load %arg3[%c0_58, %c0_59, %c0_60] : memref<9x4x256xbf16, #tpu.memory_space<vmem>>, vector<1x4x256xbf16>
      %40 = vector.shape_cast %39 : vector<1x4x256xbf16> to vector<4x256xbf16>
      %cst_61 = arith.constant dense<0.000000e+00> : vector<256x256xf32>
      %41 = tpu.matmul %38, %40, %cst_61 {dimension_numbers = #tpu.dot_dimension_numbers<[1], [0], [0], [1], [0, 0, 1, 1], [], []>} : vector<256x4xbf16>, vector<4x256xbf16>, vector<256x256xf32> -> vector<256x256xf32>
      %c0_62 = arith.constant 0 : index
      %c0_63 = arith.constant 0 : index
      %42 = vector.load %arg10[%c0_62, %c0_63] : memref<256x256xf32, #tpu.memory_space<vmem>>, vector<256x256xf32>
      tpu.vector_store %arg10[%c0_62, %c0_63], %41 {strides = array<i32>} : memref<256x256xf32, #tpu.memory_space<vmem>>, vector<256x256xf32>,
      %c0_64 = arith.constant 0 : index
      %c0_65 = arith.constant 0 : index
      %c1_66 = arith.constant 1 : index
      %c0_67 = arith.constant 0 : index
      %43 = vector.load %arg7[%c0_64, %c0_65, %c1_66, %c0_67] : memref<1x18x18x4xbf16, #tpu.memory_space<vmem>>, vector<1x16x16x4xbf16>
      %44 = vector.shape_cast %43 : vector<1x16x16x4xbf16> to vector<256x4xbf16>
      %c1_68 = arith.constant 1 : index
      %c0_69 = arith.constant 0 : index
      %c0_70 = arith.constant 0 : index
      %45 = vector.load %arg3[%c1_68, %c0_69, %c0_70] : memref<9x4x256xbf16, #tpu.memory_space<vmem>>, vector<1x4x256xbf16>
      %46 = vector.shape_cast %45 : vector<1x4x256xbf16> to vector<4x256xbf16>
      %cst_71 = arith.constant dense<0.000000e+00> : vector<256x256xf32>
      %47 = tpu.matmul %44, %46, %cst_71 {dimension_numbers = #tpu.dot_dimension_numbers<[1], [0], [0], [1], [0, 0, 1, 1], [], []>} : vector<256x4xbf16>, vector<4x256xbf16>, vector<256x256xf32> -> vector<256x256xf32>
      %c0_72 = arith.constant 0 : index
      %c0_73 = arith.constant 0 : index
      %48 = vector.load %arg10[%c0_72, %c0_73] : memref<256x256xf32, #tpu.memory_space<vmem>>, vector<256x256xf32>
      %49 = arith.addf %48, %47 : vector<256x256xf32>
      %c0_74 = arith.constant 0 : index
      %c0_75 = arith.constant 0 : index
      %50 = vector.load %arg10[%c0_74, %c0_75] : memref<256x256xf32, #tpu.memory_space<vmem>>, vector<256x256xf32>
      tpu.vector_store %arg10[%c0_74, %c0_75], %49 {strides = array<i32>} : memref<256x256xf32, #tpu.memory_space<vmem>>, vector<256x256xf32>,
      %c0_76 = arith.constant 0 : index
      %c0_77 = arith.constant 0 : index
      %c2 = arith.constant 2 : index
      %c0_78 = arith.constant 0 : index
      %51 = vector.load %arg7[%c0_76, %c0_77, %c2, %c0_78] : memref<1x18x18x4xbf16, #tpu.memory_space<vmem>>, vector<1x16x16x4xbf16>
      %52 = vector.shape_cast %51 : vector<1x16x16x4xbf16> to vector<256x4xbf16>
      %c2_79 = arith.constant 2 : index
      %c0_80 = arith.constant 0 : index
      %c0_81 = arith.constant 0 : index
      %53 = vector.load %arg3[%c2_79, %c0_80, %c0_81] : memref<9x4x256xbf16, #tpu.memory_space<vmem>>, vector<1x4x256xbf16>
      %54 = vector.shape_cast %53 : vector<1x4x256xbf16> to vector<4x256xbf16>
      %cst_82 = arith.constant dense<0.000000e+00> : vector<256x256xf32>
      %55 = tpu.matmul %52, %54, %cst_82 {dimension_numbers = #tpu.dot_dimension_numbers<[1], [0], [0], [1], [0, 0, 1, 1], [], []>} : vector<256x4xbf16>, vector<4x256xbf16>, vector<256x256xf32> -> vector<256x256xf32>
      %c0_83 = arith.constant 0 : index
      %c0_84 = arith.constant 0 : index
      %56 = vector.load %arg10[%c0_83, %c0_84] : memref<256x256xf32, #tpu.memory_space<vmem>>, vector<256x256xf32>
      %57 = arith.addf %56, %55 : vector<256x256xf32>
      %c0_85 = arith.constant 0 : index
      %c0_86 = arith.constant 0 : index
      %58 = vector.load %arg10[%c0_85, %c0_86] : memref<256x256xf32, #tpu.memory_space<vmem>>, vector<256x256xf32>
      tpu.vector_store %arg10[%c0_85, %c0_86], %57 {strides = array<i32>} : memref<256x256xf32, #tpu.memory_space<vmem>>, vector<256x256xf32>,
      %c0_87 = arith.constant 0 : index
      %c1_88 = arith.constant 1 : index
      %c0_89 = arith.constant 0 : index
      %c0_90 = arith.constant 0 : index
      %59 = vector.load %arg7[%c0_87, %c1_88, %c0_89, %c0_90] : memref<1x18x18x4xbf16, #tpu.memory_space<vmem>>, vector<1x16x16x4xbf16>
      %60 = vector.shape_cast %59 : vector<1x16x16x4xbf16> to vector<256x4xbf16>
      %c3 = arith.constant 3 : index
      %c0_91 = arith.constant 0 : index
      %c0_92 = arith.constant 0 : index
      %61 = vector.load %arg3[%c3, %c0_91, %c0_92] : memref<9x4x256xbf16, #tpu.memory_space<vmem>>, vector<1x4x256xbf16>
      %62 = vector.shape_cast %61 : vector<1x4x256xbf16> to vector<4x256xbf16>
      %cst_93 = arith.constant dense<0.000000e+00> : vector<256x256xf32>
      %63 = tpu.matmul %60, %62, %cst_93 {dimension_numbers = #tpu.dot_dimension_numbers<[1], [0], [0], [1], [0, 0, 1, 1], [], []>} : vector<256x4xbf16>, vector<4x256xbf16>, vector<256x256xf32> -> vector<256x256xf32>
      %c0_94 = arith.constant 0 : index
      %c0_95 = arith.constant 0 : index
      %64 = vector.load %arg10[%c0_94, %c0_95] : memref<256x256xf32, #tpu.memory_space<vmem>>, vector<256x256xf32>
      %65 = arith.addf %64, %63 : vector<256x256xf32>
      %c0_96 = arith.constant 0 : index
      %c0_97 = arith.constant 0 : index
      %66 = vector.load %arg10[%c0_96, %c0_97] : memref<256x256xf32, #tpu.memory_space<vmem>>, vector<256x256xf32>
      tpu.vector_store %arg10[%c0_96, %c0_97], %65 {strides = array<i32>} : memref<256x256xf32, #tpu.memory_space<vmem>>, vector<256x256xf32>,
      %c0_98 = arith.constant 0 : index
      %c1_99 = arith.constant 1 : index
      %c1_100 = arith.constant 1 : index
      %c0_101 = arith.constant 0 : index
      %67 = vector.load %arg7[%c0_98, %c1_99, %c1_100, %c0_101] : memref<1x18x18x4xbf16, #tpu.memory_space<vmem>>, vector<1x16x16x4xbf16>
      %68 = vector.shape_cast %67 : vector<1x16x16x4xbf16> to vector<256x4xbf16>
      %c4 = arith.constant 4 : index
      %c0_102 = arith.constant 0 : index
      %c0_103 = arith.constant 0 : index
      %69 = vector.load %arg3[%c4, %c0_102, %c0_103] : memref<9x4x256xbf16, #tpu.memory_space<vmem>>, vector<1x4x256xbf16>
      %70 = vector.shape_cast %69 : vector<1x4x256xbf16> to vector<4x256xbf16>
      %cst_104 = arith.constant dense<0.000000e+00> : vector<256x256xf32>
      %71 = tpu.matmul %68, %70, %cst_104 {dimension_numbers = #tpu.dot_dimension_numbers<[1], [0], [0], [1], [0, 0, 1, 1], [], []>} : vector<256x4xbf16>, vector<4x256xbf16>, vector<256x256xf32> -> vector<256x256xf32>
      %c0_105 = arith.constant 0 : index
      %c0_106 = arith.constant 0 : index
      %72 = vector.load %arg10[%c0_105, %c0_106] : memref<256x256xf32, #tpu.memory_space<vmem>>, vector<256x256xf32>
      %73 = arith.addf %72, %71 : vector<256x256xf32>
      %c0_107 = arith.constant 0 : index
      %c0_108 = arith.constant 0 : index
      %74 = vector.load %arg10[%c0_107, %c0_108] : memref<256x256xf32, #tpu.memory_space<vmem>>, vector<256x256xf32>
      tpu.vector_store %arg10[%c0_107, %c0_108], %73 {strides = array<i32>} : memref<256x256xf32, #tpu.memory_space<vmem>>, vector<256x256xf32>,
      %c0_109 = arith.constant 0 : index
      %c1_110 = arith.constant 1 : index
      %c2_111 = arith.constant 2 : index
      %c0_112 = arith.constant 0 : index
      %75 = vector.load %arg7[%c0_109, %c1_110, %c2_111, %c0_112] : memref<1x18x18x4xbf16, #tpu.memory_space<vmem>>, vector<1x16x16x4xbf16>
      %76 = vector.shape_cast %75 : vector<1x16x16x4xbf16> to vector<256x4xbf16>
      %c5 = arith.constant 5 : index
      %c0_113 = arith.constant 0 : index
      %c0_114 = arith.constant 0 : index
      %77 = vector.load %arg3[%c5, %c0_113, %c0_114] : memref<9x4x256xbf16, #tpu.memory_space<vmem>>, vector<1x4x256xbf16>
      %78 = vector.shape_cast %77 : vector<1x4x256xbf16> to vector<4x256xbf16>
      %cst_115 = arith.constant dense<0.000000e+00> : vector<256x256xf32>
      %79 = tpu.matmul %76, %78, %cst_115 {dimension_numbers = #tpu.dot_dimension_numbers<[1], [0], [0], [1], [0, 0, 1, 1], [], []>} : vector<256x4xbf16>, vector<4x256xbf16>, vector<256x256xf32> -> vector<256x256xf32>
      %c0_116 = arith.constant 0 : index
      %c0_117 = arith.constant 0 : index
      %80 = vector.load %arg10[%c0_116, %c0_117] : memref<256x256xf32, #tpu.memory_space<vmem>>, vector<256x256xf32>
      %81 = arith.addf %80, %79 : vector<256x256xf32>
      %c0_118 = arith.constant 0 : index
      %c0_119 = arith.constant 0 : index
      %82 = vector.load %arg10[%c0_118, %c0_119] : memref<256x256xf32, #tpu.memory_space<vmem>>, vector<256x256xf32>
      tpu.vector_store %arg10[%c0_118, %c0_119], %81 {strides = array<i32>} : memref<256x256xf32, #tpu.memory_space<vmem>>, vector<256x256xf32>,
      %c0_120 = arith.constant 0 : index
      %c2_121 = arith.constant 2 : index
      %c0_122 = arith.constant 0 : index
      %c0_123 = arith.constant 0 : index
      %83 = vector.load %arg7[%c0_120, %c2_121, %c0_122, %c0_123] : memref<1x18x18x4xbf16, #tpu.memory_space<vmem>>, vector<1x16x16x4xbf16>
      %84 = vector.shape_cast %83 : vector<1x16x16x4xbf16> to vector<256x4xbf16>
      %c6 = arith.constant 6 : index
      %c0_124 = arith.constant 0 : index
      %c0_125 = arith.constant 0 : index
      %85 = vector.load %arg3[%c6, %c0_124, %c0_125] : memref<9x4x256xbf16, #tpu.memory_space<vmem>>, vector<1x4x256xbf16>
      %86 = vector.shape_cast %85 : vector<1x4x256xbf16> to vector<4x256xbf16>
      %cst_126 = arith.constant dense<0.000000e+00> : vector<256x256xf32>
      %87 = tpu.matmul %84, %86, %cst_126 {dimension_numbers = #tpu.dot_dimension_numbers<[1], [0], [0], [1], [0, 0, 1, 1], [], []>} : vector<256x4xbf16>, vector<4x256xbf16>, vector<256x256xf32> -> vector<256x256xf32>
      %c0_127 = arith.constant 0 : index
      %c0_128 = arith.constant 0 : index
      %88 = vector.load %arg10[%c0_127, %c0_128] : memref<256x256xf32, #tpu.memory_space<vmem>>, vector<256x256xf32>
      %89 = arith.addf %88, %87 : vector<256x256xf32>
      %c0_129 = arith.constant 0 : index
      %c0_130 = arith.constant 0 : index
      %90 = vector.load %arg10[%c0_129, %c0_130] : memref<256x256xf32, #tpu.memory_space<vmem>>, vector<256x256xf32>
      tpu.vector_store %arg10[%c0_129, %c0_130], %89 {strides = array<i32>} : memref<256x256xf32, #tpu.memory_space<vmem>>, vector<256x256xf32>,
      %c0_131 = arith.constant 0 : index
      %c2_132 = arith.constant 2 : index
      %c1_133 = arith.constant 1 : index
      %c0_134 = arith.constant 0 : index
      %91 = vector.load %arg7[%c0_131, %c2_132, %c1_133, %c0_134] : memref<1x18x18x4xbf16, #tpu.memory_space<vmem>>, vector<1x16x16x4xbf16>
      %92 = vector.shape_cast %91 : vector<1x16x16x4xbf16> to vector<256x4xbf16>
      %c7 = arith.constant 7 : index
      %c0_135 = arith.constant 0 : index
      %c0_136 = arith.constant 0 : index
      %93 = vector.load %arg3[%c7, %c0_135, %c0_136] : memref<9x4x256xbf16, #tpu.memory_space<vmem>>, vector<1x4x256xbf16>
      %94 = vector.shape_cast %93 : vector<1x4x256xbf16> to vector<4x256xbf16>
      %cst_137 = arith.constant dense<0.000000e+00> : vector<256x256xf32>
      %95 = tpu.matmul %92, %94, %cst_137 {dimension_numbers = #tpu.dot_dimension_numbers<[1], [0], [0], [1], [0, 0, 1, 1], [], []>} : vector<256x4xbf16>, vector<4x256xbf16>, vector<256x256xf32> -> vector<256x256xf32>
      %c0_138 = arith.constant 0 : index
      %c0_139 = arith.constant 0 : index
      %96 = vector.load %arg10[%c0_138, %c0_139] : memref<256x256xf32, #tpu.memory_space<vmem>>, vector<256x256xf32>
      %97 = arith.addf %96, %95 : vector<256x256xf32>
      %c0_140 = arith.constant 0 : index
      %c0_141 = arith.constant 0 : index
      %98 = vector.load %arg10[%c0_140, %c0_141] : memref<256x256xf32, #tpu.memory_space<vmem>>, vector<256x256xf32>
      tpu.vector_store %arg10[%c0_140, %c0_141], %97 {strides = array<i32>} : memref<256x256xf32, #tpu.memory_space<vmem>>, vector<256x256xf32>,
      %c0_142 = arith.constant 0 : index
      %c2_143 = arith.constant 2 : index
      %c2_144 = arith.constant 2 : index
      %c0_145 = arith.constant 0 : index
      %99 = vector.load %arg7[%c0_142, %c2_143, %c2_144, %c0_145] : memref<1x18x18x4xbf16, #tpu.memory_space<vmem>>, vector<1x16x16x4xbf16>
      %100 = vector.shape_cast %99 : vector<1x16x16x4xbf16> to vector<256x4xbf16>
      %c8 = arith.constant 8 : index
      %c0_146 = arith.constant 0 : index
      %c0_147 = arith.constant 0 : index
      %101 = vector.load %arg3[%c8, %c0_146, %c0_147] : memref<9x4x256xbf16, #tpu.memory_space<vmem>>, vector<1x4x256xbf16>
      %102 = vector.shape_cast %101 : vector<1x4x256xbf16> to vector<4x256xbf16>
      %cst_148 = arith.constant dense<0.000000e+00> : vector<256x256xf32>
      %103 = tpu.matmul %100, %102, %cst_148 {dimension_numbers = #tpu.dot_dimension_numbers<[1], [0], [0], [1], [0, 0, 1, 1], [], []>} : vector<256x4xbf16>, vector<4x256xbf16>, vector<256x256xf32> -> vector<256x256xf32>
      %c0_149 = arith.constant 0 : index
      %c0_150 = arith.constant 0 : index
      %104 = vector.load %arg10[%c0_149, %c0_150] : memref<256x256xf32, #tpu.memory_space<vmem>>, vector<256x256xf32>
      %105 = arith.addf %104, %103 : vector<256x256xf32>
      %c0_151 = arith.constant 0 : index
      %c0_152 = arith.constant 0 : index
      %106 = vector.load %arg10[%c0_151, %c0_152] : memref<256x256xf32, #tpu.memory_space<vmem>>, vector<256x256xf32>
      tpu.vector_store %arg10[%c0_151, %c0_152], %105 {strides = array<i32>} : memref<256x256xf32, #tpu.memory_space<vmem>>, vector<256x256xf32>,
      %c0_153 = arith.constant 0 : index
      %c0_154 = arith.constant 0 : index
      %107 = vector.load %arg10[%c0_153, %c0_154] : memref<256x256xf32, #tpu.memory_space<vmem>>, vector<256x256xf32>
      %108 = vector.broadcast %1 : vector<1x256xf32> to vector<256x256xf32>
      %109 = arith.addf %107, %108 : vector<256x256xf32>
      %cst_155 = arith.constant 0.000000e+00 : f32
      %110 = vector.broadcast %cst_155 : f32 to vector<256x256xf32>
      %111 = arith.maximumf %109, %110 : vector<256x256xf32>
      %c1_i32_156 = arith.constant 1 : i32
      %112 = arith.cmpi eq, %arg1, %c1_i32_156 : i32
      %113 = arith.extui %112 : i1 to i32
      %c0_i32_157 = arith.constant 0 : i32
      %114 = arith.cmpi ne, %113, %c0_i32_157 : i32
      scf.if %114 {
        %118 = vector.shape_cast %111 : vector<256x256xf32> to vector<1x16x16x256xf32>
        %c0_160 = arith.constant 0 : index
        %c0_161 = arith.constant 0 : index
        %c0_162 = arith.constant 0 : index
        %c0_163 = arith.constant 0 : index
        %119 = vector.load %arg6[%c0_160, %c0_161, %c0_162, %c0_163] : memref<1x16x16x256xf32, #tpu.memory_space<vmem>>, vector<1x16x16x256xf32>
        tpu.vector_store %arg6[%c0_160, %c0_161, %c0_162, %c0_163], %118 {strides = array<i32>} : memref<1x16x16x256xf32, #tpu.memory_space<vmem>>, vector<1x16x16x256xf32>,
      } else {
      }
      %c1_i32_158 = arith.constant 1 : i32
      %115 = arith.cmpi slt, %arg1, %c1_i32_158 : i32
      %116 = arith.extui %115 : i1 to i32
      %c0_i32_159 = arith.constant 0 : i32
      %117 = arith.cmpi ne, %116, %c0_i32_159 : i32
      scf.if %117 {
        %118 = vector.shape_cast %111 : vector<256x256xf32> to vector<1x16x16x256xf32>
        %119 = arith.truncf %118 : vector<1x16x16x256xf32> to vector<1x16x16x256xbf16>
        %c0_160 = arith.constant 0 : index
        %c1_161 = arith.constant 1 : index
        %c1_162 = arith.constant 1 : index
        %c0_163 = arith.constant 0 : index
        %120 = vector.load %arg8[%c0_160, %c1_161, %c1_162, %c0_163] : memref<1x18x18x256xbf16, #tpu.memory_space<vmem>>, vector<1x16x16x256xbf16>
        tpu.vector_store %arg8[%c0_160, %c1_161, %c1_162, %c0_163], %119 {strides = array<i32>} : memref<1x18x18x256xbf16, #tpu.memory_space<vmem>>, vector<1x16x16x256xbf16>,
      } else {
      }
    } else {
    }
    %c2_i32 = arith.constant 2 : i32
    %c0_i32_3 = arith.constant 0 : i32
    %5 = arith.cmpi eq, %c2_i32, %c0_i32_3 : i32
    %c1_i32 = arith.constant 1 : i32
    %6 = arith.select %5, %c1_i32, %c2_i32 : i32
    %7 = arith.remsi %arg1, %6 : i32
    %c0_i32_4 = arith.constant 0 : i32
    %8 = arith.cmpi ne, %7, %c0_i32_4 : i32
    %c0_i32_5 = arith.constant 0 : i32
    %9 = arith.cmpi slt, %7, %c0_i32_5 : i32
    %c0_i32_6 = arith.constant 0 : i32
    %10 = arith.cmpi slt, %6, %c0_i32_6 : i32
    %11 = arith.xori %9, %10 : i1
    %12 = arith.andi %11, %8 : i1
    %13 = arith.addi %7, %6 : i32
    %14 = arith.select %12, %13, %7 : i32
    %c1_i32_7 = arith.constant 1 : i32
    %15 = arith.cmpi eq, %14, %c1_i32_7 : i32
    %16 = arith.extui %15 : i1 to i32
    %c0_i32_8 = arith.constant 0 : i32
    %17 = arith.cmpi ne, %16, %c0_i32_8 : i32
    scf.if %17 {
      %c0_9 = arith.constant 0 : index
      %c0_10 = arith.constant 0 : index
      %c0_11 = arith.constant 0 : index
      %c0_12 = arith.constant 0 : index
      %18 = vector.load %arg8[%c0_9, %c0_10, %c0_11, %c0_12] : memref<1x18x18x256xbf16, #tpu.memory_space<vmem>>, vector<1x16x16x256xbf16>
      %19 = vector.shape_cast %18 : vector<1x16x16x256xbf16> to vector<256x256xbf16>
      %c0_13 = arith.constant 0 : index
      %c0_14 = arith.constant 0 : index
      %c0_15 = arith.constant 0 : index
      %c0_16 = arith.constant 0 : index
      %20 = vector.load %arg4[%c0_13, %c0_14, %c0_15, %c0_16] : memref<1x9x256x256xbf16, #tpu.memory_space<vmem>>, vector<1x1x256x256xbf16>
      %21 = vector.shape_cast %20 : vector<1x1x256x256xbf16> to vector<256x256xbf16>
      %cst = arith.constant dense<0.000000e+00> : vector<256x256xf32>
      %22 = tpu.matmul %19, %21, %cst {dimension_numbers = #tpu.dot_dimension_numbers<[1], [0], [0], [1], [0, 0, 1, 1], [], []>} : vector<256x256xbf16>, vector<256x256xbf16>, vector<256x256xf32> -> vector<256x256xf32>
      %c0_17 = arith.constant 0 : index
      %c0_18 = arith.constant 0 : index
      %23 = vector.load %arg10[%c0_17, %c0_18] : memref<256x256xf32, #tpu.memory_space<vmem>>, vector<256x256xf32>
      tpu.vector_store %arg10[%c0_17, %c0_18], %22 {strides = array<i32>} : memref<256x256xf32, #tpu.memory_space<vmem>>, vector<256x256xf32>,
      %c0_19 = arith.constant 0 : index
      %c0_20 = arith.constant 0 : index
      %c1 = arith.constant 1 : index
      %c0_21 = arith.constant 0 : index
      %24 = vector.load %arg8[%c0_19, %c0_20, %c1, %c0_21] : memref<1x18x18x256xbf16, #tpu.memory_space<vmem>>, vector<1x16x16x256xbf16>
      %25 = vector.shape_cast %24 : vector<1x16x16x256xbf16> to vector<256x256xbf16>
      %c0_22 = arith.constant 0 : index
      %c1_23 = arith.constant 1 : index
      %c0_24 = arith.constant 0 : index
      %c0_25 = arith.constant 0 : index
      %26 = vector.load %arg4[%c0_22, %c1_23, %c0_24, %c0_25] : memref<1x9x256x256xbf16, #tpu.memory_space<vmem>>, vector<1x1x256x256xbf16>
      %27 = vector.shape_cast %26 : vector<1x1x256x256xbf16> to vector<256x256xbf16>
      %cst_26 = arith.constant dense<0.000000e+00> : vector<256x256xf32>
      %28 = tpu.matmul %25, %27, %cst_26 {dimension_numbers = #tpu.dot_dimension_numbers<[1], [0], [0], [1], [0, 0, 1, 1], [], []>} : vector<256x256xbf16>, vector<256x256xbf16>, vector<256x256xf32> -> vector<256x256xf32>
      %c0_27 = arith.constant 0 : index
      %c0_28 = arith.constant 0 : index
      %29 = vector.load %arg10[%c0_27, %c0_28] : memref<256x256xf32, #tpu.memory_space<vmem>>, vector<256x256xf32>
      %30 = arith.addf %29, %28 : vector<256x256xf32>
      %c0_29 = arith.constant 0 : index
      %c0_30 = arith.constant 0 : index
      %31 = vector.load %arg10[%c0_29, %c0_30] : memref<256x256xf32, #tpu.memory_space<vmem>>, vector<256x256xf32>
      tpu.vector_store %arg10[%c0_29, %c0_30], %30 {strides = array<i32>} : memref<256x256xf32, #tpu.memory_space<vmem>>, vector<256x256xf32>,
      %c0_31 = arith.constant 0 : index
      %c0_32 = arith.constant 0 : index
      %c2 = arith.constant 2 : index
      %c0_33 = arith.constant 0 : index
      %32 = vector.load %arg8[%c0_31, %c0_32, %c2, %c0_33] : memref<1x18x18x256xbf16, #tpu.memory_space<vmem>>, vector<1x16x16x256xbf16>
      %33 = vector.shape_cast %32 : vector<1x16x16x256xbf16> to vector<256x256xbf16>
      %c0_34 = arith.constant 0 : index
      %c2_35 = arith.constant 2 : index
      %c0_36 = arith.constant 0 : index
      %c0_37 = arith.constant 0 : index
      %34 = vector.load %arg4[%c0_34, %c2_35, %c0_36, %c0_37] : memref<1x9x256x256xbf16, #tpu.memory_space<vmem>>, vector<1x1x256x256xbf16>
      %35 = vector.shape_cast %34 : vector<1x1x256x256xbf16> to vector<256x256xbf16>
      %cst_38 = arith.constant dense<0.000000e+00> : vector<256x256xf32>
      %36 = tpu.matmul %33, %35, %cst_38 {dimension_numbers = #tpu.dot_dimension_numbers<[1], [0], [0], [1], [0, 0, 1, 1], [], []>} : vector<256x256xbf16>, vector<256x256xbf16>, vector<256x256xf32> -> vector<256x256xf32>
      %c0_39 = arith.constant 0 : index
      %c0_40 = arith.constant 0 : index
      %37 = vector.load %arg10[%c0_39, %c0_40] : memref<256x256xf32, #tpu.memory_space<vmem>>, vector<256x256xf32>
      %38 = arith.addf %37, %36 : vector<256x256xf32>
      %c0_41 = arith.constant 0 : index
      %c0_42 = arith.constant 0 : index
      %39 = vector.load %arg10[%c0_41, %c0_42] : memref<256x256xf32, #tpu.memory_space<vmem>>, vector<256x256xf32>
      tpu.vector_store %arg10[%c0_41, %c0_42], %38 {strides = array<i32>} : memref<256x256xf32, #tpu.memory_space<vmem>>, vector<256x256xf32>,
      %c0_43 = arith.constant 0 : index
      %c1_44 = arith.constant 1 : index
      %c0_45 = arith.constant 0 : index
      %c0_46 = arith.constant 0 : index
      %40 = vector.load %arg8[%c0_43, %c1_44, %c0_45, %c0_46] : memref<1x18x18x256xbf16, #tpu.memory_space<vmem>>, vector<1x16x16x256xbf16>
      %41 = vector.shape_cast %40 : vector<1x16x16x256xbf16> to vector<256x256xbf16>
      %c0_47 = arith.constant 0 : index
      %c3 = arith.constant 3 : index
      %c0_48 = arith.constant 0 : index
      %c0_49 = arith.constant 0 : index
      %42 = vector.load %arg4[%c0_47, %c3, %c0_48, %c0_49] : memref<1x9x256x256xbf16, #tpu.memory_space<vmem>>, vector<1x1x256x256xbf16>
      %43 = vector.shape_cast %42 : vector<1x1x256x256xbf16> to vector<256x256xbf16>
      %cst_50 = arith.constant dense<0.000000e+00> : vector<256x256xf32>
      %44 = tpu.matmul %41, %43, %cst_50 {dimension_numbers = #tpu.dot_dimension_numbers<[1], [0], [0], [1], [0, 0, 1, 1], [], []>} : vector<256x256xbf16>, vector<256x256xbf16>, vector<256x256xf32> -> vector<256x256xf32>
      %c0_51 = arith.constant 0 : index
      %c0_52 = arith.constant 0 : index
      %45 = vector.load %arg10[%c0_51, %c0_52] : memref<256x256xf32, #tpu.memory_space<vmem>>, vector<256x256xf32>
      %46 = arith.addf %45, %44 : vector<256x256xf32>
      %c0_53 = arith.constant 0 : index
      %c0_54 = arith.constant 0 : index
      %47 = vector.load %arg10[%c0_53, %c0_54] : memref<256x256xf32, #tpu.memory_space<vmem>>, vector<256x256xf32>
      tpu.vector_store %arg10[%c0_53, %c0_54], %46 {strides = array<i32>} : memref<256x256xf32, #tpu.memory_space<vmem>>, vector<256x256xf32>,
      %c0_55 = arith.constant 0 : index
      %c1_56 = arith.constant 1 : index
      %c1_57 = arith.constant 1 : index
      %c0_58 = arith.constant 0 : index
      %48 = vector.load %arg8[%c0_55, %c1_56, %c1_57, %c0_58] : memref<1x18x18x256xbf16, #tpu.memory_space<vmem>>, vector<1x16x16x256xbf16>
      %49 = vector.shape_cast %48 : vector<1x16x16x256xbf16> to vector<256x256xbf16>
      %c0_59 = arith.constant 0 : index
      %c4 = arith.constant 4 : index
      %c0_60 = arith.constant 0 : index
      %c0_61 = arith.constant 0 : index
      %50 = vector.load %arg4[%c0_59, %c4, %c0_60, %c0_61] : memref<1x9x256x256xbf16, #tpu.memory_space<vmem>>, vector<1x1x256x256xbf16>
      %51 = vector.shape_cast %50 : vector<1x1x256x256xbf16> to vector<256x256xbf16>
      %cst_62 = arith.constant dense<0.000000e+00> : vector<256x256xf32>
      %52 = tpu.matmul %49, %51, %cst_62 {dimension_numbers = #tpu.dot_dimension_numbers<[1], [0], [0], [1], [0, 0, 1, 1], [], []>} : vector<256x256xbf16>, vector<256x256xbf16>, vector<256x256xf32> -> vector<256x256xf32>
      %c0_63 = arith.constant 0 : index
      %c0_64 = arith.constant 0 : index
      %53 = vector.load %arg10[%c0_63, %c0_64] : memref<256x256xf32, #tpu.memory_space<vmem>>, vector<256x256xf32>
      %54 = arith.addf %53, %52 : vector<256x256xf32>
      %c0_65 = arith.constant 0 : index
      %c0_66 = arith.constant 0 : index
      %55 = vector.load %arg10[%c0_65, %c0_66] : memref<256x256xf32, #tpu.memory_space<vmem>>, vector<256x256xf32>
      tpu.vector_store %arg10[%c0_65, %c0_66], %54 {strides = array<i32>} : memref<256x256xf32, #tpu.memory_space<vmem>>, vector<256x256xf32>,
      %c0_67 = arith.constant 0 : index
      %c1_68 = arith.constant 1 : index
      %c2_69 = arith.constant 2 : index
      %c0_70 = arith.constant 0 : index
      %56 = vector.load %arg8[%c0_67, %c1_68, %c2_69, %c0_70] : memref<1x18x18x256xbf16, #tpu.memory_space<vmem>>, vector<1x16x16x256xbf16>
      %57 = vector.shape_cast %56 : vector<1x16x16x256xbf16> to vector<256x256xbf16>
      %c0_71 = arith.constant 0 : index
      %c5 = arith.constant 5 : index
      %c0_72 = arith.constant 0 : index
      %c0_73 = arith.constant 0 : index
      %58 = vector.load %arg4[%c0_71, %c5, %c0_72, %c0_73] : memref<1x9x256x256xbf16, #tpu.memory_space<vmem>>, vector<1x1x256x256xbf16>
      %59 = vector.shape_cast %58 : vector<1x1x256x256xbf16> to vector<256x256xbf16>
      %cst_74 = arith.constant dense<0.000000e+00> : vector<256x256xf32>
      %60 = tpu.matmul %57, %59, %cst_74 {dimension_numbers = #tpu.dot_dimension_numbers<[1], [0], [0], [1], [0, 0, 1, 1], [], []>} : vector<256x256xbf16>, vector<256x256xbf16>, vector<256x256xf32> -> vector<256x256xf32>
      %c0_75 = arith.constant 0 : index
      %c0_76 = arith.constant 0 : index
      %61 = vector.load %arg10[%c0_75, %c0_76] : memref<256x256xf32, #tpu.memory_space<vmem>>, vector<256x256xf32>
      %62 = arith.addf %61, %60 : vector<256x256xf32>
      %c0_77 = arith.constant 0 : index
      %c0_78 = arith.constant 0 : index
      %63 = vector.load %arg10[%c0_77, %c0_78] : memref<256x256xf32, #tpu.memory_space<vmem>>, vector<256x256xf32>
      tpu.vector_store %arg10[%c0_77, %c0_78], %62 {strides = array<i32>} : memref<256x256xf32, #tpu.memory_space<vmem>>, vector<256x256xf32>,
      %c0_79 = arith.constant 0 : index
      %c2_80 = arith.constant 2 : index
      %c0_81 = arith.constant 0 : index
      %c0_82 = arith.constant 0 : index
      %64 = vector.load %arg8[%c0_79, %c2_80, %c0_81, %c0_82] : memref<1x18x18x256xbf16, #tpu.memory_space<vmem>>, vector<1x16x16x256xbf16>
      %65 = vector.shape_cast %64 : vector<1x16x16x256xbf16> to vector<256x256xbf16>
      %c0_83 = arith.constant 0 : index
      %c6 = arith.constant 6 : index
      %c0_84 = arith.constant 0 : index
      %c0_85 = arith.constant 0 : index
      %66 = vector.load %arg4[%c0_83, %c6, %c0_84, %c0_85] : memref<1x9x256x256xbf16, #tpu.memory_space<vmem>>, vector<1x1x256x256xbf16>
      %67 = vector.shape_cast %66 : vector<1x1x256x256xbf16> to vector<256x256xbf16>
      %cst_86 = arith.constant dense<0.000000e+00> : vector<256x256xf32>
      %68 = tpu.matmul %65, %67, %cst_86 {dimension_numbers = #tpu.dot_dimension_numbers<[1], [0], [0], [1], [0, 0, 1, 1], [], []>} : vector<256x256xbf16>, vector<256x256xbf16>, vector<256x256xf32> -> vector<256x256xf32>
      %c0_87 = arith.constant 0 : index
      %c0_88 = arith.constant 0 : index
      %69 = vector.load %arg10[%c0_87, %c0_88] : memref<256x256xf32, #tpu.memory_space<vmem>>, vector<256x256xf32>
      %70 = arith.addf %69, %68 : vector<256x256xf32>
      %c0_89 = arith.constant 0 : index
      %c0_90 = arith.constant 0 : index
      %71 = vector.load %arg10[%c0_89, %c0_90] : memref<256x256xf32, #tpu.memory_space<vmem>>, vector<256x256xf32>
      tpu.vector_store %arg10[%c0_89, %c0_90], %70 {strides = array<i32>} : memref<256x256xf32, #tpu.memory_space<vmem>>, vector<256x256xf32>,
      %c0_91 = arith.constant 0 : index
      %c2_92 = arith.constant 2 : index
      %c1_93 = arith.constant 1 : index
      %c0_94 = arith.constant 0 : index
      %72 = vector.load %arg8[%c0_91, %c2_92, %c1_93, %c0_94] : memref<1x18x18x256xbf16, #tpu.memory_space<vmem>>, vector<1x16x16x256xbf16>
      %73 = vector.shape_cast %72 : vector<1x16x16x256xbf16> to vector<256x256xbf16>
      %c0_95 = arith.constant 0 : index
      %c7 = arith.constant 7 : index
      %c0_96 = arith.constant 0 : index
      %c0_97 = arith.constant 0 : index
      %74 = vector.load %arg4[%c0_95, %c7, %c0_96, %c0_97] : memref<1x9x256x256xbf16, #tpu.memory_space<vmem>>, vector<1x1x256x256xbf16>
      %75 = vector.shape_cast %74 : vector<1x1x256x256xbf16> to vector<256x256xbf16>
      %cst_98 = arith.constant dense<0.000000e+00> : vector<256x256xf32>
      %76 = tpu.matmul %73, %75, %cst_98 {dimension_numbers = #tpu.dot_dimension_numbers<[1], [0], [0], [1], [0, 0, 1, 1], [], []>} : vector<256x256xbf16>, vector<256x256xbf16>, vector<256x256xf32> -> vector<256x256xf32>
      %c0_99 = arith.constant 0 : index
      %c0_100 = arith.constant 0 : index
      %77 = vector.load %arg10[%c0_99, %c0_100] : memref<256x256xf32, #tpu.memory_space<vmem>>, vector<256x256xf32>
      %78 = arith.addf %77, %76 : vector<256x256xf32>
      %c0_101 = arith.constant 0 : index
      %c0_102 = arith.constant 0 : index
      %79 = vector.load %arg10[%c0_101, %c0_102] : memref<256x256xf32, #tpu.memory_space<vmem>>, vector<256x256xf32>
      tpu.vector_store %arg10[%c0_101, %c0_102], %78 {strides = array<i32>} : memref<256x256xf32, #tpu.memory_space<vmem>>, vector<256x256xf32>,
      %c0_103 = arith.constant 0 : index
      %c2_104 = arith.constant 2 : index
      %c2_105 = arith.constant 2 : index
      %c0_106 = arith.constant 0 : index
      %80 = vector.load %arg8[%c0_103, %c2_104, %c2_105, %c0_106] : memref<1x18x18x256xbf16, #tpu.memory_space<vmem>>, vector<1x16x16x256xbf16>
      %81 = vector.shape_cast %80 : vector<1x16x16x256xbf16> to vector<256x256xbf16>
      %c0_107 = arith.constant 0 : index
      %c8 = arith.constant 8 : index
      %c0_108 = arith.constant 0 : index
      %c0_109 = arith.constant 0 : index
      %82 = vector.load %arg4[%c0_107, %c8, %c0_108, %c0_109] : memref<1x9x256x256xbf16, #tpu.memory_space<vmem>>, vector<1x1x256x256xbf16>
      %83 = vector.shape_cast %82 : vector<1x1x256x256xbf16> to vector<256x256xbf16>
      %cst_110 = arith.constant dense<0.000000e+00> : vector<256x256xf32>
      %84 = tpu.matmul %81, %83, %cst_110 {dimension_numbers = #tpu.dot_dimension_numbers<[1], [0], [0], [1], [0, 0, 1, 1], [], []>} : vector<256x256xbf16>, vector<256x256xbf16>, vector<256x256xf32> -> vector<256x256xf32>
      %c0_111 = arith.constant 0 : index
      %c0_112 = arith.constant 0 : index
      %85 = vector.load %arg10[%c0_111, %c0_112] : memref<256x256xf32, #tpu.memory_space<vmem>>, vector<256x256xf32>
      %86 = arith.addf %85, %84 : vector<256x256xf32>
      %c0_113 = arith.constant 0 : index
      %c0_114 = arith.constant 0 : index
      %87 = vector.load %arg10[%c0_113, %c0_114] : memref<256x256xf32, #tpu.memory_space<vmem>>, vector<256x256xf32>
      tpu.vector_store %arg10[%c0_113, %c0_114], %86 {strides = array<i32>} : memref<256x256xf32, #tpu.memory_space<vmem>>, vector<256x256xf32>,
      %c0_115 = arith.constant 0 : index
      %c0_116 = arith.constant 0 : index
      %88 = vector.load %arg10[%c0_115, %c0_116] : memref<256x256xf32, #tpu.memory_space<vmem>>, vector<256x256xf32>
      %89 = vector.broadcast %1 : vector<1x256xf32> to vector<256x256xf32>
      %90 = arith.addf %88, %89 : vector<256x256xf32>
      %cst_117 = arith.constant 0.000000e+00 : f32
      %91 = vector.broadcast %cst_117 : f32 to vector<256x256xf32>
      %92 = arith.maximumf %90, %91 : vector<256x256xf32>
      %c1_i32_118 = arith.constant 1 : i32
      %93 = arith.cmpi eq, %arg1, %c1_i32_118 : i32
      %94 = arith.extui %93 : i1 to i32
      %c0_i32_119 = arith.constant 0 : i32
      %95 = arith.cmpi ne, %94, %c0_i32_119 : i32
      scf.if %95 {
        %96 = vector.shape_cast %92 : vector<256x256xf32> to vector<1x16x16x256xf32>
        %c0_120 = arith.constant 0 : index
        %c0_121 = arith.constant 0 : index
        %c0_122 = arith.constant 0 : index
        %c0_123 = arith.constant 0 : index
        %97 = vector.load %arg6[%c0_120, %c0_121, %c0_122, %c0_123] : memref<1x16x16x256xf32, #tpu.memory_space<vmem>>, vector<1x16x16x256xf32>
        tpu.vector_store %arg6[%c0_120, %c0_121, %c0_122, %c0_123], %96 {strides = array<i32>} : memref<1x16x16x256xf32, #tpu.memory_space<vmem>>, vector<1x16x16x256xf32>,
      } else {
      }
    } else {
    }
    return
  }
  func.func @transform_0(%arg0: i32, %arg1: i32) -> (i32, i32, i32, i32) {
    %c0_i32 = arith.constant 0 : i32
    %c0_i32_0 = arith.constant 0 : i32
    %c0_i32_1 = arith.constant 0 : i32
    %c0_i32_2 = arith.constant 0 : i32
    return %arg0, %c0_i32, %c0_i32_0, %c0_i32_1 : i32, i32, i32, i32
  }
  func.func @transform_1(%arg0: i32, %arg1: i32) -> (i32, i32, i32) {
    %c0_i32 = arith.constant 0 : i32
    %c0_i32_0 = arith.constant 0 : i32
    %c0_i32_1 = arith.constant 0 : i32
    %c0_i32_2 = arith.constant 0 : i32
    return %c0_i32, %c0_i32_0, %c0_i32_1 : i32, i32, i32
  }
  func.func @transform_2(%arg0: i32, %arg1: i32) -> (i32, i32, i32, i32) {
    %c1_i32 = arith.constant 1 : i32
    %0 = arith.subi %arg1, %c1_i32 : i32
    %c0_i32 = arith.constant 0 : i32
    %1 = arith.maxsi %0, %c0_i32 : i32
    %c0_i32_0 = arith.constant 0 : i32
    %c0_i32_1 = arith.constant 0 : i32
    %c0_i32_2 = arith.constant 0 : i32
    %c0_i32_3 = arith.constant 0 : i32
    return %1, %c0_i32_0, %c0_i32_1, %c0_i32_2 : i32, i32, i32, i32
  }
  func.func @transform_3(%arg0: i32, %arg1: i32) -> (i32, i32, i32) {
    %c0_i32 = arith.constant 0 : i32
    %c0_i32_0 = arith.constant 0 : i32
    %c0_i32_1 = arith.constant 0 : i32
    return %arg1, %c0_i32, %c0_i32_0 : i32, i32, i32
  }
  func.func @transform_4(%arg0: i32, %arg1: i32) -> (i32, i32, i32, i32) {
    %c0_i32 = arith.constant 0 : i32
    %c0_i32_0 = arith.constant 0 : i32
    %c0_i32_1 = arith.constant 0 : i32
    %c0_i32_2 = arith.constant 0 : i32
    return %arg0, %c0_i32, %c0_i32_0, %c0_i32_1 : i32, i32, i32, i32
  }
}

</mosaic_0001>

<bundles_post_ra>
// kernel: tpu_custom_call.1
= control target key start
LH: loop header
LB: loop body
LE: loop exit
PB: predicated region body
PF: predicated region fallthrough
CT: control target
= control target key end

     0   :  { %s25805_s0 = inlined_call_operand.vmem [shape: f32[2,16,16,4], index: 0, kind: input, shape index: {}]   ;;  %s25806_s1 = inlined_call_operand.hbm [shape: bf16[9,4,256], index: 1, kind: input, shape index: {}]   ;;  %s25807_s2 = inlined_call_operand.hbm [shape: bf16[1,9,256,256], index: 2, kind: input, shape index: {}]   ;;  %s25808_s3 = inlined_call_operand.hbm [shape: f32[2,1,256], index: 3, kind: input, shape index: {}]   ;;  %s25809_s4 = inlined_call_operand.hbm [shape: f32[2,16,16,256], index: 4, kind: output, shape index: {}]  }
   0x1   :  { %25867 = sst [smem:[#allocation59_spill]] %s25807_s2 }
   0x2   :  { %25868 = sst [smem:[#allocation60_spill]] %s25809_s4 }
   0x3   :  { %9 = vsyncpa [#allocation7], 0 }
   0x4   :  { %10 = vsyncpa [#allocation10], 0 }
   0x5   :  { %12 = vsyncpa [#allocation10 + $0x1], 0 }
   0x6   :  { %13 = vsyncpa [#allocation8], 0 }
   0x7   :  { %15 = vsyncpa [#allocation8 + $0x1], 0  ;;  %s20988_s15 = smov 0   ;;  %s20990_s16 = smov 0  }
   0x8   :  { %s20992_s17 = smov 0   ;;  %s20994_s18 = smov 0  }
   0x9   :  { %s20996_s19 = smov 0   ;;  %s20998_s20 = smov 0  }
   0xa   :  { %s21000_s21 = smov 0   ;;  %s21002_s22 = smov 0  }
   0xb   :  { %s21004_s23 = smov 0   ;;  %s21006_s24 = smov 0  }
   0xc   :  { %s21008_s25 = smov 0   ;;  %s21010_s26 = smov 0  }
   0xd   :  { %s21012_s27 = smov 0  }
   0xe LB: > { %25869 = sst [smem:[#allocation17_spill]] %s20902_s15  ;;  %s30_s28 = sadd.s32 1, %s20942_s25  ;;  %s20950_s27 = sphi %s21012_s27, %s21_s27   ;;  %s20946_s26 = sphi %s21010_s26, %s26214_s26   ;;  %s20942_s25 = sphi %s21008_s25, %s26224_s25   ;;  %s20938_s24 = sphi %s21006_s24, %s26223_s24   ;;  %s20934_s23 = sphi %s21004_s23, %s26222_s23   ;;  %s20930_s22 = sphi %s21002_s22, %s25787_s22   ;;  %s20926_s21 = sphi %s21000_s21, %s26221_s21   ;;  %s20922_s20 = sphi %s20998_s20, %s26220_s20   ;;  %s20918_s19 = sphi %s20996_s19, %s26219_s19   ;;  %s20914_s18 = sphi %s20994_s18, %s26218_s18   ;;  %s20910_s17 = sphi %s20992_s17, %s26212_s17   ;;  %s20906_s16 = sphi %s20990_s16, %s26217_s16   ;;  %s20902_s15 = sphi %s20988_s15, %s26216_s15  }
   0xf   : > { %25870 = sst [smem:[#allocation18_spill]] %s20910_s17  ;;  %s33_s29 = sadd.s32 1, %s20946_s26 }
  0x10   : > { %25871 = sst [smem:[#allocation19_spill]] %s20946_s26  ;;  %p31_p0 = scmp.ge.s32.totalorder %s30_s28, 2 }
  0x11   : > { %p20899_p2 = scmp.ne.s32.totalorder %s20930_s22, 0  ;;  %p25813_p3 = scmp.eq.s32.totalorder %s20950_s27, 0 }
  0x12   : > { %s26226_s28 = smov (%p31_p0, %s30_s28), 0  ;;  %s26228_s29 = smov (!%p31_p0, %s33_s29), %s20946_s26 }
  0x13   : > { %p35_p1 = scmp.ge.s32.totalorder %s26228_s29, 2  ;;  %p102_p5 = por %p20899_p2, %p25813_p3 }
  0x14   : > { %p25812_p6 = scmp.lt.s32.totalorder %s20950_s27, 4  ;;  %s203_s6 = sand.u32 1, %s20950_s27  }
  0x15   : > { %s26230_s29 = smov (%p35_p1, %s26228_s29), 0  ;;  %s20952_s8 = smov [#allocation9]  }
  0x16   : > { %25872 = sst [smem:[#allocation20_spill]] %s26230_s29  ;;  %s142_s30 = ssub.s32 %s20946_s26, %s26230_s29 }
  0x17   : > { %p21064_p4 = scmp.eq.s32.totalorder %s142_s30, 0  ;;  %p21074_p7 = pnand %p25812_p6, %p102_p5 }
  0x18   : > { %s217_s9 = sshll.u32 %s20952_s8, 4  ;;  %s21078_s10 = scalar_lea.sflag [#allocation10], %s203_s6  ;;  %s218_s9 = int_to_ptr.vmem [resolvable:$true] %s217_s9 }
  0x19   : > { %s25873_s5 = scalar_select %p21064_p4, 1, 0 }
  0x1a   : > { %s25874_s7 = scalar_select %p21074_p7, 1, 0 }
  0x1b   : > { %s25875_s2 = sld [smem:[#allocation59_spill]]  ;;  %p20713_p9 = pneg %p21074_p7 }
  0x21   : > { %s20711_s13 = scalar_lea.hbm %s25875_s2, 36864 }
  0x22   : > { %p20712_p8 = scmp.ne.s32.totalorder %s25875_s2, %s20711_s13  ;;  %p20718_p12 = scmp.lt.u32.totalorder %s20711_s13, %s20711_s13 }
  0x23   : > { %p20720_p13 = scmp.lt.u32.totalorder %s20711_s13, %s25875_s2 }
  0x24   : > { %p20714_p10 = pnand %p20713_p9, %p20712_p8 }
  0x25   : > { %p20721_p0 = por %p20720_p13, %p20718_p12 }
  0x26   : > { %p20715_p11 = pneg %p20714_p10 }
  0x28   : > { %p20722_p1 = pnand %p20721_p0, %p20715_p11 }
  0x2a   : > { %20725 = shalt.err (!%p20722_p1)
}
  0x2b   : > { %s20726_s6 = scalar_lea.vmem %s218_s9, 36864  ;;  %s20733_s8 = scalar_lea.vmem %s218_s9, 73728 }
  0x2c   : > { %p20727_p2 = scmp.ne.s32.totalorder %s218_s9, %s20726_s6  ;;  %p20734_p3 = scmp.lt.s32.totalorder %s218_s9, %s218_s9 }
  0x2d   : > { %p20735_p4 = scmp.lt.s32.totalorder %s20733_s8, %s20726_s6 }
  0x2e   : > { %p20729_p5 = pnand %p20727_p2, %p20713_p9 }
  0x2f   : > { %p20736_p7 = por %p20735_p4, %p20734_p3 }
  0x30   : > { %p20730_p6 = pneg %p20729_p5 }
  0x32   : > { %p20737_p8 = pnand %p20736_p7, %p20730_p6 }
  0x34   : > { %20740 = shalt.err (!%p20737_p8)
}
  0x35   : > { %s20953_s11 = smov 128   ;;  %s20954_s26 = smov 8  }
  0x36   : > { %p25876_p3 = scmp.ne.s32.totalorder %s25874_s7, 0  ;;  %s21098_s13 = sadd.s32 4294967295, %s20950_s27  }
  0x37   : > { %s17226_s14 = sadd.s32 4294967294, %s20950_s27   ;;  %p106_p4 = scmp.ne.s32.totalorder %s20930_s22, %s20926_s21 }
  0x38   : > { %19955 = dma.hbm_to_vmem [thread:$0]  (!%p25876_p3), %s25875_s2, 36864, %s218_s9, %s21078_s10, %s20953_s11, %s20953_s11, %s20954_s26  }
  0x39   : > { %p25816_p6 = scmp.eq.s32.totalorder %s21098_s13, 0  ;;  %s145_s30 = sadd.s32 1, %s20910_s17 }
  0x3a   : > { %p25877_p7 = scmp.ne.s32.totalorder %s25873_s5, 0  ;;  %p155_p10 = scmp.ne.s32.totalorder %s20910_s17, %s20906_s16 }
  0x3b   : > { %p21112_p9 = por %p25816_p6, %p106_p4  ;;  %p156_p11 = scmp.eq.s32.totalorder %s21098_s13, 3 }
  0x3c   : > { %s21108_s6 = scalar_select %p25877_p7, %s20910_s17, %s145_s30  }
  0x3d   : > { %s25879_s7 = scalar_select %p21112_p9, 1, 0 }
  0x3e   : > { %25878 = sst [smem:[#allocation21_spill]] %s21108_s6  ;;  %p161_p12 = scmp.ne.s32.totalorder %s20906_s16, %s20902_s15 }
  0x3f   : > { %p162_p13 = scmp.eq.s32.totalorder %s17226_s14, 3  ;;  %p17229_p0 = scmp.ge.s32.totalorder %s20950_s27, 1 }
  0x40   : > { %p21122_p1 = por %p156_p11, %p155_p10  ;;  %p169_p2 = scmp.lt.s32.totalorder %s20950_s27, 5 }
  0x41   : > { %p21127_p5 = por %p162_p13, %p161_p12  ;;  %s20955_s8 = smov [#allocation6]  }
  0x42   : > { %s25880_s9 = scalar_select %p21122_p1, 1, 0 }
  0x43   : > { %s25881_s21 = scalar_select %p21127_p5, 1, 0 }
  0x44   : > { %p21131_p8 = pnand %p17229_p0, %p169_p2  ;;  %s181_s11 = sshll.u32 %s20955_s8, 4  ;;  %s182_s11 = int_to_ptr.vmem [resolvable:$true] %s181_s11 }
  0x45   : > { %25882 = sst [smem:[#allocation22_spill]] %s25881_s21  ;;  %s20741_s14 = scalar_lea.hbm %s25806_s1, 576 }
  0x46   : > { %s25883_s5 = scalar_select %p21131_p8, 1, 0 }
  0x47   : > { %p19948_p3 = pneg %p21131_p8  ;;  %p20742_p7 = scmp.ne.s32.totalorder %s25806_s1, %s20741_s14 }
  0x48   : > { %p20748_p13 = scmp.lt.u32.totalorder %s20741_s14, %s25806_s1 }
  0x49   : > { %p21139_p4 = pnand %p19948_p3, %p25816_p6 }
  0x4b   : > { %p20743_p10 = pneg %p21139_p4 }
  0x4d   : > { %p20744_p11 = pnand %p20743_p10, %p20742_p7 }
  0x4f   : > { %p20745_p12 = pneg %p20744_p11 }
  0x51   : > { %p20750_p0 = pnand %p20748_p13, %p20745_p12 }
  0x53   : > { %20753 = shalt.err (!%p20750_p0)
}
  0x54   : > { %s20754_s17 = scalar_lea.vmem %s182_s11, 576  ;;  %p20762_p5 = scmp.lt.s32.totalorder %s182_s11, %s182_s11 }
  0x55   : > { %p20755_p2 = scmp.ne.s32.totalorder %s182_s11, %s20754_s17  ;;  %p20763_p1 = scmp.lt.s32.totalorder %s20754_s17, %s20754_s17 }
  0x57   : > { %p20757_p3 = pnand %p20755_p2, %p20743_p10  ;;  %p20764_p9 = por %p20763_p1, %p20762_p5 }
  0x59   : > { %p20758_p6 = pneg %p20757_p3 }
  0x5b   : > { %p20765_p8 = pnand %p20764_p9, %p20758_p6 }
  0x5d   : > { %20768 = shalt.err (!%p20765_p8)
}
  0x5e   : > { %s20956_s2 = smov 64   ;;  %s20957_s6 = smov 4  }
  0x5f   : > { %19951 = dma.hbm_to_vmem [thread:$0]  (!%p21139_p4), %s25806_s1, 576, %s182_s11, [#allocation7], %s20956_s2, %s20956_s2, %s20957_s6  }
  0x60   : > { %s116_s12 = ssub.s32 %s20942_s25, %s26226_s28  ;;  %s119_s14 = sadd.s32 1, %s20922_s20 }
  0x61   : > { %p117_p6 = scmp.eq.s32.totalorder %s116_s12, 0  ;;  %p126_p9 = scmp.ne.s32.totalorder %s20922_s20, %s20918_s19 }
  0x62   : > { %p132_p1 = scmp.ne.s32.totalorder %s20918_s19, %s20914_s18  ;;  %p25885_p5 = scmp.eq.s32.totalorder %s20950_s27, 0 }
  0x63   : > { %s21167_s30 = scalar_select %p117_p6, %s20922_s20, %s119_s14  }
  0x64   : > { %p128_p8 = por %p126_p9, %p25885_p5  ;;  %p25886_p7 = scmp.eq.s32.totalorder %s21098_s13, 0 }
  0x65   : > { %s229_s21 = sand.u32 1, %s20922_s20   ;;  %s18554_s26 = sshll.u32 %s20942_s25, 5 }
  0x66   : > { %p21173_p10 = por %p132_p1, %p25886_p7  ;;  %s17234_s15 = sshll.u32 %s229_s21, 1 }
  0x67   : > { %s21182_s11 = scalar_lea.hbm %s25808_s3, %s18554_s26  ;;  %p25888_p4 = scmp.lt.s32.totalorder %s20950_s27, 4 }
  0x68   : > { %s25887_s8 = scalar_select %p21173_p10, 1, 0 }
  0x69   : > { %p21186_p11 = pnand %p25888_p4, %p128_p8  ;;  %s231_s2 = scalar_lea.vmem [#allocation11], %s17234_s15 }
  0x6a   : > { %s239_s6 = sshll.u32 %s231_s2, 4  ;;  %s20769_s21 = scalar_lea.hbm %s21182_s11, 32  ;;  %s240_s6 = int_to_ptr.vmem [resolvable:$true] %s239_s6 }
  0x6b   : > { %p20770_p12 = scmp.ne.s32.totalorder %s21182_s11, %s20769_s21  ;;  %p20771_p13 = pneg %p21186_p11 }
  0x6c   : > { %s20774_s12 = scalar_lea.hbm %s25808_s3, 64  ;;  %p20775_p3 = scmp.lt.u32.totalorder %s21182_s11, %s25808_s3 }
  0x6d   : > { %p20772_p0 = pnand %p20771_p13, %p20770_p12  ;;  %p20776_p6 = scmp.lt.u32.totalorder %s20774_s12, %s20769_s21 }
  0x6e   : > { %p20778_p1 = scmp.lt.u32.totalorder %s20769_s21, %s21182_s11 }
  0x6f   : > { %p20773_p2 = pneg %p20772_p0  ;;  %p20777_p9 = por %p20776_p6, %p20775_p3 }
  0x71   : > { %p20779_p5 = por %p20778_p1, %p20777_p9 }
  0x73   : > { %p20780_p8 = pnand %p20779_p5, %p20773_p2 }
  0x75   : > { %20783 = shalt.err (!%p20780_p8)
}
  0x76   : > { %s20784_s15 = scalar_lea.vmem %s240_s6, 32  ;;  %s20958_s17 = smov [#allocation11]  }
  0x77   : > { %p20785_p7 = scmp.ne.s32.totalorder %s240_s6, %s20784_s15  ;;  %s20789_s2 = sshll.u32 %s20958_s17, 4  ;;  %s20790_s2 = int_to_ptr.vmem [resolvable:$false] %s20789_s2 }
  0x78   : > { %s20791_s4 = scalar_lea.vmem %s20790_s2, 64  ;;  %p20792_p0 = scmp.lt.s32.totalorder %s240_s6, %s20790_s2 }
  0x79   : > { %p20787_p4 = pnand %p20785_p7, %p20771_p13  ;;  %p20793_p10 = scmp.lt.s32.totalorder %s20791_s4, %s20784_s15 }
  0x7b   : > { %p20788_p12 = pneg %p20787_p4  ;;  %p20794_p3 = por %p20793_p10, %p20792_p0 }
  0x7d   : > { %p20795_p6 = pnand %p20794_p3, %p20788_p12 }
  0x7f   : > { %20798 = shalt.err (!%p20795_p6)
}
  0x80   : > { %19958 = dma.hbm_to_vmem [thread:$0]  (!%p21186_p11), %s21182_s11, 32, %s240_s6, %s21078_s10  }
  0x81   : > { %p25890_p2 = scmp.ne.s32.totalorder %s25883_s5, 0 }
  0x83   : > { %248 = sbr.rel (%p25890_p2) target bundleno = 2060 (0x80c), region = 36 }
  0x8a   : > { %p25891_p13 = scmp.eq.s32.totalorder %s21098_s13, 0 }
  0x8c   : > { %20884 = dma.done.wait (%p25891_p13), [#allocation7], 576   ;;  %p25892_p9 = pmov %p25891_p13 }
  0x8d   : > { %s254_s21 = sand.u32 1, %s21098_s13   ;;  %s256_s29 = sand.u32 1, %s20930_s22  }
  0x8e   : > { %20886 = vsyncadd (%p25892_p9), [#allocation7], 4294966720  ;;  %s19937_s12 = smul.u32 2304, %s256_s29  ;;  %s255_s14 = scalar_lea.sflag [#allocation10], %s254_s21 }
  0x8f   : > { %p25893_p10 = scmp.ne.s32.totalorder %s25879_s7, 0 }
  0x90   : > { %s21220_s18 = scalar_lea.vmem [#allocation9], %s19937_s12 }
  0x91   : > { %20888 = dma.done.wait (%p25893_p10), %s255_s14, 36864  }
  0x92   : > { %20890 = vsyncadd (%p25893_p10), %s255_s14, 4294930432  ;;  %s265_s10 = sand.u32 1, %s20918_s19   ;;  %p25894_p11 = scmp.ne.s32.totalorder %s25887_s8, 0 }
  0x93   : > { %s17239_s5 = sshll.u32 %s265_s10, 1 }
  0x94   : > { %s267_s11 = scalar_lea.vmem [#allocation11], %s17239_s5 }
  0x95   : > { %20892 = dma.done.wait (%p25894_p11), %s255_s14, 32  }
  0x96   : > { %20894 = vsyncadd (%p25894_p11), %s255_s14, 4294967264  ;;  %s299_s13 = sand.u32 1, %s20906_s16   ;;  %p302_p1 = scmp.lt.s32.totalorder %s20938_s24, 1  ;;  %v21241_v0 = vld [vmem:[%s267_s11] sm:$0x3] }
  0x97   : > { %s17240_s6 = sshll.u32 %s299_s13, 9  ;;  %25895 = vst [vmem:[#allocation23_spill] sm:$0xff] %v21241_v0  ;;  %p17243_p5 = scmp.ne.s32.totalorder %s20934_s23, 0 }
  0x98   : > { %s303_s7 = scalar_select %p302_p1, %s20938_s24, 1 }
  0x99   : > { %s21243_s4 = scalar_lea.vmem [#allocation12], %s17240_s6  ;;  %315 = sbr.rel (%p17243_p5) target bundleno = 1134 (0x46e), region = 52 }
  0x9a   : > { %s18555_s26 = sshll.u32 %s303_s7, 8 }
  0x9b   : > { %s21239_s2 = scalar_lea.vmem %s25805_s0, %s18555_s26 }
  0xa0   : > { %v17292_v1 = vld.sshfl [vmem:[#allocation6] sm:$0x33 pattern:$0x76325410]  ;;  %vm1276_vm0 = vcmask 1041408   ;;  %v20959_v4 = vmov 0  }
  0xa1   : > { %v1226_v2 = vcombine.high %v17292_v1, %v17292_v1  ;;  %v1278_v3 = vsel %vm1276_vm0, %v17292_v1, 0  ;;  %427 = vst [vmem:[#allocation3] sm:$0xff] %v20959_v4  ;;  %428 = vst [vmem:[#allocation3 + $0x8] sm:$0xff] %v20959_v4  ;;  %1315 = vmatprep.mubr.bf16.mxu1 %v20959_v4  ;;  %vm316_vm1 = vcmask 27648   ;;  %v329_v5 = vld [vmem:[#allocation2 + $0xc] sm:$0x1]  ;;  %4321 = vmatprep.mubr.bf16.mxu0 %v20959_v4 }
  0xa2   : > { %429 = vst [vmem:[#allocation3 + $0x10] sm:$0x11] %v20959_v4  ;;  %431 = vst [vmem:[#allocation3 + $0x198] sm:$0xff] %v20959_v4  ;;  %v541_v6 = vld [vmem:[%s21239_s2] sm:$0xff]  ;;  %vm319_vm2 = vcmask 24576   ;;  %vm435_vm4 = vcmask 1040384  }
  0xa3   : > { %432 = vst [vmem:[#allocation3 + $0x1a0] sm:$0xff] %v20959_v4  ;;  %433 = vst [vmem:[#allocation3 + $0x1a8] sm:$0x11] %v20959_v4  ;;  %vm327_vm3 = vsmask.f32 256  ;;  %17293 = vmatprep.subr.msk.bf16.mxu1 %vm1276_vm0, %v1226_v2  ;;  %vm437_vm6 = vcmask 1044484   ;;  %v21271_v9 = vpack.c.bf16 %v541_v6, %v541_v6 }
  0xa4   : > { %317 = vst.msk [vmem:[#allocation2] sm:$0xf] %vm316_vm1, %v20959_v4  ;;  %318 = vst.msk [vmem:[#allocation2 + $0x4] sm:$0xf] %vm316_vm1, %v20959_v4  ;;  %vm438_vm7 = vsmask.f32 4352  ;;  %1284 = vmatpush1.bf16.msra.mxu1 %v1278_v3 }
  0xa5   : > { %322 = vst.msk [vmem:[#allocation2 + $0xcc] sm:$0xf] %vm316_vm1, %v20959_v4  ;;  %323 = vst.msk [vmem:[#allocation2 + $0xd0] sm:$0xf] %vm316_vm1, %v20959_v4  ;;  %v441_v8 = vld [vmem:[#allocation3 + $0x18] sm:$0x11] }
  0xa6   : > { %vm21267_vm5 = vmand %vm319_vm2, %vm327_vm3  ;;  %320 = vst.msk [vmem:[#allocation2 + $0x8] sm:$0x1] %vm319_vm2, %v20959_v4  ;;  %vm1227_vm8 = vcmask 31744   ;;  %v444_v11 = vld [vmem:[#allocation3 + $0x30] sm:$0x11]  ;;  %v25898_v17 = vmov 0 }
  0xa7   : > { %324 = vst.msk [vmem:[#allocation2 + $0xd4] sm:$0x1] %vm319_vm2, %v20959_v4  ;;  %v330_v10 = vsel %vm21267_vm5, 0, %v329_v5  ;;  %v447_v12 = vld [vmem:[#allocation3 + $0x48] sm:$0x11]  ;;  %vm436_vm10 = vmand %vm435_vm4, %vm327_vm3  ;;  %v672_v20 = vshrl.u32 %v21271_v9, 16 }
  0xa8   : > { %331 = vst [vmem:[#allocation2 + $0xc] sm:$0x1] %v330_v10  ;;  %vm377_vm9 = vsmask.f32 7938  ;;  %v450_v13 = vld [vmem:[#allocation3 + $0x60] sm:$0x11]  ;;  %vm439_vm11 = vmand %vm437_vm6, %vm438_vm7 }
  0xa9   : > { %v453_v14 = vld [vmem:[#allocation3 + $0x78] sm:$0x11]  ;;  %v456_v15 = vld [vmem:[#allocation3 + $0x90] sm:$0x11]  ;;  %v459_v16 = vld [vmem:[#allocation3 + $0xa8] sm:$0x11] }
  0xaa   : > { %vm490_vm12 = vsmask.f32 7954  ;;  %vm21283_vm13 = vmor %vm439_vm11, %vm436_vm10  ;;  %v462_v18 = vld [vmem:[#allocation3 + $0xc0] sm:$0x11]  ;;  %v465_v19 = vld [vmem:[#allocation3 + $0xd8] sm:$0x11] }
  0xab   : > { %v25899_v17 = vsel %vm21283_vm13, 4294967295, %v25898_v17  ;;  %v675_v21 = vshll.u32 %v21271_v9, 16  ;;  %v442_v22 = vsel %vm21283_vm13, 0, %v441_v8  ;;  %v445_v23 = vsel %vm21283_vm13, 0, %v444_v11  ;;  %v468_v26 = vld [vmem:[#allocation3 + $0xf0] sm:$0x11]  ;;  %vm21299_vm14 = vmand %vm435_vm4, %vm377_vm9 }
  0xac   : > { %25900 = vst [vmem:[#allocation24_spill] sm:$0xff] %v25899_v17  ;;  %v448_v24 = vsel %vm21283_vm13, 0, %v447_v12  ;;  %v451_v25 = vsel %vm21283_vm13, 0, %v450_v13  ;;  %v20087_v28 = vld [vmem:[#allocation2] sm:$0xff]   ;;  %443 = vst [vmem:[#allocation3 + $0x18] sm:$0x11] %v442_v22 }
  0xad   : > { %446 = vst [vmem:[#allocation3 + $0x30] sm:$0x11] %v445_v23  ;;  %449 = vst [vmem:[#allocation3 + $0x48] sm:$0x11] %v448_v24  ;;  %v454_v29 = vsel %vm21283_vm13, 0, %v453_v14  ;;  %v457_v30 = vsel %vm21283_vm13, 0, %v456_v15  ;;  %17294 = vmatmul.mubr.msk.bf16.vlgmr.msra.gmra.mrb[0].mxu1 %vm1227_vm8, %v20087_v28 }
  0xae   : > { %452 = vst [vmem:[#allocation3 + $0x60] sm:$0x11] %v451_v25  ;;  %455 = vst [vmem:[#allocation3 + $0x78] sm:$0x11] %v454_v29  ;;  %v460_v31 = vsel %vm21283_vm13, 0, %v459_v16  ;;  %v463_v32 = vsel %vm21283_vm13, 0, %v462_v18  ;;  %1325 = vmatprep.mubr.bf16.mxu1 %v20959_v4 }
  0xaf   : > { %v466_v33 = vsel %vm21283_vm13, 0, %v465_v19  ;;  %v471_v34 = vld [vmem:[#allocation3 + $0x108] sm:$0x11]  ;;  %vm491_vm15 = vmand %vm437_vm6, %vm490_vm12  ;;  %458 = vst [vmem:[#allocation3 + $0x90] sm:$0x11] %v457_v30  ;;  %v469_v35 = vsel %vm21283_vm13, 0, %v468_v26 }
  0xb0   : > { %461 = vst [vmem:[#allocation3 + $0xa8] sm:$0x11] %v460_v31  ;;  %464 = vst [vmem:[#allocation3 + $0xc0] sm:$0x11] %v463_v32  ;;  %v472_v36 = vsel %vm21283_vm13, 0, %v471_v34  ;;  %v542_v44 = vld [vmem:[%s21239_s2 + $0x8] sm:$0xff] }
  0xb1   : > { %467 = vst [vmem:[#allocation3 + $0xd8] sm:$0x11] %v466_v33  ;;  %v474_v37 = vld [vmem:[#allocation3 + $0x120] sm:$0x11]  ;;  %v477_v38 = vld [vmem:[#allocation3 + $0x138] sm:$0x11]  ;;  %vm21322_vm4 = vmor %vm491_vm15, %vm21299_vm14  ;;  %v18557_v2 = vpack.c.bf16 %v542_v44, %v542_v44 }
  0xb2   : > { %470 = vst [vmem:[#allocation3 + $0xf0] sm:$0x11] %v469_v35  ;;  %473 = vst [vmem:[#allocation3 + $0x108] sm:$0x11] %v472_v36  ;;  %v475_v40 = vsel %vm21283_vm13, 0, %v474_v37  ;;  %v478_v41 = vsel %vm21283_vm13, 0, %v477_v38 }
  0xb3   : > { %v480_v42 = vld [vmem:[#allocation3 + $0x150] sm:$0x11]  ;;  %v483_v43 = vld [vmem:[#allocation3 + $0x168] sm:$0x11]  ;;  %476 = vst [vmem:[#allocation3 + $0x120] sm:$0x11] %v475_v40  ;;  %vm21374_vm7 = vmand %vm316_vm1, %vm377_vm9 }
  0xb4   : > { %479 = vst [vmem:[#allocation3 + $0x138] sm:$0x11] %v478_v41  ;;  %v481_v45 = vsel %vm21283_vm13, 0, %v480_v42  ;;  %v484_v46 = vsel %vm21283_vm13, 0, %v483_v43  ;;  %v486_v47 = vld [vmem:[#allocation3 + $0x180] sm:$0x11]  ;;  %vm21380_vm10 = vmand %vm319_vm2, %vm377_vm9 }
  0xb5   : > { %v493_v48 = vld [vmem:[#allocation3 + $0x28] sm:$0x11]  ;;  %vm669_vm6 = vsmask.f32 4368  ;;  %482 = vst [vmem:[#allocation3 + $0x150] sm:$0x11] %v481_v45 }
  0xb6   : > { %485 = vst [vmem:[#allocation3 + $0x168] sm:$0x11] %v484_v46  ;;  %v487_v49 = vsel %vm21283_vm13, 0, %v486_v47  ;;  %v494_v50 = vsel %vm21322_vm4, 0, %v493_v48  ;;  %v496_v51 = vld [vmem:[#allocation3 + $0x40] sm:$0x11]  ;;  %vm21390_vm11 = vmor %vm327_vm3, %vm669_vm6 }
  0xb7   : > { %v499_v52 = vld [vmem:[#allocation3 + $0x58] sm:$0x11]  ;;  %488 = vst [vmem:[#allocation3 + $0x180] sm:$0x11] %v487_v49  ;;  %495 = vst [vmem:[#allocation3 + $0x28] sm:$0x11] %v494_v50 }
  0xb8   : > { %v497_v53 = vsel %vm21322_vm4, 0, %v496_v51  ;;  %v500_v54 = vsel %vm21322_vm4, 0, %v499_v52  ;;  %v502_v55 = vld [vmem:[#allocation3 + $0x70] sm:$0x11]  ;;  %v505_v56 = vld [vmem:[#allocation3 + $0x88] sm:$0x11] }
  0xb9   : > { %498 = vst [vmem:[#allocation3 + $0x40] sm:$0x11] %v497_v53  ;;  %501 = vst [vmem:[#allocation3 + $0x58] sm:$0x11] %v500_v54  ;;  %v503_v57 = vsel %vm21322_vm4, 0, %v502_v55  ;;  %v506_v58 = vsel %vm21322_vm4, 0, %v505_v56 }
  0xba   : > { %v508_v59 = vld [vmem:[#allocation3 + $0xa0] sm:$0x11]  ;;  %v511_v60 = vld [vmem:[#allocation3 + $0xb8] sm:$0x11]  ;;  %504 = vst [vmem:[#allocation3 + $0x70] sm:$0x11] %v503_v57 }
  0xbb   : > { %507 = vst [vmem:[#allocation3 + $0x88] sm:$0x11] %v506_v58  ;;  %v509_v61 = vsel %vm21322_vm4, 0, %v508_v59  ;;  %v512_v62 = vsel %vm21322_vm4, 0, %v511_v60  ;;  %v514_v63 = vld [vmem:[#allocation3 + $0xd0] sm:$0x11] }
  0xbc   : > { %v517_v1 = vld [vmem:[#allocation3 + $0xe8] sm:$0x11]  ;;  %510 = vst [vmem:[#allocation3 + $0xa0] sm:$0x11] %v509_v61  ;;  %513 = vst [vmem:[#allocation3 + $0xb8] sm:$0x11] %v512_v62 }
  0xbd   : > { %v515_v3 = vsel %vm21322_vm4, 0, %v514_v63  ;;  %v518_v5 = vsel %vm21322_vm4, 0, %v517_v1  ;;  %v520_v6 = vld [vmem:[#allocation3 + $0x100] sm:$0x11]  ;;  %v523_v8 = vld [vmem:[#allocation3 + $0x118] sm:$0x11] }
  0xbe   : > { %516 = vst [vmem:[#allocation3 + $0xd0] sm:$0x11] %v515_v3  ;;  %519 = vst [vmem:[#allocation3 + $0xe8] sm:$0x11] %v518_v5  ;;  %v521_v10 = vsel %vm21322_vm4, 0, %v520_v6  ;;  %v524_v11 = vsel %vm21322_vm4, 0, %v523_v8 }
  0xbf   : > { %v526_v12 = vld [vmem:[#allocation3 + $0x130] sm:$0x11]  ;;  %v529_v13 = vld [vmem:[#allocation3 + $0x148] sm:$0x11]  ;;  %522 = vst [vmem:[#allocation3 + $0x100] sm:$0x11] %v521_v10 }
  0xc0   : > { %525 = vst [vmem:[#allocation3 + $0x118] sm:$0x11] %v524_v11  ;;  %v527_v14 = vsel %vm21322_vm4, 0, %v526_v12  ;;  %v530_v15 = vsel %vm21322_vm4, 0, %v529_v13  ;;  %v532_v16 = vld [vmem:[#allocation3 + $0x160] sm:$0x11] }
  0xc1   : > { %v535_v18 = vld [vmem:[#allocation3 + $0x178] sm:$0x11]  ;;  %528 = vst [vmem:[#allocation3 + $0x130] sm:$0x11] %v527_v14  ;;  %531 = vst [vmem:[#allocation3 + $0x148] sm:$0x11] %v530_v15 }
  0xc2   : > { %v533_v19 = vsel %vm21322_vm4, 0, %v532_v16  ;;  %v536_v22 = vsel %vm21322_vm4, 0, %v535_v18  ;;  %v538_v23 = vld [vmem:[#allocation3 + $0x190] sm:$0x11]  ;;  %v674_v24 = vrot.slane %v672_v20, 7  ;;  %v680_v25 = vshrl.u32 %v18557_v2, 16 }
  0xc3   : > { %534 = vst [vmem:[#allocation3 + $0x160] sm:$0x11] %v533_v19  ;;  %537 = vst [vmem:[#allocation3 + $0x178] sm:$0x11] %v536_v22  ;;  %v539_v26 = vsel %vm21322_vm4, 0, %v538_v23  ;;  %v683_v27 = vshll.u32 %v18557_v2, 16 }
  0xc4   : > { %v993_v29 = vld [vmem:[#allocation2 + $0xc] sm:$0xf]  ;;  %v332_v30 = vld [vmem:[#allocation2 + $0x18] sm:$0x1]  ;;  %540 = vst [vmem:[#allocation3 + $0x190] sm:$0x11] %v539_v26  ;;  %v677_v31 = vor.u32 %v675_v21, %v674_v24 }
  0xc5   : > { %v678_v32 = vrot.slane %v674_v24, 4  ;;  %v21386_v33 = vrot.slane %v680_v25, 7  ;;  %v17326_v34 = vld.sshfl [vmem:[#allocation6 + $0x4] sm:$0x33 pattern:$0x76325410] }
  0xc6   : > { %v25909_v35 = vmov 0  ;;  %v2033_v36 = vcombine.high %v17326_v34, %v17326_v34  ;;  %v2083_v37 = vsel %vm1276_vm0, %v17326_v34, 0  ;;  %v17444_v38 = vld.sshfl [vmem:[#allocation6 + $0x10] sm:$0x33 pattern:$0x76325410]  ;;  %v994_v21 = vsel %vm21374_vm7, %v677_v31, %v993_v29 }
  0xc7   : > { %v25910_v35 = vsel %vm21390_vm11, 4294967295, %v25909_v35  ;;  %v333_v39 = vsel %vm21267_vm5, 0, %v332_v30  ;;  %v685_v9 = vor.u32 %v683_v27, %v21386_v33  ;;  %v21400_v40 = vcombine.high %v17444_v38, %v17444_v38  ;;  %v543_v41 = vld [vmem:[%s21239_s2 + $0x10] sm:$0xff]  ;;  %v544_v42 = vld [vmem:[%s21239_s2 + $0x18] sm:$0xff]  ;;  %995 = vst [vmem:[#allocation2 + $0xc] sm:$0xf] %v994_v21 }
  0xc8   : > { %25911 = vst [vmem:[#allocation25_spill] sm:$0xff] %v25910_v35  ;;  %334 = vst [vmem:[#allocation2 + $0x18] sm:$0x1] %v333_v39  ;;  %v379_v43 = vld [vmem:[#allocation2 + $0x14] sm:$0x1]  ;;  %17327 = vmatprep.subr.msk.bf16.mxu1 %vm1276_vm0, %v2033_v36  ;;  %v21406_v44 = vsel %vm1276_vm0, %v17444_v38, 0  ;;  %v18558_v45 = vpack.c.bf16 %v543_v41, %v543_v41  ;;  %v18559_v46 = vpack.c.bf16 %v544_v42, %v544_v42 }
  0xc9   : > { %v17494_v47 = vld.sshfl [vmem:[#allocation6 + $0x14] sm:$0x33 pattern:$0x76325410]  ;;  %v380_v48 = vsel %vm21380_vm10, 0, %v379_v43  ;;  %v686_v49 = vsel %vm21390_vm11, %v678_v32, %v685_v9  ;;  %v687_v50 = vrot.slane %v21386_v33, 4  ;;  %2089 = vmatpush1.bf16.msra.mxu1 %v2083_v37  ;;  %17445 = vmatprep.subr.msk.bf16.mxu0 %vm1276_vm0, %v21400_v40 }
  0xca   : > { %v4940_v51 = vcombine.high %v17494_v47, %v17494_v47  ;;  %381 = vst [vmem:[#allocation2 + $0x14] sm:$0x1] %v380_v48  ;;  %v335_v52 = vld [vmem:[#allocation2 + $0x24] sm:$0x1]  ;;  %996 = vst.msk [vmem:[#allocation2 + $0x10] sm:$0xf] %vm316_vm1, %v686_v49  ;;  %4290 = vmatpush1.bf16.msra.mxu0 %v21406_v44 }
  0xcb   : > { %v689_v53 = vshrl.u32 %v18558_v45, 16  ;;  %v692_v54 = vshll.u32 %v18558_v45, 16  ;;  %v697_v55 = vshrl.u32 %v18559_v46, 16  ;;  %v700_v56 = vshll.u32 %v18559_v46, 16  ;;  %v545_v57 = vld [vmem:[%s21239_s2 + $0x20] sm:$0xff]  ;;  %v546_v58 = vld [vmem:[%s21239_s2 + $0x28] sm:$0xff] }
  0xcc   : > { %17495 = vmatprep.subr.msk.bf16.mxu0 %vm1276_vm0, %v4940_v51  ;;  %v21421_v59 = vsel %vm1276_vm0, %v17494_v47, 0  ;;  %v336_v60 = vsel %vm21267_vm5, 0, %v335_v52  ;;  %v18560_v61 = vpack.c.bf16 %v545_v57, %v545_v57  ;;  %v18561_v62 = vpack.c.bf16 %v546_v58, %v546_v58  ;;  %v382_v63 = vld [vmem:[#allocation2 + $0x20] sm:$0x1]  ;;  %v338_v1 = vld [vmem:[#allocation2 + $0x30] sm:$0x1] }
  0xcd   : > { %v691_v2 = vrot.slane %v689_v53, 7  ;;  %v699_v3 = vrot.slane %v697_v55, 7  ;;  %vm1588_vm2 = vsmask.f32 3328  ;;  %vm1589_vm3 = vsmask.f32 7440 }
  0xce   : > { %337 = vst [vmem:[#allocation2 + $0x24] sm:$0x1] %v336_v60  ;;  %v383_v5 = vsel %vm21380_vm10, 0, %v382_v63  ;;  %v339_v6 = vsel %vm21267_vm5, 0, %v338_v1  ;;  %v547_v8 = vld [vmem:[%s21239_s2 + $0x30] sm:$0xff]  ;;  %v548_v10 = vld [vmem:[%s21239_s2 + $0x38] sm:$0xff]  ;;  %vm21460_vm14 = vmor %vm1588_vm2, %vm1589_vm3 }
  0xcf   : > { %v706_v11 = vshrl.u32 %v18560_v61, 16  ;;  %v709_v12 = vshll.u32 %v18560_v61, 16  ;;  %v714_v13 = vshrl.u32 %v18561_v62, 16  ;;  %v717_v14 = vshll.u32 %v18561_v62, 16  ;;  %384 = vst [vmem:[#allocation2 + $0x20] sm:$0x1] %v383_v5 }
  0xd0   : > { %340 = vst [vmem:[#allocation2 + $0x30] sm:$0x1] %v339_v6  ;;  %v694_v15 = vor.u32 %v692_v54, %v691_v2  ;;  %v695_v16 = vrot.slane %v691_v2, 4  ;;  %v702_v18 = vor.u32 %v700_v56, %v699_v3  ;;  %v704_v19 = vrot.slane %v699_v3, 4  ;;  %v1000_v22 = vld [vmem:[#allocation2 + $0x18] sm:$0xf] }
  0xd1   : > { %v3744_v23 = vld [vmem:[#allocation2 + $0xc] sm:$0xf]  ;;  %v708_v24 = vrot.slane %v706_v11, 7  ;;  %v21431_v25 = vrot.slane %v714_v13, 7  ;;  %v18562_v26 = vpack.c.bf16 %v547_v8, %v547_v8  ;;  %v18563_v27 = vpack.c.bf16 %v548_v10, %v548_v10  ;;  %v997_v31 = vld [vmem:[#allocation2 + $0x14] sm:$0x1] }
  0xd2   : > { %v703_v29 = vsel %vm21390_vm11, %v695_v16, %v702_v18  ;;  %v1001_v30 = vsel %vm21374_vm7, %v694_v15, %v1000_v22  ;;  %v3793_v32 = vshrl.u32 %v3744_v23, 16  ;;  %v3796_v33 = vshll.u32 %v3744_v23, 16  ;;  %v20088_v34 = vld [vmem:[#allocation2 + $0xc] sm:$0xff]   ;;  %v549_v11 = vld [vmem:[%s21239_s2 + $0x40] sm:$0xff]  ;;  %p17630_p8 = scmp.ne.s32.totalorder %s20934_s23, 1 }
  0xd3   : > { %1002 = vst [vmem:[#allocation2 + $0x18] sm:$0xf] %v1001_v30  ;;  %1003 = vst.msk [vmem:[#allocation2 + $0x1c] sm:$0xf] %vm316_vm1, %v703_v29  ;;  %v998_v36 = vsel %vm21267_vm5, %v687_v50, %v997_v31  ;;  %v3745_v37 = vld [vmem:[#allocation2 + $0x10] sm:$0xf]  ;;  %v711_v38 = vor.u32 %v709_v12, %v708_v24  ;;  %v719_v9 = vor.u32 %v717_v14, %v21431_v25  ;;  %17295 = vmatmul.mubr.msk.bf16.gmra.mrb[4].mxu1 %vm1227_vm8, %v20088_v34 }
  0xd4   : > { %v712_v39 = vrot.slane %v708_v24, 4  ;;  %999 = vst [vmem:[#allocation2 + $0x14] sm:$0x1] %v998_v36  ;;  %v3795_v21 = vrot.slane %v3793_v32, 4  ;;  %v3798_v41 = vrot.slane %v3796_v33, 5  ;;  %v3802_v42 = vshll.u32 %v3745_v37, 16  ;;  %1335 = vmatprep.mubr.bf16.mxu1 %v20959_v4 }
  0xd5   : > { %v3806_v43 = vshrl.u32 %v3745_v37, 16  ;;  %v385_v45 = vld [vmem:[#allocation2 + $0x2c] sm:$0x1]  ;;  %v1007_v47 = vld [vmem:[#allocation2 + $0x24] sm:$0xf]  ;;  %v723_v48 = vshrl.u32 %v18562_v26, 16  ;;  %v18564_v34 = vpack.c.bf16 %v549_v11, %v549_v11 }
  0xd6   : > { %v720_v46 = vsel %vm21390_vm11, %v712_v39, %v719_v9  ;;  %v726_v49 = vshll.u32 %v18562_v26, 16  ;;  %v341_v50 = vld [vmem:[#allocation2 + $0x3c] sm:$0x1]  ;;  %v3799_v51 = vor.u32 %v3798_v41, %v3795_v21  ;;  %v21445_v52 = vrot.slane %v3802_v42, 5  ;;  %v1004_v55 = vld [vmem:[#allocation2 + $0x20] sm:$0x1] }
  0xd7   : > { %v3808_v53 = vrot.slane %v3806_v43, 4  ;;  %v1008_v54 = vsel %vm21374_vm7, %v711_v38, %v1007_v47  ;;  %1010 = vst.msk [vmem:[#allocation2 + $0x28] sm:$0xf] %vm316_vm1, %v720_v46  ;;  %v1005_v56 = vsel %vm21267_vm5, %v704_v19, %v1004_v55  ;;  %v725_v57 = vrot.slane %v723_v48, 7  ;;  %v1014_v63 = vld [vmem:[#allocation2 + $0x30] sm:$0xf] }
  0xd8   : > { %1009 = vst [vmem:[#allocation2 + $0x24] sm:$0xf] %v1008_v54  ;;  %v731_v58 = vshrl.u32 %v18563_v27, 16  ;;  %v734_v60 = vshll.u32 %v18563_v27, 16  ;;  %v721_v62 = vrot.slane %v21431_v25, 4  ;;  %v386_v1 = vsel %vm21380_vm10, 0, %v385_v45 }
  0xd9   : > { %v3809_v61 = vor.u32 %v3808_v53, %v21445_v52  ;;  %1006 = vst [vmem:[#allocation2 + $0x20] sm:$0x1] %v1005_v56  ;;  %v342_v2 = vsel %vm21267_vm5, 0, %v341_v50  ;;  %v3800_v5 = vrot.slane %v3799_v51, 4  ;;  %v728_v6 = vor.u32 %v726_v49, %v725_v57  ;;  %387 = vst [vmem:[#allocation2 + $0x2c] sm:$0x1] %v386_v1 }
  0xda   : > { %v729_v8 = vrot.slane %v725_v57, 4  ;;  %v21464_v10 = vrot.slane %v731_v58, 7  ;;  %343 = vst [vmem:[#allocation2 + $0x3c] sm:$0x1] %v342_v2  ;;  %v550_v12 = vld [vmem:[%s21239_s2 + $0x48] sm:$0xff]  ;;  %v20089_v13 = vld [vmem:[#allocation2 + $0x18] sm:$0xff]  }
  0xdb   : > { %v3810_v14 = vrot.slane %v3809_v61, 4  ;;  %v3746_v15 = vld [vmem:[#allocation2 + $0x14] sm:$0x1]  ;;  %v3747_v16 = vld [vmem:[#allocation2 + $0x18] sm:$0xf]  ;;  %v1015_v22 = vsel %vm21374_vm7, %v728_v6, %v1014_v63  ;;  %17296 = vmatmul.mubr.msk.bf16.gmra.mrb[8].mxu1 %vm1227_vm8, %v20089_v13  ;;  %v3805_v30 = vsel %vm21460_vm14, %v3800_v5, %v21445_v52  ;;  %v18565_v39 = vpack.c.bf16 %v550_v12, %v550_v12  ;;  %v553_v13 = vld [vmem:[%s21239_s2 + $0x60] sm:$0xff] }
  0xdc   : > { %v3748_v18 = vld [vmem:[#allocation2 + $0x1c] sm:$0xf]  ;;  %v736_v19 = vor.u32 %v734_v60, %v21464_v10  ;;  %v3812_v23 = vshll.u32 %v3746_v15, 16  ;;  %v3817_v24 = vshrl.u32 %v3747_v16, 16  ;;  %v3820_v25 = vshll.u32 %v3747_v16, 16  ;;  %v551_v27 = vld [vmem:[%s21239_s2 + $0x50] sm:$0xff]  ;;  %1345 = vmatprep.mubr.bf16.mxu1 %v20959_v4 }
  0xdd   : > { %v3826_v26 = vshll.u32 %v3748_v18, 16  ;;  %1016 = vst [vmem:[#allocation2 + $0x30] sm:$0xf] %v1015_v22  ;;  %v552_v29 = vld [vmem:[%s21239_s2 + $0x58] sm:$0xff]  ;;  %v3830_v31 = vshrl.u32 %v3748_v18, 16  ;;  %v21481_v43 = vpack.c.bf16 %v551_v27, %v551_v27  ;;  %v740_v5 = vshrl.u32 %v18564_v34, 16 }
  0xde   : > { %v737_v32 = vsel %vm21390_vm11, %v729_v8, %v736_v19  ;;  %v3751_v33 = vld [vmem:[#allocation2 + $0x28] sm:$0xf]  ;;  %v3814_v36 = vrot.slane %v3812_v23, 5  ;;  %v3819_v37 = vrot.slane %v3817_v24, 4  ;;  %v3822_v38 = vrot.slane %v3820_v25, 5 }
  0xdf   : > { %1017 = vst.msk [vmem:[#allocation2 + $0x34] sm:$0xf] %vm316_vm1, %v737_v32  ;;  %v3828_v21 = vrot.slane %v3826_v26, 5  ;;  %v3832_v41 = vrot.slane %v3830_v31, 4  ;;  %v3750_v42 = vld [vmem:[#allocation2 + $0x24] sm:$0xf]  ;;  %v21483_v45 = vpack.c.bf16 %v552_v29, %v552_v29 }
  0xe0   : > { %v3749_v9 = vld [vmem:[#allocation2 + $0x20] sm:$0x1]  ;;  %v3815_v46 = vsel %vm21460_vm14, %v3810_v14, %v3814_v36  ;;  %v3823_v47 = vor.u32 %v3822_v38, %v3819_v37  ;;  %v1011_v49 = vld [vmem:[#allocation2 + $0x2c] sm:$0x1]  ;;  %v3841_v50 = vshrl.u32 %v3750_v42, 16  ;;  %v20090_v52 = vld [vmem:[#allocation2 + $0x24] sm:$0xff]   ;;  %v21507_v36 = vpack.c.bf16 %v553_v13, %v553_v13 }
  0xe1   : > { %v3836_v48 = vshll.u32 %v3749_v9, 16  ;;  %v17428_v51 = vcombine.low %v3805_v30, %v3815_v46  ;;  %v3833_v53 = vor.u32 %v3832_v41, %v3828_v21  ;;  %v1012_v54 = vsel %vm21267_vm5, %v721_v62, %v1011_v49  ;;  %v388_v61 = vld [vmem:[#allocation2 + $0x38] sm:$0x1]  ;;  %v1021_v12 = vld [vmem:[#allocation2 + $0x3c] sm:$0xf] }
  0xe2   : > { %v3844_v55 = vshll.u32 %v3750_v42, 16  ;;  %v3824_v56 = vrot.slane %v3823_v47, 4  ;;  %1013 = vst [vmem:[#allocation2 + $0x2c] sm:$0x1] %v1012_v54  ;;  %v3843_v58 = vrot.slane %v3841_v50, 4  ;;  %v3850_v60 = vshll.u32 %v3751_v33, 16 }
  0xe3   : > { %v3838_v57 = vrot.slane %v3836_v48, 5  ;;  %17446 = vmatmul.mubr.msk.bf16.vlgmr.msra.gmra.mrb[0].mxu0 %vm1227_vm8, %v17428_v51  ;;  %v3834_v63 = vrot.slane %v3833_v53, 4  ;;  %v3854_v2 = vshrl.u32 %v3751_v33, 16  ;;  %v743_v8 = vshll.u32 %v18564_v34, 16  ;;  %17297 = vmatmul.mubr.msk.bf16.gmra.mrb[12].mxu1 %vm1227_vm8, %v20090_v52  ;;  %v344_v34 = vld [vmem:[#allocation2 + $0x48] sm:$0x1] }
  0xe4   : > { %v3846_v1 = vrot.slane %v3844_v55, 5  ;;  %4996 = vmatpush1.bf16.msra.mxu0 %v21421_v59  ;;  %4331 = vmatprep.mubr.bf16.mxu0 %v20959_v4  ;;  %v3829_v62 = vsel %vm21460_vm14, %v3824_v56, %v3828_v21  ;;  %v21494_v6 = vrot.slane %v3850_v60, 5  ;;  %v748_v11 = vshrl.u32 %v18565_v39, 16  ;;  %v3753_v59 = vld [vmem:[#allocation2 + $0x30] sm:$0xf]  ;;  %v556_v13 = vld [vmem:[%s21239_s2 + $0x78] sm:$0xff] }
  0xe5   : > { %v3839_v14 = vsel %vm21460_vm14, %v3834_v63, %v3838_v57  ;;  %v3856_v16 = vrot.slane %v3854_v2, 4  ;;  %v742_v18 = vrot.slane %v740_v5, 7  ;;  %1355 = vmatprep.mubr.bf16.mxu1 %v20959_v4  ;;  %v751_v23 = vshll.u32 %v18565_v39, 16  ;;  %v391_v49 = vld [vmem:[#allocation2 + $0x44] sm:$0x1] }
  0xe6   : > { %v3847_v15 = vor.u32 %v3846_v1, %v3843_v58  ;;  %v17429_v19 = vcombine.low %v3829_v62, %v3839_v14  ;;  %v21501_v22 = vrot.slane %v748_v11, 7  ;;  %v389_v24 = vsel %vm21380_vm10, 0, %v388_v61  ;;  %v3754_v25 = vld [vmem:[#allocation2 + $0x34] sm:$0xf]  ;;  %v554_v58 = vld [vmem:[%s21239_s2 + $0x68] sm:$0xff] }
  0xe7   : > { %v3857_v27 = vor.u32 %v3856_v16, %v21494_v6  ;;  %v745_v29 = vor.u32 %v743_v8, %v742_v18  ;;  %v746_v30 = vrot.slane %v742_v18, 4  ;;  %390 = vst [vmem:[#allocation2 + $0x38] sm:$0x1] %v389_v24  ;;  %v3865_v32 = vshrl.u32 %v3753_v59, 16  ;;  %v20091_v38 = vld [vmem:[#allocation2 + $0x30] sm:$0xff]  }
  0xe8   : > { %v3848_v26 = vrot.slane %v3847_v15, 4  ;;  %v753_v31 = vor.u32 %v751_v23, %v21501_v22  ;;  %v3868_v33 = vshll.u32 %v3753_v59, 16  ;;  %v738_v37 = vrot.slane %v21464_v10, 4  ;;  %v347_v53 = vld [vmem:[#allocation2 + $0x54] sm:$0x1] }
  0xe9   : > { %v3752_v39 = vld [vmem:[#allocation2 + $0x2c] sm:$0x1]  ;;  %v3858_v9 = vrot.slane %v3857_v27, 4  ;;  %v1022_v21 = vsel %vm21374_vm7, %v745_v29, %v1021_v12  ;;  %v3874_v41 = vshll.u32 %v3754_v25, 16  ;;  %v3867_v47 = vrot.slane %v3865_v32, 4  ;;  %v555_v8 = vld [vmem:[%s21239_s2 + $0x70] sm:$0xff] }
  0xea   : > { %v3860_v42 = vshll.u32 %v3752_v39, 16  ;;  %v754_v46 = vsel %vm21390_vm11, %v746_v30, %v753_v31  ;;  %1023 = vst [vmem:[#allocation2 + $0x3c] sm:$0xf] %v1022_v21  ;;  %v3870_v48 = vrot.slane %v3868_v33, 5  ;;  %v3853_v10 = vsel %vm21460_vm14, %v3848_v26, %v21494_v6  ;;  %v394_v30 = vld [vmem:[#allocation2 + $0x50] sm:$0x1] }
  0xeb   : > { %17447 = vmatmul.mubr.msk.bf16.gmra.mrb[4].mxu0 %vm1227_vm8, %v17429_v19  ;;  %1024 = vst.msk [vmem:[#allocation2 + $0x40] sm:$0xf] %vm316_vm1, %v754_v46  ;;  %v3878_v50 = vshrl.u32 %v3754_v25, 16  ;;  %v345_v51 = vsel %vm21267_vm5, 0, %v344_v34  ;;  %v757_v52 = vshrl.u32 %v21481_v43, 16  ;;  %v21523_v55 = vrot.slane %v3874_v41, 5  ;;  %17298 = vmatmul.mubr.msk.bf16.gmra.mrb[16].mxu1 %vm1227_vm8, %v20091_v38 }
  0xec   : > { %4341 = vmatprep.mubr.bf16.mxu0 %v20959_v4  ;;  %v3862_v54 = vrot.slane %v3860_v42, 5  ;;  %346 = vst [vmem:[#allocation2 + $0x48] sm:$0x1] %v345_v51  ;;  %v760_v56 = vshll.u32 %v21481_v43, 16  ;;  %v765_v57 = vshrl.u32 %v21483_v45, 16  ;;  %v3871_v60 = vor.u32 %v3870_v48, %v3867_v47  ;;  %1365 = vmatprep.mubr.bf16.mxu1 %v20959_v4 }
  0xed   : > { %v759_v61 = vrot.slane %v757_v52, 7  ;;  %v768_v63 = vshll.u32 %v21483_v45, 16  ;;  %v392_v1 = vsel %vm21380_vm10, 0, %v391_v49  ;;  %v3880_v43 = vrot.slane %v3878_v50, 4  ;;  %v350_v42 = vld [vmem:[#allocation2 + $0x60] sm:$0x1] }
  0xee   : > { %v3863_v2 = vsel %vm21460_vm14, %v3858_v9, %v3862_v54  ;;  %v1018_v5 = vld [vmem:[#allocation2 + $0x38] sm:$0x1]  ;;  %v21535_v62 = vrot.slane %v765_v57, 7  ;;  %393 = vst [vmem:[#allocation2 + $0x44] sm:$0x1] %v392_v1  ;;  %v348_v6 = vsel %vm21267_vm5, 0, %v347_v53  ;;  %v18569_v12 = vpack.c.bf16 %v554_v58, %v554_v58 }
  0xef   : > { %v17430_v11 = vcombine.low %v3853_v10, %v3863_v2  ;;  %v1019_v45 = vsel %vm21267_vm5, %v738_v37, %v1018_v5  ;;  %349 = vst [vmem:[#allocation2 + $0x54] sm:$0x1] %v348_v6  ;;  %v755_v14 = vrot.slane %v21501_v22, 4  ;;  %v762_v15 = vor.u32 %v760_v56, %v759_v61 }
  0xf0   : > { %1020 = vst [vmem:[#allocation2 + $0x38] sm:$0x1] %v1019_v45  ;;  %v763_v16 = vrot.slane %v759_v61, 4  ;;  %v770_v18 = vor.u32 %v768_v63, %v21535_v62  ;;  %v21545_v59 = vrot.slane %v3871_v60, 4  ;;  %v774_v23 = vshrl.u32 %v21507_v36, 16 }
  0xf1   : > { %v3756_v19 = vld [vmem:[#allocation2 + $0x3c] sm:$0xf]  ;;  %v21548_v24 = vpack.c.bf16 %v555_v8, %v555_v8  ;;  %v3881_v26 = vor.u32 %v3880_v43, %v21523_v55  ;;  %v21553_v31 = vpack.c.bf16 %v556_v13, %v556_v13  ;;  %v777_v21 = vshll.u32 %v21507_v36, 16 }
  0xf2   : > { %v20092_v25 = vld [vmem:[#allocation2 + $0x3c] sm:$0xff]   ;;  %v771_v27 = vsel %vm21390_vm11, %v763_v16, %v770_v18  ;;  %v3889_v22 = vshrl.u32 %v3756_v19, 16  ;;  %v3892_v33 = vshll.u32 %v3756_v19, 16  ;;  %v776_v38 = vrot.slane %v774_v23, 7 }
  0xf3   : > { %v3757_v29 = vld [vmem:[#allocation2 + $0x40] sm:$0xf]  ;;  %17448 = vmatmul.mubr.msk.bf16.gmra.mrb[8].mxu0 %vm1227_vm8, %v17430_v11  ;;  %v1028_v32 = vld [vmem:[#allocation2 + $0x48] sm:$0xf]  ;;  %1031 = vst.msk [vmem:[#allocation2 + $0x4c] sm:$0xf] %vm316_vm1, %v771_v27  ;;  %17299 = vmatmul.mubr.msk.bf16.gmra.mrb[20].mxu1 %vm1227_vm8, %v20092_v25  ;;  %v3877_v45 = vsel %vm21460_vm14, %v21545_v59, %v21523_v55 }
  0xf4   : > { %v3898_v34 = vshll.u32 %v3757_v29, 16  ;;  %v3902_v37 = vshrl.u32 %v3757_v29, 16  ;;  %4351 = vmatprep.mubr.bf16.mxu0 %v20959_v4  ;;  %v1029_v39 = vsel %vm21374_vm7, %v762_v15, %v1028_v32  ;;  %v3891_v9 = vrot.slane %v3889_v22, 4  ;;  %1375 = vmatprep.mubr.bf16.mxu1 %v20959_v4  ;;  %v557_v11 = vld [vmem:[%s21239_s2 + $0x80] sm:$0xff] }
  0xf5   : > { %v782_v41 = vshrl.u32 %v18569_v12, 16  ;;  %1030 = vst [vmem:[#allocation2 + $0x48] sm:$0xf] %v1029_v39  ;;  %v1025_v46 = vld [vmem:[#allocation2 + $0x44] sm:$0x1]  ;;  %v3894_v47 = vrot.slane %v3892_v33, 5  ;;  %v779_v51 = vor.u32 %v777_v21, %v776_v38  ;;  %v21597_v27 = vpack.c.bf16 %v557_v11, %v557_v11 }
  0xf6   : > { %v21562_v48 = vrot.slane %v3898_v34, 5  ;;  %v3904_v49 = vrot.slane %v3902_v37, 4  ;;  %v780_v10 = vrot.slane %v776_v38, 4  ;;  %v1026_v50 = vsel %vm21267_vm5, %v755_v14, %v1025_v46  ;;  %v1035_v53 = vld [vmem:[#allocation2 + $0x54] sm:$0xf]  ;;  %v558_v21 = vld [vmem:[%s21239_s2 + $0x88] sm:$0xff] }
  0xf7   : > { %v21567_v52 = vrot.slane %v782_v41, 7  ;;  %v785_v36 = vshll.u32 %v18569_v12, 16  ;;  %v3755_v54 = vld [vmem:[#allocation2 + $0x38] sm:$0x1]  ;;  %1027 = vst [vmem:[#allocation2 + $0x44] sm:$0x1] %v1026_v50  ;;  %v3895_v56 = vor.u32 %v3894_v47, %v3891_v9  ;;  %v1036_v1 = vsel %vm21374_vm7, %v779_v51, %v1035_v53 }
  0xf8   : > { %v395_v57 = vsel %vm21380_vm10, 0, %v394_v30  ;;  %v351_v58 = vsel %vm21267_vm5, 0, %v350_v42  ;;  %v3882_v60 = vrot.slane %v3881_v26, 4  ;;  %v3884_v61 = vshll.u32 %v3755_v54, 16  ;;  %1037 = vst [vmem:[#allocation2 + $0x54] sm:$0xf] %v1036_v1 }
  0xf9   : > { %v787_v63 = vor.u32 %v785_v36, %v21567_v52  ;;  %396 = vst [vmem:[#allocation2 + $0x50] sm:$0x1] %v395_v57  ;;  %352 = vst [vmem:[#allocation2 + $0x60] sm:$0x1] %v351_v58  ;;  %v21578_v5 = vrot.slane %v3895_v56, 4  ;;  %v3905_v43 = vor.u32 %v3904_v49, %v21562_v48  ;;  %v791_v6 = vshrl.u32 %v21548_v24, 16 }
  0xfa   : > { %v21576_v2 = vld.sshfl [vmem:[#allocation6 + $0x18] sm:$0x33 pattern:$0x76325410]  ;;  %v794_v8 = vshll.u32 %v21548_v24, 16  ;;  %v3886_v12 = vrot.slane %v3884_v61, 5 }
  0xfb   : > { %v788_v13 = vsel %vm21390_vm11, %v780_v10, %v787_v63  ;;  %v3760_v14 = vld [vmem:[#allocation2 + $0x4c] sm:$0xf]  ;;  %v799_v15 = vshrl.u32 %v21553_v31, 16  ;;  %v772_v16 = vrot.slane %v21535_v62, 4  ;;  %v793_v23 = vrot.slane %v791_v6, 7  ;;  %v559_v41 = vld [vmem:[%s21239_s2 + $0x90] sm:$0xff] }
  0xfc   : > { %1038 = vst.msk [vmem:[#allocation2 + $0x58] sm:$0xf] %vm316_vm1, %v788_v13  ;;  %v3922_v18 = vshll.u32 %v3760_v14, 16  ;;  %v3926_v19 = vshrl.u32 %v3760_v14, 16  ;;  %v397_v24 = vld [vmem:[#allocation2 + $0x5c] sm:$0x1]  ;;  %v3887_v25 = vsel %vm21460_vm14, %v3882_v60, %v3886_v12  ;;  %v5503_v62 = vcombine.high %v21576_v2, %v21576_v2 }
  0xfd   : > { %v20093_v26 = vld [vmem:[#allocation2 + $0x48] sm:$0xff]   ;;  %v21595_v59 = vrot.slane %v799_v15, 7  ;;  %v17431_v29 = vcombine.low %v3877_v45, %v3887_v25  ;;  %v3906_v22 = vrot.slane %v3905_v43, 4  ;;  %v3901_v37 = vsel %vm21460_vm14, %v21578_v5, %v21562_v48  ;;  %v356_v14 = vld [vmem:[#allocation2 + $0x78] sm:$0x1] }
  0xfe   : > { %v3759_v55 = vld [vmem:[#allocation2 + $0x48] sm:$0xf]  ;;  %v353_v33 = vld [vmem:[#allocation2 + $0x6c] sm:$0x1]  ;;  %17300 = vmatmul.mubr.msk.bf16.gmra.mrb[24].mxu1 %vm1227_vm8, %v20093_v26  ;;  %v3758_v34 = vld [vmem:[#allocation2 + $0x44] sm:$0x1]  ;;  %v796_v38 = vor.u32 %v794_v8, %v793_v23  ;;  %17529 = vmatprep.subr.msk.bf16.mxu0 %vm1276_vm0, %v5503_v62  ;;  %v18573_v63 = vpack.c.bf16 %v558_v21, %v558_v21  ;;  %v21629_v8 = vpack.c.bf16 %v559_v41, %v559_v41 }
  0xff   : > { %v3913_v30 = vshrl.u32 %v3759_v55, 16  ;;  %v3916_v32 = vshll.u32 %v3759_v55, 16  ;;  %v797_v39 = vrot.slane %v793_v23, 4  ;;  %v802_v9 = vshll.u32 %v21553_v31, 16  ;;  %17449 = vmatmul.mubr.msk.bf16.gmra.mrb[12].mxu0 %vm1227_vm8, %v17431_v29  ;;  %1385 = vmatprep.mubr.bf16.mxu1 %v20959_v4  ;;  %v3762_v57 = vld [vmem:[#allocation2 + $0x54] sm:$0xf] }
 0x100   : > { %v3908_v42 = vshll.u32 %v3758_v34, 16  ;;  %v1032_v46 = vld [vmem:[#allocation2 + $0x50] sm:$0x1]  ;;  %v21612_v10 = vrot.slane %v3922_v18, 5  ;;  %4361 = vmatprep.mubr.bf16.mxu0 %v20959_v4  ;;  %v3928_v31 = vrot.slane %v3926_v19, 4  ;;  %v398_v36 = vsel %vm21380_vm10, 0, %v397_v24 }
 0x101   : > { %v3915_v47 = vrot.slane %v3913_v30, 4  ;;  %v3918_v49 = vrot.slane %v3916_v32, 5  ;;  %v1033_v48 = vsel %vm21267_vm5, %v772_v16, %v1032_v46  ;;  %v804_v50 = vor.u32 %v802_v9, %v21595_v59  ;;  %v1042_v51 = vld [vmem:[#allocation2 + $0x60] sm:$0xf]  ;;  %399 = vst [vmem:[#allocation2 + $0x5c] sm:$0x1] %v398_v36 }
 0x102   : > { %v3910_v53 = vrot.slane %v3908_v42, 5  ;;  %1034 = vst [vmem:[#allocation2 + $0x50] sm:$0x1] %v1033_v48  ;;  %v1043_v56 = vsel %vm21374_vm7, %v796_v38, %v1042_v51  ;;  %v354_v4 = vsel %vm21267_vm5, 0, %v353_v33  ;;  %v3937_v5 = vshrl.u32 %v3762_v57, 16  ;;  %v560_v55 = vld [vmem:[%s21239_s2 + $0x98] sm:$0xff] }
 0x103   : > { %v3919_v54 = vor.u32 %v3918_v49, %v3915_v47  ;;  %v20094_v58 = vld [vmem:[#allocation2 + $0x54] sm:$0xff]   ;;  %v805_v60 = vsel %vm21390_vm11, %v797_v39, %v804_v50  ;;  %1044 = vst [vmem:[#allocation2 + $0x60] sm:$0xf] %v1043_v56  ;;  %355 = vst [vmem:[#allocation2 + $0x6c] sm:$0x1] %v354_v4  ;;  %v3940_v43 = vshll.u32 %v3762_v57, 16  ;;  %v3929_v16 = vor.u32 %v3928_v31, %v21612_v10 }
 0x104   : > { %v3763_v61 = vld [vmem:[#allocation2 + $0x58] sm:$0xf]  ;;  %v3911_v1 = vsel %vm21460_vm14, %v3906_v22, %v3910_v53  ;;  %1045 = vst.msk [vmem:[#allocation2 + $0x64] sm:$0xf] %vm316_vm1, %v805_v60  ;;  %v400_v6 = vld [vmem:[#allocation2 + $0x68] sm:$0x1]  ;;  %v18575_v41 = vpack.c.bf16 %v560_v55, %v560_v55 }
 0x105   : > { %v17432_v11 = vcombine.low %v3901_v37, %v3911_v1  ;;  %v789_v45 = vrot.slane %v21567_v52, 4  ;;  %v806_v12 = vrot.slane %v21595_v59, 4  ;;  %v808_v13 = vshrl.u32 %v21597_v27, 16  ;;  %v21639_v52 = vld [vmem:[#allocation3] sm:$0xff]  ;;  %v561_v60 = vld [vmem:[%s21239_s2 + $0xa0] sm:$0xff] }
 0x106   : > { %v3920_v15 = vrot.slane %v3919_v54, 4  ;;  %v3946_v18 = vshll.u32 %v3763_v61, 16  ;;  %v811_v19 = vshll.u32 %v21597_v27, 16  ;;  %17301 = vmatmul.mubr.msk.bf16.gmra.mrb[28].mxu1 %vm1227_vm8, %v20094_v58  ;;  %v3939_v23 = vrot.slane %v3937_v5, 4 }
 0x107   : > { %v3950_v24 = vshrl.u32 %v3763_v61, 16  ;;  %v810_v25 = vrot.slane %v808_v13, 7  ;;  %v816_v26 = vshrl.u32 %v18573_v63, 16  ;;  %17450 = vmatmul.mubr.msk.bf16.gmra.mrb[16].mxu0 %vm1227_vm8, %v17432_v11  ;;  %1395 = vmatprep.mubr.bf16.mxu1 %v21639_v52  ;;  %v3942_v62 = vrot.slane %v3940_v43, 5 }
 0x108   : > { %v819_v29 = vshll.u32 %v18573_v63, 16  ;;  %v401_v22 = vsel %vm21380_vm10, 0, %v400_v6  ;;  %v357_v27 = vsel %vm21267_vm5, 0, %v356_v14  ;;  %4371 = vmatprep.mubr.bf16.mxu0 %v21639_v52  ;;  %v1039_v32 = vld [vmem:[#allocation2 + $0x5c] sm:$0x1]  ;;  %v3930_v38 = vrot.slane %v3929_v16, 4 }
 0x109   : > { %v3761_v30 = vld [vmem:[#allocation2 + $0x50] sm:$0x1]  ;;  %v813_v33 = vor.u32 %v811_v19, %v810_v25  ;;  %v814_v34 = vrot.slane %v810_v25, 4  ;;  %v21647_v37 = vrot.slane %v816_v26, 7  ;;  %402 = vst [vmem:[#allocation2 + $0x68] sm:$0x1] %v401_v22  ;;  %v1040_v9 = vsel %vm21267_vm5, %v789_v45, %v1039_v32 }
 0x10a   : > { %358 = vst [vmem:[#allocation2 + $0x78] sm:$0x1] %v357_v27  ;;  %v3932_v39 = vshll.u32 %v3761_v30, 16  ;;  %v1049_v21 = vld [vmem:[#allocation2 + $0x6c] sm:$0xf]  ;;  %v21651_v46 = vrot.slane %v3946_v18, 5  ;;  %v3925_v31 = vsel %vm21460_vm14, %v3920_v15, %v21612_v10  ;;  %v3943_v51 = vor.u32 %v3942_v62, %v3939_v23 }
 0x10b   : > { %v20095_v42 = vld [vmem:[#allocation2 + $0x60] sm:$0xff]   ;;  %1041 = vst [vmem:[#allocation2 + $0x5c] sm:$0x1] %v1040_v9  ;;  %v3952_v47 = vrot.slane %v3950_v24, 4  ;;  %v821_v49 = vor.u32 %v819_v29, %v21647_v37  ;;  %v1050_v48 = vsel %vm21374_vm7, %v813_v33, %v1049_v21  ;;  %v825_v54 = vshrl.u32 %v21629_v8, 16  ;;  %v562_v16 = vld [vmem:[%s21239_s2 + $0xa8] sm:$0xff] }
 0x10c   : > { %v3934_v50 = vrot.slane %v3932_v39, 5  ;;  %1051 = vst [vmem:[#allocation2 + $0x6c] sm:$0xf] %v1050_v48  ;;  %v3765_v36 = vld [vmem:[#allocation2 + $0x60] sm:$0xf]  ;;  %v828_v1 = vshll.u32 %v21629_v8, 16  ;;  %v21671_v18 = vpack.c.bf16 %v561_v60, %v561_v60  ;;  %v18577_v32 = vpack.c.bf16 %v562_v16, %v562_v16 }
 0x10d   : > { %v3766_v53 = vld [vmem:[#allocation2 + $0x64] sm:$0xf]  ;;  %v822_v56 = vsel %vm21390_vm11, %v814_v34, %v821_v49  ;;  %v3961_v57 = vshrl.u32 %v3765_v36, 16  ;;  %v3964_v4 = vshll.u32 %v3765_v36, 16  ;;  %v827_v63 = vrot.slane %v825_v54, 7  ;;  %v563_v22 = vld [vmem:[%s21239_s2 + $0xb0] sm:$0xff] }
 0x10e   : > { %v3970_v58 = vshll.u32 %v3766_v53, 16  ;;  %v3935_v61 = vsel %vm21460_vm14, %v3930_v38, %v3934_v50  ;;  %1052 = vst.msk [vmem:[#allocation2 + $0x70] sm:$0xf] %vm316_vm1, %v822_v56  ;;  %v3974_v10 = vshrl.u32 %v3766_v53, 16  ;;  %17302 = vmatmul.mubr.msk.bf16.gmra.mrb[32].mxu1 %vm1227_vm8, %v20095_v42  ;;  %v3953_v43 = vor.u32 %v3952_v47, %v21651_v46  ;;  %v359_v30 = vld [vmem:[#allocation2 + $0x84] sm:$0x1] }
 0x10f   : > { %v17433_v5 = vcombine.low %v3925_v31, %v3935_v61  ;;  %v3963_v6 = vrot.slane %v3961_v57, 4  ;;  %v3966_v11 = vrot.slane %v3964_v4, 5  ;;  %v3944_v45 = vrot.slane %v3943_v51, 4  ;;  %1405 = vmatprep.mubr.bf16.mxu1 %v21639_v52  ;;  %v21687_v34 = vld [vmem:[#allocation2 + $0x10] sm:$0xf]  ;;  %v564_v38 = vld [vmem:[%s21239_s2 + $0xb8] sm:$0xff] }
 0x110   : > { %v1046_v13 = vld [vmem:[#allocation2 + $0x68] sm:$0x1]  ;;  %v830_v14 = vor.u32 %v828_v1, %v827_v63  ;;  %v833_v15 = vshrl.u32 %v18575_v41, 16  ;;  %v21678_v19 = vrot.slane %v3970_v58, 5  ;;  %v3976_v23 = vrot.slane %v3974_v10, 4  ;;  %v565_v47 = vld [vmem:[%s21239_s2 + $0xc0] sm:$0xff] }
 0x111   : > { %17451 = vmatmul.mubr.msk.bf16.gmra.mrb[20].mxu0 %vm1227_vm8, %v17433_v5  ;;  %v1047_v8 = vsel %vm21267_vm5, %v806_v12, %v1046_v13  ;;  %v836_v24 = vshll.u32 %v18575_v41, 16  ;;  %v1056_v25 = vld [vmem:[#allocation2 + $0x78] sm:$0xf]  ;;  %v3967_v55 = vor.u32 %v3966_v11, %v3963_v6  ;;  %v831_v62 = vrot.slane %v827_v63, 4  ;;  %v362_v51 = vld [vmem:[#allocation2 + $0x90] sm:$0x1] }
 0x112   : > { %4381 = vmatprep.mubr.bf16.mxu0 %v21639_v52  ;;  %v3764_v26 = vld [vmem:[#allocation2 + $0x5c] sm:$0x1]  ;;  %1048 = vst [vmem:[#allocation2 + $0x68] sm:$0x1] %v1047_v8  ;;  %v21681_v29 = vrot.slane %v833_v15, 7  ;;  %v1057_v59 = vsel %vm21374_vm7, %v830_v14, %v1056_v25  ;;  %v3954_v12 = vrot.slane %v3953_v43, 4  ;;  %v3949_v39 = vsel %vm21460_vm14, %v3944_v45, %v21651_v46 }
 0x113   : > { %v3956_v27 = vshll.u32 %v3764_v26, 16  ;;  %1058 = vst [vmem:[#allocation2 + $0x78] sm:$0xf] %v1057_v59  ;;  %vm2569_vm15 = vcmask 1042432   ;;  %v3977_v41 = vor.u32 %v3976_v23, %v21678_v19  ;;  %v18578_v42 = vpack.c.bf16 %v563_v22, %v563_v22  ;;  %v4674_v57 = vld [vmem:[#allocation2 + $0xc] sm:$0xe] }
 0x114   : > { %v838_v33 = vor.u32 %v836_v24, %v21681_v29  ;;  %v3968_v49 = vrot.slane %v3967_v55, 4  ;;  %v360_v31 = vsel %vm21267_vm5, 0, %v359_v30  ;;  %v842_v50 = vshrl.u32 %v21671_v18, 16  ;;  %v4676_v4 = vld [vmem:[#allocation2 + $0x14] sm:$0x1] }
 0x115   : > { %v3958_v9 = vrot.slane %v3956_v27, 5  ;;  %v20096_v21 = vld [vmem:[#allocation2 + $0x6c] sm:$0xff]   ;;  %361 = vst [vmem:[#allocation2 + $0x84] sm:$0x1] %v360_v31  ;;  %v845_v46 = vshll.u32 %v21671_v18, 16  ;;  %v850_v53 = vshrl.u32 %v18577_v32, 16  ;;  %v18579_v60 = vpack.c.bf16 %v564_v38, %v564_v38 }
 0x116   : > { %v839_v48 = vsel %vm21390_vm11, %v831_v62, %v838_v33  ;;  %17303 = vmatmul.mubr.msk.bf16.gmra.mrb[36].mxu1 %vm1227_vm8, %v20096_v21  ;;  %v853_v54 = vshll.u32 %v18577_v32, 16  ;;  %v844_v58 = vrot.slane %v842_v50, 7  ;;  %v21706_v61 = vpack.c.bf16 %v565_v47, %v565_v47  ;;  %v21719_v8 = vld [vmem:[#allocation2 + $0x1c] sm:$0xf] }
 0x117   : > { %v3959_v36 = vsel %vm21460_vm14, %v3954_v12, %v3958_v9  ;;  %1059 = vst.msk [vmem:[#allocation2 + $0x7c] sm:$0xf] %vm316_vm1, %v839_v48  ;;  %1415 = vmatprep.mubr.bf16.mxu1 %v21639_v52  ;;  %vm2570_vm4 = vcmask 1046532   ;;  %v4772_v63 = vrot.slane %v21687_v34, 5  ;;  %v21709_v1 = vrot.slane %v850_v53, 7  ;;  %v566_v12 = vld [vmem:[%s21239_s2 + $0xc8] sm:$0xff] }
 0x118   : > { %v17434_v56 = vcombine.low %v3949_v39, %v3959_v36  ;;  %v363_v5 = vsel %vm21267_vm5, 0, %v362_v51  ;;  %v3978_v43 = vrot.slane %v3977_v41, 4  ;;  %v848_v11 = vrot.slane %v844_v58, 4  ;;  %vm21723_vm6 = vmor %vm2569_vm15, %vm2570_vm4  ;;  %v365_v22 = vld [vmem:[#allocation2 + $0x9c] sm:$0x1] }
 0x119   : > { %v3767_v10 = vld [vmem:[#allocation2 + $0x68] sm:$0x1]  ;;  %364 = vst [vmem:[#allocation2 + $0x90] sm:$0x1] %v363_v5  ;;  %v859_v45 = vshrl.u32 %v18578_v42, 16  ;;  %v3973_v13 = vsel %vm21460_vm14, %v3968_v49, %v21678_v19  ;;  %v17462_v14 = vrot.slane %v4674_v57, 9  ;;  %v847_v15 = vor.u32 %v845_v46, %v844_v58 }
 0x11a   : > { %17452 = vmatmul.mubr.msk.bf16.gmra.mrb[24].mxu0 %vm1227_vm8, %v17434_v56  ;;  %v3980_v6 = vshll.u32 %v3767_v10, 16  ;;  %v855_v16 = vor.u32 %v853_v54, %v21709_v1  ;;  %v862_v24 = vshll.u32 %v18578_v42, 16  ;;  %v867_v25 = vshrl.u32 %v18579_v60, 16  ;;  %v4677_v48 = vld [vmem:[#allocation2 + $0x18] sm:$0xe]  ;;  %v567_v57 = vld [vmem:[%s21239_s2 + $0xd0] sm:$0xff] }
 0x11b   : > { %4391 = vmatprep.mubr.bf16.mxu0 %v21639_v52  ;;  %v861_v23 = vrot.slane %v859_v45, 7  ;;  %v4774_v55 = vrot.slane %v4772_v63, 4  ;;  %v4775_v62 = vrot.slane %v4676_v4, 5  ;;  %v870_v59 = vshll.u32 %v18579_v60, 16  ;;  %v368_v56 = vld [vmem:[#allocation2 + $0xa8] sm:$0x1] }
 0x11c   : > { %v3982_v18 = vrot.slane %v3980_v6, 5  ;;  %v856_v19 = vsel %vm21390_vm11, %v848_v11, %v855_v16  ;;  %v1063_v32 = vld [vmem:[#allocation2 + $0x84] sm:$0xf]  ;;  %v21735_v9 = vrot.slane %v867_v25, 7  ;;  %v366_v21 = vsel %vm21267_vm5, 0, %v365_v22  ;;  %v568_v10 = vld [vmem:[%s21239_s2 + $0xd8] sm:$0xff] }
 0x11d   : > { %1066 = vst.msk [vmem:[#allocation2 + $0x88] sm:$0xf] %vm316_vm1, %v856_v19  ;;  %v864_v33 = vor.u32 %v862_v24, %v861_v23  ;;  %v1064_v38 = vsel %vm21374_vm7, %v847_v15, %v1063_v32  ;;  %v865_v39 = vrot.slane %v861_v23, 4  ;;  %v18581_v41 = vpack.c.bf16 %v566_v12, %v566_v12  ;;  %367 = vst [vmem:[#allocation2 + $0x9c] sm:$0x1] %v366_v21  ;;  %v569_v12 = vld [vmem:[%s21239_s2 + $0xe0] sm:$0xff] }
 0x11e   : > { %v3983_v27 = vsel %vm21460_vm14, %v3978_v43, %v3982_v18  ;;  %v20097_v30 = vld [vmem:[#allocation2 + $0x78] sm:$0xff]   ;;  %1065 = vst [vmem:[#allocation2 + $0x84] sm:$0xf] %v1064_v38  ;;  %v876_v42 = vshrl.u32 %v21706_v61, 16  ;;  %v4773_v47 = vsel %vm21723_vm6, %v17462_v14, %v4772_v63  ;;  %v4776_v49 = vsel %vm21723_vm6, %v4774_v55, %v4775_v62  ;;  %v4679_v4 = vld [vmem:[#allocation2 + $0x20] sm:$0x1] }
 0x11f   : > { %v17435_v34 = vcombine.low %v3973_v13, %v3983_v27  ;;  %17304 = vmatmul.mubr.msk.bf16.gmra.mrb[40].mxu1 %vm1227_vm8, %v20097_v30  ;;  %v4779_v31 = vrot.slane %v21719_v8, 5  ;;  %v872_v50 = vor.u32 %v870_v59, %v21735_v9  ;;  %v879_v53 = vshll.u32 %v21706_v61, 16  ;;  %v21762_v15 = vld [vmem:[#allocation2 + $0x28] sm:$0xf]  ;;  %v371_v8 = vld [vmem:[#allocation2 + $0xb4] sm:$0x1] }
 0x120   : > { %1425 = vmatprep.mubr.bf16.mxu1 %v21639_v52  ;;  %v1070_v51 = vld [vmem:[#allocation2 + $0x90] sm:$0xf]  ;;  %v878_v46 = vrot.slane %v876_v42, 7  ;;  %v884_v54 = vshrl.u32 %v18581_v41, 16  ;;  %v887_v60 = vshll.u32 %v18581_v41, 16  ;;  %v17478_v63 = vcombine.low %v4773_v47, %v4776_v49  ;;  %v570_v32 = vld [vmem:[%s21239_s2 + $0xe8] sm:$0xff] }
 0x121   : > { %v1071_v36 = vsel %vm21374_vm7, %v864_v33, %v1070_v51  ;;  %v873_v58 = vsel %vm21390_vm11, %v865_v39, %v872_v50  ;;  %v17463_v6 = vrot.slane %v4677_v48, 9  ;;  %v369_v11 = vsel %vm21267_vm5, 0, %v368_v56  ;;  %v4680_v47 = vld [vmem:[#allocation2 + $0x24] sm:$0xe]  ;;  %v4682_v49 = vld [vmem:[#allocation2 + $0x2c] sm:$0x1] }
 0x122   : > { %17453 = vmatmul.mubr.msk.bf16.gmra.mrb[28].mxu0 %vm1227_vm8, %v17435_v34  ;;  %1072 = vst [vmem:[#allocation2 + $0x90] sm:$0xf] %v1071_v36  ;;  %1073 = vst.msk [vmem:[#allocation2 + $0x94] sm:$0xf] %vm316_vm1, %v873_v58  ;;  %v882_v5 = vrot.slane %v878_v46, 4  ;;  %v21758_v43 = vrot.slane %v884_v54, 7  ;;  %v881_v61 = vor.u32 %v879_v53, %v878_v46  ;;  %v18582_v45 = vpack.c.bf16 %v567_v57, %v567_v57 }
 0x123   : > { %5027 = vmatprep.mubr.bf16.mxu0 %v21639_v52  ;;  %v4781_v13 = vrot.slane %v4779_v31, 4  ;;  %v4782_v14 = vrot.slane %v4679_v4, 5  ;;  %370 = vst [vmem:[#allocation2 + $0xa8] sm:$0x1] %v369_v11  ;;  %v18583_v18 = vpack.c.bf16 %v568_v10, %v568_v10  ;;  %v5553_v55 = vsel %vm1276_vm0, %v21576_v2, 0 }
 0x124   : > { %v889_v16 = vor.u32 %v887_v60, %v21758_v43  ;;  %v893_v24 = vshrl.u32 %v18582_v45, 16  ;;  %v896_v25 = vshll.u32 %v18582_v45, 16  ;;  %v1077_v19 = vld [vmem:[#allocation2 + $0x9c] sm:$0xf]  ;;  %v4780_v2 = vsel %vm21723_vm6, %v17463_v6, %v4779_v31  ;;  %v4683_v45 = vld [vmem:[#allocation2 + $0x30] sm:$0xe] }
 0x125   : > { %v20098_v23 = vld [vmem:[#allocation2 + $0x84] sm:$0xff]   ;;  %v901_v59 = vshrl.u32 %v18583_v18, 16  ;;  %v904_v22 = vshll.u32 %v18583_v18, 16  ;;  %v1078_v27 = vsel %vm21374_vm7, %v881_v61, %v1077_v19  ;;  %v4783_v33 = vsel %vm21723_vm6, %v4781_v13, %v4782_v14  ;;  %v4685_v13 = vld [vmem:[#allocation2 + $0x38] sm:$0x1] }
 0x126   : > { %v890_v62 = vsel %vm21390_vm11, %v882_v5, %v889_v16  ;;  %v895_v30 = vrot.slane %v893_v24, 7  ;;  %v4786_v34 = vrot.slane %v21762_v15, 5  ;;  %1079 = vst [vmem:[#allocation2 + $0x9c] sm:$0xf] %v1078_v27  ;;  %v372_v41 = vsel %vm21267_vm5, 0, %v371_v8 }
 0x127   : > { %17305 = vmatmul.mubr.msk.bf16.gmra.mrb[44].mxu1 %vm1227_vm8, %v20098_v23  ;;  %1080 = vst.msk [vmem:[#allocation2 + $0xa0] sm:$0xf] %vm316_vm1, %v890_v62  ;;  %v21782_v38 = vrot.slane %v901_v59, 7  ;;  %v18584_v42 = vpack.c.bf16 %v569_v12, %v569_v12  ;;  %373 = vst [vmem:[#allocation2 + $0xb4] sm:$0x1] %v372_v41  ;;  %v18585_v31 = vpack.c.bf16 %v570_v32, %v570_v32  ;;  %v17464_v58 = vrot.slane %v4680_v47, 9 }
 0x128   : > { %1435 = vmatprep.mubr.bf16.mxu1 %v21639_v52  ;;  %v898_v39 = vor.u32 %v896_v25, %v895_v30  ;;  %v899_v21 = vrot.slane %v895_v30, 4  ;;  %v17479_v50 = vcombine.low %v4780_v2, %v4783_v33  ;;  %v4788_v60 = vrot.slane %v4786_v34, 4  ;;  %v21804_v23 = vld.sshfl [vmem:[#allocation6 + $0x8] sm:$0x33 pattern:$0x76325410] }
 0x129   : > { %v906_v48 = vor.u32 %v904_v22, %v21782_v38  ;;  %v20099_v51 = vld [vmem:[#allocation2 + $0x90] sm:$0xff]   ;;  %v910_v46 = vshrl.u32 %v18584_v42, 16  ;;  %v913_v53 = vshll.u32 %v18584_v42, 16  ;;  %v918_v57 = vshrl.u32 %v18585_v31, 16  ;;  %v1541_v62 = vld [vmem:[#allocation2 + $0x4] sm:$0xf] }
 0x12a   : > { %17496 = vmatmul.mubr.msk.bf16.vlgmr.msra.gmra.mrb[0].mxu0 %vm1227_vm8, %v17478_v63  ;;  %v1084_v36 = vld [vmem:[#allocation2 + $0xa8] sm:$0xf]  ;;  %v921_v4 = vshll.u32 %v18585_v31, 16  ;;  %v4789_v10 = vrot.slane %v4682_v49, 5  ;;  %v4684_v63 = vld [vmem:[#allocation2 + $0x34] sm:$0xf]  ;;  %v4787_v16 = vsel %vm21723_vm6, %v17464_v58, %v4786_v34  ;;  %v2742_v30 = vcombine.high %v21804_v23, %v21804_v23 }
 0x12b   : > { %5559 = vmatpush1.bf16.msra.mxu0 %v5553_v55  ;;  %5037 = vmatprep.mubr.bf16.mxu0 %v21639_v52  ;;  %v907_v54 = vsel %vm21390_vm11, %v899_v21, %v906_v48  ;;  %v1085_v56 = vsel %vm21374_vm7, %v898_v39, %v1084_v36  ;;  %v912_v5 = vrot.slane %v910_v46, 7  ;;  %v21793_v6 = vrot.slane %v918_v57, 7  ;;  %v1540_v55 = vld [vmem:[#allocation2] sm:$0xf]  ;;  %v4686_v42 = vld [vmem:[#allocation2 + $0x3c] sm:$0xe] }
 0x12c   : > { %1086 = vst [vmem:[#allocation2 + $0xa8] sm:$0xf] %v1085_v56  ;;  %1087 = vst.msk [vmem:[#allocation2 + $0xac] sm:$0xf] %vm316_vm1, %v907_v54  ;;  %v4793_v14 = vrot.slane %v4684_v63, 5  ;;  %v4790_v18 = vsel %vm21723_vm6, %v4788_v60, %v4789_v10  ;;  %v17465_v59 = vrot.slane %v4683_v45, 9  ;;  %17377 = vmatprep.subr.msk.bf16.mxu1 %vm1276_vm0, %v2742_v30 }
 0x12d   : > { %v915_v61 = vor.u32 %v913_v53, %v912_v5  ;;  %v916_v11 = vrot.slane %v912_v5, 4  ;;  %v923_v15 = vor.u32 %v921_v4, %v21793_v6  ;;  %v17480_v22 = vcombine.low %v4787_v16, %v4790_v18  ;;  %v4687_v32 = vld [vmem:[#allocation2 + $0x40] sm:$0xf]  ;;  %v4688_v49 = vld [vmem:[#allocation2 + $0x44] sm:$0x1] }
 0x12e   : > { %v1091_v8 = vld [vmem:[#allocation2 + $0xb4] sm:$0xf]  ;;  %v20100_v19 = vld [vmem:[#allocation2 + $0x9c] sm:$0xff]   ;;  %v4795_v12 = vrot.slane %v4793_v14, 4  ;;  %v4796_v27 = vrot.slane %v4685_v13, 5  ;;  %v1592_v2 = vshrl.u32 %v1540_v55, 16  ;;  %v4794_v21 = vsel %vm21723_vm6, %v17465_v59, %v4793_v14 }
 0x12f   : > { %17306 = vmatmul.mubr.msk.bf16.gmra.mrb[48].mxu1 %vm1227_vm8, %v20099_v51  ;;  %v924_v24 = vsel %vm21390_vm11, %v916_v11, %v923_v15  ;;  %v1092_v25 = vsel %vm21374_vm7, %v915_v61, %v1091_v8  ;;  %v1595_v33 = vshll.u32 %v1540_v55, 16  ;;  %v1601_v34 = vshll.u32 %v1541_v62, 16  ;;  %v1542_v36 = vld [vmem:[#allocation2 + $0x8] sm:$0x1]  ;;  %v1543_v53 = vld [vmem:[#allocation2 + $0xc] sm:$0xf] }
 0x130   : > { %1445 = vmatprep.mubr.bf16.mxu1 %v21639_v52  ;;  %1093 = vst [vmem:[#allocation2 + $0xb4] sm:$0xf] %v1092_v25  ;;  %1094 = vst.msk [vmem:[#allocation2 + $0xb8] sm:$0xf] %vm316_vm1, %v924_v24  ;;  %v1605_v39 = vshrl.u32 %v1541_v62, 16  ;;  %v4797_v41 = vsel %vm21723_vm6, %v4795_v12, %v4796_v27  ;;  %v4800_v47 = vrot.slane %v4687_v32, 5 }
 0x131   : > { %v1594_v48 = vrot.slane %v1592_v2, 4  ;;  %v1597_v31 = vrot.slane %v1595_v33, 5  ;;  %v1544_v54 = vld [vmem:[#allocation2 + $0x10] sm:$0xf]  ;;  %v17481_v56 = vcombine.low %v4794_v21, %v4797_v41  ;;  %v17466_v57 = vrot.slane %v4686_v42, 9 }
 0x132   : > { %17497 = vmatmul.mubr.msk.bf16.gmra.mrb[4].mxu0 %vm1227_vm8, %v17479_v50  ;;  %v21822_v50 = vrot.slane %v1601_v34, 5  ;;  %v1607_v51 = vrot.slane %v1605_v39, 4  ;;  %v4802_v4 = vrot.slane %v4800_v47, 4  ;;  %v4803_v58 = vrot.slane %v4688_v49, 5  ;;  %v403_v60 = vld [vmem:[#allocation2 + $0x74] sm:$0x1] }
 0x133   : > { %5047 = vmatprep.mubr.bf16.mxu0 %v21639_v52  ;;  %v20101_v46 = vld [vmem:[#allocation2 + $0xa8] sm:$0xff]   ;;  %v1598_v63 = vor.u32 %v1597_v31, %v1594_v48  ;;  %v1611_v61 = vshll.u32 %v1542_v36, 16  ;;  %v1616_v11 = vshrl.u32 %v1543_v53, 16  ;;  %v1619_v45 = vshll.u32 %v1543_v53, 16  ;;  %v4691_v24 = vld [vmem:[#allocation2 + $0x50] sm:$0x1] }
 0x134   : > { %v4690_v10 = vld [vmem:[#allocation2 + $0x4c] sm:$0xf]  ;;  %v1608_v5 = vor.u32 %v1607_v51, %v21822_v50  ;;  %v1625_v13 = vshll.u32 %v1544_v54, 16  ;;  %v1629_v14 = vshrl.u32 %v1544_v54, 16  ;;  %v4689_v15 = vld [vmem:[#allocation2 + $0x48] sm:$0xe]  ;;  %v4801_v18 = vsel %vm21723_vm6, %v17466_v57, %v4800_v47 }
 0x135   : > { %v404_v16 = vsel %vm21380_vm10, 0, %v403_v60  ;;  %v4804_v8 = vsel %vm21723_vm6, %v4802_v4, %v4803_v58  ;;  %v4807_v25 = vrot.slane %v4690_v10, 5  ;;  %v21834_v55 = vld [vmem:[#allocation2 + $0x58] sm:$0xf]  ;;  %v1599_v62 = vrot.slane %v1598_v63, 4 }
 0x136   : > { %405 = vst [vmem:[#allocation2 + $0x74] sm:$0x1] %v404_v16  ;;  %v1613_v59 = vrot.slane %v1611_v61, 5  ;;  %v1618_v12 = vrot.slane %v1616_v11, 4  ;;  %v1621_v27 = vrot.slane %v1619_v45, 5  ;;  %v21837_v30 = vrot.slane %v1625_v13, 5 }
 0x137   : > { %17307 = vmatmul.mubr.msk.bf16.gmra.mrb[52].mxu1 %vm1227_vm8, %v20100_v19  ;;  %v1609_v19 = vrot.slane %v1608_v5, 4  ;;  %v1631_v32 = vrot.slane %v1629_v14, 4  ;;  %v406_v2 = vld [vmem:[#allocation2 + $0x80] sm:$0x1]  ;;  %v823_v33 = vrot.slane %v21647_v37, 4  ;;  %v840_v34 = vrot.slane %v21681_v29, 4 }
 0x138   : > { %1455 = vmatprep.mubr.bf16.mxu1 %v21639_v52  ;;  %v17482_v39 = vcombine.low %v4801_v18, %v4804_v8  ;;  %v20102_v21 = vld [vmem:[#allocation2 + $0xb4] sm:$0xff]   ;;  %v17467_v42 = vrot.slane %v4689_v15, 9  ;;  %v4809_v47 = vrot.slane %v4807_v25, 4  ;;  %v4810_v49 = vrot.slane %v4691_v24, 5  ;;  %v1547_v31 = vld [vmem:[#allocation2 + $0x1c] sm:$0xf] }
 0x139   : > { %v1546_v41 = vld [vmem:[#allocation2 + $0x18] sm:$0xf]  ;;  %v4814_v48 = vrot.slane %v21834_v55, 5  ;;  %v1604_v51 = vsel %vm21460_vm14, %v1599_v62, %v21822_v50  ;;  %v1614_v36 = vsel %vm21460_vm14, %v1609_v19, %v1613_v59  ;;  %v407_v53 = vsel %vm21380_vm10, 0, %v406_v2  ;;  %v4694_v54 = vld [vmem:[#allocation2 + $0x5c] sm:$0x1] }
 0x13a   : > { %17498 = vmatmul.mubr.msk.bf16.gmra.mrb[8].mxu0 %vm1227_vm8, %v17480_v22  ;;  %v1545_v22 = vld [vmem:[#allocation2 + $0x14] sm:$0x1]  ;;  %v1632_v57 = vor.u32 %v1631_v32, %v21837_v30  ;;  %v1640_v4 = vshrl.u32 %v1546_v41, 16  ;;  %v1643_v58 = vshll.u32 %v1546_v41, 16  ;;  %v1549_v60 = vld [vmem:[#allocation2 + $0x24] sm:$0xf]  ;;  %v4808_v61 = vsel %vm21723_vm6, %v17467_v42, %v4807_v25 }
 0x13b   : > { %5057 = vmatprep.mubr.bf16.mxu0 %v21639_v52  ;;  %v1635_v37 = vshll.u32 %v1545_v22, 16  ;;  %408 = vst [vmem:[#allocation2 + $0x80] sm:$0x1] %v407_v53  ;;  %v1649_v10 = vshll.u32 %v1547_v31, 16  ;;  %v1653_v50 = vshrl.u32 %v1547_v31, 16  ;;  %v4811_v11 = vsel %vm21723_vm6, %v4809_v47, %v4810_v49 }
 0x13c   : > { %v1550_v5 = vld [vmem:[#allocation2 + $0x28] sm:$0xf]  ;;  %v409_v14 = vld [vmem:[#allocation2 + $0x8c] sm:$0x1]  ;;  %v17310_v15 = vcombine.low %v1604_v51, %v1614_v36  ;;  %v4816_v16 = vrot.slane %v4814_v48, 4  ;;  %v4817_v18 = vrot.slane %v4694_v54, 5  ;;  %v17483_v2 = vcombine.low %v4808_v61, %v4811_v11 }
 0x13d   : > { %v1053_v63 = vld [vmem:[#allocation2 + $0x74] sm:$0x1]  ;;  %v1637_v8 = vrot.slane %v1635_v37, 5  ;;  %v1633_v55 = vrot.slane %v1632_v57, 4  ;;  %v21860_v25 = vld [vmem:[#allocation2 + $0x64] sm:$0xf] }
 0x13e   : > { %v1054_v13 = vsel %vm21267_vm5, %v823_v33, %v1053_v63  ;;  %v1642_v62 = vrot.slane %v1640_v4, 4  ;;  %v1645_v19 = vrot.slane %v1643_v58, 5  ;;  %v1548_v59 = vld [vmem:[#allocation2 + $0x20] sm:$0x1]  ;;  %v21862_v22 = vrot.slane %v1649_v10, 5 }
 0x13f   : > { %17308 = vmatmul.mubr.msk.bf16.gmra.mrb[56].mxu1 %vm1227_vm8, %v20101_v46  ;;  %v4692_v46 = vld [vmem:[#allocation2 + $0x54] sm:$0xe]  ;;  %1055 = vst [vmem:[#allocation2 + $0x74] sm:$0x1] %v1054_v13  ;;  %v410_v32 = vsel %vm21380_vm10, 0, %v409_v14  ;;  %v1667_v33 = vshll.u32 %v1549_v60, 16  ;;  %v4818_v47 = vsel %vm21723_vm6, %v4816_v16, %v4817_v18 }
 0x140   : > { %1465 = vmatprep.mubr.bf16.mxu1 %v21639_v52  ;;  %v17468_v45 = vrot.slane %v4692_v46, 9  ;;  %411 = vst [vmem:[#allocation2 + $0x8c] sm:$0x1] %v410_v32  ;;  %v857_v41 = vrot.slane %v21709_v1, 4  ;;  %v2792_v49 = vsel %vm1276_vm0, %v21804_v23, 0  ;;  %v1638_v46 = vsel %vm21460_vm14, %v1633_v55, %v1637_v8 }
 0x141   : > { %v412_v51 = vld [vmem:[#allocation2 + $0x98] sm:$0x1]  ;;  %v4695_v1 = vld [vmem:[#allocation2 + $0x60] sm:$0xe]  ;;  %v4821_v37 = vrot.slane %v21860_v25, 5  ;;  %v1646_v53 = vor.u32 %v1645_v19, %v1642_v62  ;;  %v1669_v4 = vrot.slane %v1667_v33, 5 }
 0x142   : > { %17499 = vmatmul.mubr.msk.bf16.gmra.mrb[12].mxu0 %vm1227_vm8, %v17481_v56  ;;  %v1622_v56 = vor.u32 %v1621_v27, %v1618_v12  ;;  %v1655_v12 = vrot.slane %v1653_v50, 4  ;;  %v1664_v27 = vshrl.u32 %v1549_v60, 16  ;;  %v21869_v42 = vsel %vm21723_vm6, %v17468_v45, %v4814_v48  ;;  %v1060_v31 = vld [vmem:[#allocation2 + $0x80] sm:$0x1]  ;;  %v4697_v23 = vld [vmem:[#allocation2 + $0x68] sm:$0x1] }
 0x143   : > { %5067 = vmatprep.mubr.bf16.mxu0 %v21639_v52  ;;  %v1061_v48 = vsel %vm21267_vm5, %v840_v34, %v1060_v31  ;;  %v413_v34 = vsel %vm21380_vm10, 0, %v412_v51  ;;  %v17469_v60 = vrot.slane %v4695_v1, 9  ;;  %v21894_v10 = vld [vmem:[#allocation2 + $0x70] sm:$0xf]  ;;  %v415_v63 = vld [vmem:[#allocation2 + $0xa4] sm:$0x1] }
 0x144   : > { %v1623_v24 = vrot.slane %v1622_v56, 4  ;;  %v1656_v54 = vor.u32 %v1655_v12, %v21862_v22  ;;  %v1659_v56 = vshll.u32 %v1548_v59, 16  ;;  %v1666_v57 = vrot.slane %v1664_v27, 4  ;;  %1062 = vst [vmem:[#allocation2 + $0x80] sm:$0x1] %v1061_v48 }
 0x145   : > { %v1552_v50 = vld [vmem:[#allocation2 + $0x30] sm:$0xf]  ;;  %414 = vst [vmem:[#allocation2 + $0x98] sm:$0x1] %v413_v34  ;;  %v4823_v11 = vrot.slane %v4821_v37, 4  ;;  %v4824_v45 = vrot.slane %v4697_v23, 5  ;;  %v4822_v27 = vsel %vm21723_vm6, %v17469_v60, %v4821_v37 }
 0x146   : > { %v1628_v36 = vsel %vm21460_vm14, %v1623_v24, %v21837_v30  ;;  %v1551_v30 = vld [vmem:[#allocation2 + $0x2c] sm:$0x1]  ;;  %v1647_v13 = vrot.slane %v1646_v53, 4  ;;  %v1657_v14 = vrot.slane %v1656_v54, 4  ;;  %v1670_v8 = vor.u32 %v1669_v4, %v1666_v57  ;;  %v1553_v55 = vld [vmem:[#allocation2 + $0x34] sm:$0xf] }
 0x147   : > { %17309 = vmatmul.mubr.msk.bf16.gmra.mrb[60].mxu1 %vm1227_vm8, %v20102_v21  ;;  %v1677_v21 = vshrl.u32 %v1550_v5, 16  ;;  %v17311_v61 = vcombine.low %v1628_v36, %v1638_v46  ;;  %v1683_v16 = vshll.u32 %v1551_v30, 16  ;;  %v1067_v18 = vld [vmem:[#allocation2 + $0x8c] sm:$0x1]  ;;  %v1688_v25 = vshrl.u32 %v1552_v50, 16 }
 0x148   : > { %2120 = vmatprep.mubr.bf16.mxu1 %v21639_v52  ;;  %v1068_v62 = vsel %vm21267_vm5, %v857_v41, %v1067_v18  ;;  %v874_v19 = vrot.slane %v21735_v9, 4  ;;  %v891_v59 = vrot.slane %v21758_v43, 4  ;;  %v1691_v12 = vshll.u32 %v1552_v50, 16  ;;  %v1555_v33 = vld [vmem:[#allocation2 + $0x3c] sm:$0xf] }
 0x149   : > { %v1679_v29 = vrot.slane %v1677_v21, 4  ;;  %1069 = vst [vmem:[#allocation2 + $0x8c] sm:$0x1] %v1068_v62  ;;  %v4825_v32 = vsel %vm21723_vm6, %v4823_v11, %v4824_v45  ;;  %v1652_v9 = vsel %vm21460_vm14, %v1647_v13, %v21862_v22  ;;  %v4698_v21 = vld [vmem:[#allocation2 + $0x6c] sm:$0xe]  ;;  %v1697_v41 = vshll.u32 %v1553_v55, 16 }
 0x14a   : > { %17500 = vmatmul.mubr.msk.bf16.gmra.mrb[16].mxu0 %vm1227_vm8, %v17482_v39  ;;  %v1673_v39 = vshll.u32 %v1550_v5, 16  ;;  %v17484_v5 = vcombine.low %v21869_v42, %v4818_v47  ;;  %v1701_v42 = vshrl.u32 %v1553_v55, 16  ;;  %v1556_v47 = vld [vmem:[#allocation2 + $0x40] sm:$0xf]  ;;  %v1685_v51 = vrot.slane %v1683_v16, 5 }
 0x14b   : > { %5077 = vmatprep.mubr.bf16.mxu0 %v21639_v52  ;;  %v21917_v36 = vld [vmem:[#allocation2 + $0x7c] sm:$0xf]  ;;  %v1690_v46 = vrot.slane %v1688_v25, 4  ;;  %v1693_v22 = vrot.slane %v1691_v12, 5  ;;  %v1712_v37 = vshrl.u32 %v1555_v33, 16  ;;  %v1715_v48 = vshll.u32 %v1555_v33, 16 }
 0x14c   : > { %v21889_v58 = vrot.slane %v1673_v39, 5  ;;  %v416_v39 = vsel %vm21380_vm10, 0, %v415_v63  ;;  %v1074_v1 = vld [vmem:[#allocation2 + $0x98] sm:$0x1]  ;;  %v418_v53 = vld [vmem:[#allocation2 + $0xb0] sm:$0x1]  ;;  %v17485_v60 = vcombine.low %v4822_v27, %v4825_v32 }
 0x14d   : > { %417 = vst [vmem:[#allocation2 + $0xa4] sm:$0x1] %v416_v39  ;;  %v1075_v23 = vsel %vm21267_vm5, %v874_v19, %v1074_v1  ;;  %v1554_v57 = vld [vmem:[#allocation2 + $0x38] sm:$0x1]  ;;  %v21922_v30 = vrot.slane %v1697_v41, 5  ;;  %v1703_v4 = vrot.slane %v1701_v42, 4  ;;  %v1694_v18 = vor.u32 %v1693_v22, %v1690_v46 }
 0x14e   : > { %v1680_v24 = vor.u32 %v1679_v29, %v21889_v58  ;;  %1076 = vst [vmem:[#allocation2 + $0x98] sm:$0x1] %v1075_v23  ;;  %v1721_v29 = vshll.u32 %v1556_v47, 16  ;;  %v1725_v34 = vshrl.u32 %v1556_v47, 16  ;;  %v17470_v50 = vrot.slane %v4698_v21, 9  ;;  %v572_v39 = vld [vmem:[%s21239_s2 + $0xf8] sm:$0xff] }
 0x14f   : > { %17328 = vmatmul.mubr.msk.bf16.vlgmr.msra.gmra.mrb[0].mxu1 %vm1227_vm8, %v17310_v15  ;;  %v1661_v15 = vrot.slane %v1659_v56, 5  ;;  %v4700_v56 = vld [vmem:[#allocation2 + $0x74] sm:$0x1]  ;;  %v21935_v16 = vld [vmem:[#allocation2 + $0x88] sm:$0xf]  ;;  %v1717_v55 = vrot.slane %v1715_v48, 5  ;;  %v1704_v62 = vor.u32 %v1703_v4, %v21922_v30 }
 0x150   : > { %2130 = vmatprep.mubr.bf16.mxu1 %v21639_v52  ;;  %2798 = vmatpush1.bf16.msra.mxu1 %v2792_v49  ;;  %v1671_v49 = vrot.slane %v1670_v8, 4  ;;  %v1681_v31 = vrot.slane %v1680_v24, 4  ;;  %v4831_v11 = vrot.slane %v4700_v56, 5  ;;  %v1707_v8 = vshll.u32 %v1554_v57, 16  ;;  %v1557_v33 = vld [vmem:[#allocation2 + $0x44] sm:$0x1] }
 0x151   : > { %v1662_v43 = vsel %vm21460_vm14, %v1657_v14, %v1661_v15  ;;  %v4701_v14 = vld [vmem:[#allocation2 + $0x78] sm:$0xe]  ;;  %v4835_v15 = vrot.slane %v21917_v36, 5  ;;  %v1714_v24 = vrot.slane %v1712_v37, 4  ;;  %v1727_v19 = vrot.slane %v1725_v34, 4 }
 0x152   : > { %17501 = vmatmul.mubr.msk.bf16.gmra.mrb[20].mxu0 %vm1227_vm8, %v17483_v2  ;;  %v4828_v2 = vrot.slane %v21894_v10, 5  ;;  %v17312_v54 = vcombine.low %v1652_v9, %v1662_v43  ;;  %v1676_v45 = vsel %vm21460_vm14, %v1671_v49, %v21889_v58  ;;  %v1686_v13 = vsel %vm21460_vm14, %v1681_v31, %v1685_v51  ;;  %v1558_v41 = vld [vmem:[#allocation2 + $0x48] sm:$0xf]  ;;  %v1559_v42 = vld [vmem:[#allocation2 + $0x4c] sm:$0xf] }
 0x153   : > { %5087 = vmatprep.mubr.bf16.mxu0 %v21639_v52  ;;  %v21939_v58 = vrot.slane %v1721_v29, 5  ;;  %v908_v27 = vrot.slane %v21782_v38, 4  ;;  %v925_v32 = vrot.slane %v21793_v6, 4  ;;  %v17471_v43 = vrot.slane %v4701_v14, 9  ;;  %v4703_v49 = vld [vmem:[#allocation2 + $0x80] sm:$0x1] }
 0x154   : > { %v4830_v63 = vrot.slane %v4828_v2, 4  ;;  %v1081_v25 = vld [vmem:[#allocation2 + $0xa4] sm:$0x1]  ;;  %v4837_v21 = vrot.slane %v4835_v15, 4  ;;  %v17313_v47 = vcombine.low %v1676_v45, %v1686_v13  ;;  %v1695_v31 = vrot.slane %v1694_v18, 4 }
 0x155   : > { %v1082_v12 = vsel %vm21267_vm5, %v891_v59, %v1081_v25  ;;  %v4829_v59 = vsel %vm21723_vm6, %v17470_v50, %v4828_v2  ;;  %v1709_v51 = vrot.slane %v1707_v8, 5  ;;  %v4842_v36 = vrot.slane %v21935_v16, 5  ;;  %v21961_v22 = vld [vmem:[#allocation2 + $0x90] sm:$0xe]  ;;  %v21963_v37 = vld [vmem:[#allocation2 + $0x94] sm:$0xf] }
 0x156   : > { %1083 = vst [vmem:[#allocation2 + $0xa4] sm:$0x1] %v1082_v12  ;;  %v4832_v38 = vsel %vm21723_vm6, %v4830_v63, %v4831_v11  ;;  %v1705_v46 = vrot.slane %v1704_v62, 4  ;;  %v1718_v10 = vor.u32 %v1717_v55, %v1714_v24  ;;  %v1728_v1 = vor.u32 %v1727_v19, %v21939_v58  ;;  %v421_v48 = vld [vmem:[#allocation2 + $0xbc] sm:$0x1] }
 0x157   : > { %17329 = vmatmul.mubr.msk.bf16.gmra.mrb[4].mxu1 %vm1227_vm8, %v17311_v61  ;;  %v571_v61 = vld [vmem:[%s21239_s2 + $0xf0] sm:$0xff]  ;;  %v1731_v2 = vshll.u32 %v1557_v33, 16  ;;  %v17486_v23 = vcombine.low %v4829_v59, %v4832_v38  ;;  %v21965_v57 = vpack.c.bf16 %v572_v39, %v572_v39  ;;  %v4838_v4 = vrot.slane %v4703_v49, 5  ;;  %v374_v25 = vld [vmem:[#allocation2 + $0xc0] sm:$0x1] }
 0x158   : > { %2140 = vmatprep.mubr.bf16.mxu1 %v21639_v52  ;;  %v21948_v9 = vpack.c.bf16 %v571_v61, %v571_v61  ;;  %v1745_v29 = vshll.u32 %v1559_v42, 16  ;;  %v1749_v34 = vshrl.u32 %v1559_v42, 16  ;;  %v4836_v50 = vsel %vm21723_vm6, %v17471_v43, %v4835_v15  ;;  %v21980_v18 = vld [vmem:[#allocation2 + $0x50] sm:$0x1]  ;;  %v424_v33 = vld [vmem:[#allocation2 + $0xc8] sm:$0x1] }
 0x159   : > { %v1700_v63 = vsel %vm21460_vm14, %v1695_v31, %v21922_v30  ;;  %v422_v61 = vsel %vm21380_vm10, 0, %v421_v48  ;;  %v1710_v11 = vsel %vm21460_vm14, %v1705_v46, %v1709_v51  ;;  %v1719_v45 = vrot.slane %v1718_v10, 4  ;;  %v21983_v30 = vld [vmem:[#allocation3] sm:$0xff]  ;;  %v4706_v59 = vld [vmem:[#allocation2 + $0x8c] sm:$0x1] }
 0x15a   : > { %17502 = vmatmul.mubr.msk.bf16.gmra.mrb[24].mxu0 %vm1227_vm8, %v17484_v5  ;;  %v419_v5 = vsel %vm21380_vm10, 0, %v418_v53  ;;  %v1736_v53 = vshrl.u32 %v1558_v41, 16  ;;  %v1729_v13 = vrot.slane %v1728_v1, 4  ;;  %v1733_v14 = vrot.slane %v1731_v2, 5  ;;  %423 = vst [vmem:[#allocation2 + $0xbc] sm:$0x1] %v422_v61 }
 0x15b   : > { %5097 = vmatprep.mubr.bf16.mxu0 %v21639_v52  ;;  %420 = vst [vmem:[#allocation2 + $0xb0] sm:$0x1] %v419_v5  ;;  %v4849_v5 = vrot.slane %v21963_v37, 5  ;;  %v4844_v8 = vrot.slane %v4842_v36, 4  ;;  %v17473_v24 = vrot.slane %v21961_v22, 9  ;;  %v4839_v62 = vsel %vm21723_vm6, %v4837_v21, %v4838_v4 }
 0x15c   : > { %v1738_v55 = vrot.slane %v1736_v53, 4  ;;  %v21993_v12 = vrot.slane %v1745_v29, 5  ;;  %v17314_v39 = vcombine.low %v1700_v63, %v1710_v11  ;;  %v1724_v38 = vsel %vm21460_vm14, %v1719_v45, %v21939_v58  ;;  %v1561_v42 = vld [vmem:[#allocation2 + $0x54] sm:$0xf]  ;;  %v1562_v49 = vld [vmem:[#allocation2 + $0x58] sm:$0xf] }
 0x15d   : > { %v1734_v43 = vsel %vm21460_vm14, %v1729_v13, %v1733_v14  ;;  %v1755_v21 = vshll.u32 %v21980_v18, 16  ;;  %v375_v31 = vsel %vm21267_vm5, 0, %v374_v25  ;;  %v425_v51 = vsel %vm21380_vm10, 0, %v424_v33  ;;  %v1564_v29 = vld [vmem:[#allocation2 + $0x60] sm:$0xf] }
 0x15e   : > { %v927_v58 = vshrl.u32 %v21948_v9, 16  ;;  %v4845_v46 = vrot.slane %v4706_v59, 5  ;;  %376 = vst [vmem:[#allocation2 + $0xc0] sm:$0x1] %v375_v31  ;;  %426 = vst [vmem:[#allocation2 + $0xc8] sm:$0x1] %v425_v51 }
 0x15f   : > { %17330 = vmatmul.mubr.msk.bf16.gmra.mrb[8].mxu1 %vm1227_vm8, %v17312_v54  ;;  %v1739_v54 = vshll.u32 %v1558_v41, 16  ;;  %v22002_v41 = vrot.slane %v4849_v5, 4  ;;  %v930_v10 = vshll.u32 %v21948_v9, 16  ;;  %v935_v1 = vshrl.u32 %v21965_v57, 16  ;;  %v4709_v16 = vld [vmem:[#allocation2 + $0x98] sm:$0x1] }
 0x160   : > { %2150 = vmatprep.mubr.bf16.mxu1 %v21639_v52  ;;  %v1760_v48 = vshrl.u32 %v1561_v42, 16  ;;  %v929_v53 = vrot.slane %v927_v58, 7  ;;  %v1763_v20 = vshll.u32 %v1561_v42, 16  ;;  %v1769_v4 = vshll.u32 %v1562_v49, 16  ;;  %v1563_v42 = vld [vmem:[#allocation2 + $0x5c] sm:$0x1] }
 0x161   : > { %v1741_v19 = vrot.slane %v1739_v54, 5  ;;  %v938_v54 = vshll.u32 %v21965_v57, 16  ;;  %v4846_v6 = vsel %vm21723_vm6, %v4844_v8, %v4845_v46  ;;  %v22030_v13 = vld.sshfl [vmem:[#allocation6 + $0xc] sm:$0x33 pattern:$0x76325410] }
 0x162   : > { %17503 = vmatmul.mubr.msk.bf16.gmra.mrb[28].mxu0 %vm1227_vm8, %v17485_v60  ;;  %v1088_v56 = vld [vmem:[#allocation2 + $0xb0] sm:$0x1]  ;;  %v933_v63 = vrot.slane %v929_v53, 4  ;;  %v932_v61 = vor.u32 %v930_v10, %v929_v53  ;;  %v1757_v18 = vrot.slane %v1755_v21, 5  ;;  %v1765_v25 = vrot.slane %v1763_v20, 5 }
 0x163   : > { %5107 = vmatprep.mubr.bf16.mxu0 %v21639_v52  ;;  %v21958_v52 = vld [vmem:[#allocation2 + $0x84] sm:$0xe]  ;;  %v1089_v60 = vsel %vm21267_vm5, %v908_v27, %v1088_v56  ;;  %v1751_v27 = vrot.slane %v1749_v34, 4  ;;  %v937_v34 = vrot.slane %v935_v1, 7  ;;  %v4852_v21 = vrot.slane %v4709_v16, 5 }
 0x164   : > { %1090 = vst [vmem:[#allocation2 + $0xb0] sm:$0x1] %v1089_v60  ;;  %v17472_v15 = vrot.slane %v21958_v52, 9  ;;  %v1742_v52 = vor.u32 %v1741_v19, %v1738_v55  ;;  %v17315_v60 = vcombine.low %v1724_v38, %v1734_v43  ;;  %v1762_v55 = vrot.slane %v1760_v48, 4  ;;  %v4714_v48 = vld [vmem:[#allocation2 + $0xac] sm:$0xf] }
 0x165   : > { %v1752_v2 = vor.u32 %v1751_v27, %v21993_v12  ;;  %v22014_v56 = vld.sshfl [vmem:[#allocation6 + $0x1c] sm:$0x33 pattern:$0x76325410]  ;;  %v940_v11 = vor.u32 %v938_v54, %v937_v34  ;;  %v942_v45 = vrot.slane %v937_v34, 4  ;;  %v3304_v43 = vcombine.high %v22030_v13, %v22030_v13 }
 0x166   : > { %v4843_v57 = vsel %vm21723_vm6, %v17472_v15, %v4842_v36  ;;  %v1743_v14 = vrot.slane %v1742_v52, 4  ;;  %v22032_v15 = vld [vmem:[#allocation2 + $0xa0] sm:$0xf]  ;;  %v6433_v8 = vcombine.high %v22014_v56, %v22014_v56  ;;  %v1102_v38 = vld [vmem:[#allocation2 + $0xc8] sm:$0x1]  ;;  %v1766_v10 = vor.u32 %v1765_v25, %v1762_v55 }
 0x167   : > { %17331 = vmatmul.mubr.msk.bf16.gmra.mrb[12].mxu1 %vm1227_vm8, %v17313_v47  ;;  %v17487_v47 = vcombine.low %v4836_v50, %v4839_v62  ;;  %v1773_v50 = vshrl.u32 %v1562_v49, 16  ;;  %v1753_v36 = vrot.slane %v1752_v2, 4  ;;  %v22034_v62 = vrot.slane %v1769_v4, 5  ;;  %v1098_v59 = vld [vmem:[#allocation2 + $0xc0] sm:$0xf]  ;;  %17411 = vmatprep.subr.msk.bf16.mxu1 %vm1276_vm0, %v3304_v43 }
 0x168   : > { %2160 = vmatprep.mubr.bf16.mxu1 %v21983_v30  ;;  %v941_v19 = vsel %vm21390_vm11, %v933_v63, %v940_v11  ;;  %v17488_v27 = vcombine.low %v4843_v57, %v4846_v6  ;;  %v1099_v49 = vsel %vm21374_vm7, %v932_v61, %v1098_v59  ;;  %v1103_v31 = vsel %vm21267_vm5, %v942_v45, %v1102_v38  ;;  %v4710_v52 = vld [vmem:[#allocation2 + $0x9c] sm:$0xe]  ;;  %v1566_v53 = vld [vmem:[#allocation2 + $0x68] sm:$0x1]  ;;  %v4712_v4 = vld [vmem:[#allocation2 + $0xa4] sm:$0x1] }
 0x169   : > { %v1775_v33 = vrot.slane %v1773_v50, 4  ;;  %1101 = vst.msk [vmem:[#allocation2 + $0xc4] sm:$0xf] %vm316_vm1, %v941_v19  ;;  %17563 = vmatprep.subr.msk.bf16.mxu0 %vm1276_vm0, %v6433_v8  ;;  %1100 = vst [vmem:[#allocation2 + $0xc0] sm:$0xf] %v1099_v49  ;;  %v1748_v46 = vsel %vm21460_vm14, %v1743_v14, %v21993_v12  ;;  %v4856_v28 = vrot.slane %v22032_v15, 5  ;;  %v1758_v7 = vsel %vm21460_vm14, %v1753_v36, %v1757_v18 }
 0x16a   : > { %17504 = vmatmul.mubr.msk.bf16.gmra.mrb[32].mxu0 %vm1227_vm8, %v17486_v23  ;;  %v1095_v23 = vld [vmem:[#allocation2 + $0xbc] sm:$0x1]  ;;  %1104 = vst [vmem:[#allocation2 + $0xc8] sm:$0x1] %v1103_v31  ;;  %v1779_v2 = vshll.u32 %v1563_v42, 16  ;;  %v4850_v12 = vsel %vm21723_vm6, %v17473_v24, %v4849_v5  ;;  %v17316_v34 = vcombine.low %v1748_v46, %v1758_v7  ;;  %v17474_v57 = vrot.slane %v4710_v52, 9 }
 0x16b   : > { %5117 = vmatprep.mubr.bf16.mxu0 %v21983_v30  ;;  %v1096_v9 = vsel %vm21267_vm5, %v925_v32, %v1095_v23  ;;  %v1565_v32 = vld [vmem:[#allocation2 + $0x64] sm:$0xf]  ;;  %v1776_v1 = vor.u32 %v1775_v33, %v22034_v62  ;;  %v4853_v23 = vsel %vm21723_vm6, %v22002_v41, %v4852_v21  ;;  %v1567_v37 = vld [vmem:[#allocation2 + $0x6c] sm:$0xf]  ;;  %v1568_v50 = vld [vmem:[#allocation2 + $0x70] sm:$0xf] }
 0x16c   : > { %1097 = vst [vmem:[#allocation2 + $0xbc] sm:$0x1] %v1096_v9  ;;  %v1793_v51 = vshll.u32 %v1565_v32, 16  ;;  %v1797_v58 = vshrl.u32 %v1565_v32, 16  ;;  %v17489_v22 = vcombine.low %v4850_v12, %v4853_v23  ;;  %v1767_v63 = vrot.slane %v1766_v10, 4 }
 0x16d   : > { %v1777_v6 = vrot.slane %v1776_v1, 4  ;;  %v1781_v5 = vrot.slane %v1779_v2, 5  ;;  %v4859_v24 = vrot.slane %v4712_v4, 5  ;;  %v4713_v32 = vld [vmem:[#allocation2 + $0xa8] sm:$0xe]  ;;  %v4863_v61 = vrot.slane %v4714_v48, 5 }
 0x16e   : > { %v1799_v9 = vrot.slane %v1797_v58, 4  ;;  %v1803_v11 = vshll.u32 %v1566_v53, 16  ;;  %v1808_v16 = vshrl.u32 %v1567_v37, 16  ;;  %v1811_v14 = vshll.u32 %v1567_v37, 16  ;;  %v4715_v19 = vld [vmem:[#allocation2 + $0xb0] sm:$0x1] }
 0x16f   : > { %17332 = vmatmul.mubr.msk.bf16.gmra.mrb[16].mxu1 %vm1227_vm8, %v17314_v39  ;;  %v1784_v39 = vshrl.u32 %v1564_v29, 16  ;;  %v1817_v36 = vshll.u32 %v1568_v50, 16  ;;  %v1821_v18 = vshrl.u32 %v1568_v50, 16  ;;  %v4857_v15 = vsel %vm21723_vm6, %v17474_v57, %v4856_v28  ;;  %v1569_v58 = vld [vmem:[#allocation2 + $0x74] sm:$0x1] }
 0x170   : > { %2170 = vmatprep.mubr.bf16.mxu1 %v21983_v30  ;;  %v1772_v55 = vsel %vm21460_vm14, %v1767_v63, %v22034_v62  ;;  %v1782_v25 = vsel %vm21460_vm14, %v1777_v6, %v1781_v5  ;;  %v17475_v8 = vrot.slane %v4713_v32, 9  ;;  %v1805_v38 = vrot.slane %v1803_v11, 5  ;;  %v1571_v7 = vld [vmem:[#allocation2 + $0x7c] sm:$0xf]  ;;  %v4716_v2 = vld [vmem:[#allocation2 + $0xb4] sm:$0xe] }
 0x171   : > { %v1786_v54 = vrot.slane %v1784_v39, 4  ;;  %v4865_v39 = vrot.slane %v4863_v61, 4  ;;  %v1810_v21 = vrot.slane %v1808_v16, 4  ;;  %v1813_v42 = vrot.slane %v1811_v14, 5  ;;  %v4717_v48 = vld [vmem:[#allocation2 + $0xb8] sm:$0xf] }
 0x172   : > { %17505 = vmatmul.mubr.msk.bf16.gmra.mrb[36].mxu0 %vm1227_vm8, %v17487_v47  ;;  %v1787_v47 = vshll.u32 %v1564_v29, 16  ;;  %v22069_v29 = vrot.slane %v1793_v51, 5  ;;  %v17317_v62 = vcombine.low %v1772_v55, %v1782_v25  ;;  %v4866_v49 = vrot.slane %v4715_v19, 5  ;;  %v1573_v37 = vld [vmem:[#allocation2 + $0x84] sm:$0xf] }
 0x173   : > { %5127 = vmatprep.mubr.bf16.mxu0 %v21983_v30  ;;  %v1823_v31 = vrot.slane %v1821_v18, 4  ;;  %v4864_v52 = vsel %vm21723_vm6, %v17475_v8, %v4863_v61  ;;  %v1814_v23 = vor.u32 %v1813_v42, %v1810_v21  ;;  %v4870_v57 = vrot.slane %v4717_v48, 5  ;;  %v1574_v63 = vld [vmem:[#allocation2 + $0x88] sm:$0xf]  ;;  %v1575_v42 = vld [vmem:[#allocation2 + $0x8c] sm:$0x1] }
 0x174   : > { %v1789_v20 = vrot.slane %v1787_v47, 5  ;;  %v1800_v45 = vor.u32 %v1799_v9, %v22069_v29  ;;  %v22085_v47 = vrot.slane %v1817_v36, 5  ;;  %v4867_v12 = vsel %vm21723_vm6, %v4865_v39, %v4866_v49  ;;  %v1576_v49 = vld [vmem:[#allocation2 + $0x90] sm:$0xf] }
 0x175   : > { %v1845_v9 = vshrl.u32 %v1571_v7, 16  ;;  %v17491_v6 = vcombine.low %v4864_v52, %v4867_v12  ;;  %v1815_v5 = vrot.slane %v1814_v23, 4  ;;  %v4872_v16 = vrot.slane %v4870_v57, 4 }
 0x176   : > { %v1790_v41 = vor.u32 %v1789_v20, %v1786_v54  ;;  %v1801_v43 = vrot.slane %v1800_v45, 4  ;;  %v1824_v53 = vor.u32 %v1823_v31, %v22085_v47  ;;  %v1827_v54 = vshll.u32 %v1569_v58, 16  ;;  %v4721_v31 = vld [vmem:[#allocation2 + $0xc8] sm:$0x1] }
 0x177   : > { %17333 = vmatmul.mubr.msk.bf16.gmra.mrb[20].mxu1 %vm1227_vm8, %v17315_v60  ;;  %v4858_v60 = vrot.slane %v4856_v28, 4  ;;  %v1847_v11 = vrot.slane %v1845_v9, 4  ;;  %v1856_v36 = vshrl.u32 %v1573_v37, 16  ;;  %v1859_v18 = vshll.u32 %v1573_v37, 16 }
 0x178   : > { %2180 = vmatprep.mubr.bf16.mxu1 %v21983_v30  ;;  %v1791_v59 = vrot.slane %v1790_v41, 4  ;;  %v1806_v1 = vsel %vm21460_vm14, %v1801_v43, %v1805_v38  ;;  %v1829_v32 = vrot.slane %v1827_v54, 5  ;;  %v1820_v25 = vsel %vm21460_vm14, %v1815_v5, %v22085_v47  ;;  %v4719_v43 = vld [vmem:[#allocation2 + $0xc0] sm:$0xe] }
 0x179   : > { %v4860_v33 = vsel %vm21723_vm6, %v4858_v60, %v4859_v24  ;;  %v1572_v60 = vld [vmem:[#allocation2 + $0x80] sm:$0x1]  ;;  %v1825_v24 = vrot.slane %v1824_v53, 4  ;;  %v1865_v19 = vshll.u32 %v1574_v63, 16  ;;  %v1869_v8 = vshrl.u32 %v1574_v63, 16 }
 0x17a   : > { %17506 = vmatmul.mubr.msk.bf16.gmra.mrb[40].mxu0 %vm1227_vm8, %v17488_v27  ;;  %v1570_v27 = vld [vmem:[#allocation2 + $0x78] sm:$0xf]  ;;  %v17490_v51 = vcombine.low %v4857_v15, %v4860_v33  ;;  %v1796_v10 = vsel %vm21460_vm14, %v1791_v59, %v22069_v29  ;;  %v1841_v29 = vshll.u32 %v1571_v7, 16  ;;  %v1851_v45 = vshll.u32 %v1572_v60, 16  ;;  %v4720_v15 = vld [vmem:[#allocation2 + $0xc4] sm:$0xf] }
 0x17b   : > { %5137 = vmatprep.mubr.bf16.mxu0 %v21983_v30  ;;  %v1832_v46 = vshrl.u32 %v1570_v27, 16  ;;  %v1835_v28 = vshll.u32 %v1570_v27, 16  ;;  %v17318_v50 = vcombine.low %v1796_v10, %v1806_v1  ;;  %v1830_v27 = vsel %vm21460_vm14, %v1825_v24, %v1829_v32  ;;  %v1579_v60 = vld [vmem:[#allocation2 + $0x9c] sm:$0xf] }
 0x17c   : > { %v1843_v41 = vrot.slane %v1841_v29, 5  ;;  %v1853_v59 = vrot.slane %v1851_v45, 5  ;;  %v4877_v21 = vrot.slane %v4720_v15, 5  ;;  %v1858_v47 = vrot.slane %v1856_v36, 4 }
 0x17d   : > { %v1834_v20 = vrot.slane %v1832_v46, 4  ;;  %v1837_v4 = vrot.slane %v1835_v28, 5  ;;  %v1867_v58 = vrot.slane %v1865_v19, 5  ;;  %v1871_v46 = vrot.slane %v1869_v8, 4  ;;  %v1577_v28 = vld [vmem:[#allocation2 + $0x94] sm:$0xf] }
 0x17e   : > { %v1848_v39 = vor.u32 %v1847_v11, %v1843_v41  ;;  %v17477_v52 = vrot.slane %v4719_v43, 9  ;;  %v4879_v1 = vrot.slane %v4877_v21, 4  ;;  %v1875_v12 = vshll.u32 %v1575_v42, 16  ;;  %v1580_v11 = vld [vmem:[#allocation2 + $0xa0] sm:$0xf] }
 0x17f   : > { %17334 = vmatmul.mubr.msk.bf16.gmra.mrb[24].mxu1 %vm1227_vm8, %v17316_v34  ;;  %v17476_v34 = vrot.slane %v4716_v2, 9  ;;  %v1838_v61 = vor.u32 %v1837_v4, %v1834_v20  ;;  %v4880_v2 = vrot.slane %v4721_v31, 5  ;;  %v1880_v23 = vshrl.u32 %v1576_v49, 16  ;;  %v1582_v8 = vld [vmem:[#allocation2 + $0xa8] sm:$0xf] }
 0x180   : > { %2190 = vmatprep.mubr.bf16.mxu1 %v21983_v30  ;;  %v1849_v10 = vrot.slane %v1848_v39, 4  ;;  %v1872_v53 = vor.u32 %v1871_v46, %v1867_v58  ;;  %v1883_v54 = vshll.u32 %v1576_v49, 16  ;;  %v1889_v29 = vshll.u32 %v1577_v28, 16  ;;  %v1583_v49 = vld [vmem:[#allocation2 + $0xac] sm:$0xf] }
 0x181   : > { %v4871_v55 = vsel %vm21723_vm6, %v17476_v34, %v4870_v57  ;;  %v1839_v33 = vrot.slane %v1838_v61, 4  ;;  %v1893_v9 = vshrl.u32 %v1577_v28, 16  ;;  %v4878_v34 = vsel %vm21723_vm6, %v17477_v52, %v4877_v21  ;;  %v22134_v39 = vld.sshfl [vmem:[#allocation6 + $0x20] sm:$0x33 pattern:$0x76325410] }
 0x182   : > { %17507 = vmatmul.mubr.msk.bf16.gmra.mrb[44].mxu0 %vm1227_vm8, %v17489_v22  ;;  %v4718_v22 = vld [vmem:[#allocation2 + $0xbc] sm:$0x1]  ;;  %v1854_v4 = vsel %vm21460_vm14, %v1849_v10, %v1853_v59  ;;  %v4881_v57 = vsel %vm21723_vm6, %v4879_v1, %v4880_v2  ;;  %v1885_v5 = vrot.slane %v1883_v54, 5  ;;  %v1891_v32 = vrot.slane %v1889_v29, 5 }
 0x183   : > { %5147 = vmatprep.mubr.bf16.mxu0 %v21983_v30  ;;  %v4873_v14 = vrot.slane %v4718_v22, 5  ;;  %v1844_v20 = vsel %vm21460_vm14, %v1839_v33, %v1843_v41  ;;  %v1882_v22 = vrot.slane %v1880_v23, 4  ;;  %v17493_v24 = vcombine.low %v4878_v34, %v4881_v57  ;;  %v1578_v41 = vld [vmem:[#allocation2 + $0x98] sm:$0x1] }
 0x184   : > { %v17320_v63 = vcombine.low %v1844_v20, %v1854_v4  ;;  %v1895_v61 = vrot.slane %v1893_v9, 4  ;;  %v1904_v45 = vshrl.u32 %v1579_v60, 16  ;;  %v1917_v19 = vshrl.u32 %v1580_v11, 16  ;;  %v20103_v59 = vld [vmem:[#allocation2 + $0x18] sm:$0xff]   ;;  %v20104_v9 = vld [vmem:[#allocation2 + $0x24] sm:$0xff]  }
 0x185   : > { %v4874_v38 = vsel %vm21723_vm6, %v4872_v16, %v4873_v14  ;;  %v1907_v16 = vshll.u32 %v1579_v60, 16  ;;  %v6483_v31 = vsel %vm1276_vm0, %v22014_v56, 0  ;;  %v1928_v46 = vshrl.u32 %v1582_v8, 16  ;;  %v1585_v60 = vld [vmem:[#allocation2 + $0xb4] sm:$0xf] }
 0x186   : > { %v17492_v7 = vcombine.low %v4871_v55, %v4874_v38  ;;  %v1896_v15 = vor.u32 %v1895_v61, %v1891_v32  ;;  %v1899_v55 = vshll.u32 %v1578_v41, 16  ;;  %v1931_v28 = vshll.u32 %v1582_v8, 16 }
 0x187   : > { %17335 = vmatmul.mubr.msk.bf16.gmra.mrb[28].mxu1 %vm1227_vm8, %v17317_v62  ;;  %v1861_v62 = vrot.slane %v1859_v18, 5  ;;  %v1886_v18 = vor.u32 %v1885_v5, %v1882_v22  ;;  %v1909_v33 = vrot.slane %v1907_v16, 5  ;;  %v1937_v52 = vshll.u32 %v1583_v49, 16 }
 0x188   : > { %2200 = vmatprep.mubr.bf16.mxu1 %v21983_v30  ;;  %v1897_v21 = vrot.slane %v1896_v15, 4  ;;  %v1901_v42 = vrot.slane %v1899_v55, 5  ;;  %v1941_v10 = vshrl.u32 %v1583_v49, 16  ;;  %v1933_v54 = vrot.slane %v1931_v28, 5  ;;  %v2474_v49 = vld [vmem:[#allocation2 + $0x4] sm:$0xf] }
 0x189   : > { %v1862_v48 = vor.u32 %v1861_v62, %v1858_v47  ;;  %v1887_v43 = vrot.slane %v1886_v18, 4  ;;  %v1919_v62 = vrot.slane %v1917_v19, 4  ;;  %v1939_v4 = vrot.slane %v1937_v52, 5  ;;  %v1587_v19 = vld [vmem:[#allocation2 + $0xbc] sm:$0x1]  ;;  %v20107_v52 = vld [vmem:[#allocation2 + $0x48] sm:$0xff]  }
 0x18a   : > { %17508 = vmatmul.mubr.msk.bf16.gmra.mrb[48].mxu0 %vm1227_vm8, %v17490_v51  ;;  %v17319_v51 = vcombine.low %v1820_v25, %v1830_v27  ;;  %v1913_v25 = vshll.u32 %v1580_v11, 16  ;;  %v1906_v27 = vrot.slane %v1904_v45, 4  ;;  %v1902_v56 = vsel %vm21460_vm14, %v1897_v21, %v1901_v42  ;;  %v20106_v21 = vld [vmem:[#allocation2 + $0x3c] sm:$0xff]   ;;  %v2475_v28 = vld [vmem:[#allocation2 + $0x8] sm:$0x1] }
 0x18b   : > { %5157 = vmatprep.mubr.bf16.mxu0 %v21983_v30  ;;  %v1863_v37 = vrot.slane %v1862_v48, 4  ;;  %v1892_v1 = vsel %vm21460_vm14, %v1887_v43, %v1891_v32  ;;  %v1943_v29 = vrot.slane %v1941_v10, 4  ;;  %v1952_v5 = vshrl.u32 %v1585_v60, 16 }
 0x18c   : > { %v1915_v47 = vrot.slane %v1913_v25, 5  ;;  %v17322_v20 = vcombine.low %v1892_v1, %v1902_v56  ;;  %v1955_v32 = vshll.u32 %v1585_v60, 16  ;;  %v2577_v56 = vrot.slane %v2475_v28, 5  ;;  %v2490_v28 = vld [vmem:[#allocation2 + $0x44] sm:$0x1] }
 0x18d   : > { %v1868_v14 = vsel %vm21460_vm14, %v1863_v37, %v1867_v58  ;;  %v1910_v58 = vor.u32 %v1909_v33, %v1906_v27  ;;  %v1586_v37 = vld [vmem:[#allocation2 + $0xb8] sm:$0xf]  ;;  %v3354_v60 = vsel %vm1276_vm0, %v22030_v13, 0 }
 0x18e   : > { %v1920_v2 = vor.u32 %v1919_v62, %v1915_v47  ;;  %v1961_v61 = vshll.u32 %v1586_v37, 16  ;;  %v1965_v41 = vshrl.u32 %v1586_v37, 16  ;;  %v1957_v15 = vrot.slane %v1955_v32, 5 }
 0x18f   : > { %17336 = vmatmul.mubr.msk.bf16.gmra.mrb[32].mxu1 %vm1227_vm8, %v17318_v50  ;;  %v1877_v50 = vrot.slane %v1875_v12, 5  ;;  %v1584_v12 = vld [vmem:[#allocation2 + $0xb0] sm:$0x1]  ;;  %v1911_v23 = vrot.slane %v1910_v58, 4  ;;  %v2574_v58 = vrot.slane %v2474_v49, 5 }
 0x190   : > { %2210 = vmatprep.mubr.bf16.mxu1 %v21983_v30  ;;  %v1921_v34 = vrot.slane %v1920_v2, 4  ;;  %v1963_v55 = vrot.slane %v1961_v61, 5  ;;  %v1967_v25 = vrot.slane %v1965_v41, 4  ;;  %v2477_v2 = vld [vmem:[#allocation2 + $0x10] sm:$0xf] }
 0x191   : > { %v1916_v22 = vsel %vm21460_vm14, %v1911_v23, %v1915_v47  ;;  %v2576_v1 = vrot.slane %v2574_v58, 4  ;;  %v2581_v23 = vrot.slane %v2477_v2, 5  ;;  %v2483_v41 = vld [vmem:[#allocation2 + $0x28] sm:$0xf]  ;;  %v2489_v49 = vld [vmem:[#allocation2 + $0x40] sm:$0xf] }
 0x192   : > { %17509 = vmatmul.mubr.msk.bf16.gmra.mrb[52].mxu0 %vm1227_vm8, %v17491_v6  ;;  %v1873_v6 = vrot.slane %v1872_v53, 4  ;;  %v1930_v53 = vrot.slane %v1928_v46, 4  ;;  %v2473_v46 = vld [vmem:[#allocation2] sm:$0xe]  ;;  %v2492_v2 = vld [vmem:[#allocation2 + $0x4c] sm:$0xf] }
 0x193   : > { %5167 = vmatprep.mubr.bf16.mxu0 %v21983_v30  ;;  %v17344_v10 = vrot.slane %v2473_v46, 9  ;;  %v2488_v46 = vld [vmem:[#allocation2 + $0x3c] sm:$0xe] }
 0x194   : > { %v1878_v36 = vsel %vm21460_vm14, %v1873_v6, %v1877_v50  ;;  %v1947_v50 = vshll.u32 %v1584_v12, 16  ;;  %v1944_v6 = vor.u32 %v1943_v29, %v1939_v4  ;;  %v2578_v12 = vsel %vm21723_vm6, %v2576_v1, %v2577_v56 }
 0x195   : > { %v17321_v38 = vcombine.low %v1868_v14, %v1878_v36  ;;  %v1954_v14 = vrot.slane %v1952_v5, 4  ;;  %v20105_v36 = vld [vmem:[#allocation2 + $0x30] sm:$0xff]   ;;  %v20109_v5 = vld [vmem:[#allocation2 + $0x60] sm:$0xff]   ;;  %v2612_v56 = vrot.slane %v2490_v28, 5 }
 0x196   : > { %v1949_v16 = vrot.slane %v1947_v50, 5  ;;  %v1945_v18 = vrot.slane %v1944_v6, 4  ;;  %v2481_v6 = vld [vmem:[#allocation2 + $0x20] sm:$0x1] }
 0x197   : > { %17337 = vmatmul.mubr.msk.bf16.gmra.mrb[36].mxu1 %vm1227_vm8, %v17319_v51  ;;  %v1581_v51 = vld [vmem:[#allocation2 + $0xa4] sm:$0x1]  ;;  %v1958_v33 = vor.u32 %v1957_v15, %v1954_v14  ;;  %v2591_v61 = vrot.slane %v2481_v6, 5  ;;  %v2484_v14 = vld [vmem:[#allocation2 + $0x2c] sm:$0x1] }
 0x198   : > { %2220 = vmatprep.mubr.bf16.mxu1 %v21983_v30  ;;  %v1923_v48 = vshll.u32 %v1581_v51, 16  ;;  %v1950_v27 = vsel %vm21460_vm14, %v1945_v18, %v1949_v16  ;;  %v2595_v16 = vrot.slane %v2483_v41, 5  ;;  %v20110_v18 = vld [vmem:[#allocation2 + $0x6c] sm:$0xff]  }
 0x199   : > { %v1959_v42 = vrot.slane %v1958_v33, 4 }
 0x19a   : > { %17510 = vmatmul.mubr.msk.bf16.gmra.mrb[56].mxu0 %vm1227_vm8, %v17492_v7  ;;  %v7139_v7 = vcombine.high %v22134_v39, %v22134_v39  ;;  %v1925_v57 = vrot.slane %v1923_v48, 5  ;;  %v2575_v48 = vsel %vm21723_vm6, %v17344_v10, %v2574_v58  ;;  %v2609_v58 = vrot.slane %v2489_v49, 5  ;;  %v2504_v49 = vld [vmem:[#allocation2 + $0x7c] sm:$0xf] }
 0x19b   : > { %5177 = vmatprep.mubr.bf16.mxu0 %v21983_v30  ;;  %v17349_v10 = vrot.slane %v2488_v46, 9 }
 0x19c   : > { %v2611_v1 = vrot.slane %v2609_v58, 4 }
 0x19f   : > { %17338 = vmatmul.mubr.msk.bf16.gmra.mrb[40].mxu1 %vm1227_vm8, %v17320_v63  ;;  %v1934_v63 = vor.u32 %v1933_v54, %v1930_v53  ;;  %v2476_v53 = vld [vmem:[#allocation2 + $0xc] sm:$0xe]  ;;  %v2478_v54 = vld [vmem:[#allocation2 + $0x14] sm:$0x1] }
 0x1a0   : > { %2230 = vmatprep.mubr.bf16.mxu1 %v21983_v30  ;;  %v17345_v29 = vrot.slane %v2476_v53, 9  ;;  %v2491_v53 = vld [vmem:[#allocation2 + $0x48] sm:$0xe] }
 0x1a1   : > { %v1935_v45 = vrot.slane %v1934_v63, 4  ;;  %v2479_v63 = vld [vmem:[#allocation2 + $0x18] sm:$0xe] }
 0x1a2   : > { %17511 = vmatmul.mubr.msk.bf16.gmra.mrb[60].mxu0 %vm1227_vm8, %v17493_v24  ;;  %v1926_v24 = vsel %vm21460_vm14, %v1921_v34, %v1925_v57  ;;  %v2584_v34 = vrot.slane %v2478_v54, 5  ;;  %v2480_v57 = vld [vmem:[#allocation2 + $0x1c] sm:$0xf]  ;;  %v2582_v37 = vsel %vm21723_vm6, %v17345_v29, %v2581_v23  ;;  %v2493_v54 = vld [vmem:[#allocation2 + $0x50] sm:$0x1]  ;;  %v17350_v29 = vrot.slane %v2491_v53, 9 }
 0x1a3   : > { %5590 = vmatprep.mubr.bf16.mxu0 %v21983_v30  ;;  %v17323_v11 = vcombine.low %v1916_v22, %v1926_v24  ;;  %v1940_v8 = vsel %vm21460_vm14, %v1935_v45, %v1939_v4  ;;  %v20108_v4 = vld [vmem:[#allocation2 + $0x54] sm:$0xff]   ;;  %v2588_v22 = vrot.slane %v2480_v57, 5  ;;  %v17346_v24 = vrot.slane %v2479_v63, 9  ;;  %v2496_v63 = vld [vmem:[#allocation2 + $0x5c] sm:$0x1] }
 0x1a4   : > { %v17324_v43 = vcombine.low %v1940_v8, %v1950_v27  ;;  %v2495_v57 = vld [vmem:[#allocation2 + $0x58] sm:$0xf] }
 0x1a5   : > { %v2590_v32 = vrot.slane %v2588_v22, 4 }
 0x1a7   : > { %17339 = vmatmul.mubr.msk.bf16.gmra.mrb[44].mxu1 %vm1227_vm8, %v17321_v38  ;;  %v1971_v38 = vshll.u32 %v1587_v19, 16  ;;  %v2592_v45 = vsel %vm21723_vm6, %v2590_v32, %v2591_v61  ;;  %v2486_v19 = vld [vmem:[#allocation2 + $0x34] sm:$0xf]  ;;  %v2626_v32 = vrot.slane %v2496_v63, 5  ;;  %v2498_v61 = vld [vmem:[#allocation2 + $0x64] sm:$0xf] }
 0x1a8   : > { %2240 = vmatprep.mubr.bf16.mxu1 %v21983_v30  ;;  %v2602_v33 = vrot.slane %v2486_v19, 5  ;;  %v2501_v19 = vld [vmem:[#allocation2 + $0x70] sm:$0xf] }
 0x1a9   : > { %v1973_v62 = vrot.slane %v1971_v38, 5  ;;  %v2487_v38 = vld [vmem:[#allocation2 + $0x38] sm:$0x1] }
 0x1aa   : > { %17530 = vmatmul.mubr.msk.bf16.vlgmr.msra.gmra.mrb[0].mxu0 %vm1227_vm8, %v20103_v59  ;;  %v1968_v59 = vor.u32 %v1967_v25, %v1963_v55  ;;  %v2598_v25 = vrot.slane %v2484_v14, 5  ;;  %v2499_v14 = vld [vmem:[#allocation2 + $0x68] sm:$0x1] }
 0x1ab   : > { %6489 = vmatpush1.bf16.msra.mxu0 %v6483_v31  ;;  %5600 = vmatprep.mubr.bf16.mxu0 %v21983_v30  ;;  %v1964_v31 = vsel %vm21460_vm14, %v1959_v42, %v1963_v55  ;;  %v2597_v55 = vrot.slane %v2595_v16, 4 }
 0x1ac   : > { %17613 = vmatprep.subr.msk.bf16.mxu0 %vm1276_vm0, %v7139_v7  ;;  %v1969_v47 = vrot.slane %v1968_v59, 4  ;;  %v2485_v59 = vld [vmem:[#allocation2 + $0x30] sm:$0xe] }
 0x1ad   : > { %v2599_v27 = vsel %vm21723_vm6, %v2597_v55, %v2598_v25  ;;  %v17348_v42 = vrot.slane %v2485_v59, 9  ;;  %v2633_v25 = vrot.slane %v2499_v14, 5  ;;  %v2502_v59 = vld [vmem:[#allocation2 + $0x74] sm:$0x1]  ;;  %v5948_v14 = vld [vmem:[#allocation2 + $0x2c] sm:$0x1] }
 0x1ae   : > { %v1974_v51 = vsel %vm21460_vm14, %v1969_v47, %v1973_v62  ;;  %v2604_v47 = vrot.slane %v2602_v33, 4  ;;  %v2605_v62 = vrot.slane %v2487_v38, 5 }
 0x1af   : > { %17340 = vmatmul.mubr.msk.bf16.gmra.mrb[48].mxu1 %vm1227_vm8, %v17322_v20  ;;  %v17325_v7 = vcombine.low %v1964_v31, %v1974_v51  ;;  %v17360_v20 = vcombine.low %v2575_v48, %v2578_v12  ;;  %v2603_v31 = vsel %vm21723_vm6, %v17348_v42, %v2602_v33  ;;  %v2610_v48 = vsel %vm21723_vm6, %v17349_v10, %v2609_v58  ;;  %v2500_v33 = vld [vmem:[#allocation2 + $0x6c] sm:$0xe]  ;;  %v2505_v10 = vld [vmem:[#allocation2 + $0x80] sm:$0x1] }
 0x1b0   : > { %2250 = vmatprep.mubr.bf16.mxu1 %v21983_v30  ;;  %v2606_v51 = vsel %vm21723_vm6, %v2604_v47, %v2605_v62  ;;  %v2613_v12 = vsel %vm21723_vm6, %v2611_v1, %v2612_v56  ;;  %v2640_v47 = vrot.slane %v2502_v59, 5  ;;  %v5943_v62 = vld [vmem:[#allocation2 + $0x18] sm:$0xf] }
 0x1b1   : > { %v5995_v58 = vshll.u32 %v5943_v62, 16 }
 0x1b2   : > { %17531 = vmatmul.mubr.msk.bf16.gmra.mrb[4].mxu0 %vm1227_vm8, %v20104_v9  ;;  %v2583_v9 = vrot.slane %v2581_v23, 4  ;;  %v2616_v23 = vrot.slane %v2492_v2, 5  ;;  %v5946_v2 = vld [vmem:[#allocation2 + $0x24] sm:$0xf] }
 0x1b3   : > { %5610 = vmatprep.mubr.bf16.mxu0 %v21983_v30 }
 0x1b4   : > { %v2585_v50 = vsel %vm21723_vm6, %v2583_v9, %v2584_v34  ;;  %v2618_v9 = vrot.slane %v2616_v23, 4  ;;  %v2619_v34 = vrot.slane %v2493_v54, 5  ;;  %v5997_v54 = vrot.slane %v5995_v58, 5  ;;  %v2509_v58 = vld [vmem:[#allocation2 + $0x90] sm:$0xe] }
 0x1b5   : > { %v17361_v13 = vcombine.low %v2582_v37, %v2585_v50  ;;  %v2623_v50 = vrot.slane %v2495_v57, 5  ;;  %v6019_v57 = vshll.u32 %v5946_v2, 16 }
 0x1b6   : > { %v2620_v37 = vsel %vm21723_vm6, %v2618_v9, %v2619_v34  ;;  %v5945_v9 = vld [vmem:[#allocation2 + $0x20] sm:$0x1]  ;;  %v6016_v34 = vshrl.u32 %v5946_v2, 16 }
 0x1b7   : > { %17341 = vmatmul.mubr.msk.bf16.gmra.mrb[52].mxu1 %vm1227_vm8, %v17323_v11  ;;  %v2589_v11 = vsel %vm21723_vm6, %v17346_v24, %v2588_v22  ;;  %v2494_v22 = vld [vmem:[#allocation2 + $0x54] sm:$0xe]  ;;  %v2625_v24 = vrot.slane %v2623_v50, 4 }
 0x1b8   : > { %2260 = vmatprep.mubr.bf16.mxu1 %v21983_v30 }
 0x1ba   : > { %17532 = vmatmul.mubr.msk.bf16.gmra.mrb[8].mxu0 %vm1227_vm8, %v20105_v36  ;;  %v17362_v36 = vcombine.low %v2589_v11, %v2592_v45  ;;  %v2627_v11 = vsel %vm21723_vm6, %v2625_v24, %v2626_v32  ;;  %v2630_v45 = vrot.slane %v2498_v61, 5  ;;  %v6018_v61 = vrot.slane %v6016_v34, 4  ;;  %v5951_v34 = vld [vmem:[#allocation2 + $0x38] sm:$0x1] }
 0x1bb   : > { %5620 = vmatprep.mubr.bf16.mxu0 %v21983_v30 }
 0x1bc   : > { %v2632_v55 = vrot.slane %v2630_v45, 4 }
 0x1bf   : > { %17342 = vmatmul.mubr.msk.bf16.gmra.mrb[56].mxu1 %vm1227_vm8, %v17324_v43 }
 0x1c0   : > { %2270 = vmatprep.mubr.bf16.mxu1 %v21983_v30 }
 0x1c2   : > { %17533 = vmatmul.mubr.msk.bf16.gmra.mrb[12].mxu0 %vm1227_vm8, %v20106_v21  ;;  %v20111_v21 = vld [vmem:[#allocation2 + $0x78] sm:$0xff]  }
 0x1c3   : > { %5630 = vmatprep.mubr.bf16.mxu0 %v21983_v30 }
 0x1c7   : > { %17343 = vmatmul.mubr.msk.bf16.gmra.mrb[60].mxu1 %vm1227_vm8, %v17325_v7  ;;  %v17364_v7 = vcombine.low %v2603_v31, %v2606_v51  ;;  %v5944_v31 = vld [vmem:[#allocation2 + $0x1c] sm:$0xf]  ;;  %v5992_v51 = vshrl.u32 %v5943_v62, 16 }
 0x1c8   : > { %2829 = vmatprep.mubr.bf16.mxu1 %v21983_v30  ;;  %v6001_v1 = vshll.u32 %v5944_v31, 16  ;;  %v6005_v56 = vshrl.u32 %v5944_v31, 16 }
 0x1c9   : > { %v5994_v53 = vrot.slane %v5992_v51, 4 }
 0x1ca   : > { %17534 = vmatmul.mubr.msk.bf16.gmra.mrb[16].mxu0 %vm1227_vm8, %v20107_v52  ;;  %v20112_v52 = vld [vmem:[#allocation2 + $0x84] sm:$0xff]  }
 0x1cb   : > { %5640 = vmatprep.mubr.bf16.mxu0 %v21983_v30 }
 0x1cf   : > { %17378 = vmatmul.mubr.msk.bf16.vlgmr.msra.gmra.mrb[0].mxu1 %vm1227_vm8, %v17360_v20  ;;  %v17365_v20 = vcombine.low %v2610_v48, %v2613_v12  ;;  %v20117_v48 = vld [vmem:[#allocation2 + $0xc0] sm:$0xff]  }
 0x1d0   : > { %2839 = vmatprep.mubr.bf16.mxu1 %v21983_v30  ;;  %3360 = vmatpush1.bf16.msra.mxu1 %v3354_v60  ;;  %v2617_v60 = vsel %vm21723_vm6, %v17350_v29, %v2616_v23  ;;  %v2647_v29 = vrot.slane %v2505_v10, 5 }
 0x1d1   : > { %18621 = vmatprep.subr.msk.bf16.mxu1 %vm1276_vm0, %v21400_v40  ;;  %v2482_v40 = vld [vmem:[#allocation2 + $0x24] sm:$0xe]  ;;  %v17366_v6 = vcombine.low %v2617_v60, %v2620_v37  ;;  %v22259_v60 = vrot.slane %v6001_v1, 5  ;;  %v6007_v37 = vrot.slane %v6005_v56, 4  ;;  %v2511_v1 = vld [vmem:[#allocation2 + $0x98] sm:$0x1] }
 0x1d2   : > { %17535 = vmatmul.mubr.msk.bf16.gmra.mrb[20].mxu0 %vm1227_vm8, %v20108_v4  ;;  %v17347_v15 = vrot.slane %v2482_v40, 9  ;;  %v20113_v4 = vld [vmem:[#allocation2 + $0x90] sm:$0xff]   ;;  %v2497_v40 = vld [vmem:[#allocation2 + $0x60] sm:$0xe] }
 0x1d3   : > { %5650 = vmatprep.mubr.bf16.mxu0 %v21983_v30 }
 0x1d4   : > { %v2596_v8 = vsel %vm21723_vm6, %v17347_v15, %v2595_v16  ;;  %v22240_v16 = vld [vmem:[#allocation3] sm:$0xff]  ;;  %v17352_v15 = vrot.slane %v2497_v40, 9  ;;  %v2508_v40 = vld [vmem:[#allocation2 + $0x8c] sm:$0x1] }
 0x1d5   : > { %v17363_v43 = vcombine.low %v2596_v8, %v2599_v27  ;;  %v2634_v8 = vsel %vm21723_vm6, %v2632_v55, %v2633_v25  ;;  %v2637_v27 = vrot.slane %v2501_v19, 5  ;;  %v2654_v59 = vrot.slane %v2508_v40, 5 }
 0x1d7   : > { %17379 = vmatmul.mubr.msk.bf16.gmra.mrb[4].mxu1 %vm1227_vm8, %v17361_v13  ;;  %v20114_v13 = vld [vmem:[#allocation2 + $0x9c] sm:$0xff]   ;;  %v2639_v42 = vrot.slane %v2637_v27, 4 }
 0x1d8   : > { %2849 = vmatprep.mubr.bf16.mxu1 %v21983_v30 }
 0x1d9   : > { %v2641_v28 = vsel %vm21723_vm6, %v2639_v42, %v2640_v47  ;;  %v6035_v42 = vshll.u32 %v5948_v14, 16 }
 0x1da   : > { %17536 = vmatmul.mubr.msk.bf16.gmra.mrb[24].mxu0 %vm1227_vm8, %v20109_v5  ;;  %v17351_v5 = vrot.slane %v2494_v22, 9 }
 0x1db   : > { %5660 = vmatprep.mubr.bf16.mxu0 %v21983_v30  ;;  %v6037_v2 = vrot.slane %v6035_v42, 5 }
 0x1dc   : > { %v2624_v41 = vsel %vm21723_vm6, %v17351_v5, %v2623_v50  ;;  %v2507_v50 = vld [vmem:[#allocation2 + $0x88] sm:$0xf]  ;;  %v6011_v5 = vshll.u32 %v5945_v9, 16  ;;  %v2661_v9 = vrot.slane %v2511_v1, 5 }
 0x1dd   : > { %v2651_v32 = vrot.slane %v2507_v50, 5  ;;  %v7189_v50 = vsel %vm1276_vm0, %v22134_v39, 0 }
 0x1de   : > { %v6013_v19 = vrot.slane %v6011_v5, 5 }
 0x1df   : > { %17380 = vmatmul.mubr.msk.bf16.gmra.mrb[8].mxu1 %vm1227_vm8, %v17362_v36  ;;  %v17367_v36 = vcombine.low %v2624_v41, %v2627_v11  ;;  %v6021_v41 = vrot.slane %v6019_v57, 5  ;;  %v6008_v11 = vor.u32 %v6007_v37, %v22259_v60  ;;  %v5953_v37 = vld [vmem:[#allocation2 + $0x40] sm:$0xf] }
 0x1e0   : > { %2859 = vmatprep.mubr.bf16.mxu1 %v21983_v30  ;;  %v6077_v14 = vshrl.u32 %v5953_v37, 16 }
 0x1e2   : > { %17537 = vmatmul.mubr.msk.bf16.gmra.mrb[28].mxu0 %vm1227_vm8, %v20110_v18  ;;  %v20115_v18 = vld [vmem:[#allocation2 + $0xa8] sm:$0xff]  }
 0x1e3   : > { %5670 = vmatprep.mubr.bf16.mxu0 %v21983_v30 }
 0x1e7   : > { %17381 = vmatmul.mubr.msk.bf16.gmra.mrb[12].mxu1 %vm1227_vm8, %v17363_v43  ;;  %v20116_v43 = vld [vmem:[#allocation2 + $0xb4] sm:$0xff]  }
 0x1e8   : > { %2869 = vmatprep.mubr.bf16.mxu1 %v21983_v30 }
 0x1ea   : > { %17538 = vmatmul.mubr.msk.bf16.gmra.mrb[32].mxu0 %vm1227_vm8, %v20111_v21  ;;  %v17353_v21 = vrot.slane %v2500_v33, 9  ;;  %v2653_v33 = vrot.slane %v2651_v32, 4 }
 0x1eb   : > { %5680 = vmatprep.mubr.bf16.mxu0 %v21983_v30 }
 0x1ec   : > { %v2638_v46 = vsel %vm21723_vm6, %v17353_v21, %v2637_v27  ;;  %v6009_v21 = vrot.slane %v6008_v11, 4  ;;  %v6073_v11 = vshll.u32 %v5953_v37, 16  ;;  %v5959_v37 = vld [vmem:[#allocation2 + $0x58] sm:$0xf] }
 0x1ed   : > { %v17369_v12 = vcombine.low %v2638_v46, %v2641_v28 }
 0x1ee   : > { %v6014_v56 = vsel %vm21460_vm14, %v6009_v21, %v6013_v19 }
 0x1ef   : > { %17382 = vmatmul.mubr.msk.bf16.gmra.mrb[16].mxu1 %vm1227_vm8, %v17364_v7  ;;  %v2503_v7 = vld [vmem:[#allocation2 + $0x78] sm:$0xe] }
 0x1f0   : > { %2879 = vmatprep.mubr.bf16.mxu1 %v21983_v30  ;;  %v17354_v23 = vrot.slane %v2503_v7, 9 }
 0x1f2   : > { %17539 = vmatmul.mubr.msk.bf16.gmra.mrb[36].mxu0 %vm1227_vm8, %v20112_v52  ;;  %v2644_v52 = vrot.slane %v2504_v49, 5 }
 0x1f3   : > { %5690 = vmatprep.mubr.bf16.mxu0 %v21983_v30 }
 0x1f7   : > { %17383 = vmatmul.mubr.msk.bf16.gmra.mrb[20].mxu1 %vm1227_vm8, %v17365_v20  ;;  %v5947_v20 = vld [vmem:[#allocation2 + $0x28] sm:$0xf] }
 0x1f8   : > { %2889 = vmatprep.mubr.bf16.mxu1 %v21983_v30  ;;  %v6025_v22 = vshll.u32 %v5947_v20, 16  ;;  %v6029_v63 = vshrl.u32 %v5947_v20, 16 }
 0x1fa   : > { %17540 = vmatmul.mubr.msk.bf16.gmra.mrb[40].mxu0 %vm1227_vm8, %v20113_v4  ;;  %v2646_v4 = vrot.slane %v2644_v52, 4 }
 0x1fb   : > { %5700 = vmatprep.mubr.bf16.mxu0 %v21983_v30 }
 0x1fc   : > { %v2648_v24 = vsel %vm21723_vm6, %v2646_v4, %v2647_v29 }
 0x1ff   : > { %17384 = vmatmul.mubr.msk.bf16.gmra.mrb[24].mxu1 %vm1227_vm8, %v17366_v6  ;;  %v2645_v6 = vsel %vm21723_vm6, %v17354_v23, %v2644_v52  ;;  %v2655_v52 = vsel %vm21723_vm6, %v2653_v33, %v2654_v59 }
 0x200   : > { %2899 = vmatprep.mubr.bf16.mxu1 %v21983_v30  ;;  %v2631_v30 = vsel %vm21723_vm6, %v17352_v15, %v2630_v45  ;;  %v2506_v45 = vld [vmem:[#allocation2 + $0x84] sm:$0xe]  ;;  %v5949_v15 = vld [vmem:[#allocation2 + $0x30] sm:$0xf]  ;;  %v17370_v55 = vcombine.low %v2645_v6, %v2648_v24  ;;  %v2513_v6 = vld [vmem:[#allocation2 + $0xa0] sm:$0xf] }
 0x201   : > { %v17368_v38 = vcombine.low %v2631_v30, %v2634_v8  ;;  %v5950_v30 = vld [vmem:[#allocation2 + $0x34] sm:$0xf]  ;;  %v20118_v8 = vld [vmem:[#allocation2 + $0xcc] sm:$0xff]   ;;  %v17355_v27 = vrot.slane %v2506_v45, 9  ;;  %v6040_v47 = vshrl.u32 %v5949_v15, 16  ;;  %v6043_v62 = vshll.u32 %v5949_v15, 16 }
 0x202   : > { %17541 = vmatmul.mubr.msk.bf16.gmra.mrb[44].mxu0 %vm1227_vm8, %v20114_v13  ;;  %v5998_v13 = vor.u32 %v5997_v54, %v5994_v53  ;;  %v6049_v31 = vshll.u32 %v5950_v30, 16  ;;  %v6053_v51 = vshrl.u32 %v5950_v30, 16  ;;  %v17356_v53 = vrot.slane %v2509_v58, 9  ;;  %v2512_v45 = vld [vmem:[#allocation2 + $0x9c] sm:$0xe] }
 0x203   : > { %5710 = vmatprep.mubr.bf16.mxu0 %v22240_v16  ;;  %v2652_v7 = vsel %vm21723_vm6, %v17355_v27, %v2651_v32  ;;  %v6059_v32 = vshll.u32 %v5951_v34, 16  ;;  %v2665_v40 = vrot.slane %v2513_v6, 5  ;;  %v5955_v15 = vld [vmem:[#allocation2 + $0x48] sm:$0xf]  ;;  %v17357_v27 = vrot.slane %v2512_v45, 9 }
 0x204   : > { %v5999_v25 = vrot.slane %v5998_v13, 4  ;;  %v22286_v54 = vrot.slane %v6049_v31, 5  ;;  %v6055_v20 = vrot.slane %v6053_v51, 4  ;;  %v17371_v4 = vcombine.low %v2652_v7, %v2655_v52  ;;  %v2515_v58 = vld [vmem:[#allocation2 + $0xa8] sm:$0xe] }
 0x205   : > { %v6061_v30 = vrot.slane %v6059_v32, 5  ;;  %v2667_v21 = vrot.slane %v2665_v40, 4  ;;  %v6091_v51 = vshll.u32 %v5955_v15, 16  ;;  %v6121_v45 = vshll.u32 %v5959_v37, 16 }
 0x206   : > { %v6004_v28 = vsel %vm21460_vm14, %v5999_v25, %v22259_v60  ;;  %v5952_v60 = vld [vmem:[#allocation2 + $0x3c] sm:$0xf]  ;;  %v6056_v24 = vor.u32 %v6055_v20, %v22286_v54 }
 0x207   : > { %17385 = vmatmul.mubr.msk.bf16.gmra.mrb[28].mxu1 %vm1227_vm8, %v17367_v36  ;;  %v22270_v36 = vrot.slane %v6025_v22, 5  ;;  %v17546_v57 = vcombine.low %v6004_v28, %v6014_v56 }
 0x208   : > { %2909 = vmatprep.mubr.bf16.mxu1 %v22240_v16  ;;  %v6057_v19 = vrot.slane %v6056_v24, 4 }
 0x20a   : > { %17542 = vmatmul.mubr.msk.bf16.gmra.mrb[48].mxu0 %vm1227_vm8, %v20115_v18  ;;  %v6031_v18 = vrot.slane %v6029_v63, 4 }
 0x20b   : > { %5720 = vmatprep.mubr.bf16.mxu0 %v22240_v16 }
 0x20c   : > { %v6032_v49 = vor.u32 %v6031_v18, %v22270_v36  ;;  %v2514_v18 = vld [vmem:[#allocation2 + $0xa4] sm:$0x1] }
 0x20d   : > { %v2668_v42 = vrot.slane %v2514_v18, 5  ;;  %v2518_v18 = vld [vmem:[#allocation2 + $0xb4] sm:$0xe] }
 0x20e   : > { %v6033_v23 = vrot.slane %v6032_v49, 4  ;;  %v6088_v49 = vshrl.u32 %v5955_v15, 16  ;;  %v2520_v15 = vld [vmem:[#allocation2 + $0xbc] sm:$0x1] }
 0x20f   : > { %17386 = vmatmul.mubr.msk.bf16.gmra.mrb[32].mxu1 %vm1227_vm8, %v17368_v38  ;;  %v6022_v38 = vor.u32 %v6021_v41, %v6018_v61  ;;  %v6064_v61 = vshrl.u32 %v5952_v60, 16  ;;  %v6067_v41 = vshll.u32 %v5952_v60, 16  ;;  %v5958_v60 = vld [vmem:[#allocation2 + $0x54] sm:$0xf] }
 0x210   : > { %2919 = vmatprep.mubr.bf16.mxu1 %v22240_v16  ;;  %v6038_v13 = vsel %vm21460_vm14, %v6033_v23, %v6037_v2  ;;  %v2666_v2 = vsel %vm21723_vm6, %v17357_v27, %v2665_v40  ;;  %v6090_v23 = vrot.slane %v6088_v49, 4  ;;  %v5961_v49 = vld [vmem:[#allocation2 + $0x60] sm:$0xf] }
 0x211   : > { %v6023_v10 = vrot.slane %v6022_v38, 4  ;;  %v6066_v33 = vrot.slane %v6064_v61, 4  ;;  %v6069_v59 = vrot.slane %v6067_v41, 5  ;;  %v22304_v38 = vrot.slane %v6073_v11, 5 }
 0x212   : > { %17543 = vmatmul.mubr.msk.bf16.gmra.mrb[52].mxu0 %vm1227_vm8, %v20116_v43  ;;  %v2510_v43 = vld [vmem:[#allocation2 + $0x94] sm:$0xf]  ;;  %v6112_v41 = vshrl.u32 %v5958_v60, 16  ;;  %v6115_v11 = vshll.u32 %v5958_v60, 16  ;;  %v5964_v60 = vld [vmem:[#allocation2 + $0x6c] sm:$0xf] }
 0x213   : > { %5730 = vmatprep.mubr.bf16.mxu0 %v22240_v16  ;;  %v2658_v46 = vrot.slane %v2510_v43, 5  ;;  %v6028_v22 = vsel %vm21460_vm14, %v6023_v10, %v22270_v36  ;;  %v5956_v43 = vld [vmem:[#allocation2 + $0x4c] sm:$0xf]  ;;  %v6062_v10 = vsel %vm21460_vm14, %v6057_v19, %v6061_v30  ;;  %v6070_v1 = vor.u32 %v6069_v59, %v6066_v33 }
 0x214   : > { %v17547_v36 = vcombine.low %v6028_v22, %v6038_v13  ;;  %v6097_v28 = vshll.u32 %v5956_v43, 16  ;;  %v6101_v7 = vshrl.u32 %v5956_v43, 16  ;;  %v2519_v13 = vld [vmem:[#allocation2 + $0xb8] sm:$0xf]  ;;  %v6114_v27 = vrot.slane %v6112_v41, 4 }
 0x215   : > { %v2660_v29 = vrot.slane %v2658_v46, 4  ;;  %v2659_v5 = vsel %vm21723_vm6, %v17356_v53, %v2658_v46  ;;  %v2517_v46 = vld [vmem:[#allocation2 + $0xb0] sm:$0x1]  ;;  %v17358_v53 = vrot.slane %v2515_v58, 9  ;;  %v6071_v22 = vrot.slane %v6070_v1, 4 }
 0x216   : > { %v2675_v20 = vrot.slane %v2517_v46, 5  ;;  %v6103_v34 = vrot.slane %v6101_v7, 4  ;;  %v2679_v40 = vrot.slane %v2519_v13, 5  ;;  %v6117_v33 = vrot.slane %v6115_v11, 5  ;;  %v5967_v41 = vld [vmem:[#allocation2 + $0x78] sm:$0xf] }
 0x217   : > { %17387 = vmatmul.mubr.msk.bf16.gmra.mrb[36].mxu1 %vm1227_vm8, %v17369_v12  ;;  %v6045_v12 = vrot.slane %v6043_v62, 5  ;;  %v2662_v39 = vsel %vm21723_vm6, %v2660_v29, %v2661_v9  ;;  %v6079_v62 = vrot.slane %v6077_v14, 4  ;;  %v5957_v29 = vld [vmem:[#allocation2 + $0x50] sm:$0x1]  ;;  %v6099_v9 = vrot.slane %v6097_v28, 5 }
 0x218   : > { %2929 = vmatprep.mubr.bf16.mxu1 %v22240_v16  ;;  %v6125_v14 = vshrl.u32 %v5959_v37, 16  ;;  %v6123_v59 = vrot.slane %v6121_v45, 5  ;;  %v17359_v43 = vrot.slane %v2518_v18, 9  ;;  %v6118_v46 = vor.u32 %v6117_v33, %v6114_v27  ;;  %v5965_v37 = vld [vmem:[#allocation2 + $0x70] sm:$0xf] }
 0x219   : > { %v6104_v61 = vor.u32 %v6103_v34, %v6099_v9  ;;  %v6136_v1 = vshrl.u32 %v5961_v49, 16  ;;  %v5968_v11 = vld [vmem:[#allocation2 + $0x7c] sm:$0xf] }
 0x21a   : > { %17544 = vmatmul.mubr.msk.bf16.gmra.mrb[56].mxu0 %vm1227_vm8, %v20117_v48  ;;  %v6042_v48 = vrot.slane %v6040_v47, 4  ;;  %v5954_v47 = vld [vmem:[#allocation2 + $0x44] sm:$0x1]  ;;  %v2680_v28 = vsel %vm21723_vm6, %v17359_v43, %v2679_v40  ;;  %v6193_v27 = vshll.u32 %v5968_v11, 16  ;;  %v6197_v33 = vshrl.u32 %v5968_v11, 16 }
 0x21b   : > { %5740 = vmatprep.mubr.bf16.mxu0 %v22240_v16  ;;  %v6083_v56 = vshll.u32 %v5954_v47, 16 }
 0x21c   : > { %v6046_v63 = vor.u32 %v6045_v12, %v6042_v48  ;;  %v2669_v48 = vsel %vm21723_vm6, %v2667_v21, %v2668_v42  ;;  %v6080_v12 = vor.u32 %v6079_v62, %v22304_v38  ;;  %v2681_v21 = vrot.slane %v2679_v40, 4  ;;  %v5960_v62 = vld [vmem:[#allocation2 + $0x5c] sm:$0x1] }
 0x21d   : > { %v6085_v6 = vrot.slane %v6083_v56, 5  ;;  %v2682_v42 = vrot.slane %v2520_v15, 5  ;;  %v6139_v56 = vshll.u32 %v5961_v49, 16  ;;  %v6195_v49 = vrot.slane %v6193_v27, 5  ;;  %v5975_v27 = vld [vmem:[#allocation2 + $0x98] sm:$0x1] }
 0x21e   : > { %v6047_v25 = vrot.slane %v6046_v63, 4  ;;  %v6081_v63 = vrot.slane %v6080_v12, 4 }
 0x21f   : > { %17388 = vmatmul.mubr.msk.bf16.gmra.mrb[40].mxu1 %vm1227_vm8, %v17370_v55  ;;  %v17372_v55 = vcombine.low %v2659_v5, %v2662_v39  ;;  %v6107_v39 = vshll.u32 %v5957_v29, 16  ;;  %v2683_v7 = vsel %vm21723_vm6, %v2681_v21, %v2682_v42  ;;  %v6141_v29 = vrot.slane %v6139_v56, 5 }
 0x220   : > { %2939 = vmatprep.mubr.bf16.mxu1 %v22240_v16  ;;  %v6052_v52 = vsel %vm21460_vm14, %v6047_v25, %v22286_v54 }
 0x221   : > { %v6109_v30 = vrot.slane %v6107_v39, 5  ;;  %v6173_v39 = vshrl.u32 %v5965_v37, 16 }
 0x222   : > { %17545 = vmatmul.mubr.msk.bf16.gmra.mrb[60].mxu0 %vm1227_vm8, %v20118_v8  ;;  %v2516_v8 = vld [vmem:[#allocation2 + $0xac] sm:$0xf] }
 0x223   : > { %6520 = vmatprep.mubr.bf16.mxu0 %v22240_v16  ;;  %v2672_v31 = vrot.slane %v2516_v8, 5  ;;  %v6105_v8 = vrot.slane %v6104_v61, 4  ;;  %v20119_v61 = vld [vmem:[#allocation2 + $0xc] sm:$0xff]  }
 0x225   : > { %v2674_v54 = vrot.slane %v2672_v31, 4  ;;  %v2673_v5 = vsel %vm21723_vm6, %v17358_v53, %v2672_v31  ;;  %v5962_v31 = vld [vmem:[#allocation2 + $0x64] sm:$0xf]  ;;  %v6110_v58 = vsel %vm21460_vm14, %v6105_v8, %v6109_v30  ;;  %v6119_v53 = vrot.slane %v6118_v46, 4 }
 0x226   : > { %v6184_v30 = vshrl.u32 %v5967_v41, 16  ;;  %v6187_v8 = vshll.u32 %v5967_v41, 16 }
 0x227   : > { %17389 = vmatmul.mubr.msk.bf16.gmra.mrb[44].mxu1 %vm1227_vm8, %v17371_v4  ;;  %v6093_v4 = vrot.slane %v6091_v51, 5  ;;  %v2676_v24 = vsel %vm21723_vm6, %v2674_v54, %v2675_v20 }
 0x228   : > { %2949 = vmatprep.mubr.bf16.mxu1 %v22240_v16  ;;  %v17374_v25 = vcombine.low %v2673_v5, %v2676_v24  ;;  %v6160_v5 = vshrl.u32 %v5964_v60, 16  ;;  %v6163_v24 = vshll.u32 %v5964_v60, 16 }
 0x229   : > { %v6094_v32 = vor.u32 %v6093_v4, %v6090_v23  ;;  %v17375_v23 = vcombine.low %v2680_v28, %v2683_v7  ;;  %v6138_v4 = vrot.slane %v6136_v1, 4  ;;  %v5970_v28 = vld [vmem:[#allocation2 + $0x84] sm:$0xf]  ;;  %v5971_v7 = vld [vmem:[#allocation2 + $0x88] sm:$0xf] }
 0x22a   : > { %17564 = vmatmul.mubr.msk.bf16.vlgmr.msra.gmra.mrb[0].mxu0 %vm1227_vm8, %v17546_v57  ;;  %v17373_v57 = vcombine.low %v2666_v2, %v2669_v48  ;;  %v6145_v2 = vshll.u32 %v5962_v31, 16  ;;  %v6149_v48 = vshrl.u32 %v5962_v31, 16  ;;  %v6162_v18 = vrot.slane %v6160_v5, 4 }
 0x22b   : > { %7195 = vmatpush1.bf16.msra.mxu0 %v7189_v50  ;;  %6530 = vmatprep.mubr.bf16.mxu0 %v22240_v16  ;;  %v17548_v50 = vcombine.low %v6052_v52, %v6062_v10  ;;  %v6095_v19 = vrot.slane %v6094_v32, 4  ;;  %v6131_v10 = vshll.u32 %v5960_v62, 16  ;;  %v6169_v32 = vshll.u32 %v5965_v37, 16 }
 0x22c   : > { %v6151_v34 = vrot.slane %v6149_v48, 4  ;;  %v6165_v15 = vrot.slane %v6163_v24, 5  ;;  %v6189_v62 = vrot.slane %v6187_v8, 5  ;;  %v6199_v31 = vrot.slane %v6197_v33, 4  ;;  %v5976_v33 = vld [vmem:[#allocation2 + $0x9c] sm:$0xf] }
 0x22d   : > { %v6100_v51 = vsel %vm21460_vm14, %v6095_v19, %v6099_v9  ;;  %v6133_v20 = vrot.slane %v6131_v10, 5  ;;  %v6147_v9 = vrot.slane %v6145_v2, 5  ;;  %v5966_v19 = vld [vmem:[#allocation2 + $0x74] sm:$0x1] }
 0x22e   : > { %v17550_v12 = vcombine.low %v6100_v51, %v6110_v58  ;;  %v6166_v21 = vor.u32 %v6165_v15, %v6162_v18  ;;  %v20120_v51 = vld [vmem:[#allocation2 + $0x18] sm:$0xff]   ;;  %v5969_v58 = vld [vmem:[#allocation2 + $0x80] sm:$0x1]  ;;  %v6200_v2 = vor.u32 %v6199_v31, %v6195_v49 }
 0x22f   : > { %17390 = vmatmul.mubr.msk.bf16.gmra.mrb[48].mxu1 %vm1227_vm8, %v17372_v55  ;;  %v6086_v55 = vsel %vm21460_vm14, %v6081_v63, %v6085_v6  ;;  %v6142_v63 = vor.u32 %v6141_v29, %v6138_v4  ;;  %v6152_v6 = vor.u32 %v6151_v34, %v6147_v9  ;;  %v6203_v48 = vshll.u32 %v5969_v58, 16  ;;  %v20121_v34 = vld [vmem:[#allocation2 + $0x24] sm:$0xff]   ;;  %v20123_v58 = vld [vmem:[#allocation2 + $0x3c] sm:$0xff]  }
 0x230   : > { %2959 = vmatprep.mubr.bf16.mxu1 %v22240_v16  ;;  %v6201_v29 = vrot.slane %v6200_v2, 4 }
 0x231   : > { %v6143_v40 = vrot.slane %v6142_v63, 4  ;;  %v5972_v63 = vld [vmem:[#allocation2 + $0x8c] sm:$0x1] }
 0x232   : > { %17565 = vmatmul.mubr.msk.bf16.gmra.mrb[4].mxu0 %vm1227_vm8, %v17547_v36  ;;  %v6076_v36 = vsel %vm21460_vm14, %v6071_v22, %v22304_v38  ;;  %v6127_v38 = vrot.slane %v6125_v14, 4  ;;  %v6153_v14 = vrot.slane %v6152_v6, 4  ;;  %v5973_v6 = vld [vmem:[#allocation2 + $0x90] sm:$0xf] }
 0x233   : > { %6540 = vmatprep.mubr.bf16.mxu0 %v22240_v16  ;;  %v17549_v47 = vcombine.low %v6076_v36, %v6086_v55  ;;  %v6171_v55 = vrot.slane %v6169_v32, 5  ;;  %v6232_v41 = vshrl.u32 %v5973_v6, 16  ;;  %v6235_v11 = vshll.u32 %v5973_v6, 16  ;;  %v5981_v6 = vld [vmem:[#allocation2 + $0xb0] sm:$0x1] }
 0x234   : > { %v6128_v52 = vor.u32 %v6127_v38, %v6123_v59  ;;  %v6179_v38 = vshll.u32 %v5966_v19, 16 }
 0x235   : > { %v6237_v19 = vrot.slane %v6235_v11, 5 }
 0x236   : > { %v6129_v54 = vrot.slane %v6128_v52, 4  ;;  %v6167_v52 = vrot.slane %v6166_v21, 4  ;;  %v6181_v1 = vrot.slane %v6179_v38, 5 }
 0x237   : > { %17391 = vmatmul.mubr.msk.bf16.gmra.mrb[52].mxu1 %vm1227_vm8, %v17373_v57  ;;  %v5963_v57 = vld [vmem:[#allocation2 + $0x68] sm:$0x1] }
 0x238   : > { %2969 = vmatprep.mubr.bf16.mxu1 %v22240_v16  ;;  %v6134_v22 = vsel %vm21460_vm14, %v6129_v54, %v6133_v20  ;;  %v6155_v13 = vshll.u32 %v5963_v57, 16  ;;  %v6172_v54 = vsel %vm21460_vm14, %v6167_v52, %v6171_v55 }
 0x23a   : > { %17566 = vmatmul.mubr.msk.bf16.gmra.mrb[8].mxu0 %vm1227_vm8, %v17548_v50  ;;  %v6124_v50 = vsel %vm21460_vm14, %v6119_v53, %v6123_v59  ;;  %v6157_v36 = vrot.slane %v6155_v13, 5  ;;  %v6148_v59 = vsel %vm21460_vm14, %v6143_v40, %v6147_v9  ;;  %v6221_v53 = vshrl.u32 %v5971_v7, 16  ;;  %v5974_v13 = vld [vmem:[#allocation2 + $0x94] sm:$0xf] }
 0x23b   : > { %6550 = vmatprep.mubr.bf16.mxu0 %v22240_v16  ;;  %v17551_v45 = vcombine.low %v6124_v50, %v6134_v22  ;;  %v6205_v9 = vrot.slane %v6203_v48, 5  ;;  %v6245_v40 = vshrl.u32 %v5974_v13, 16 }
 0x23c   : > { %v6158_v43 = vsel %vm21460_vm14, %v6153_v14, %v6157_v36  ;;  %v6223_v50 = vrot.slane %v6221_v53, 4  ;;  %v20122_v36 = vld [vmem:[#allocation2 + $0x30] sm:$0xff]  }
 0x23d   : > { %v17552_v46 = vcombine.low %v6148_v59, %v6158_v43  ;;  %v6206_v24 = vsel %vm21460_vm14, %v6201_v29, %v6205_v9  ;;  %v6247_v8 = vrot.slane %v6245_v40, 4  ;;  %v5977_v59 = vld [vmem:[#allocation2 + $0xa0] sm:$0xf] }
 0x23e   : > { %v6265_v31 = vshll.u32 %v5977_v59, 16 }
 0x23f   : > { %17392 = vmatmul.mubr.msk.bf16.gmra.mrb[56].mxu1 %vm1227_vm8, %v17374_v25  ;;  %v6175_v25 = vrot.slane %v6173_v39, 4 }
 0x240   : > { %2979 = vmatprep.mubr.bf16.mxu1 %v22240_v16  ;;  %v6267_v48 = vrot.slane %v6265_v31, 5 }
 0x241   : > { %v6176_v42 = vor.u32 %v6175_v25, %v6171_v55  ;;  %v6234_v25 = vrot.slane %v6232_v41, 4 }
 0x242   : > { %17567 = vmatmul.mubr.msk.bf16.gmra.mrb[12].mxu0 %vm1227_vm8, %v17549_v47  ;;  %v6186_v47 = vrot.slane %v6184_v30, 4 }
 0x243   : > { %6560 = vmatprep.mubr.bf16.mxu0 %v22240_v16  ;;  %v6177_v10 = vrot.slane %v6176_v42, 4  ;;  %v6238_v42 = vor.u32 %v6237_v19, %v6234_v25 }
 0x244   : > { %v6190_v56 = vor.u32 %v6189_v62, %v6186_v47  ;;  %v6251_v47 = vshll.u32 %v5975_v27, 16  ;;  %v6256_v62 = vshrl.u32 %v5976_v33, 16 }
 0x245   : > { %v6182_v20 = vsel %vm21460_vm14, %v6177_v10, %v6181_v1  ;;  %v6239_v52 = vrot.slane %v6238_v42, 4  ;;  %v5984_v42 = vld [vmem:[#allocation2 + $0xbc] sm:$0x1] }
 0x246   : > { %v6191_v4 = vrot.slane %v6190_v56, 4  ;;  %v17553_v22 = vcombine.low %v6172_v54, %v6182_v20  ;;  %v6253_v1 = vrot.slane %v6251_v47, 5  ;;  %v6258_v56 = vrot.slane %v6256_v62, 4  ;;  %v5986_v47 = vld [vmem:[#allocation2 + $0xc4] sm:$0xf] }
 0x247   : > { %17393 = vmatmul.mubr.msk.bf16.gmra.mrb[60].mxu1 %vm1227_vm8, %v17375_v23  ;;  %v6217_v23 = vshll.u32 %v5971_v7, 16 }
 0x248   : > { %3391 = vmatprep.mubr.bf16.mxu1 %v22240_v16  ;;  %v6196_v5 = vsel %vm21460_vm14, %v6191_v4, %v6195_v49  ;;  %v6259_v49 = vshll.u32 %v5976_v33, 16 }
 0x249   : > { %v6219_v37 = vrot.slane %v6217_v23, 5  ;;  %v17554_v14 = vcombine.low %v6196_v5, %v6206_v24  ;;  %v5982_v5 = vld [vmem:[#allocation2 + $0xb4] sm:$0xf]  ;;  %v5983_v24 = vld [vmem:[#allocation2 + $0xb8] sm:$0xf] }
 0x24a   : > { %17568 = vmatmul.mubr.msk.bf16.gmra.mrb[16].mxu0 %vm1227_vm8, %v17550_v12  ;;  %v6211_v12 = vshll.u32 %v5970_v28, 16  ;;  %v6261_v2 = vrot.slane %v6259_v49, 5  ;;  %v6304_v40 = vshrl.u32 %v5982_v5, 16 }
 0x24b   : > { %6570 = vmatprep.mubr.bf16.mxu0 %v22240_v16  ;;  %v6224_v39 = vor.u32 %v6223_v50, %v6219_v37 }
 0x24c   : > { %v6213_v60 = vrot.slane %v6211_v12, 5  ;;  %v5978_v12 = vld [vmem:[#allocation2 + $0xa4] sm:$0x1]  ;;  %v6262_v9 = vor.u32 %v6261_v2, %v6258_v56  ;;  %v6306_v27 = vrot.slane %v6304_v40, 4 }
 0x24d   : > { %v6225_v15 = vrot.slane %v6224_v39, 4 }
 0x24f   : > { %17412 = vmatmul.mubr.msk.bf16.vlgmr.msra.gmra.mrb[0].mxu1 %vm1227_vm8, %v20119_v61  ;;  %v6227_v61 = vshll.u32 %v5972_v63, 16  ;;  %v20124_v63 = vld [vmem:[#allocation2 + $0x48] sm:$0xff]  }
 0x250   : > { %3401 = vmatprep.mubr.bf16.mxu1 %v22240_v16  ;;  %18622 = vmatpush1.bf16.msra.mxu1 %v21406_v44  ;;  %v6208_v44 = vshrl.u32 %v5970_v28, 16  ;;  %v5980_v28 = vld [vmem:[#allocation2 + $0xac] sm:$0xf] }
 0x251   : > { %v6229_v55 = vrot.slane %v6227_v61, 5  ;;  %v6289_v54 = vshll.u32 %v5980_v28, 16  ;;  %v6293_v20 = vshrl.u32 %v5980_v28, 16 }
 0x252   : > { %17569 = vmatmul.mubr.msk.bf16.gmra.mrb[20].mxu0 %vm1227_vm8, %v17551_v45  ;;  %v6210_v57 = vrot.slane %v6208_v44, 4  ;;  %v6241_v45 = vshll.u32 %v5974_v13, 16 }
 0x253   : > { %6580 = vmatprep.mubr.bf16.mxu0 %v22240_v16  ;;  %v6230_v21 = vsel %vm21460_vm14, %v6225_v15, %v6229_v55  ;;  %v6291_v50 = vrot.slane %v6289_v54, 5  ;;  %v5987_v54 = vld [vmem:[#allocation2 + $0xc8] sm:$0x1] }
 0x254   : > { %v6214_v32 = vor.u32 %v6213_v60, %v6210_v57  ;;  %v6243_v30 = vrot.slane %v6241_v45, 5  ;;  %v6275_v57 = vshll.u32 %v5978_v12, 16  ;;  %v6299_v45 = vshll.u32 %v5981_v6, 16  ;;  %v20127_v6 = vld [vmem:[#allocation2 + $0x6c] sm:$0xff]  }
 0x256   : > { %v6215_v18 = vrot.slane %v6214_v32, 4  ;;  %v6248_v38 = vor.u32 %v6247_v8, %v6243_v30  ;;  %v6244_v4 = vsel %vm21460_vm14, %v6239_v52, %v6243_v30  ;;  %v6263_v32 = vrot.slane %v6262_v9, 4  ;;  %v20125_v8 = vld [vmem:[#allocation2 + $0x54] sm:$0xff]  }
 0x257   : > { %17413 = vmatmul.mubr.msk.bf16.gmra.mrb[4].mxu1 %vm1227_vm8, %v20120_v51  ;;  %v6269_v51 = vshrl.u32 %v5977_v59, 16  ;;  %v6277_v61 = vrot.slane %v6275_v57, 5  ;;  %v6301_v30 = vrot.slane %v6299_v45, 5  ;;  %v6341_v52 = vshrl.u32 %v5986_v47, 16  ;;  %v5990_v45 = vld [vmem:[#allocation2 + $0xd4] sm:$0x1] }
 0x258   : > { %3411 = vmatprep.mubr.bf16.mxu1 %v22240_v16  ;;  %v6220_v43 = vsel %vm21460_vm14, %v6215_v18, %v6219_v37  ;;  %v6249_v10 = vrot.slane %v6248_v38, 4  ;;  %v6317_v18 = vshrl.u32 %v5983_v24, 16  ;;  %v6268_v15 = vsel %vm21460_vm14, %v6263_v32, %v6267_v48  ;;  %v5985_v38 = vld [vmem:[#allocation2 + $0xc0] sm:$0xf] }
 0x259   : > { %v17555_v7 = vcombine.low %v6220_v43, %v6230_v21  ;;  %v6271_v44 = vrot.slane %v6269_v51, 4  ;;  %v6331_v28 = vshll.u32 %v5985_v38, 16 }
 0x25a   : > { %17570 = vmatmul.mubr.msk.bf16.gmra.mrb[24].mxu0 %vm1227_vm8, %v17552_v46  ;;  %v5979_v46 = vld [vmem:[#allocation2 + $0xa8] sm:$0xf]  ;;  %v6254_v29 = vsel %vm21460_vm14, %v6249_v10, %v6253_v1  ;;  %v6319_v43 = vrot.slane %v6317_v18, 4  ;;  %v20126_v1 = vld [vmem:[#allocation2 + $0x60] sm:$0xff]  }
 0x25b   : > { %6590 = vmatprep.mubr.bf16.mxu0 %v22240_v16  ;;  %v6280_v23 = vshrl.u32 %v5979_v46, 16  ;;  %v6283_v53 = vshll.u32 %v5979_v46, 16  ;;  %v17556_v13 = vcombine.low %v6244_v4, %v6254_v29  ;;  %v6328_v46 = vshrl.u32 %v5985_v38, 16  ;;  %v5989_v4 = vld [vmem:[#allocation2 + $0xd0] sm:$0xf]  ;;  %v20129_v38 = vld [vmem:[#allocation2 + $0x84] sm:$0xff]  }
 0x25c   : > { %v6333_v12 = vrot.slane %v6331_v28, 5 }
 0x25d   : > { %v6282_v60 = vrot.slane %v6280_v23, 4  ;;  %v6285_v37 = vrot.slane %v6283_v53, 5  ;;  %v6343_v53 = vrot.slane %v6341_v52, 4  ;;  %v6878_v52 = vld [vmem:[#allocation2 + $0x2c] sm:$0x1] }
 0x25f   : > { %17414 = vmatmul.mubr.msk.bf16.gmra.mrb[8].mxu1 %vm1227_vm8, %v20121_v34  ;;  %v6272_v34 = vor.u32 %v6271_v44, %v6267_v48  ;;  %v6286_v41 = vor.u32 %v6285_v37, %v6282_v60  ;;  %v6330_v44 = vrot.slane %v6328_v46, 4  ;;  %v6347_v60 = vshll.u32 %v5987_v54, 16  ;;  %v6879_v54 = vld [vmem:[#allocation2 + $0x30] sm:$0xe] }
 0x260   : > { %3421 = vmatprep.mubr.bf16.mxu1 %v22240_v16 }
 0x261   : > { %v6273_v39 = vrot.slane %v6272_v34, 4  ;;  %v6287_v25 = vrot.slane %v6286_v41, 4  ;;  %v6334_v34 = vor.u32 %v6333_v12, %v6330_v44  ;;  %v6349_v32 = vrot.slane %v6347_v60, 5  ;;  %v6880_v44 = vld [vmem:[#allocation2 + $0x34] sm:$0xf] }
 0x262   : > { %17571 = vmatmul.mubr.msk.bf16.gmra.mrb[28].mxu0 %vm1227_vm8, %v17553_v22  ;;  %v6295_v22 = vrot.slane %v6293_v20, 4  ;;  %v5988_v20 = vld [vmem:[#allocation2 + $0xcc] sm:$0xf]  ;;  %v6883_v60 = vld [vmem:[#allocation2 + $0x40] sm:$0xf] }
 0x263   : > { %6600 = vmatprep.mubr.bf16.mxu0 %v22240_v16  ;;  %v6278_v55 = vsel %vm21460_vm14, %v6273_v39, %v6277_v61  ;;  %v6292_v62 = vsel %vm21460_vm14, %v6287_v25, %v6291_v50  ;;  %v6352_v37 = vshrl.u32 %v5988_v20, 16 }
 0x264   : > { %v6296_v11 = vor.u32 %v6295_v22, %v6291_v50  ;;  %v17557_v21 = vcombine.low %v6268_v15, %v6278_v55  ;;  %v6355_v50 = vshll.u32 %v5988_v20, 16  ;;  %v6361_v22 = vshll.u32 %v5989_v4, 16  ;;  %v20128_v55 = vld [vmem:[#allocation2 + $0x78] sm:$0xff]  }
 0x265   : > { %v6354_v39 = vrot.slane %v6352_v37, 4  ;;  %v6371_v15 = vshll.u32 %v5990_v45, 16  ;;  %v6881_v20 = vld [vmem:[#allocation2 + $0x38] sm:$0x1]  ;;  %v6992_v37 = vrot.slane %v6883_v60, 5 }
 0x266   : > { %v6297_v19 = vrot.slane %v6296_v11, 4  ;;  %v6357_v61 = vrot.slane %v6355_v50, 5  ;;  %v6363_v41 = vrot.slane %v6361_v22, 5 }
 0x267   : > { %17415 = vmatmul.mubr.msk.bf16.gmra.mrb[12].mxu1 %vm1227_vm8, %v20122_v36  ;;  %v6313_v36 = vshll.u32 %v5983_v24, 16 }
 0x268   : > { %3431 = vmatprep.mubr.bf16.mxu1 %v22240_v16  ;;  %v6302_v49 = vsel %vm21460_vm14, %v6297_v19, %v6301_v30 }
 0x269   : > { %v6315_v59 = vrot.slane %v6313_v36, 5  ;;  %v17558_v10 = vcombine.low %v6292_v62, %v6302_v49  ;;  %v6358_v36 = vor.u32 %v6357_v61, %v6354_v39  ;;  %v6994_v61 = vrot.slane %v6992_v37, 4 }
 0x26a   : > { %17572 = vmatmul.mubr.msk.bf16.gmra.mrb[32].mxu0 %vm1227_vm8, %v17554_v14  ;;  %v6307_v14 = vshll.u32 %v5982_v5, 16  ;;  %v6335_v5 = vrot.slane %v6334_v34, 4 }
 0x26b   : > { %6610 = vmatprep.mubr.bf16.mxu0 %v22240_v16  ;;  %v6320_v51 = vor.u32 %v6319_v43, %v6315_v59  ;;  %v6359_v19 = vrot.slane %v6358_v36, 4 }
 0x26c   : > { %v6309_v33 = vrot.slane %v6307_v14, 5 }
 0x26d   : > { %v6321_v2 = vrot.slane %v6320_v51, 4  ;;  %v6877_v51 = vld [vmem:[#allocation2 + $0x28] sm:$0xf] }
 0x26e   : > { %v6310_v31 = vor.u32 %v6309_v33, %v6306_v27  ;;  %v6874_v27 = vld [vmem:[#allocation2 + $0x1c] sm:$0xf]  ;;  %v6364_v33 = vsel %vm21460_vm14, %v6359_v19, %v6363_v41  ;;  %v6978_v28 = vrot.slane %v6877_v51, 5  ;;  %v6887_v19 = vld [vmem:[#allocation2 + $0x50] sm:$0x1] }
 0x26f   : > { %17416 = vmatmul.mubr.msk.bf16.gmra.mrb[16].mxu1 %vm1227_vm8, %v20123_v58  ;;  %v6323_v58 = vshll.u32 %v5984_v42, 16  ;;  %v6971_v43 = vrot.slane %v6874_v27, 5  ;;  %v6875_v42 = vld [vmem:[#allocation2 + $0x20] sm:$0x1] }
 0x270   : > { %3441 = vmatprep.mubr.bf16.mxu1 %v22240_v16  ;;  %v6311_v56 = vrot.slane %v6310_v31, 4  ;;  %v6974_v31 = vrot.slane %v6875_v42, 5  ;;  %v3772_v42 = vld [vmem:[#allocation2 + $0x7c] sm:$0xf] }
 0x271   : > { %v6325_v48 = vrot.slane %v6323_v58, 5  ;;  %v6973_v49 = vrot.slane %v6971_v43, 4 }
 0x272   : > { %17573 = vmatmul.mubr.msk.bf16.gmra.mrb[36].mxu0 %vm1227_vm8, %v17555_v7  ;;  %v6337_v7 = vshll.u32 %v5986_v47, 16  ;;  %v6316_v29 = vsel %vm21460_vm14, %v6311_v56, %v6315_v59 }
 0x273   : > { %6620 = vmatprep.mubr.bf16.mxu0 %v22240_v16  ;;  %v6326_v9 = vsel %vm21460_vm14, %v6321_v2, %v6325_v48  ;;  %v6975_v46 = vsel %vm21723_vm6, %v6973_v49, %v6974_v31  ;;  %v6980_v2 = vrot.slane %v6978_v28, 4  ;;  %v6981_v48 = vrot.slane %v6878_v52, 5 }
 0x274   : > { %v6339_v23 = vrot.slane %v6337_v7, 5  ;;  %v6876_v7 = vld [vmem:[#allocation2 + $0x24] sm:$0xe]  ;;  %v7002_v49 = vrot.slane %v6887_v19, 5  ;;  %v4018_v52 = vshll.u32 %v3772_v42, 16 }
 0x275   : > { %v17581_v56 = vrot.slane %v6876_v7, 9 }
 0x276   : > { %v6344_v57 = vor.u32 %v6343_v53, %v6339_v23  ;;  %v6340_v40 = vsel %vm21460_vm14, %v6335_v5, %v6339_v23  ;;  %v6982_v23 = vsel %vm21723_vm6, %v6980_v2, %v6981_v48  ;;  %v6985_v53 = vrot.slane %v6880_v44, 5  ;;  %v3769_v5 = vld [vmem:[#allocation2 + $0x70] sm:$0xf]  ;;  %v6888_v2 = vld [vmem:[#allocation2 + $0x54] sm:$0xe] }
 0x277   : > { %17417 = vmatmul.mubr.msk.bf16.gmra.mrb[20].mxu1 %vm1227_vm8, %v20124_v63  ;;  %v6365_v63 = vshrl.u32 %v5989_v4, 16  ;;  %v6979_v12 = vsel %vm21723_vm6, %v17581_v56, %v6978_v28  ;;  %v20131_v4 = vld [vmem:[#allocation2 + $0x9c] sm:$0xff]   ;;  %v3998_v36 = vshrl.u32 %v3769_v5, 16 }
 0x278   : > { %3451 = vmatprep.mubr.bf16.mxu1 %v22240_v16  ;;  %v6345_v24 = vrot.slane %v6344_v57, 4  ;;  %v6987_v34 = vrot.slane %v6985_v53, 4  ;;  %v6988_v57 = vrot.slane %v6881_v20, 5  ;;  %v6890_v48 = vld [vmem:[#allocation2 + $0x5c] sm:$0x1] }
 0x279   : > { %v6367_v11 = vrot.slane %v6365_v63, 4  ;;  %v6882_v63 = vld [vmem:[#allocation2 + $0x3c] sm:$0xe] }
 0x27a   : > { %17574 = vmatmul.mubr.msk.bf16.gmra.mrb[40].mxu0 %vm1227_vm8, %v17556_v13  ;;  %v17559_v13 = vcombine.low %v6316_v29, %v6326_v9  ;;  %v6350_v14 = vsel %vm21460_vm14, %v6345_v24, %v6349_v32  ;;  %v17597_v29 = vcombine.low %v6979_v12, %v6982_v23  ;;  %v17582_v9 = vrot.slane %v6879_v54, 9  ;;  %v20132_v24 = vld [vmem:[#allocation2 + $0xa8] sm:$0xff]   ;;  %v6892_v54 = vld [vmem:[#allocation2 + $0x64] sm:$0xf] }
 0x27b   : > { %6630 = vmatprep.mubr.bf16.mxu0 %v22240_v16  ;;  %v6368_v18 = vor.u32 %v6367_v11, %v6363_v41  ;;  %v17560_v25 = vcombine.low %v6340_v40, %v6350_v14  ;;  %v6989_v22 = vsel %vm21723_vm6, %v6987_v34, %v6988_v57  ;;  %v17583_v39 = vrot.slane %v6882_v63, 9  ;;  %v6886_v11 = vld [vmem:[#allocation2 + $0x4c] sm:$0xf]  ;;  %v20134_v34 = vld [vmem:[#allocation2 + $0xc0] sm:$0xff]  }
 0x27c   : > { %v6986_v50 = vsel %vm21723_vm6, %v17582_v9, %v6985_v53  ;;  %v3994_v14 = vshll.u32 %v3769_v5, 16  ;;  %v3773_v57 = vld [vmem:[#allocation2 + $0x80] sm:$0x1]  ;;  %v7013_v5 = vrot.slane %v6892_v54, 5 }
 0x27d   : > { %v6369_v30 = vrot.slane %v6368_v18, 4  ;;  %v17598_v32 = vcombine.low %v6986_v50, %v6989_v22  ;;  %v6993_v18 = vsel %vm21723_vm6, %v17583_v39, %v6992_v37  ;;  %v17585_v37 = vrot.slane %v6888_v2, 9  ;;  %v3774_v50 = vld [vmem:[#allocation2 + $0x84] sm:$0xf]  ;;  %v3775_v22 = vld [vmem:[#allocation2 + $0x88] sm:$0xf] }
 0x27e   : > { %v22468_v27 = vrot.slane %v3994_v14, 5  ;;  %v6893_v39 = vld [vmem:[#allocation2 + $0x68] sm:$0x1]  ;;  %v4042_v14 = vshll.u32 %v3775_v22, 16 }
 0x27f   : > { %17418 = vmatmul.mubr.msk.bf16.gmra.mrb[24].mxu1 %vm1227_vm8, %v20125_v8  ;;  %v6373_v8 = vrot.slane %v6371_v15, 5  ;;  %v7016_v19 = vrot.slane %v6893_v39, 5 }
 0x280   : > { %3461 = vmatprep.mubr.bf16.mxu1 %v22240_v16 }
 0x281   : > { %v6374_v59 = vsel %vm21460_vm14, %v6369_v30, %v6373_v8 }
 0x282   : > { %17575 = vmatmul.mubr.msk.bf16.gmra.mrb[44].mxu0 %vm1227_vm8, %v17557_v21  ;;  %v6873_v21 = vld [vmem:[#allocation2 + $0x18] sm:$0xe]  ;;  %v17561_v47 = vcombine.low %v6364_v33, %v6374_v59  ;;  %v4000_v33 = vrot.slane %v3998_v36, 4  ;;  %v3770_v59 = vld [vmem:[#allocation2 + $0x74] sm:$0x1]  ;;  %v4046_v36 = vshrl.u32 %v3775_v22, 16 }
 0x283   : > { %6640 = vmatprep.mubr.bf16.mxu0 %v22240_v16  ;;  %v17580_v62 = vrot.slane %v6873_v21, 9  ;;  %v3771_v21 = vld [vmem:[#allocation2 + $0x78] sm:$0xf] }
 0x284   : > { %v4001_v51 = vor.u32 %v4000_v33, %v22468_v27  ;;  %v4009_v28 = vshrl.u32 %v3771_v21, 16  ;;  %v4012_v7 = vshll.u32 %v3771_v21, 16 }
 0x285   : > { %v6972_v58 = vsel %vm21723_vm6, %v17580_v62, %v6971_v43  ;;  %v20133_v43 = vld [vmem:[#allocation2 + $0xb4] sm:$0xff]  }
 0x286   : > { %v4002_v23 = vrot.slane %v4001_v51, 4  ;;  %v4011_v20 = vrot.slane %v4009_v28, 4  ;;  %v6894_v28 = vld [vmem:[#allocation2 + $0x6c] sm:$0xe] }
 0x287   : > { %17419 = vmatmul.mubr.msk.bf16.gmra.mrb[28].mxu1 %vm1227_vm8, %v20126_v1  ;;  %v17596_v1 = vcombine.low %v6972_v58, %v6975_v46  ;;  %v4004_v58 = vshll.u32 %v3770_v59, 16  ;;  %v6889_v46 = vld [vmem:[#allocation2 + $0x58] sm:$0xf]  ;;  %v6895_v59 = vld [vmem:[#allocation2 + $0x70] sm:$0xf] }
 0x288   : > { %3471 = vmatprep.mubr.bf16.mxu1 %v22240_v16  ;;  %v7006_v44 = vrot.slane %v6889_v46, 5 }
 0x289   : > { %v4006_v53 = vrot.slane %v4004_v58, 5 }
 0x28a   : > { %17576 = vmatmul.mubr.msk.bf16.gmra.mrb[48].mxu0 %vm1227_vm8, %v17558_v10  ;;  %v20130_v10 = vld [vmem:[#allocation2 + $0x90] sm:$0xff]   ;;  %v7008_v63 = vrot.slane %v7006_v44, 4 }
 0x28b   : > { %6650 = vmatprep.mubr.bf16.mxu0 %v22240_v16 }
 0x28f   : > { %17420 = vmatmul.mubr.msk.bf16.gmra.mrb[32].mxu1 %vm1227_vm8, %v20127_v6  ;;  %v6884_v6 = vld [vmem:[#allocation2 + $0x44] sm:$0x1] }
 0x290   : > { %3481 = vmatprep.mubr.bf16.mxu1 %v22240_v16  ;;  %v6995_v41 = vrot.slane %v6884_v6, 5  ;;  %v7009_v6 = vrot.slane %v6890_v48, 5 }
 0x292   : > { %17577 = vmatmul.mubr.msk.bf16.gmra.mrb[52].mxu0 %vm1227_vm8, %v17559_v13  ;;  %v3768_v13 = vld [vmem:[#allocation2 + $0x6c] sm:$0xf]  ;;  %v6996_v15 = vsel %vm21723_vm6, %v6994_v61, %v6995_v41 }
 0x293   : > { %6660 = vmatprep.mubr.bf16.mxu0 %v22240_v16  ;;  %v3985_v45 = vshrl.u32 %v3768_v13, 16  ;;  %v3988_v40 = vshll.u32 %v3768_v13, 16 }
 0x295   : > { %v3987_v30 = vrot.slane %v3985_v45, 4  ;;  %v3990_v8 = vrot.slane %v3988_v40, 5  ;;  %v4033_v45 = vshrl.u32 %v3774_v50, 16  ;;  %v4036_v40 = vshll.u32 %v3774_v50, 16  ;;  %v6898_v50 = vld [vmem:[#allocation2 + $0x7c] sm:$0xf] }
 0x297   : > { %17421 = vmatmul.mubr.msk.bf16.gmra.mrb[36].mxu1 %vm1227_vm8, %v20128_v55  ;;  %v6885_v55 = vld [vmem:[#allocation2 + $0x48] sm:$0xe]  ;;  %v3991_v31 = vor.u32 %v3990_v8, %v3987_v30  ;;  %v4038_v21 = vrot.slane %v4036_v40, 5  ;;  %v7027_v40 = vrot.slane %v6898_v50, 5 }
 0x298   : > { %3491 = vmatprep.mubr.bf16.mxu1 %v22240_v16 }
 0x299   : > { %v3992_v12 = vrot.slane %v3991_v31, 4  ;;  %v3778_v31 = vld [vmem:[#allocation2 + $0x94] sm:$0xf] }
 0x29a   : > { %17578 = vmatmul.mubr.msk.bf16.gmra.mrb[56].mxu0 %vm1227_vm8, %v17560_v25  ;;  %v6999_v25 = vrot.slane %v6886_v11, 5  ;;  %v4028_v11 = vshll.u32 %v3773_v57, 16 }
 0x29b   : > { %6670 = vmatprep.mubr.bf16.mxu0 %v22240_v16  ;;  %v3997_v13 = vsel %vm21460_vm14, %v3992_v12, %v22468_v27  ;;  %v4066_v12 = vshll.u32 %v3778_v31, 16 }
 0x29c   : > { %v7001_v62 = vrot.slane %v6999_v25, 4  ;;  %v4030_v33 = vrot.slane %v4028_v11, 5 }
 0x29e   : > { %v7003_v56 = vsel %vm21723_vm6, %v7001_v62, %v7002_v49  ;;  %v3776_v62 = vld [vmem:[#allocation2 + $0x8c] sm:$0x1]  ;;  %v3777_v49 = vld [vmem:[#allocation2 + $0x90] sm:$0xf] }
 0x29f   : > { %17422 = vmatmul.mubr.msk.bf16.gmra.mrb[40].mxu1 %vm1227_vm8, %v20129_v38  ;;  %v17599_v38 = vcombine.low %v6993_v18, %v6996_v15  ;;  %v7007_v18 = vsel %vm21723_vm6, %v17585_v37, %v7006_v44  ;;  %v7010_v15 = vsel %vm21723_vm6, %v7008_v63, %v7009_v6  ;;  %v4052_v2 = vshll.u32 %v3776_v62, 16 }
 0x2a0   : > { %3501 = vmatprep.mubr.bf16.mxu1 %v22240_v16  ;;  %v4057_v48 = vshrl.u32 %v3777_v49, 16  ;;  %v4060_v44 = vshll.u32 %v3777_v49, 16  ;;  %v22511_v6 = vrot.slane %v4066_v12, 5  ;;  %v7029_v62 = vrot.slane %v7027_v40, 4 }
 0x2a1   : > { %v4054_v37 = vrot.slane %v4052_v2, 5 }
 0x2a2   : > { %17579 = vmatmul.mubr.msk.bf16.gmra.mrb[60].mxu0 %vm1227_vm8, %v17561_v47  ;;  %v17584_v47 = vrot.slane %v6885_v55, 9  ;;  %v4059_v22 = vrot.slane %v4057_v48, 4  ;;  %v4062_v63 = vrot.slane %v4060_v44, 5 }
 0x2a3   : > { %7226 = vmatprep.mubr.bf16.mxu0 %v22240_v16  ;;  %v22444_v16 = vld [vmem:[#allocation3] sm:$0xff] }
 0x2a7   : > { %17423 = vmatmul.mubr.msk.bf16.gmra.mrb[44].mxu1 %vm1227_vm8, %v20130_v10  ;;  %v4022_v10 = vshrl.u32 %v3772_v42, 16  ;;  %v22495_v42 = vrot.slane %v4042_v14, 5 }
 0x2a8   : > { %3511 = vmatprep.mubr.bf16.mxu1 %v22444_v16 }
 0x2a9   : > { %v4024_v9 = vrot.slane %v4022_v10, 4  ;;  %v6896_v10 = vld [vmem:[#allocation2 + $0x74] sm:$0x1] }
 0x2aa   : > { %17614 = vmatmul.mubr.msk.bf16.vlgmr.msra.gmra.mrb[0].mxu0 %vm1227_vm8, %v17596_v1  ;;  %v7000_v1 = vsel %vm21723_vm6, %v17584_v47, %v6999_v25  ;;  %v7015_v25 = vrot.slane %v7013_v5, 4  ;;  %v17601_v47 = vcombine.low %v7007_v18, %v7010_v15  ;;  %v6899_v18 = vld [vmem:[#allocation2 + $0x80] sm:$0x1]  ;;  %v4063_v15 = vor.u32 %v4062_v63, %v4059_v22  ;;  %v3785_v22 = vld [vmem:[#allocation2 + $0xb0] sm:$0x1] }
 0x2ab   : > { %7236 = vmatprep.mubr.bf16.mxu0 %v22444_v16  ;;  %v17600_v60 = vcombine.low %v7000_v1, %v7003_v56 }
 0x2ac   : > { %v7017_v58 = vsel %vm21723_vm6, %v7015_v25, %v7016_v19  ;;  %v4064_v49 = vrot.slane %v4063_v15, 4 }
 0x2ae   : > { %v4069_v44 = vsel %vm21460_vm14, %v4064_v49, %v22511_v6 }
 0x2af   : > { %17424 = vmatmul.mubr.msk.bf16.gmra.mrb[48].mxu1 %vm1227_vm8, %v20131_v4  ;;  %v4014_v4 = vrot.slane %v4012_v7, 5  ;;  %v7020_v7 = vrot.slane %v6895_v59, 5 }
 0x2b0   : > { %3521 = vmatprep.mubr.bf16.mxu1 %v22444_v16 }
 0x2b1   : > { %v4015_v61 = vor.u32 %v4014_v4, %v4011_v20  ;;  %v7022_v20 = vrot.slane %v7020_v7, 4  ;;  %v7023_v4 = vrot.slane %v6896_v10, 5 }
 0x2b2   : > { %17615 = vmatmul.mubr.msk.bf16.gmra.mrb[4].mxu0 %vm1227_vm8, %v17597_v29  ;;  %v22479_v29 = vrot.slane %v4018_v52, 5 }
 0x2b3   : > { %7246 = vmatprep.mubr.bf16.mxu0 %v22444_v16  ;;  %v4016_v8 = vrot.slane %v4015_v61, 4  ;;  %v7024_v11 = vsel %vm21723_vm6, %v7022_v20, %v7023_v4 }
 0x2b4   : > { %v4025_v41 = vor.u32 %v4024_v9, %v22479_v29  ;;  %v3781_v9 = vld [vmem:[#allocation2 + $0xa0] sm:$0xf] }
 0x2b5   : > { %v4021_v46 = vsel %vm21460_vm14, %v4016_v8, %v22479_v29  ;;  %v3780_v29 = vld [vmem:[#allocation2 + $0x9c] sm:$0xf]  ;;  %v4090_v39 = vshll.u32 %v3781_v9, 16  ;;  %v4094_v61 = vshrl.u32 %v3781_v9, 16  ;;  %v6904_v9 = vld [vmem:[#allocation2 + $0x94] sm:$0xf] }
 0x2b6   : > { %v4026_v27 = vrot.slane %v4025_v41, 4 }
 0x2b7   : > { %17425 = vmatmul.mubr.msk.bf16.gmra.mrb[52].mxu1 %vm1227_vm8, %v20132_v24  ;;  %v4007_v24 = vsel %vm21460_vm14, %v4002_v23, %v4006_v53  ;;  %v4070_v23 = vshrl.u32 %v3778_v31, 16  ;;  %v17587_v53 = vrot.slane %v6894_v28, 9  ;;  %v22527_v8 = vrot.slane %v4090_v39, 5 }
 0x2b8   : > { %3531 = vmatprep.mubr.bf16.mxu1 %v22444_v16  ;;  %v17436_v30 = vcombine.low %v3997_v13, %v4007_v24  ;;  %v4031_v52 = vsel %vm21460_vm14, %v4026_v27, %v4030_v33  ;;  %v4081_v24 = vshrl.u32 %v3780_v29, 16  ;;  %v4096_v27 = vrot.slane %v4094_v61, 4  ;;  %v3782_v33 = vld [vmem:[#allocation2 + $0xa4] sm:$0x1] }
 0x2b9   : > { %v4072_v13 = vrot.slane %v4070_v23, 4  ;;  %v7021_v41 = vsel %vm21723_vm6, %v17587_v53, %v7020_v7  ;;  %v4100_v28 = vshll.u32 %v3782_v33, 16  ;;  %v6901_v7 = vld [vmem:[#allocation2 + $0x88] sm:$0xf]  ;;  %v6900_v23 = vld [vmem:[#allocation2 + $0x84] sm:$0xe] }
 0x2ba   : > { %17616 = vmatmul.mubr.msk.bf16.gmra.mrb[8].mxu0 %vm1227_vm8, %v17598_v32  ;;  %v6891_v32 = vld [vmem:[#allocation2 + $0x60] sm:$0xe]  ;;  %v4083_v19 = vrot.slane %v4081_v24, 4  ;;  %v17603_v59 = vcombine.low %v7021_v41, %v7024_v11  ;;  %v6902_v53 = vld [vmem:[#allocation2 + $0x8c] sm:$0x1]  ;;  %v7041_v61 = vrot.slane %v6904_v9, 5 }
 0x2bb   : > { %7256 = vmatprep.mubr.bf16.mxu0 %v22444_v16  ;;  %v17586_v55 = vrot.slane %v6891_v32, 9  ;;  %v4084_v32 = vshll.u32 %v3780_v29, 16  ;;  %v4102_v29 = vrot.slane %v4100_v28, 5  ;;  %v6903_v11 = vld [vmem:[#allocation2 + $0x90] sm:$0xe] }
 0x2bd   : > { %v7014_v51 = vsel %vm21723_vm6, %v17586_v55, %v7013_v5  ;;  %v3779_v5 = vld [vmem:[#allocation2 + $0x98] sm:$0x1]  ;;  %v4073_v55 = vor.u32 %v4072_v13, %v22511_v6  ;;  %v17589_v6 = vrot.slane %v6900_v23, 9  ;;  %v3786_v13 = vld [vmem:[#allocation2 + $0xb4] sm:$0xf] }
 0x2be   : > { %v17602_v54 = vcombine.low %v7014_v51, %v7017_v58  ;;  %v4076_v25 = vshll.u32 %v3779_v5, 16  ;;  %v3787_v5 = vld [vmem:[#allocation2 + $0xb8] sm:$0xf]  ;;  %v4132_v15 = vshll.u32 %v3786_v13, 16 }
 0x2bf   : > { %17426 = vmatmul.mubr.msk.bf16.gmra.mrb[56].mxu1 %vm1227_vm8, %v20133_v43  ;;  %v4035_v43 = vrot.slane %v4033_v45, 4  ;;  %v4074_v31 = vrot.slane %v4073_v55, 4  ;;  %v4138_v55 = vshll.u32 %v3787_v5, 16 }
 0x2c0   : > { %3541 = vmatprep.mubr.bf16.mxu1 %v22444_v16  ;;  %v4078_v51 = vrot.slane %v4076_v25, 5  ;;  %v4142_v25 = vshrl.u32 %v3787_v5, 16 }
 0x2c1   : > { %v4039_v1 = vor.u32 %v4038_v21, %v4035_v43 }
 0x2c2   : > { %17617 = vmatmul.mubr.msk.bf16.gmra.mrb[12].mxu0 %vm1227_vm8, %v17599_v38  ;;  %v4048_v38 = vrot.slane %v4046_v36, 4  ;;  %v6897_v36 = vld [vmem:[#allocation2 + $0x78] sm:$0xe]  ;;  %v4079_v12 = vsel %vm21460_vm14, %v4074_v31, %v4078_v51  ;;  %v4144_v49 = vrot.slane %v4142_v25, 4  ;;  %v3788_v51 = vld [vmem:[#allocation2 + $0xbc] sm:$0x1] }
 0x2c3   : > { %7266 = vmatprep.mubr.bf16.mxu0 %v22444_v16  ;;  %v4040_v57 = vrot.slane %v4039_v1, 4  ;;  %v17588_v21 = vrot.slane %v6897_v36, 9  ;;  %v17439_v50 = vcombine.low %v4069_v44, %v4079_v12  ;;  %v4124_v36 = vshll.u32 %v3785_v22, 16 }
 0x2c4   : > { %v4049_v56 = vor.u32 %v4048_v38, %v22495_v42  ;;  %v3783_v38 = vld [vmem:[#allocation2 + $0xa8] sm:$0xf] }
 0x2c5   : > { %v4045_v45 = vsel %vm21460_vm14, %v4040_v57, %v22495_v42  ;;  %v7030_v42 = vrot.slane %v6899_v18, 5  ;;  %v4108_v10 = vshll.u32 %v3783_v38, 16  ;;  %v7028_v2 = vsel %vm21723_vm6, %v17588_v21, %v7027_v40 }
 0x2c6   : > { %v4129_v18 = vshrl.u32 %v3786_v13, 16 }
 0x2c7   : > { %17427 = vmatmul.mubr.msk.bf16.gmra.mrb[60].mxu1 %vm1227_vm8, %v20134_v34  ;;  %v17437_v34 = vcombine.low %v4021_v46, %v4031_v52  ;;  %v4097_v46 = vor.u32 %v4096_v27, %v22527_v8  ;;  %v4105_v52 = vshrl.u32 %v3783_v38, 16  ;;  %v7031_v48 = vsel %vm21723_vm6, %v7029_v62, %v7030_v42 }
 0x2c8   : > { %4401 = vmatprep.mubr.bf16.mxu1 %v22444_v16  ;;  %v4110_v57 = vrot.slane %v4108_v10, 5  ;;  %v17604_v63 = vcombine.low %v7028_v2, %v7031_v48  ;;  %v7043_v27 = vrot.slane %v7041_v61, 4  ;;  %v4126_v42 = vrot.slane %v4124_v36, 5  ;;  %v6907_v10 = vld [vmem:[#allocation2 + $0xa0] sm:$0xf] }
 0x2c9   : > { %v4098_v4 = vrot.slane %v4097_v46, 4  ;;  %v4131_v38 = vrot.slane %v4129_v18, 4  ;;  %v4140_v62 = vrot.slane %v4138_v55, 5  ;;  %v3790_v46 = vld [vmem:[#allocation2 + $0xc4] sm:$0xf]  ;;  %v4148_v48 = vshll.u32 %v3788_v51, 16 }
 0x2ca   : > { %17618 = vmatmul.mubr.msk.bf16.gmra.mrb[16].mxu0 %vm1227_vm8, %v17600_v60  ;;  %v4050_v60 = vrot.slane %v4049_v56, 4  ;;  %v4162_v23 = vshll.u32 %v3790_v46, 16  ;;  %v6909_v18 = vld [vmem:[#allocation2 + $0xa8] sm:$0xe] }
 0x2cb   : > { %7276 = vmatprep.mubr.bf16.mxu0 %v22444_v16  ;;  %v4103_v41 = vsel %vm21460_vm14, %v4098_v4, %v4102_v29  ;;  %v4145_v2 = vor.u32 %v4144_v49, %v4140_v62  ;;  %v6906_v4 = vld [vmem:[#allocation2 + $0x9c] sm:$0xe]  ;;  %v6908_v29 = vld [vmem:[#allocation2 + $0xa4] sm:$0x1]  ;;  %v6912_v49 = vld [vmem:[#allocation2 + $0xb4] sm:$0xe] }
 0x2cc   : > { %v4055_v14 = vsel %vm21460_vm14, %v4050_v60, %v4054_v37  ;;  %v4164_v22 = vrot.slane %v4162_v23, 5  ;;  %v7051_v5 = vrot.slane %v6908_v29, 5  ;;  %v6918_v29 = vld [vmem:[#allocation2 + $0xcc] sm:$0xe] }
 0x2cd   : > { %v17438_v43 = vcombine.low %v4045_v45, %v4055_v14  ;;  %v6905_v45 = vld [vmem:[#allocation2 + $0x98] sm:$0x1] }
 0x2ce   : > { %v7044_v33 = vrot.slane %v6905_v45, 5 }
 0x2cf   : > { %17454 = vmatmul.mubr.msk.bf16.vlgmr.msra.gmra.mrb[32].mxu1 %vm1227_vm8, %v17436_v30  ;;  %v4086_v30 = vrot.slane %v4084_v32, 5  ;;  %v7037_v32 = vrot.slane %v6902_v53, 5  ;;  %v4166_v53 = vshrl.u32 %v3790_v46, 16  ;;  %v17593_v46 = vrot.slane %v6912_v49, 9 }
 0x2d0   : > { %4411 = vmatprep.mubr.bf16.mxu1 %v22444_v16 }
 0x2d1   : > { %v4087_v58 = vor.u32 %v4086_v30, %v4083_v19 }
 0x2d2   : > { %17619 = vmatmul.mubr.msk.bf16.gmra.mrb[20].mxu0 %vm1227_vm8, %v17601_v47  ;;  %v3784_v47 = vld [vmem:[#allocation2 + $0xac] sm:$0xf] }
 0x2d3   : > { %7286 = vmatprep.mubr.bf16.mxu0 %v22444_v16  ;;  %v4114_v1 = vshll.u32 %v3784_v47, 16  ;;  %v4118_v56 = vshrl.u32 %v3784_v47, 16  ;;  %v4088_v20 = vrot.slane %v4087_v58, 4  ;;  %v4134_v47 = vrot.slane %v4132_v15, 5  ;;  %v3789_v58 = vld [vmem:[#allocation2 + $0xc0] sm:$0xf] }
 0x2d4   : > { %v4153_v44 = vshrl.u32 %v3789_v58, 16  ;;  %v4156_v12 = vshll.u32 %v3789_v58, 16  ;;  %v6911_v15 = vld [vmem:[#allocation2 + $0xb0] sm:$0x1] }
 0x2d5   : > { %v22543_v60 = vrot.slane %v4114_v1, 5  ;;  %v4120_v37 = vrot.slane %v4118_v56, 4  ;;  %v4093_v39 = vsel %vm21460_vm14, %v4088_v20, %v22527_v8  ;;  %v17590_v8 = vrot.slane %v6903_v11, 9 }
 0x2d6   : > { %v4135_v56 = vor.u32 %v4134_v47, %v4131_v38 }
 0x2d7   : > { %17455 = vmatmul.mubr.msk.bf16.gmra.mrb[36].mxu1 %vm1227_vm8, %v17437_v34  ;;  %v4107_v34 = vrot.slane %v4105_v52, 4  ;;  %v4121_v14 = vor.u32 %v4120_v37, %v22543_v60  ;;  %v7042_v28 = vsel %vm21723_vm6, %v17590_v8, %v7041_v61  ;;  %v4155_v37 = vrot.slane %v4153_v44, 4 }
 0x2d8   : > { %4421 = vmatprep.mubr.bf16.mxu1 %v22444_v16 }
 0x2d9   : > { %v4111_v40 = vor.u32 %v4110_v57, %v4107_v34  ;;  %v4122_v21 = vrot.slane %v4121_v14, 4  ;;  %v4136_v34 = vrot.slane %v4135_v56, 4  ;;  %v4146_v57 = vrot.slane %v4145_v2, 4  ;;  %v6915_v56 = vld [vmem:[#allocation2 + $0xc0] sm:$0xe] }
 0x2da   : > { %17620 = vmatmul.mubr.msk.bf16.gmra.mrb[24].mxu0 %vm1227_vm8, %v17602_v54  ;;  %v7034_v54 = vrot.slane %v6901_v7, 5  ;;  %v7045_v7 = vsel %vm21723_vm6, %v7043_v27, %v7044_v33  ;;  %v17592_v27 = vrot.slane %v6909_v18, 9  ;;  %v6917_v2 = vld [vmem:[#allocation2 + $0xc8] sm:$0x1]  ;;  %v17594_v44 = vrot.slane %v6915_v56, 9 }
 0x2db   : > { %7296 = vmatprep.mubr.bf16.mxu0 %v22444_v16  ;;  %v4127_v1 = vsel %vm21460_vm14, %v4122_v21, %v4126_v42  ;;  %v17606_v20 = vcombine.low %v7042_v28, %v7045_v7  ;;  %v7072_v23 = vrot.slane %v6917_v2, 5 }
 0x2dc   : > { %v7036_v24 = vrot.slane %v7034_v54, 4  ;;  %v7035_v19 = vsel %vm21723_vm6, %v17589_v6, %v7034_v54  ;;  %v7048_v54 = vrot.slane %v6907_v10, 5  ;;  %v17591_v6 = vrot.slane %v6906_v4, 9 }
 0x2de   : > { %v7038_v30 = vsel %vm21723_vm6, %v7036_v24, %v7037_v32  ;;  %v7050_v13 = vrot.slane %v7048_v54, 4  ;;  %v3791_v24 = vld [vmem:[#allocation2 + $0xc8] sm:$0x1]  ;;  %v6910_v32 = vld [vmem:[#allocation2 + $0xac] sm:$0xf] }
 0x2df   : > { %17456 = vmatmul.mubr.msk.bf16.gmra.mrb[40].mxu1 %vm1227_vm8, %v17438_v43  ;;  %v4112_v43 = vrot.slane %v4111_v40, 4  ;;  %v17605_v31 = vcombine.low %v7035_v19, %v7038_v30  ;;  %v4172_v45 = vshll.u32 %v3791_v24, 16  ;;  %v7049_v40 = vsel %vm21723_vm6, %v17591_v6, %v7048_v54 }
 0x2e0   : > { %4431 = vmatprep.mubr.bf16.mxu1 %v22444_v16  ;;  %v7052_v14 = vsel %vm21723_vm6, %v7050_v13, %v7051_v5  ;;  %v7055_v36 = vrot.slane %v6910_v32, 5 }
 0x2e1   : > { %v4117_v52 = vsel %vm21460_vm14, %v4112_v43, %v22543_v60  ;;  %v4150_v60 = vrot.slane %v4148_v48, 5  ;;  %v17607_v25 = vcombine.low %v7049_v40, %v7052_v14  ;;  %v4174_v8 = vrot.slane %v4172_v45, 5  ;;  %v6913_v43 = vld [vmem:[#allocation2 + $0xb8] sm:$0xf] }
 0x2e2   : > { %17621 = vmatmul.mubr.msk.bf16.gmra.mrb[28].mxu0 %vm1227_vm8, %v17603_v59  ;;  %v17440_v59 = vcombine.low %v4093_v39, %v4103_v41  ;;  %v17441_v9 = vcombine.low %v4117_v52, %v4127_v1  ;;  %v4141_v39 = vsel %vm21460_vm14, %v4136_v34, %v4140_v62  ;;  %v7057_v33 = vrot.slane %v7055_v36, 4  ;;  %v6916_v52 = vld [vmem:[#allocation2 + $0xc4] sm:$0xf] }
 0x2e3   : > { %7306 = vmatprep.mubr.bf16.mxu0 %v22444_v16  ;;  %v4151_v61 = vsel %vm21460_vm14, %v4146_v57, %v4150_v60  ;;  %v7056_v38 = vsel %vm21723_vm6, %v17592_v27, %v7055_v36  ;;  %v7062_v62 = vrot.slane %v6913_v43, 5  ;;  %v7069_v1 = vrot.slane %v6916_v52, 5 }
 0x2e4   : > { %v17442_v55 = vcombine.low %v4141_v39, %v4151_v61  ;;  %v17595_v57 = vrot.slane %v6918_v29, 9 }
 0x2e5   : > { %v7064_v28 = vrot.slane %v7062_v62, 4  ;;  %v7063_v3 = vsel %vm21723_vm6, %v17593_v46, %v7062_v62  ;;  %v7070_v54 = vsel %vm21723_vm6, %v17594_v44, %v7069_v1 }
 0x2e7   : > { %17457 = vmatmul.mubr.msk.bf16.gmra.mrb[44].mxu1 %vm1227_vm8, %v17439_v50  ;;  %v4158_v50 = vrot.slane %v4156_v12, 5  ;;  %v7071_v12 = vrot.slane %v7069_v1, 4 }
 0x2e8   : > { %4441 = vmatprep.mubr.bf16.mxu1 %v22444_v16 }
 0x2e9   : > { %v4159_v41 = vor.u32 %v4158_v50, %v4155_v37 }
 0x2ea   : > { %17622 = vmatmul.mubr.msk.bf16.gmra.mrb[32].mxu0 %vm1227_vm8, %v17604_v63  ;;  %v4168_v63 = vrot.slane %v4166_v53, 4  ;;  %v6919_v53 = vld [vmem:[#allocation2 + $0xd0] sm:$0xf] }
 0x2eb   : > { %7316 = vmatprep.mubr.bf16.mxu0 %v22444_v16  ;;  %v4160_v19 = vrot.slane %v4159_v41, 4  ;;  %v7076_v4 = vrot.slane %v6919_v53, 5 }
 0x2ec   : > { %v4169_v11 = vor.u32 %v4168_v63, %v4164_v22 }
 0x2ed   : > { %v4165_v21 = vsel %vm21460_vm14, %v4160_v19, %v4164_v22  ;;  %v7078_v60 = vrot.slane %v7076_v4, 4  ;;  %v7077_v50 = vsel %vm21723_vm6, %v17595_v57, %v7076_v4 }
 0x2ee   : > { %v4170_v30 = vrot.slane %v4169_v11, 4 }
 0x2ef   : > { %17458 = vmatmul.mubr.msk.bf16.gmra.mrb[48].mxu1 %vm1227_vm8, %v17440_v59  ;;  %v7058_v59 = vrot.slane %v6911_v15, 5 }
 0x2f0   : > { %4451 = vmatprep.mubr.bf16.mxu1 %v22444_v16  ;;  %v4175_v42 = vsel %vm21460_vm14, %v4170_v30, %v4174_v8 }
 0x2f1   : > { %v7059_v47 = vsel %vm21723_vm6, %v7057_v33, %v7058_v59  ;;  %v17443_v51 = vcombine.low %v4165_v21, %v4175_v42 }
 0x2f2   : > { %17623 = vmatmul.mubr.msk.bf16.gmra.mrb[36].mxu0 %vm1227_vm8, %v17605_v31  ;;  %v6914_v31 = vld [vmem:[#allocation2 + $0xbc] sm:$0x1]  ;;  %v17608_v58 = vcombine.low %v7056_v38, %v7059_v47 }
 0x2f3   : > { %7326 = vmatprep.mubr.bf16.mxu0 %v22444_v16  ;;  %v7065_v7 = vrot.slane %v6914_v31, 5  ;;  %v7644_v31 = vlaneseq }
 0x2f5   : > { %v7066_v10 = vsel %vm21723_vm6, %v7064_v28, %v7065_v7 }
 0x2f6   : > { %v17609_v48 = vcombine.low %v7063_v3, %v7066_v10 }
 0x2f7   : > { %17459 = vmatmul.mubr.msk.bf16.gmra.mrb[52].mxu1 %vm1227_vm8, %v17441_v9  ;;  %v6920_v9 = vld [vmem:[#allocation2 + $0xd4] sm:$0x1] }
 0x2f8   : > { %4461 = vmatprep.mubr.bf16.mxu1 %v22444_v16  ;;  %v7079_v37 = vrot.slane %v6920_v9, 5 }
 0x2fa   : > { %17624 = vmatmul.mubr.msk.bf16.gmra.mrb[40].mxu0 %vm1227_vm8, %v17606_v20  ;;  %v7073_v20 = vsel %vm21723_vm6, %v7071_v12, %v7072_v23  ;;  %v7080_v22 = vsel %vm21723_vm6, %v7078_v60, %v7079_v37 }
 0x2fb   : > { %7336 = vmatprep.mubr.bf16.mxu0 %v22444_v16  ;;  %v17610_v34 = vcombine.low %v7070_v54, %v7073_v20  ;;  %v17611_v63 = vcombine.low %v7077_v50, %v7080_v22 }
 0x2ff   : > { %17460 = vmatmul.mubr.msk.bf16.gmra.mrb[56].mxu1 %vm1227_vm8, %v17442_v55 }
 0x300   : > { %4471 = vmatprep.mubr.bf16.mxu1 %v22444_v16 }
 0x302   : > { %17625 = vmatmul.mubr.msk.bf16.gmra.mrb[44].mxu0 %vm1227_vm8, %v17607_v25 }
 0x303   : > { %7346 = vmatprep.mubr.bf16.mxu0 %v22444_v16 }
 0x307   : > { %17461 = vmatmul.mubr.msk.bf16.gmra.mrb[60].mxu1 %vm1227_vm8, %v17443_v51  ;;  %v7645_v51 = vshrl.u32 %v7644_v31, 7 }
 0x309   : > { %v7650_v46 = vsub.s32 1, %v7645_v51 }
 0x30a   : > { %17626 = vmatmul.mubr.msk.bf16.gmra.mrb[48].mxu0 %vm1227_vm8, %v17608_v58  ;;  %v7646_v58 = vsub.s32 0, %v7645_v51 }
 0x30b   : > { %7356 = vmatprep.mubr.bf16.mxu0 %v22444_v16  ;;  %v22668_v52 = vrot.slane %v21241_v0, %v7650_v46 }
 0x30c   : > { %v22665_v28 = vrot.slane %v21241_v0, %v7646_v58 }
 0x312   : > { %17627 = vmatmul.mubr.msk.bf16.gmra.mrb[52].mxu0 %vm1227_vm8, %v17609_v48 }
 0x313   : > { %7366 = vmatprep.mubr.bf16.mxu0 %v22444_v16 }
 0x31a   : > { %17628 = vmatmul.mubr.msk.bf16.gmra.mrb[56].mxu0 %vm1227_vm8, %v17610_v34 }
 0x31b   : > { %7376 = vmatprep.mubr.bf16.mxu0 %v22444_v16 }
 0x322   : > { %17629 = vmatmul.mubr.msk.bf16.gmra.mrb[60].mxu0 %vm1227_vm8, %v17611_v63  ;;  %v3393_v6 = vpop.f32.mrb[0].mxu1 }
 0x323   : > { %v3395_v13 = vpop.f32.mrb[1].mxu1 }
 0x324   : > { %v3397_v5 = vpop.f32.mrb[2].mxu1 }
 0x325   : > { %v3399_v24 = vpop.f32.mrb[3].mxu1 }
 0x32a   : > { %v3403_v32 = vpop.f32.mrb[4].mxu1 }
 0x32b   : > { %v3405_v39 = vpop.f32.mrb[5].mxu1 }
 0x32c   : > { %v3407_v61 = vpop.f32.mrb[6].mxu1 }
 0x32d   : > { %v3409_v41 = vpop.f32.mrb[7].mxu1 }
 0x332   : > { %v22616_v11 = vpop.f32.mrb[8].mxu1 }
 0x333   : > { %v22618_v16 = vpop.f32.mrb[9].mxu1 }
 0x334   : > { %v22620_v45 = vpop.f32.mrb[10].mxu1 }
 0x335   : > { %v22622_v40 = vpop.f32.mrb[11].mxu1 }
 0x33a   : > { %v22624_v26 = vpop.f32.mrb[12].mxu1 }
 0x33b   : > { %v22626_v14 = vpop.f32.mrb[13].mxu1 }
 0x33c   : > { %v22628_v36 = vpop.f32.mrb[14].mxu1 }
 0x33d   : > { %v22630_v18 = vpop.f32.mrb[15].mxu1 }
 0x342   : > { %v22632_v15 = vpop.f32.mrb[16].mxu1 }
 0x343   : > { %v22634_v55 = vpop.f32.mrb[17].mxu1 }
 0x344   : > { %v22636_v25 = vpop.f32.mrb[18].mxu1 }
 0x345   : > { %v22638_v19 = vpop.f32.mrb[19].mxu1 }
 0x34a   : > { %v22640_v30 = vpop.f32.mrb[20].mxu1 }
 0x34b   : > { %v22642_v8 = vpop.f32.mrb[21].mxu1 }
 0x34c   : > { %v22644_v27 = vpop.f32.mrb[22].mxu1 }
 0x34d   : > { %v22646_v33 = vpop.f32.mrb[23].mxu1 }
 0x352   : > { %v22648_v59 = vpop.f32.mrb[24].mxu1 }
 0x353   : > { %v22650_v43 = vpop.f32.mrb[25].mxu1 }
 0x354   : > { %v22652_v21 = vpop.f32.mrb[26].mxu1 }
 0x355   : > { %v22654_v42 = vpop.f32.mrb[27].mxu1 }
 0x35a   : > { %v22656_v38 = vpop.f32.mrb[28].mxu1 }
 0x35b   : > { %v22658_v47 = vpop.f32.mrb[29].mxu1 }
 0x35c   : > { %v22660_v62 = vpop.f32.mrb[30].mxu1 }
 0x35d   : > { %v22662_v49 = vpop.f32.mrb[31].mxu1 }
 0x37d   : > { %v7228_v7 = vpop.f32.mrb[0].mxu0 }
 0x37e   : > { %v18625_v3 = vadd.f32 %v7228_v7, %v3393_v6  ;;  %v7230_v10 = vpop.f32.mrb[1].mxu0 }
 0x37f   : > { %v18628_v1 = vadd.f32 %v7230_v10, %v3395_v13  ;;  %v7232_v56 = vpop.f32.mrb[2].mxu0 }
 0x380   : > { %v22671_v2 = vadd.f32 %v18625_v3, %v22665_v28  ;;  %v18631_v48 = vadd.f32 %v7232_v56, %v3397_v5  ;;  %v7234_v44 = vpop.f32.mrb[3].mxu0 }
 0x381   : > { %v22674_v12 = vadd.f32 %v18628_v1, %v22668_v52  ;;  %v18634_v23 = vadd.f32 %v7234_v44, %v3399_v24 }
 0x382   : > { %v22678_v54 = vadd.f32 %v18631_v48, %v22665_v28 }
 0x383   : > { %v22682_v4 = vadd.f32 %v18634_v23, %v22668_v52 }
 0x385   : > { %v7238_v34 = vpop.f32.mrb[4].mxu0 }
 0x386   : > { %v18637_v57 = vadd.f32 %v7238_v34, %v3403_v32  ;;  %v7240_v60 = vpop.f32.mrb[5].mxu0 }
 0x387   : > { %v18640_v37 = vadd.f32 %v7240_v60, %v3405_v39  ;;  %v7242_v50 = vpop.f32.mrb[6].mxu0 }
 0x388   : > { %v22687_v22 = vadd.f32 %v18637_v57, %v22665_v28  ;;  %v18643_v63 = vadd.f32 %v7242_v50, %v3407_v61  ;;  %v7244_v6 = vpop.f32.mrb[7].mxu0 }
 0x389   : > { %v22690_v13 = vadd.f32 %v18640_v37, %v22668_v52  ;;  %v18646_v5 = vadd.f32 %v7244_v6, %v3409_v41 }
 0x38a   : > { %v22694_v31 = vadd.f32 %v18643_v63, %v22665_v28 }
 0x38b   : > { %v22698_v32 = vadd.f32 %v18646_v5, %v22668_v52 }
 0x38d   : > { %v7248_v61 = vpop.f32.mrb[8].mxu0 }
 0x38e   : > { %v18649_v46 = vadd.f32 %v7248_v61, %v22616_v11  ;;  %v7250_v7 = vpop.f32.mrb[9].mxu0 }
 0x38f   : > { %v18652_v41 = vadd.f32 %v7250_v7, %v22618_v16  ;;  %v7252_v3 = vpop.f32.mrb[10].mxu0 }
 0x390   : > { %v22705_v10 = vadd.f32 %v18649_v46, %v22665_v28  ;;  %v18655_v1 = vadd.f32 %v7252_v3, %v22620_v45  ;;  %v7254_v56 = vpop.f32.mrb[11].mxu0 }
 0x391   : > { %v22709_v48 = vadd.f32 %v18652_v41, %v22668_v52  ;;  %v18658_v44 = vadd.f32 %v7254_v56, %v22622_v40 }
 0x392   : > { %v22714_v34 = vadd.f32 %v18655_v1, %v22665_v28 }
 0x393   : > { %v22718_v16 = vadd.f32 %v18658_v44, %v22668_v52 }
 0x395   : > { %v7258_v60 = vpop.f32.mrb[12].mxu0 }
 0x396   : > { %v18661_v37 = vadd.f32 %v7258_v60, %v22624_v26  ;;  %v7260_v50 = vpop.f32.mrb[13].mxu0 }
 0x397   : > { %v18664_v40 = vadd.f32 %v7260_v50, %v22626_v14  ;;  %v7262_v63 = vpop.f32.mrb[14].mxu0 }
 0x398   : > { %v22725_v6 = vadd.f32 %v18661_v37, %v22665_v28  ;;  %v18667_v5 = vadd.f32 %v7262_v63, %v22628_v36  ;;  %v7264_v61 = vpop.f32.mrb[15].mxu0 }
 0x399   : > { %v22729_v46 = vadd.f32 %v18664_v40, %v22668_v52  ;;  %v18670_v7 = vadd.f32 %v7264_v61, %v22630_v18 }
 0x39a   : > { %v22734_v3 = vadd.f32 %v18667_v5, %v22665_v28 }
 0x39b   : > { %v22738_v14 = vadd.f32 %v18670_v7, %v22668_v52 }
 0x39d   : > { %v7268_v56 = vpop.f32.mrb[16].mxu0 }
 0x39e   : > { %v18673_v44 = vadd.f32 %v7268_v56, %v22632_v15  ;;  %v7270_v60 = vpop.f32.mrb[17].mxu0 }
 0x39f   : > { %v18676_v18 = vadd.f32 %v7270_v60, %v22634_v55  ;;  %v7272_v37 = vpop.f32.mrb[18].mxu0 }
 0x3a0   : > { %v22745_v50 = vadd.f32 %v18673_v44, %v22665_v28  ;;  %v18679_v40 = vadd.f32 %v7272_v37, %v22636_v25  ;;  %v7274_v63 = vpop.f32.mrb[19].mxu0 }
 0x3a1   : > { %v22749_v5 = vadd.f32 %v18676_v18, %v22668_v52  ;;  %v18682_v61 = vadd.f32 %v7274_v63, %v22638_v19 }
 0x3a2   : > { %v22754_v36 = vadd.f32 %v18679_v40, %v22665_v28  ;;  %v22761_v44 = vpop.f32.mrb[32].mxu1 }
 0x3a3   : > { %v22758_v55 = vadd.f32 %v18682_v61, %v22668_v52  ;;  %v22764_v18 = vpop.f32.mrb[33].mxu1 }
 0x3a4   : > { %v22767_v63 = vpop.f32.mrb[34].mxu1 }
 0x3a5   : > { %v7278_v60 = vpop.f32.mrb[20].mxu0  ;;  %v22770_v7 = vpop.f32.mrb[35].mxu1 }
 0x3a6   : > { %v18685_v19 = vadd.f32 %v7278_v60, %v22640_v30  ;;  %v7280_v37 = vpop.f32.mrb[21].mxu0 }
 0x3a7   : > { %v18688_v40 = vadd.f32 %v7280_v37, %v22642_v8  ;;  %v7282_v15 = vpop.f32.mrb[22].mxu0 }
 0x3a8   : > { %v22773_v61 = vadd.f32 %v18685_v19, %v22665_v28  ;;  %v18691_v56 = vadd.f32 %v7282_v15, %v22644_v27  ;;  %v7284_v1 = vpop.f32.mrb[23].mxu0 }
 0x3a9   : > { %v22777_v25 = vadd.f32 %v18688_v40, %v22668_v52  ;;  %v18694_v26 = vadd.f32 %v7284_v1, %v22646_v33 }
 0x3aa   : > { %v22782_v60 = vadd.f32 %v18691_v56, %v22665_v28  ;;  %v22789_v41 = vpop.f32.mrb[36].mxu1 }
 0x3ab   : > { %v22786_v37 = vadd.f32 %v18694_v26, %v22668_v52  ;;  %v22792_v40 = vpop.f32.mrb[37].mxu1 }
 0x3ac   : > { %v22795_v30 = vpop.f32.mrb[38].mxu1 }
 0x3ad   : > { %v7288_v15 = vpop.f32.mrb[24].mxu0  ;;  %v22798_v45 = vpop.f32.mrb[39].mxu1 }
 0x3ae   : > { %v18697_v33 = vadd.f32 %v7288_v15, %v22648_v59  ;;  %v7290_v1 = vpop.f32.mrb[25].mxu0 }
 0x3af   : > { %v18700_v56 = vadd.f32 %v7290_v1, %v22650_v43  ;;  %v7292_v8 = vpop.f32.mrb[26].mxu0 }
 0x3b0   : > { %v22801_v26 = vadd.f32 %v18697_v33, %v22665_v28  ;;  %v18703_v19 = vadd.f32 %v7292_v8, %v22652_v21  ;;  %v7294_v57 = vpop.f32.mrb[27].mxu0 }
 0x3b1   : > { %v22805_v27 = vadd.f32 %v18700_v56, %v22668_v52  ;;  %v18706_v11 = vadd.f32 %v7294_v57, %v22654_v42 }
 0x3b2   : > { %v22810_v15 = vadd.f32 %v18703_v19, %v22665_v28  ;;  %v22817_v23 = vpop.f32.mrb[40].mxu1 }
 0x3b3   : > { %v22814_v1 = vadd.f32 %v18706_v11, %v22668_v52  ;;  %v22820_v56 = vpop.f32.mrb[41].mxu1 }
 0x3b4   : > { %v22823_v59 = vpop.f32.mrb[42].mxu1 }
 0x3b5   : > { %v7298_v8 = vpop.f32.mrb[28].mxu0  ;;  %v22826_v58 = vpop.f32.mrb[43].mxu1 }
 0x3b6   : > { %v18709_v42 = vadd.f32 %v7298_v8, %v22656_v38  ;;  %v7300_v57 = vpop.f32.mrb[29].mxu0 }
 0x3b7   : > { %v18712_v19 = vadd.f32 %v7300_v57, %v22658_v47  ;;  %v7302_v43 = vpop.f32.mrb[30].mxu0 }
 0x3b8   : > { %v22829_v11 = vadd.f32 %v18709_v42, %v22665_v28  ;;  %v18715_v33 = vadd.f32 %v7302_v43, %v22660_v62  ;;  %v7304_v39 = vpop.f32.mrb[31].mxu0 }
 0x3b9   : > { %v22833_v21 = vadd.f32 %v18712_v19, %v22668_v52  ;;  %v18718_v51 = vadd.f32 %v7304_v39, %v22662_v49 }
 0x3ba   : > { %v22838_v8 = vadd.f32 %v18715_v33, %v22665_v28  ;;  %v22845_v24 = vpop.f32.mrb[44].mxu1 }
 0x3bb   : > { %v22842_v57 = vadd.f32 %v18718_v51, %v22668_v52  ;;  %v22848_v19 = vpop.f32.mrb[45].mxu1 }
 0x3bc   : > { %v22851_v38 = vpop.f32.mrb[46].mxu1 }
 0x3bd   : > { %v7308_v43 = vpop.f32.mrb[32].mxu0  ;;  %v22854_v9 = vpop.f32.mrb[47].mxu1 }
 0x3be   : > { %v18721_v49 = vadd.f32 %v7308_v43, %v22761_v44  ;;  %v7310_v39 = vpop.f32.mrb[33].mxu0 }
 0x3bf   : > { %v18724_v33 = vadd.f32 %v7310_v39, %v22764_v18  ;;  %v7312_v47 = vpop.f32.mrb[34].mxu0 }
 0x3c0   : > { %v22857_v51 = vadd.f32 %v18721_v49, %v22665_v28  ;;  %v18727_v42 = vadd.f32 %v7312_v47, %v22767_v63  ;;  %v7314_v29 = vpop.f32.mrb[35].mxu0 }
 0x3c1   : > { %v22861_v62 = vadd.f32 %v18724_v33, %v22668_v52  ;;  %v18730_v20 = vadd.f32 %v7314_v29, %v22770_v7 }
 0x3c2   : > { %v22866_v43 = vadd.f32 %v18727_v42, %v22665_v28  ;;  %v22873_v53 = vpop.f32.mrb[48].mxu1 }
 0x3c3   : > { %25916 = vst [vmem:[#allocation26_spill] sm:$0xff] %v22861_v62  ;;  %v22870_v39 = vadd.f32 %v18730_v20, %v22668_v52  ;;  %v22876_v33 = vpop.f32.mrb[49].mxu1 }
 0x3c4   : > { %25917 = vst [vmem:[#allocation27_spill] sm:$0xff] %v22866_v43  ;;  %v22879_v44 = vpop.f32.mrb[50].mxu1 }
 0x3c5   : > { %25918 = vst [vmem:[#allocation28_spill] sm:$0xff] %v22870_v39  ;;  %v7318_v47 = vpop.f32.mrb[36].mxu0  ;;  %v22882_v0 = vpop.f32.mrb[51].mxu1 }
 0x3c6   : > { %v18733_v29 = vadd.f32 %v7318_v47, %v22789_v41  ;;  %v7320_v7 = vpop.f32.mrb[37].mxu0 }
 0x3c7   : > { %v18736_v42 = vadd.f32 %v7320_v7, %v22792_v40  ;;  %v7322_v18 = vpop.f32.mrb[38].mxu0 }
 0x3c8   : > { %v22885_v20 = vadd.f32 %v18733_v29, %v22665_v28  ;;  %v18739_v49 = vadd.f32 %v7322_v18, %v22795_v30  ;;  %v7324_v17 = vpop.f32.mrb[39].mxu0 }
 0x3c9   : > { %v22889_v63 = vadd.f32 %v18736_v42, %v22668_v52  ;;  %v18742_v35 = vadd.f32 %v7324_v17, %v22798_v45 }
 0x3ca   : > { %25919 = vst [vmem:[#allocation29_spill] sm:$0xff] %v22885_v20  ;;  %v22894_v47 = vadd.f32 %v18739_v49, %v22665_v28  ;;  %v4453_v39 = vpop.f32.mrb[52].mxu1 }
 0x3cb   : > { %25920 = vst [vmem:[#allocation30_spill] sm:$0xff] %v22889_v63  ;;  %v22898_v7 = vadd.f32 %v18742_v35, %v22668_v52  ;;  %v4455_v42 = vpop.f32.mrb[53].mxu1 }
 0x3cc   : > { %25921 = vst [vmem:[#allocation31_spill] sm:$0xff] %v22894_v47  ;;  %v4457_v45 = vpop.f32.mrb[54].mxu1 }
 0x3cd   : > { %25922 = vst [vmem:[#allocation32_spill] sm:$0xff] %v22898_v7  ;;  %v7328_v18 = vpop.f32.mrb[40].mxu0  ;;  %v4459_v20 = vpop.f32.mrb[55].mxu1 }
 0x3ce   : > { %v18745_v43 = vadd.f32 %v7328_v18, %v22817_v23  ;;  %v7330_v17 = vpop.f32.mrb[41].mxu0 }
 0x3cf   : > { %v18748_v41 = vadd.f32 %v7330_v17, %v22820_v56  ;;  %v7332_v49 = vpop.f32.mrb[42].mxu0 }
 0x3d0   : > { %v22905_v40 = vadd.f32 %v18745_v43, %v22665_v28  ;;  %v18751_v35 = vadd.f32 %v7332_v49, %v22823_v59  ;;  %v7334_v63 = vpop.f32.mrb[43].mxu0 }
 0x3d1   : > { %v22909_v29 = vadd.f32 %v18748_v41, %v22668_v52  ;;  %v18754_v30 = vadd.f32 %v7334_v63, %v22826_v58 }
 0x3d2   : > { %25923 = vst [vmem:[#allocation33_spill] sm:$0xff] %v22905_v40  ;;  %v22914_v23 = vadd.f32 %v18751_v35, %v22665_v28  ;;  %v4463_v17 = vpop.f32.mrb[56].mxu1 }
 0x3d3   : > { %25924 = vst [vmem:[#allocation34_spill] sm:$0xff] %v22909_v29  ;;  %v22918_v18 = vadd.f32 %v18754_v30, %v22668_v52  ;;  %v4465_v41 = vpop.f32.mrb[57].mxu1 }
 0x3d4   : > { %25925 = vst [vmem:[#allocation35_spill] sm:$0xff] %v22914_v23  ;;  %v4467_v63 = vpop.f32.mrb[58].mxu1 }
 0x3d5   : > { %25926 = vst [vmem:[#allocation36_spill] sm:$0xff] %v22918_v18  ;;  %v7338_v49 = vpop.f32.mrb[44].mxu0  ;;  %v4469_v40 = vpop.f32.mrb[59].mxu1 }
 0x3d6   : > { %v18757_v47 = vadd.f32 %v7338_v49, %v22845_v24  ;;  %v7340_v58 = vpop.f32.mrb[45].mxu0 }
 0x3d7   : > { %v18760_v7 = vadd.f32 %v7340_v58, %v22848_v19  ;;  %v7342_v35 = vpop.f32.mrb[46].mxu0 }
 0x3d8   : > { %v22925_v56 = vadd.f32 %v18757_v47, %v22665_v28  ;;  %v18763_v30 = vadd.f32 %v7342_v35, %v22851_v38  ;;  %v7344_v29 = vpop.f32.mrb[47].mxu0 }
 0x3d9   : > { %v22929_v43 = vadd.f32 %v18760_v7, %v22668_v52  ;;  %v18766_v59 = vadd.f32 %v7344_v29, %v22854_v9 }
 0x3da   : > { %25927 = vst [vmem:[#allocation37_spill] sm:$0xff] %v22925_v56  ;;  %v22934_v24 = vadd.f32 %v18763_v30, %v22665_v28  ;;  %v4473_v58 = vpop.f32.mrb[60].mxu1 }
 0x3db   : > { %25928 = vst [vmem:[#allocation38_spill] sm:$0xff] %v22929_v43  ;;  %v22938_v49 = vadd.f32 %v18766_v59, %v22668_v52  ;;  %v4475_v7 = vpop.f32.mrb[61].mxu1 }
 0x3dc   : > { %25929 = vst [vmem:[#allocation39_spill] sm:$0xff] %v22934_v24  ;;  %v4477_v29 = vpop.f32.mrb[62].mxu1 }
 0x3dd   : > { %25930 = vst [vmem:[#allocation40_spill] sm:$0xff] %v22938_v49  ;;  %v7348_v35 = vpop.f32.mrb[48].mxu0  ;;  %v4479_v56 = vpop.f32.mrb[63].mxu1 }
 0x3de   : > { %v18769_v23 = vadd.f32 %v7348_v35, %v22873_v53  ;;  %v7350_v9 = vpop.f32.mrb[49].mxu0 }
 0x3df   : > { %v18772_v18 = vadd.f32 %v7350_v9, %v22876_v33  ;;  %v7352_v30 = vpop.f32.mrb[50].mxu0 }
 0x3e0   : > { %v22945_v19 = vadd.f32 %v18769_v23, %v22665_v28  ;;  %v18775_v59 = vadd.f32 %v7352_v30, %v22879_v44  ;;  %v7354_v43 = vpop.f32.mrb[51].mxu0 }
 0x3e1   : > { %v22949_v47 = vadd.f32 %v18772_v18, %v22668_v52  ;;  %v18778_v38 = vadd.f32 %v7354_v43, %v22882_v0 }
 0x3e2   : > { %v22954_v53 = vadd.f32 %v18775_v59, %v22665_v28 }
 0x3e3   : > { %v22958_v35 = vadd.f32 %v18778_v38, %v22668_v52 }
 0x3e5   : > { %v7358_v9 = vpop.f32.mrb[52].mxu0 }
 0x3e6   : > { %v18781_v30 = vadd.f32 %v7358_v9, %v4453_v39  ;;  %v7360_v18 = vpop.f32.mrb[53].mxu0 }
 0x3e7   : > { %v18784_v24 = vadd.f32 %v7360_v18, %v4455_v42  ;;  %v7362_v62 = vpop.f32.mrb[54].mxu0 }
 0x3e8   : > { %v22963_v0 = vadd.f32 %v18781_v30, %v22665_v28  ;;  %v18787_v43 = vadd.f32 %v7362_v62, %v4457_v45  ;;  %v7364_v59 = vpop.f32.mrb[55].mxu0 }
 0x3e9   : > { %v22966_v49 = vadd.f32 %v18784_v24, %v22668_v52  ;;  %v18790_v33 = vadd.f32 %v7364_v59, %v4459_v20 }
 0x3ea   : > { %v22970_v23 = vadd.f32 %v18787_v43, %v22665_v28 }
 0x3eb   : > { %v22974_v39 = vadd.f32 %v18790_v33, %v22668_v52 }
 0x3ed   : > { %v7368_v62 = vpop.f32.mrb[56].mxu0 }
 0x3ee   : > { %v18793_v45 = vadd.f32 %v7368_v62, %v4463_v17  ;;  %v7370_v30 = vpop.f32.mrb[57].mxu0 }
 0x3ef   : > { %v18796_v24 = vadd.f32 %v7370_v30, %v4465_v41  ;;  %v7372_v18 = vpop.f32.mrb[58].mxu0 }
 0x3f0   : > { %v22979_v20 = vadd.f32 %v18793_v45, %v22665_v28  ;;  %v18799_v59 = vadd.f32 %v7372_v18, %v4467_v63  ;;  %v7374_v43 = vpop.f32.mrb[59].mxu0 }
 0x3f1   : > { %v22982_v38 = vadd.f32 %v18796_v24, %v22668_v52  ;;  %v18802_v44 = vadd.f32 %v7374_v43, %v4469_v40 }
 0x3f2   : > { %v22986_v42 = vadd.f32 %v18799_v59, %v22665_v28 }
 0x3f3   : > { %v22990_v17 = vadd.f32 %v18802_v44, %v22668_v52 }
 0x3f5   : > { %v7378_v63 = vpop.f32.mrb[60].mxu0 }
 0x3f6   : > { %v18805_v45 = vadd.f32 %v7378_v63, %v4473_v58  ;;  %v7380_v30 = vpop.f32.mrb[61].mxu0 }
 0x3f7   : > { %v18808_v24 = vadd.f32 %v7380_v30, %v4475_v7  ;;  %v7382_v18 = vpop.f32.mrb[62].mxu0  ;;  %7785 = sbr.rel (%p17630_p8) target bundleno = 1052 (0x41c), region = 56  ;;  %v25941_v30 = vmax.f32 (!%p17630_p8), %v22694_v31, 0.0 }
 0x3f8   : > { %v22995_v40 = vadd.f32 %v18805_v45, %v22665_v28  ;;  %v18811_v43 = vadd.f32 %v7382_v18, %v4477_v29  ;;  %v7384_v59 = vpop.f32.mrb[63].mxu0  ;;  %v25935_v29 = vmax.f32 (!%p17630_p8), %v22671_v2, 0.0  ;;  %v25940_v45 = vmax.f32 (!%p17630_p8), %v22690_v13, 0.0 }
 0x3f9   : > { %v22998_v33 = vadd.f32 %v18808_v24, %v22668_v52  ;;  %v18814_v9 = vadd.f32 %v7384_v59, %v4479_v56  ;;  %v25938_v56 = vmax.f32 (!%p17630_p8), %v22682_v4, 0.0  ;;  %7792 = vst [vmem:[%s21243_s4 + $0x30] sm:$0xff] (!%p17630_p8), %v25941_v30  ;;  %v25942_v24 = vmax.f32 (!%p17630_p8), %v22698_v32, 0.0 }
 0x3fa   : > { %25931 = vst [vmem:[#allocation41_spill] sm:$0xff] %v22995_v40  ;;  %v25848_v44 = vmax.f32 %v22995_v40, 0.0  ;;  %v23002_v41 = vadd.f32 %v18811_v43, %v22665_v28  ;;  %7786 = vst [vmem:[%s21243_s4] sm:$0xff] (!%p17630_p8), %v25935_v29  ;;  %v25936_v28 = vmax.f32 (!%p17630_p8), %v22674_v12, 0.0  ;;  %v25943_v18 = vmax.f32 (!%p17630_p8), %v22705_v10, 0.0 }
 0x3fb   : > { %25932 = vst [vmem:[#allocation42_spill] sm:$0xff] %v22998_v33  ;;  %v25847_v62 = vmax.f32 %v22998_v33, 0.0  ;;  %v23006_v58 = vadd.f32 %v18814_v9, %v22668_v52  ;;  %v25937_v52 = vmax.f32 (!%p17630_p8), %v22678_v54, 0.0  ;;  %7789 = vst [vmem:[%s21243_s4 + $0x18] sm:$0xff] (!%p17630_p8), %v25938_v56  ;;  %v25939_v9 = vmax.f32 (!%p17630_p8), %v22687_v22, 0.0 }
 0x3fc   : > { %25933 = vst [vmem:[#allocation43_spill] sm:$0xff] %v23002_v41  ;;  %v25846_v7 = vmax.f32 %v23002_v41, 0.0  ;;  %7787 = vst [vmem:[%s21243_s4 + $0x8] sm:$0xff] (!%p17630_p8), %v25936_v28  ;;  %v25944_v43 = vmax.f32 (!%p17630_p8), %v22709_v48, 0.0  ;;  %v25945_v59 = vmax.f32 (!%p17630_p8), %v22714_v34, 0.0  ;;  %v25946_v29 = vmax.f32 (!%p17630_p8), %v22718_v16, 0.0 }
 0x3fd   : > { %25934 = vst [vmem:[#allocation44_spill] sm:$0xff] %v23006_v58  ;;  %v25845_v63 = vmax.f32 %v23006_v58, 0.0  ;;  %7788 = vst [vmem:[%s21243_s4 + $0x10] sm:$0xff] (!%p17630_p8), %v25937_v52  ;;  %v25947_v28 = vmax.f32 (!%p17630_p8), %v22725_v6, 0.0  ;;  %v25948_v52 = vmax.f32 (!%p17630_p8), %v22729_v46, 0.0  ;;  %v25949_v56 = vmax.f32 (!%p17630_p8), %v22734_v3, 0.0 }
 0x3fe   : > { %7790 = vst [vmem:[%s21243_s4 + $0x20] sm:$0xff] %v25939_v9  ;;  %7791 = vst [vmem:[%s21243_s4 + $0x28] sm:$0xff] %v25940_v45  ;;  %v25950_v9 = vmax.f32 %v22738_v14, 0.0  ;;  %v25951_v45 = vmax.f32 %v22745_v50, 0.0  ;;  %v25952_v30 = vmax.f32 %v22749_v5, 0.0 }
 0x3ff   : > { %7793 = vst [vmem:[%s21243_s4 + $0x38] sm:$0xff] %v25942_v24  ;;  %7794 = vst [vmem:[%s21243_s4 + $0x40] sm:$0xff] %v25943_v18  ;;  %v25953_v24 = vmax.f32 %v22754_v36, 0.0  ;;  %v25954_v18 = vmax.f32 %v22758_v55, 0.0 }
 0x400   : > { %7795 = vst [vmem:[%s21243_s4 + $0x48] sm:$0xff] %v25944_v43  ;;  %7796 = vst [vmem:[%s21243_s4 + $0x50] sm:$0xff] %v25945_v59  ;;  %v25955_v43 = vmax.f32 %v22773_v61, 0.0  ;;  %v25956_v59 = vmax.f32 %v22777_v25, 0.0 }
 0x401   : > { %7797 = vst [vmem:[%s21243_s4 + $0x58] sm:$0xff] %v25946_v29  ;;  %7798 = vst [vmem:[%s21243_s4 + $0x60] sm:$0xff] %v25947_v28  ;;  %v25957_v29 = vmax.f32 %v22782_v60, 0.0  ;;  %v25958_v28 = vmax.f32 %v22786_v37, 0.0 }
 0x402   : > { %7799 = vst [vmem:[%s21243_s4 + $0x68] sm:$0xff] %v25948_v52  ;;  %7800 = vst [vmem:[%s21243_s4 + $0x70] sm:$0xff] %v25949_v56  ;;  %v25959_v52 = vmax.f32 %v22801_v26, 0.0  ;;  %v25960_v56 = vmax.f32 %v22805_v27, 0.0 }
 0x403   : > { %7801 = vst [vmem:[%s21243_s4 + $0x78] sm:$0xff] %v25950_v9  ;;  %7802 = vst [vmem:[%s21243_s4 + $0x80] sm:$0xff] %v25951_v45  ;;  %v25961_v9 = vmax.f32 %v22810_v15, 0.0  ;;  %v25962_v45 = vmax.f32 %v22814_v1, 0.0 }
 0x404   : > { %7803 = vst [vmem:[%s21243_s4 + $0x88] sm:$0xff] %v25952_v30  ;;  %7804 = vst [vmem:[%s21243_s4 + $0x90] sm:$0xff] %v25953_v24  ;;  %v25963_v30 = vmax.f32 %v22829_v11, 0.0  ;;  %v25964_v24 = vmax.f32 %v22833_v21, 0.0 }
 0x405   : > { %7805 = vst [vmem:[%s21243_s4 + $0x98] sm:$0xff] %v25954_v18  ;;  %7806 = vst [vmem:[%s21243_s4 + $0xa0] sm:$0xff] %v25955_v43  ;;  %v25965_v18 = vmax.f32 %v22838_v8, 0.0  ;;  %v25966_v43 = vmax.f32 %v22842_v57, 0.0 }
 0x406   : > { %7807 = vst [vmem:[%s21243_s4 + $0xa8] sm:$0xff] %v25956_v59  ;;  %7808 = vst [vmem:[%s21243_s4 + $0xb0] sm:$0xff] %v25957_v29  ;;  %v25967_v59 = vmax.f32 %v22857_v51, 0.0  ;;  %v25968_v29 = vld [vmem:[#allocation26_spill] sm:$0xff] }
 0x407   : > { %7809 = vst [vmem:[%s21243_s4 + $0xb8] sm:$0xff] %v25958_v28  ;;  %7810 = vst [vmem:[%s21243_s4 + $0xc0] sm:$0xff] %v25959_v52  ;;  %v25969_v28 = vmax.f32 %v25968_v29, 0.0  ;;  %v25970_v52 = vld [vmem:[#allocation27_spill] sm:$0xff] }
 0x408   : > { %7811 = vst [vmem:[%s21243_s4 + $0xc8] sm:$0xff] %v25960_v56  ;;  %7812 = vst [vmem:[%s21243_s4 + $0xd0] sm:$0xff] %v25961_v9  ;;  %v25971_v56 = vmax.f32 %v25970_v52, 0.0  ;;  %v25972_v9 = vld [vmem:[#allocation28_spill] sm:$0xff] }
 0x409   : > { %7813 = vst [vmem:[%s21243_s4 + $0xd8] sm:$0xff] %v25962_v45  ;;  %7814 = vst [vmem:[%s21243_s4 + $0xe0] sm:$0xff] %v25963_v30  ;;  %v25973_v45 = vmax.f32 %v25972_v9, 0.0  ;;  %v25974_v30 = vld [vmem:[#allocation29_spill] sm:$0xff] }
 0x40a   : > { %7815 = vst [vmem:[%s21243_s4 + $0xe8] sm:$0xff] %v25964_v24  ;;  %7816 = vst [vmem:[%s21243_s4 + $0xf0] sm:$0xff] %v25965_v18  ;;  %v25975_v24 = vmax.f32 %v25974_v30, 0.0  ;;  %v25976_v18 = vld [vmem:[#allocation30_spill] sm:$0xff] }
 0x40b   : > { %7817 = vst [vmem:[%s21243_s4 + $0xf8] sm:$0xff] %v25966_v43  ;;  %7818 = vst [vmem:[%s21243_s4 + $0x100] sm:$0xff] %v25967_v59  ;;  %v25977_v43 = vmax.f32 %v25976_v18, 0.0  ;;  %v25978_v59 = vld [vmem:[#allocation31_spill] sm:$0xff] }
 0x40c   : > { %7819 = vst [vmem:[%s21243_s4 + $0x108] sm:$0xff] %v25969_v28  ;;  %7820 = vst [vmem:[%s21243_s4 + $0x110] sm:$0xff] %v25971_v56  ;;  %v25979_v29 = vmax.f32 %v25978_v59, 0.0  ;;  %v25980_v28 = vld [vmem:[#allocation32_spill] sm:$0xff]  ;;  %v25982_v56 = vld [vmem:[#allocation33_spill] sm:$0xff] }
 0x40d   : > { %7821 = vst [vmem:[%s21243_s4 + $0x118] sm:$0xff] %v25973_v45  ;;  %7822 = vst [vmem:[%s21243_s4 + $0x120] sm:$0xff] %v25975_v24  ;;  %v25981_v52 = vmax.f32 %v25980_v28, 0.0  ;;  %v25983_v9 = vmax.f32 %v25982_v56, 0.0  ;;  %v25984_v45 = vld [vmem:[#allocation34_spill] sm:$0xff]  ;;  %v25986_v24 = vld [vmem:[#allocation35_spill] sm:$0xff] }
 0x40e   : > { %7823 = vst [vmem:[%s21243_s4 + $0x128] sm:$0xff] %v25977_v43  ;;  %7824 = vst [vmem:[%s21243_s4 + $0x130] sm:$0xff] %v25979_v29  ;;  %v25985_v30 = vmax.f32 %v25984_v45, 0.0  ;;  %v25987_v18 = vmax.f32 %v25986_v24, 0.0  ;;  %v25988_v43 = vld [vmem:[#allocation36_spill] sm:$0xff]  ;;  %v25990_v29 = vld [vmem:[#allocation37_spill] sm:$0xff] }
 0x40f   : > { %7825 = vst [vmem:[%s21243_s4 + $0x138] sm:$0xff] %v25981_v52  ;;  %7826 = vst [vmem:[%s21243_s4 + $0x140] sm:$0xff] %v25983_v9  ;;  %v25989_v59 = vmax.f32 %v25988_v43, 0.0  ;;  %v25991_v28 = vmax.f32 %v25990_v29, 0.0  ;;  %v25992_v52 = vld [vmem:[#allocation38_spill] sm:$0xff]  ;;  %v25994_v9 = vld [vmem:[#allocation39_spill] sm:$0xff] }
 0x410   : > { %7827 = vst [vmem:[%s21243_s4 + $0x148] sm:$0xff] %v25985_v30  ;;  %7828 = vst [vmem:[%s21243_s4 + $0x150] sm:$0xff] %v25987_v18  ;;  %v25993_v56 = vmax.f32 %v25992_v52, 0.0  ;;  %v25995_v45 = vmax.f32 %v25994_v9, 0.0  ;;  %v25996_v30 = vld [vmem:[#allocation40_spill] sm:$0xff]  ;;  %v25998_v18 = vmax.f32 %v22945_v19, 0.0 }
 0x411   : > { %7829 = vst [vmem:[%s21243_s4 + $0x158] sm:$0xff] %v25989_v59  ;;  %7830 = vst [vmem:[%s21243_s4 + $0x160] sm:$0xff] %v25991_v28  ;;  %v25997_v24 = vmax.f32 %v25996_v30, 0.0  ;;  %v25999_v43 = vmax.f32 %v22949_v47, 0.0  ;;  %v26000_v59 = vmax.f32 %v22954_v53, 0.0  ;;  %v26001_v29 = vmax.f32 %v22958_v35, 0.0 }
 0x412   : > { %7831 = vst [vmem:[%s21243_s4 + $0x168] sm:$0xff] %v25993_v56  ;;  %7832 = vst [vmem:[%s21243_s4 + $0x170] sm:$0xff] %v25995_v45  ;;  %v26002_v28 = vmax.f32 %v22963_v0, 0.0  ;;  %v26003_v52 = vmax.f32 %v22966_v49, 0.0  ;;  %v26004_v56 = vmax.f32 %v22970_v23, 0.0  ;;  %v26005_v9 = vmax.f32 %v22974_v39, 0.0 }
 0x413   : > { %7833 = vst [vmem:[%s21243_s4 + $0x178] sm:$0xff] %v25997_v24  ;;  %7834 = vst [vmem:[%s21243_s4 + $0x180] sm:$0xff] %v25998_v18  ;;  %v26006_v45 = vmax.f32 %v22979_v20, 0.0  ;;  %v26007_v30 = vmax.f32 %v22982_v38, 0.0  ;;  %v26008_v24 = vmax.f32 %v22986_v42, 0.0  ;;  %v26009_v18 = vmax.f32 %v22990_v17, 0.0 }
 0x414   : > { %7835 = vst [vmem:[%s21243_s4 + $0x188] sm:$0xff] %v25999_v43  ;;  %7836 = vst [vmem:[%s21243_s4 + $0x190] sm:$0xff] %v26000_v59 }
 0x415   : > { %7837 = vst [vmem:[%s21243_s4 + $0x198] sm:$0xff] %v26001_v29  ;;  %7838 = vst [vmem:[%s21243_s4 + $0x1a0] sm:$0xff] %v26002_v28 }
 0x416   : > { %7839 = vst [vmem:[%s21243_s4 + $0x1a8] sm:$0xff] %v26003_v52  ;;  %7840 = vst [vmem:[%s21243_s4 + $0x1b0] sm:$0xff] %v26004_v56 }
 0x417   : > { %7841 = vst [vmem:[%s21243_s4 + $0x1b8] sm:$0xff] %v26005_v9  ;;  %7842 = vst [vmem:[%s21243_s4 + $0x1c0] sm:$0xff] %v26006_v45 }
 0x418   : > { %7843 = vst [vmem:[%s21243_s4 + $0x1c8] sm:$0xff] %v26007_v30  ;;  %7844 = vst [vmem:[%s21243_s4 + $0x1d0] sm:$0xff] %v26008_v24 }
 0x419   : > { %7845 = vst [vmem:[%s21243_s4 + $0x1d8] sm:$0xff] %v26009_v18  ;;  %7846 = vst [vmem:[%s21243_s4 + $0x1e0] sm:$0xff] %v25848_v44 }
 0x41a   : > { %7847 = vst [vmem:[%s21243_s4 + $0x1e8] sm:$0xff] %v25847_v62  ;;  %7848 = vst [vmem:[%s21243_s4 + $0x1f0] sm:$0xff] %v25846_v7 }
 0x41b   : > { %7849 = vst [vmem:[%s21243_s4 + $0x1f8] sm:$0xff] %v25845_v63 }
 0x41c PF: > { %p17631_p7 = scmp.ge.s32.totalorder %s20934_s23, 1 }
 0x41d   : > { %v26010_v43 = vmax.f32 (!%p17631_p7), %v22671_v2, 0.0  ;;  %v26011_v59 = vmax.f32 (!%p17631_p7), %v22674_v12, 0.0  ;;  %vm8334_vm0 = vcmask (!%p17631_p7), 1043456   ;;  %vm8336_vm1 = vcmask (!%p17631_p7), 1047556   ;;  %v8350_v44 = vld [vmem:[#allocation3 + $0x40] sm:$0x11] (!%p17631_p7) }
 0x41e   : > { %7853 = sbr.rel (%p17631_p7) target bundleno = 1134 (0x46e), region = 60  ;;  %v26012_v28 = vmax.f32 (!%p17631_p7), %v22678_v54, 0.0  ;;  %v26013_v52 = vmax.f32 (!%p17631_p7), %v22682_v4, 0.0  ;;  %vm23213_vm5 = vmand (!%p17631_p7), %vm8334_vm0, %vm377_vm9  ;;  %v26016_v45 = vmax.f32 (!%p17631_p7), %v22687_v22, 0.0  ;;  %v26017_v30 = vmax.f32 (!%p17631_p7), %v22690_v13, 0.0 }
 0x41f   : > { %v18588_v29 = vpack.c.bf16 (!%p17631_p7), %v26011_v59, %v26010_v43  ;;  %v26018_v12 = vmax.f32 (!%p17631_p7), %v22694_v31, 0.0  ;;  %v26019_v24 = vmax.f32 (!%p17631_p7), %v22698_v32, 0.0  ;;  %v26020_v54 = vmax.f32 (!%p17631_p7), %v22705_v10, 0.0  ;;  %vm8337_vm8 = vmand (!%p17631_p7), %vm8336_vm1, %vm490_vm12  ;;  %v8339_v10 = vld [vmem:[#allocation3 + $0x18] sm:$0xff] (!%p17631_p7) }
 0x420   : > { %v18589_v56 = vpack.c.bf16 (!%p17631_p7), %v26013_v52, %v26012_v28  ;;  %v18590_v2 = vpack.c.bf16 (!%p17631_p7), %v26017_v30, %v26016_v45  ;;  %v26021_v4 = vmax.f32 (!%p17631_p7), %v22709_v48, 0.0  ;;  %v26022_v59 = vmax.f32 (!%p17631_p7), %v22714_v34, 0.0  ;;  %vm23236_vm9 = vmor (!%p17631_p7), %vm8337_vm8, %vm23213_vm5 }
 0x421   : > { %v18591_v18 = vpack.c.bf16 (!%p17631_p7), %v26019_v24, %v26018_v12  ;;  %v26023_v28 = vmax.f32 (!%p17631_p7), %v22718_v16, 0.0  ;;  %v8015_v63 = vshrl.u32 (!%p17631_p7), %v18588_v29, 16  ;;  %v8018_v22 = vshll.u32 (!%p17631_p7), %v18588_v29, 16  ;;  %v8343_v16 = vld [vmem:[#allocation3 + $0x28] sm:$0x11] (!%p17631_p7) }
 0x422   : > { %v18592_v43 = vpack.c.bf16 (!%p17631_p7), %v26021_v4, %v26020_v54  ;;  %v8023_v13 = vshrl.u32 (!%p17631_p7), %v18589_v56, 16  ;;  %v8026_v45 = vshll.u32 (!%p17631_p7), %v18589_v56, 16  ;;  %v8032_v31 = vshrl.u32 (!%p17631_p7), %v18590_v2, 16 }
 0x423   : > { %v18593_v52 = vpack.c.bf16 (!%p17631_p7), %v26023_v28, %v26022_v59  ;;  %v8035_v30 = vshll.u32 (!%p17631_p7), %v18590_v2, 16  ;;  %v8040_v32 = vshrl.u32 (!%p17631_p7), %v18591_v18, 16  ;;  %v8043_v12 = vshll.u32 (!%p17631_p7), %v18591_v18, 16 }
 0x424   : > { %v8017_v24 = vrot.slane (!%p17631_p7), %v8015_v63, 7  ;;  %v8025_v7 = vrot.slane (!%p17631_p7), %v8023_v13, 7  ;;  %v8049_v48 = vshrl.u32 (!%p17631_p7), %v18592_v43, 16  ;;  %v8052_v54 = vshll.u32 (!%p17631_p7), %v18592_v43, 16  ;;  %v8346_v63 = vld [vmem:[#allocation3 + $0x30] sm:$0xff] (!%p17631_p7) }
 0x425   : > { %v8034_v29 = vrot.slane %v8032_v31, 7  ;;  %v8042_v4 = vrot.slane %v8040_v32, 7  ;;  %v8057_v59 = vshrl.u32 %v18593_v52, 16  ;;  %v8060_v56 = vshll.u32 %v18593_v52, 16 }
 0x426   : > { %v8020_v28 = vor.u32 %v8018_v22, %v8017_v24  ;;  %v8021_v2 = vrot.slane %v8017_v24, 4  ;;  %v8028_v62 = vor.u32 %v8026_v45, %v8025_v7  ;;  %v8030_v18 = vrot.slane %v8025_v7, 4 }
 0x427   : > { %v8037_v13 = vor.u32 %v8035_v30, %v8034_v29  ;;  %v8038_v58 = vrot.slane %v8034_v29, 4  ;;  %v8045_v43 = vor.u32 %v8043_v12, %v8042_v4  ;;  %v8047_v41 = vrot.slane %v8042_v4, 4  ;;  %v8353_v30 = vld [vmem:[#allocation3 + $0x48] sm:$0xff] }
 0x428   : > { %v8340_v9 = vsel %vm23236_vm9, %v8020_v28, %v8339_v10  ;;  %v8029_v40 = vsel %vm21390_vm11, %v8021_v2, %v8028_v62  ;;  %v8344_v32 = vsel %vm21283_vm13, %v8030_v18, %v8343_v16  ;;  %v8051_v52 = vrot.slane %v8049_v48, 7  ;;  %v8357_v10 = vld [vmem:[#allocation3 + $0x58] sm:$0x11] }
 0x429   : > { %8341 = vst [vmem:[#allocation3 + $0x18] sm:$0xff] %v8340_v9  ;;  %8342 = vst [vmem:[#allocation3 + $0x20] sm:$0xff] %v8029_v40  ;;  %v8347_v7 = vsel %vm23236_vm9, %v8037_v13, %v8346_v63  ;;  %v8046_v22 = vsel %vm21390_vm11, %v8038_v58, %v8045_v43  ;;  %v8351_v45 = vsel %vm21283_vm13, %v8047_v41, %v8350_v44  ;;  %v8059_v12 = vrot.slane %v8057_v59, 7 }
 0x42a   : > { %8345 = vst [vmem:[#allocation3 + $0x28] sm:$0x11] %v8344_v32  ;;  %8348 = vst [vmem:[#allocation3 + $0x30] sm:$0xff] %v8347_v7  ;;  %v8054_v62 = vor.u32 %v8052_v54, %v8051_v52  ;;  %v8055_v24 = vrot.slane %v8051_v52, 4  ;;  %v26028_v40 = vmax.f32 %v22725_v6, 0.0  ;;  %v26029_v48 = vmax.f32 %v22729_v46, 0.0 }
 0x42b   : > { %8349 = vst [vmem:[#allocation3 + $0x38] sm:$0xff] %v8046_v22  ;;  %8352 = vst [vmem:[#allocation3 + $0x40] sm:$0x11] %v8351_v45  ;;  %v26030_v29 = vmax.f32 %v22734_v3, 0.0  ;;  %v26031_v58 = vmax.f32 %v22738_v14, 0.0  ;;  %v8062_v28 = vor.u32 %v8060_v56, %v8059_v12  ;;  %v8064_v41 = vrot.slane %v8059_v12, 4 }
 0x42c   : > { %v18594_v16 = vpack.c.bf16 %v26029_v48, %v26028_v40  ;;  %v26032_v44 = vmax.f32 %v22745_v50, 0.0  ;;  %v26033_v59 = vmax.f32 %v22749_v5, 0.0  ;;  %v26034_v54 = vmax.f32 %v22754_v36, 0.0  ;;  %v8360_v32 = vld [vmem:[#allocation3 + $0x60] sm:$0xff]  ;;  %v8364_v52 = vld [vmem:[#allocation3 + $0x70] sm:$0x11] }
 0x42d   : > { %v18595_v4 = vpack.c.bf16 %v26031_v58, %v26030_v29  ;;  %v26035_v18 = vmax.f32 %v22758_v55, 0.0  ;;  %v8354_v46 = vsel %vm23236_vm9, %v8054_v62, %v8353_v30  ;;  %v8063_v14 = vsel %vm21390_vm11, %v8055_v24, %v8062_v28  ;;  %v8367_v58 = vld [vmem:[#allocation3 + $0x78] sm:$0xff] }
 0x42e   : > { %v18596_v2 = vpack.c.bf16 %v26033_v59, %v26032_v44  ;;  %v8066_v63 = vshrl.u32 %v18594_v16, 16  ;;  %v8069_v3 = vshll.u32 %v18594_v16, 16  ;;  %8355 = vst [vmem:[#allocation3 + $0x48] sm:$0xff] %v8354_v46  ;;  %v8358_v50 = vsel %vm21283_vm13, %v8064_v41, %v8357_v10  ;;  %8356 = vst [vmem:[#allocation3 + $0x50] sm:$0xff] %v8063_v14  ;;  %v8374_v46 = vld [vmem:[#allocation3 + $0x90] sm:$0xff] }
 0x42f   : > { %v18597_v6 = vpack.c.bf16 %v26035_v18, %v26034_v54  ;;  %v8074_v13 = vshrl.u32 %v18595_v4, 16  ;;  %v8077_v5 = vshll.u32 %v18595_v4, 16  ;;  %8359 = vst [vmem:[#allocation3 + $0x58] sm:$0x11] %v8358_v50  ;;  %v26036_v45 = vmax.f32 %v22773_v61, 0.0 }
 0x430   : > { %v8083_v56 = vshrl.u32 %v18596_v2, 16  ;;  %v8068_v36 = vrot.slane %v8066_v63, 7  ;;  %v8086_v43 = vshll.u32 %v18596_v2, 16  ;;  %v26037_v30 = vmax.f32 %v22777_v25, 0.0 }
 0x431   : > { %v8076_v55 = vrot.slane %v8074_v13, 7  ;;  %v8091_v9 = vshrl.u32 %v18597_v6, 16  ;;  %v8094_v22 = vshll.u32 %v18597_v6, 16  ;;  %v26038_v62 = vmax.f32 %v22782_v60, 0.0 }
 0x432   : > { %v8085_v7 = vrot.slane %v8083_v56, 7  ;;  %v18598_v12 = vpack.c.bf16 %v26037_v30, %v26036_v45  ;;  %v26039_v24 = vmax.f32 %v22786_v37, 0.0  ;;  %v8071_v40 = vor.u32 %v8069_v3, %v8068_v36  ;;  %v8371_v37 = vld [vmem:[#allocation3 + $0x88] sm:$0x11] }
 0x433   : > { %v8072_v48 = vrot.slane %v8068_v36, 4  ;;  %v8079_v16 = vor.u32 %v8077_v5, %v8076_v55  ;;  %v8081_v29 = vrot.slane %v8076_v55, 4  ;;  %v8093_v41 = vrot.slane %v8091_v9, 7 }
 0x434   : > { %v18599_v10 = vpack.c.bf16 %v26039_v24, %v26038_v62  ;;  %v8088_v4 = vor.u32 %v8086_v43, %v8085_v7  ;;  %v8089_v28 = vrot.slane %v8085_v7, 4  ;;  %v8100_v44 = vshrl.u32 %v18598_v12, 16 }
 0x435   : > { %v8361_v61 = vsel %vm23236_vm9, %v8071_v40, %v8360_v32  ;;  %v8080_v25 = vsel %vm21390_vm11, %v8072_v48, %v8079_v16  ;;  %v8365_v60 = vsel %vm21283_vm13, %v8081_v29, %v8364_v52  ;;  %v8103_v59 = vshll.u32 %v18598_v12, 16 }
 0x436   : > { %8362 = vst [vmem:[#allocation3 + $0x60] sm:$0xff] %v8361_v61  ;;  %8363 = vst [vmem:[#allocation3 + $0x68] sm:$0xff] %v8080_v25  ;;  %v8368_v2 = vsel %vm23236_vm9, %v8088_v4, %v8367_v58  ;;  %v8096_v54 = vor.u32 %v8094_v22, %v8093_v41  ;;  %v8098_v18 = vrot.slane %v8093_v41, 4  ;;  %v8102_v6 = vrot.slane %v8100_v44, 7  ;;  %v8378_v22 = vld [vmem:[#allocation3 + $0xa0] sm:$0x11] }
 0x437   : > { %8366 = vst [vmem:[#allocation3 + $0x70] sm:$0x11] %v8365_v60  ;;  %8369 = vst [vmem:[#allocation3 + $0x78] sm:$0xff] %v8368_v2  ;;  %v8108_v63 = vshrl.u32 %v18599_v10, 16  ;;  %v8111_v3 = vshll.u32 %v18599_v10, 16  ;;  %v26040_v13 = vmax.f32 %v22801_v26, 0.0 }
 0x438   : > { %v26041_v14 = vmax.f32 %v22805_v27, 0.0  ;;  %v26042_v5 = vmax.f32 %v22810_v15, 0.0  ;;  %v26043_v56 = vmax.f32 %v22814_v1, 0.0  ;;  %v8097_v55 = vsel %vm21390_vm11, %v8089_v28, %v8096_v54  ;;  %v8381_v58 = vld [vmem:[#allocation3 + $0xa8] sm:$0xff]  ;;  %v8388_v54 = vld [vmem:[#allocation3 + $0xc0] sm:$0xff] }
 0x439   : > { %v8372_v43 = vsel %vm21283_vm13, %v8098_v18, %v8371_v37  ;;  %v8105_v9 = vor.u32 %v8103_v59, %v8102_v6  ;;  %v8106_v32 = vrot.slane %v8102_v6, 4  ;;  %8370 = vst [vmem:[#allocation3 + $0x80] sm:$0xff] %v8097_v55  ;;  %v8110_v52 = vrot.slane %v8108_v63, 7  ;;  %v26049_v6 = vld [vmem:[#allocation26_spill] sm:$0xff] }
 0x43a   : > { %v18600_v50 = vpack.c.bf16 %v26041_v14, %v26040_v13  ;;  %v18601_v36 = vpack.c.bf16 %v26043_v56, %v26042_v5  ;;  %8373 = vst [vmem:[#allocation3 + $0x88] sm:$0x11] %v8372_v43  ;;  %v26044_v45 = vmax.f32 %v22829_v11, 0.0  ;;  %v26045_v30 = vmax.f32 %v22833_v21, 0.0  ;;  %v26053_v14 = vld [vmem:[#allocation28_spill] sm:$0xff]  ;;  %v26055_v56 = vld [vmem:[#allocation29_spill] sm:$0xff] }
 0x43b   : > { %v8375_v15 = vsel %vm23236_vm9, %v8105_v9, %v8374_v46  ;;  %v26046_v62 = vmax.f32 %v22838_v8, 0.0  ;;  %v26047_v24 = vmax.f32 %v22842_v57, 0.0  ;;  %v8113_v40 = vor.u32 %v8111_v3, %v8110_v52  ;;  %v8385_v57 = vld [vmem:[#allocation3 + $0xb8] sm:$0x11]  ;;  %v26057_v55 = vld [vmem:[#allocation30_spill] sm:$0xff] }
 0x43c   : > { %v8117_v26 = vshrl.u32 %v18600_v50, 16  ;;  %v8120_v7 = vshll.u32 %v18600_v50, 16  ;;  %v8125_v27 = vshrl.u32 %v18601_v36, 16  ;;  %v8128_v1 = vshll.u32 %v18601_v36, 16  ;;  %8376 = vst [vmem:[#allocation3 + $0x90] sm:$0xff] %v8375_v15  ;;  %v26051_v3 = vld [vmem:[#allocation27_spill] sm:$0xff] }
 0x43d   : > { %v18602_v12 = vpack.c.bf16 %v26045_v30, %v26044_v45  ;;  %v18603_v10 = vpack.c.bf16 %v26047_v24, %v26046_v62  ;;  %v8115_v48 = vrot.slane %v8110_v52, 4  ;;  %v8114_v11 = vsel %vm21390_vm11, %v8106_v32, %v8113_v40 }
 0x43e   : > { %v8119_v16 = vrot.slane %v8117_v26, 7  ;;  %v8127_v29 = vrot.slane %v8125_v27, 7  ;;  %8377 = vst [vmem:[#allocation3 + $0x98] sm:$0xff] %v8114_v11  ;;  %v26048_v18 = vmax.f32 %v22857_v51, 0.0  ;;  %v26050_v46 = vmax.f32 %v26049_v6, 0.0  ;;  %v26069_v6 = vld [vmem:[#allocation36_spill] sm:$0xff] }
 0x43f   : > { %v8134_v4 = vshrl.u32 %v18602_v12, 16  ;;  %v8137_v28 = vshll.u32 %v18602_v12, 16  ;;  %v8142_v41 = vshrl.u32 %v18603_v10, 16  ;;  %v8145_v44 = vshll.u32 %v18603_v10, 16 }
 0x440   : > { %v8379_v21 = vsel %vm21283_vm13, %v8115_v48, %v8378_v22  ;;  %v8122_v8 = vor.u32 %v8120_v7, %v8119_v16  ;;  %v8123_v61 = vrot.slane %v8119_v16, 4  ;;  %v8130_v25 = vor.u32 %v8128_v1, %v8127_v29  ;;  %v8392_v7 = vld [vmem:[#allocation3 + $0xd0] sm:$0x11]  ;;  %v8395_v16 = vld [vmem:[#allocation3 + $0xd8] sm:$0xff] }
 0x441   : > { %8380 = vst [vmem:[#allocation3 + $0xa0] sm:$0x11] %v8379_v21  ;;  %v8132_v60 = vrot.slane %v8127_v29, 4  ;;  %v8136_v37 = vrot.slane %v8134_v4, 7  ;;  %v8144_v59 = vrot.slane %v8142_v41, 7  ;;  %v18604_v63 = vpack.c.bf16 %v26050_v46, %v26048_v18  ;;  %v26059_v4 = vld [vmem:[#allocation31_spill] sm:$0xff] }
 0x442   : > { %v8382_v2 = vsel %vm23236_vm9, %v8122_v8, %v8381_v58  ;;  %v26052_v13 = vmax.f32 %v26051_v3, 0.0  ;;  %v26054_v50 = vmax.f32 %v26053_v14, 0.0  ;;  %v26056_v36 = vmax.f32 %v26055_v56, 0.0  ;;  %v26061_v41 = vld [vmem:[#allocation32_spill] sm:$0xff]  ;;  %v26063_v21 = vld [vmem:[#allocation33_spill] sm:$0xff]  ;;  %v26073_v14 = vld [vmem:[#allocation38_spill] sm:$0xff] }
 0x443   : > { %v26058_v43 = vmax.f32 %v26057_v55, 0.0  ;;  %8383 = vst [vmem:[#allocation3 + $0xa8] sm:$0xff] %v8382_v2  ;;  %v8131_v32 = vsel %vm21390_vm11, %v8123_v61, %v8130_v25  ;;  %v8386_v51 = vsel %vm21283_vm13, %v8132_v60, %v8385_v57  ;;  %v8139_v52 = vor.u32 %v8137_v28, %v8136_v37  ;;  %v26065_v61 = vld [vmem:[#allocation34_spill] sm:$0xff]  ;;  %v26071_v3 = vld [vmem:[#allocation37_spill] sm:$0xff] }
 0x444   : > { %v18605_v5 = vpack.c.bf16 %v26054_v50, %v26052_v13  ;;  %v8140_v26 = vrot.slane %v8136_v37, 4  ;;  %8384 = vst [vmem:[#allocation3 + $0xb0] sm:$0xff] %v8131_v32  ;;  %8387 = vst [vmem:[#allocation3 + $0xb8] sm:$0x11] %v8386_v51  ;;  %v8147_v27 = vor.u32 %v8145_v44, %v8144_v59  ;;  %v8149_v15 = vrot.slane %v8144_v59, 4  ;;  %v8402_v2 = vld [vmem:[#allocation3 + $0xf0] sm:$0xff] }
 0x445   : > { %v18606_v9 = vpack.c.bf16 %v26058_v43, %v26056_v36  ;;  %v8151_v22 = vshrl.u32 %v18604_v63, 16  ;;  %v8154_v1 = vshll.u32 %v18604_v63, 16  ;;  %v8389_v45 = vsel %vm23236_vm9, %v8139_v52, %v8388_v54  ;;  %v8399_v59 = vld [vmem:[#allocation3 + $0xe8] sm:$0x11]  ;;  %v26067_v54 = vld [vmem:[#allocation35_spill] sm:$0xff] }
 0x446   : > { %v8159_v30 = vshrl.u32 %v18605_v5, 16  ;;  %v8162_v12 = vshll.u32 %v18605_v5, 16  ;;  %8390 = vst [vmem:[#allocation3 + $0xc0] sm:$0xff] %v8389_v45  ;;  %v8148_v24 = vsel %vm21390_vm11, %v8140_v26, %v8147_v27  ;;  %v8393_v10 = vsel %vm21283_vm13, %v8149_v15, %v8392_v7 }
 0x447   : > { %v8168_v62 = vshrl.u32 %v18606_v9, 16  ;;  %v8153_v40 = vrot.slane %v8151_v22, 7  ;;  %v8171_v48 = vshll.u32 %v18606_v9, 16  ;;  %8391 = vst [vmem:[#allocation3 + $0xc8] sm:$0xff] %v8148_v24  ;;  %8394 = vst [vmem:[#allocation3 + $0xd0] sm:$0x11] %v8393_v10 }
 0x448   : > { %v8161_v29 = vrot.slane %v8159_v30, 7  ;;  %v26060_v28 = vmax.f32 %v26059_v4, 0.0  ;;  %v26062_v44 = vmax.f32 %v26061_v41, 0.0  ;;  %v26064_v8 = vmax.f32 %v26063_v21, 0.0 }
 0x449   : > { %v8170_v58 = vrot.slane %v8168_v62, 7  ;;  %v26066_v57 = vmax.f32 %v26065_v61, 0.0  ;;  %v8156_v60 = vor.u32 %v8154_v1, %v8153_v40  ;;  %v8157_v37 = vrot.slane %v8153_v40, 4  ;;  %v8409_v62 = vld [vmem:[#allocation3 + $0x108] sm:$0xff]  ;;  %v26075_v40 = vld [vmem:[#allocation39_spill] sm:$0xff] }
 0x44a   : > { %v18607_v11 = vpack.c.bf16 %v26062_v44, %v26060_v28  ;;  %v26068_v18 = vmax.f32 %v26067_v54, 0.0  ;;  %v26070_v46 = vmax.f32 %v26069_v6, 0.0  ;;  %v26072_v13 = vmax.f32 %v26071_v3, 0.0 }
 0x44b   : > { %v18608_v25 = vpack.c.bf16 %v26066_v57, %v26064_v8  ;;  %v26074_v50 = vmax.f32 %v26073_v14, 0.0  ;;  %v8164_v56 = vor.u32 %v8162_v12, %v8161_v29  ;;  %v8166_v36 = vrot.slane %v8161_v29, 4  ;;  %v8406_v12 = vld [vmem:[#allocation3 + $0x100] sm:$0x11] }
 0x44c   : > { %v18609_v63 = vpack.c.bf16 %v26070_v46, %v26068_v18  ;;  %v8173_v55 = vor.u32 %v8171_v48, %v8170_v58  ;;  %v8174_v43 = vrot.slane %v8170_v58, 4  ;;  %v8396_v9 = vsel %vm23236_vm9, %v8156_v60, %v8395_v16  ;;  %v26077_v16 = vld [vmem:[#allocation40_spill] sm:$0xff] }
 0x44d   : > { %v18610_v5 = vpack.c.bf16 %v26074_v50, %v26072_v13  ;;  %v8176_v32 = vshrl.u32 %v18607_v11, 16  ;;  %v8179_v51 = vshll.u32 %v18607_v11, 16  ;;  %v8185_v52 = vshrl.u32 %v18608_v25, 16  ;;  %8397 = vst [vmem:[#allocation3 + $0xd8] sm:$0xff] %v8396_v9  ;;  %v8420_v9 = vld [vmem:[#allocation3 + $0x130] sm:$0x11] }
 0x44e   : > { %v8165_v26 = vsel %vm21390_vm11, %v8157_v37, %v8164_v56  ;;  %v8400_v7 = vsel %vm21283_vm13, %v8166_v36, %v8399_v59  ;;  %v8403_v27 = vsel %vm23236_vm9, %v8173_v55, %v8402_v2  ;;  %v8188_v15 = vshll.u32 %v18608_v25, 16  ;;  %v8413_v2 = vld [vmem:[#allocation3 + $0x118] sm:$0x11] }
 0x44f   : > { %8398 = vst [vmem:[#allocation3 + $0xe0] sm:$0xff] %v8165_v26  ;;  %8401 = vst [vmem:[#allocation3 + $0xe8] sm:$0x11] %v8400_v7  ;;  %v8178_v22 = vrot.slane %v8176_v32, 7  ;;  %v8187_v1 = vrot.slane %v8185_v52, 7  ;;  %v8193_v45 = vshrl.u32 %v18609_v63, 16 }
 0x450   : > { %8404 = vst [vmem:[#allocation3 + $0xf0] sm:$0xff] %v8403_v27  ;;  %v8196_v30 = vshll.u32 %v18609_v63, 16  ;;  %v8202_v24 = vshrl.u32 %v18610_v5, 16  ;;  %v8205_v10 = vshll.u32 %v18610_v5, 16  ;;  %v26076_v48 = vmax.f32 %v26075_v40, 0.0  ;;  %v8423_v32 = vld [vmem:[#allocation3 + $0x138] sm:$0xff] }
 0x451   : > { %v26078_v29 = vmax.f32 %v26077_v16, 0.0  ;;  %v26079_v4 = vmax.f32 %v22945_v19, 0.0  ;;  %v26080_v28 = vmax.f32 %v22949_v47, 0.0  ;;  %v8181_v44 = vor.u32 %v8179_v51, %v8178_v22  ;;  %v8416_v47 = vld [vmem:[#allocation3 + $0x120] sm:$0xff] }
 0x452   : > { %v8183_v11 = vrot.slane %v8178_v22, 4  ;;  %v8190_v21 = vor.u32 %v8188_v15, %v8187_v1  ;;  %v8191_v8 = vrot.slane %v8187_v1, 4  ;;  %v8195_v61 = vrot.slane %v8193_v45, 7 }
 0x453   : > { %v18611_v58 = vpack.c.bf16 %v26078_v29, %v26076_v48  ;;  %v18612_v41 = vpack.c.bf16 %v26080_v28, %v26079_v4  ;;  %v8204_v57 = vrot.slane %v8202_v24, 7  ;;  %v8182_v37 = vsel %vm21390_vm11, %v8174_v43, %v8181_v44 }
 0x454   : > { %v8407_v59 = vsel %vm21283_vm13, %v8183_v11, %v8406_v12  ;;  %v8410_v19 = vsel %vm23236_vm9, %v8190_v21, %v8409_v62  ;;  %8405 = vst [vmem:[#allocation3 + $0xf8] sm:$0xff] %v8182_v37  ;;  %v8198_v18 = vor.u32 %v8196_v30, %v8195_v61  ;;  %v8200_v6 = vrot.slane %v8195_v61, 4  ;;  %v26091_v11 = vld [vmem:[#allocation41_spill] sm:$0xff] }
 0x455   : > { %v8210_v25 = vshrl.u32 %v18611_v58, 16  ;;  %v8213_v60 = vshll.u32 %v18611_v58, 16  ;;  %v8219_v54 = vshrl.u32 %v18612_v41, 16  ;;  %8408 = vst [vmem:[#allocation3 + $0x100] sm:$0x11] %v8407_v59  ;;  %8411 = vst [vmem:[#allocation3 + $0x108] sm:$0xff] %v8410_v19  ;;  %v8207_v46 = vor.u32 %v8205_v10, %v8204_v57 }
 0x456   : > { %v8208_v63 = vrot.slane %v8204_v57, 4  ;;  %v8222_v14 = vshll.u32 %v18612_v41, 16  ;;  %v26081_v50 = vmax.f32 %v22954_v53, 0.0  ;;  %v26082_v5 = vmax.f32 %v22958_v35, 0.0  ;;  %v8427_v41 = vld [vmem:[#allocation3 + $0x148] sm:$0x11] }
 0x457   : > { %v8212_v3 = vrot.slane %v8210_v25, 7  ;;  %v8221_v13 = vrot.slane %v8219_v54, 7  ;;  %v8199_v36 = vsel %vm21390_vm11, %v8191_v8, %v8198_v18  ;;  %v8414_v55 = vsel %vm21283_vm13, %v8200_v6, %v8413_v2  ;;  %v26093_v8 = vld [vmem:[#allocation42_spill] sm:$0xff]  ;;  %v26095_v25 = vld [vmem:[#allocation43_spill] sm:$0xff] }
 0x458   : > { %v18613_v56 = vpack.c.bf16 %v26082_v5, %v26081_v50  ;;  %v8417_v43 = vsel %vm23236_vm9, %v8207_v46, %v8416_v47  ;;  %v26083_v51 = vmax.f32 %v22963_v0, 0.0  ;;  %v26084_v52 = vmax.f32 %v22966_v49, 0.0  ;;  %8412 = vst [vmem:[#allocation3 + $0x110] sm:$0xff] %v8199_v36  ;;  %8415 = vst [vmem:[#allocation3 + $0x118] sm:$0x11] %v8414_v55  ;;  %v8437_v36 = vld [vmem:[#allocation3 + $0x168] sm:$0xff] }
 0x459   : > { %8418 = vst [vmem:[#allocation3 + $0x120] sm:$0xff] %v8417_v43  ;;  %v8215_v53 = vor.u32 %v8213_v60, %v8212_v3  ;;  %v8217_v35 = vrot.slane %v8212_v3, 4  ;;  %v8224_v7 = vor.u32 %v8222_v14, %v8221_v13  ;;  %v8225_v27 = vrot.slane %v8221_v13, 4  ;;  %v8434_v3 = vld [vmem:[#allocation3 + $0x160] sm:$0x11] }
 0x45a   : > { %v18614_v26 = vpack.c.bf16 %v26084_v52, %v26083_v51  ;;  %v8227_v15 = vshrl.u32 %v18613_v56, 16  ;;  %v8230_v22 = vshll.u32 %v18613_v56, 16  ;;  %v26085_v12 = vmax.f32 %v22970_v23, 0.0  ;;  %v8430_v23 = vld [vmem:[#allocation3 + $0x150] sm:$0xff] }
 0x45b   : > { %v8216_v30 = vsel %vm21390_vm11, %v8208_v63, %v8215_v53  ;;  %v8421_v0 = vsel %vm21283_vm13, %v8217_v35, %v8420_v9  ;;  %v8424_v49 = vsel %vm23236_vm9, %v8224_v7, %v8423_v32  ;;  %v26086_v62 = vmax.f32 %v22974_v39, 0.0  ;;  %v8441_v35 = vld [vmem:[#allocation3 + $0x178] sm:$0x11] }
 0x45c   : > { %v8236_v1 = vshrl.u32 %v18614_v26, 16  ;;  %v8239_v45 = vshll.u32 %v18614_v26, 16  ;;  %8419 = vst [vmem:[#allocation3 + $0x128] sm:$0xff] %v8216_v30  ;;  %8422 = vst [vmem:[#allocation3 + $0x130] sm:$0x11] %v8421_v0  ;;  %v8229_v10 = vrot.slane %v8227_v15, 7 }
 0x45d   : > { %v18615_v24 = vpack.c.bf16 %v26086_v62, %v26085_v12  ;;  %8425 = vst [vmem:[#allocation3 + $0x138] sm:$0xff] %v8424_v49  ;;  %v26087_v48 = vmax.f32 %v22979_v20, 0.0  ;;  %v26088_v16 = vmax.f32 %v22982_v38, 0.0  ;;  %v26089_v58 = vmax.f32 %v22986_v42, 0.0  ;;  %v26097_v20 = vld [vmem:[#allocation44_spill] sm:$0xff] }
 0x45e   : > { %v8238_v40 = vrot.slane %v8236_v1, 7  ;;  %v26090_v4 = vmax.f32 %v22990_v17, 0.0  ;;  %v26092_v21 = vmax.f32 %v26091_v11, 0.0  ;;  %v26094_v61 = vmax.f32 %v26093_v8, 0.0  ;;  %v8448_v62 = vld [vmem:[#allocation3 + $0x190] sm:$0x11] }
 0x45f   : > { %v18616_v29 = vpack.c.bf16 %v26088_v16, %v26087_v48  ;;  %v8244_v44 = vshrl.u32 %v18615_v24, 16  ;;  %v8247_v39 = vshll.u32 %v18615_v24, 16  ;;  %v26096_v60 = vmax.f32 %v26095_v25, 0.0 }
 0x460   : > { %v18617_v28 = vpack.c.bf16 %v26090_v4, %v26089_v58  ;;  %v18618_v57 = vpack.c.bf16 %v26094_v61, %v26092_v21  ;;  %v26098_v37 = vmax.f32 %v26097_v20, 0.0  ;;  %v8232_v59 = vor.u32 %v8230_v22, %v8229_v10 }
 0x461   : > { %v8234_v19 = vrot.slane %v8229_v10, 4  ;;  %v8241_v42 = vor.u32 %v8239_v45, %v8238_v40  ;;  %v8242_v2 = vrot.slane %v8238_v40, 4  ;;  %v8246_v17 = vrot.slane %v8244_v44, 7  ;;  %v8444_v45 = vld [vmem:[#allocation3 + $0x180] sm:$0xff] }
 0x462   : > { %v18619_v38 = vpack.c.bf16 %v26098_v37, %v26096_v60  ;;  %v8253_v47 = vshrl.u32 %v18616_v29, 16  ;;  %v8256_v54 = vshll.u32 %v18616_v29, 16  ;;  %v8261_v18 = vshrl.u32 %v18617_v28, 16 }
 0x463   : > { %v8233_v6 = vsel %vm21390_vm11, %v8225_v27, %v8232_v59  ;;  %v8428_v46 = vsel %vm21283_vm13, %v8234_v19, %v8427_v41  ;;  %v8431_v63 = vsel %vm23236_vm9, %v8241_v42, %v8430_v23  ;;  %v8264_v13 = vshll.u32 %v18617_v28, 16 }
 0x464   : > { %8426 = vst [vmem:[#allocation3 + $0x140] sm:$0xff] %v8233_v6  ;;  %8429 = vst [vmem:[#allocation3 + $0x148] sm:$0x11] %v8428_v46  ;;  %v8249_v14 = vor.u32 %v8247_v39, %v8246_v17  ;;  %v8251_v50 = vrot.slane %v8246_v17, 4  ;;  %v8255_v5 = vrot.slane %v8253_v47, 7  ;;  %v8263_v56 = vrot.slane %v8261_v18, 7 }
 0x465   : > { %8432 = vst [vmem:[#allocation3 + $0x150] sm:$0xff] %v8431_v63  ;;  %v8270_v55 = vshrl.u32 %v18618_v57, 16  ;;  %v8273_v43 = vshll.u32 %v18618_v57, 16  ;;  %v8278_v9 = vshrl.u32 %v18619_v38, 16  ;;  %v8281_v32 = vshll.u32 %v18619_v38, 16 }
 0x466   : > { %v8250_v51 = vsel %vm21390_vm11, %v8242_v2, %v8249_v14  ;;  %v8435_v52 = vsel %vm21283_vm13, %v8251_v50, %v8434_v3  ;;  %v8258_v26 = vor.u32 %v8256_v54, %v8255_v5  ;;  %v8259_v53 = vrot.slane %v8255_v5, 4 }
 0x467   : > { %8433 = vst [vmem:[#allocation3 + $0x158] sm:$0xff] %v8250_v51  ;;  %8436 = vst [vmem:[#allocation3 + $0x160] sm:$0x11] %v8435_v52  ;;  %v8266_v7 = vor.u32 %v8264_v13, %v8263_v56  ;;  %v8268_v27 = vrot.slane %v8263_v56, 4  ;;  %v8272_v15 = vrot.slane %v8270_v55, 7  ;;  %v8280_v22 = vrot.slane %v8278_v9, 7 }
 0x468   : > { %v8438_v1 = vsel %vm23236_vm9, %v8258_v26, %v8437_v36 }
 0x469   : > { %8439 = vst [vmem:[#allocation3 + $0x168] sm:$0xff] %v8438_v1  ;;  %v8267_v30 = vsel %vm21390_vm11, %v8259_v53, %v8266_v7  ;;  %v8442_v0 = vsel %vm21283_vm13, %v8268_v27, %v8441_v35  ;;  %v8275_v49 = vor.u32 %v8273_v43, %v8272_v15  ;;  %v8276_v12 = vrot.slane %v8272_v15, 4 }
 0x46a   : > { %8440 = vst [vmem:[#allocation3 + $0x170] sm:$0xff] %v8267_v30  ;;  %8443 = vst [vmem:[#allocation3 + $0x178] sm:$0x11] %v8442_v0  ;;  %v8283_v24 = vor.u32 %v8281_v32, %v8280_v22  ;;  %v8285_v10 = vrot.slane %v8280_v22, 4 }
 0x46b   : > { %v8445_v40 = vsel %vm23236_vm9, %v8275_v49, %v8444_v45 }
 0x46c   : > { %8446 = vst [vmem:[#allocation3 + $0x180] sm:$0xff] %v8445_v40  ;;  %v8284_v48 = vsel %vm21390_vm11, %v8276_v12, %v8283_v24  ;;  %v8449_v16 = vsel %vm21283_vm13, %v8285_v10, %v8448_v62 }
 0x46d   : > { %8447 = vst [vmem:[#allocation3 + $0x188] sm:$0xff] %v8284_v48  ;;  %8450 = vst [vmem:[#allocation3 + $0x190] sm:$0x11] %v8449_v16 }
 0x46e PF: > { %p8451_p4 = scmp.lt.s32.totalorder %s20934_s23, 0  ;;  %s8452_s8 = ssub.s32 0, %s20934_s23 }
 0x46f   : > { %s17664_s21 = smin.u32 %s20934_s23, %s8452_s8 }
 0x470   : > { %s8454_s29 = sand.u32 1, %s17664_s21  }
 0x471   : > { %s8455_s12 = ssub.s32 0, %s8454_s29 }
 0x472   : > { %s26232_s12 = smov (!%p8451_p4, %s8455_s12), %s8454_s29 }
 0x473   : > { %p17666_p12 = scmp.lt.s32.totalorder %s26232_s12, 0  ;;  %s8461_s14 = sadd.s32 2, %s26232_s12 }
 0x475   : > { %s26234_s14 = smov (!%p17666_p12, %s8461_s14), %s26232_s12 }
 0x476   : > { %p17667_p0 = scmp.ne.s32.totalorder %s26234_s14, 1 }
 0x478   : > { %8466 = sbr.rel (%p17667_p0) target bundleno = 2033 (0x7f1), region = 64 }
 0x47f   : > { %v20139_v33 = vld [vmem:[%s21220_s18 + $0x4] ss:$8 sps:$4 sm:$0xff]   ;;  %v20143_v31 = vld [vmem:[%s21220_s18] ss:$8 sps:$4 sm:$0xff]   ;;  %v20145_v58 = vld [vmem:[%s21220_s18 + $0x14] ss:$8 sps:$4 sm:$0xff]  }
 0x480   : > { %v20141_v34 = vld [vmem:[%s21220_s18 + $0x404] ss:$8 sps:$4 sm:$0xff]   ;;  %8851 = vmatprep.subr.bf16.mxu1 %v20139_v33  ;;  %v20144_v29 = vld [vmem:[%s21220_s18 + $0x400] ss:$8 sps:$4 sm:$0xff]   ;;  %v20147_v4 = vld [vmem:[%s21220_s18 + $0x414] ss:$8 sps:$4 sm:$0xff]  }
 0x481   : > { %12690 = vmatprep.subr.bf16.mxu0 %v20141_v34  ;;  %8852 = vmatpush1.bf16.msra.mxu1 %v20143_v31  ;;  %v20149_v28 = vld [vmem:[%s21220_s18 + $0x10] ss:$8 sps:$4 sm:$0xff]   ;;  %v20151_v23 = vld [vmem:[%s21220_s18 + $0x24] ss:$8 sps:$4 sm:$0xff]   ;;  %v20155_v39 = vld [vmem:[%s21220_s18 + $0x20] ss:$8 sps:$4 sm:$0xff]  }
 0x482   : > { %12691 = vmatpush1.bf16.msra.mxu0 %v20144_v29  ;;  %8853 = vmatprep.subr.bf16.mxu1 %v20145_v58  ;;  %v20150_v41 = vld [vmem:[%s21220_s18 + $0x410] ss:$8 sps:$4 sm:$0xff]   ;;  %v20153_v44 = vld [vmem:[%s21220_s18 + $0x424] ss:$8 sps:$4 sm:$0xff]   ;;  %v20156_v11 = vld [vmem:[%s21220_s18 + $0x420] ss:$8 sps:$4 sm:$0xff]  }
 0x483   : > { %12692 = vmatprep.subr.bf16.mxu0 %v20147_v4  ;;  %v20157_v21 = vld [vmem:[%s21220_s18 + $0x34] ss:$8 sps:$4 sm:$0xff]   ;;  %v20161_v61 = vld [vmem:[%s21220_s18 + $0x30] ss:$8 sps:$4 sm:$0xff]   ;;  %v20163_v25 = vld [vmem:[%s21220_s18 + $0x44] ss:$8 sps:$4 sm:$0xff]  }
 0x484   : > { %v20159_v8 = vld [vmem:[%s21220_s18 + $0x434] ss:$8 sps:$4 sm:$0xff]   ;;  %v20162_v57 = vld [vmem:[%s21220_s18 + $0x430] ss:$8 sps:$4 sm:$0xff]   ;;  %v20165_v60 = vld [vmem:[%s21220_s18 + $0x444] ss:$8 sps:$4 sm:$0xff]  }
 0x485   : > { %8854 = vmatpush1.bf16.msra.mxu1 %v20149_v28  ;;  %v20167_v20 = vld [vmem:[%s21220_s18 + $0x40] ss:$8 sps:$4 sm:$0xff]   ;;  %v20169_v38 = vld [vmem:[%s21220_s18 + $0x54] ss:$8 sps:$4 sm:$0xff]   ;;  %v20173_v19 = vld [vmem:[%s21220_s18 + $0x50] ss:$8 sps:$4 sm:$0xff]  }
 0x486   : > { %12693 = vmatpush1.bf16.msra.mxu0 %v20150_v41  ;;  %8855 = vmatprep.subr.bf16.mxu1 %v20151_v23  ;;  %v20168_v37 = vld [vmem:[%s21220_s18 + $0x440] ss:$8 sps:$4 sm:$0xff]   ;;  %v20171_v59 = vld [vmem:[%s21220_s18 + $0x454] ss:$8 sps:$4 sm:$0xff]   ;;  %v20174_v42 = vld [vmem:[%s21220_s18 + $0x450] ss:$8 sps:$4 sm:$0xff]  }
 0x487   : > { %12694 = vmatprep.subr.bf16.mxu0 %v20153_v44  ;;  %v20175_v2 = vld [vmem:[%s21220_s18 + $0x64] ss:$8 sps:$4 sm:$0xff]   ;;  %v20179_v47 = vld [vmem:[%s21220_s18 + $0x60] ss:$8 sps:$4 sm:$0xff]   ;;  %v20181_v18 = vld [vmem:[%s21220_s18 + $0x74] ss:$8 sps:$4 sm:$0xff]  }
 0x488   : > { %v20177_v17 = vld [vmem:[%s21220_s18 + $0x464] ss:$8 sps:$4 sm:$0xff]   ;;  %v20180_v54 = vld [vmem:[%s21220_s18 + $0x460] ss:$8 sps:$4 sm:$0xff]   ;;  %v20183_v6 = vld [vmem:[%s21220_s18 + $0x474] ss:$8 sps:$4 sm:$0xff]  }
 0x489   : > { %8856 = vmatpush1.bf16.msra.mxu1 %v20155_v39  ;;  %v20185_v46 = vld [vmem:[%s21220_s18 + $0x70] ss:$8 sps:$4 sm:$0xff]   ;;  %v20187_v3 = vld [vmem:[%s21220_s18 + $0x84] ss:$8 sps:$4 sm:$0xff]   ;;  %v20191_v14 = vld [vmem:[%s21220_s18 + $0x80] ss:$8 sps:$4 sm:$0xff]  }
 0x48a   : > { %12695 = vmatpush1.bf16.msra.mxu0 %v20156_v11  ;;  %8857 = vmatprep.subr.bf16.mxu1 %v20157_v21  ;;  %v20186_v63 = vld [vmem:[%s21220_s18 + $0x470] ss:$8 sps:$4 sm:$0xff]   ;;  %v20189_v13 = vld [vmem:[%s21220_s18 + $0x484] ss:$8 sps:$4 sm:$0xff]   ;;  %v20192_v50 = vld [vmem:[%s21220_s18 + $0x480] ss:$8 sps:$4 sm:$0xff]  }
 0x48b   : > { %12696 = vmatprep.subr.bf16.mxu0 %v20159_v8  ;;  %v20193_v5 = vld [vmem:[%s21220_s18 + $0x94] ss:$8 sps:$4 sm:$0xff]   ;;  %v20197_v36 = vld [vmem:[%s21220_s18 + $0x90] ss:$8 sps:$4 sm:$0xff]   ;;  %v20199_v43 = vld [vmem:[%s21220_s18 + $0xa4] ss:$8 sps:$4 sm:$0xff]  }
 0x48c   : > { %v20195_v56 = vld [vmem:[%s21220_s18 + $0x494] ss:$8 sps:$4 sm:$0xff]   ;;  %v20198_v55 = vld [vmem:[%s21220_s18 + $0x490] ss:$8 sps:$4 sm:$0xff]   ;;  %v20201_v9 = vld [vmem:[%s21220_s18 + $0x4a4] ss:$8 sps:$4 sm:$0xff]  }
 0x48d   : > { %8858 = vmatpush1.bf16.msra.mxu1 %v20161_v61  ;;  %v20203_v32 = vld [vmem:[%s21220_s18 + $0xa0] ss:$8 sps:$4 sm:$0xff]   ;;  %v20205_v52 = vld [vmem:[%s21220_s18 + $0xb4] ss:$8 sps:$4 sm:$0xff]   ;;  %vm9156_vm12 = vsmask.f32 3328 }
 0x48e   : > { %12697 = vmatpush1.bf16.msra.mxu0 %v20162_v57  ;;  %8859 = vmatprep.subr.bf16.mxu1 %v20163_v25  ;;  %v20204_v51 = vld [vmem:[%s21220_s18 + $0x4a0] ss:$8 sps:$4 sm:$0xff]   ;;  %v20207_v26 = vld [vmem:[%s21220_s18 + $0x4b4] ss:$8 sps:$4 sm:$0xff]   ;;  %v20209_v53 = vld [vmem:[%s21220_s18 + $0xb0] ss:$8 sps:$4 sm:$0xff]  }
 0x48f   : > { %12698 = vmatprep.subr.bf16.mxu0 %v20165_v60  ;;  %v20210_v35 = vld [vmem:[%s21220_s18 + $0x4b0] ss:$8 sps:$4 sm:$0xff]   ;;  %v20211_v7 = vld [vmem:[%s21220_s18 + $0xc4] ss:$8 sps:$4 sm:$0xff]   ;;  %vm9157_vm13 = vsmask.f32 7440 }
 0x490   : > { %v20237_v27 = vld [vmem:[#allocation3 + $0x4] ss:$8 sps:$4 sm:$0xff]   ;;  %v20213_v15 = vld [vmem:[%s21220_s18 + $0x4c4] ss:$8 sps:$4 sm:$0xff]   ;;  %v20215_v62 = vld [vmem:[%s21220_s18 + $0xc0] ss:$8 sps:$4 sm:$0xff]  }
 0x491   : > { %8860 = vmatpush1.bf16.msra.mxu1 %v20167_v20  ;;  %v23493_v22 = vld [vmem:[#allocation3 + $0x18] sm:$0xff]  ;;  %v23495_v1 = vld [vmem:[#allocation3 + $0x20] sm:$0xff]  ;;  %v11939_v45 = vld [vmem:[#allocation3 + $0x28] sm:$0x11]  ;;  %8883 = vmatprep.mubr.bf16.mxu1 %v20237_v27  ;;  %vm10345_vm10 = vcmask 1042432   ;;  %vm10346_vm11 = vcmask 1046532  }
 0x492   : > { %12699 = vmatpush1.bf16.msra.mxu0 %v20168_v37  ;;  %8861 = vmatprep.subr.bf16.mxu1 %v20169_v38  ;;  %v11986_v30 = vshrl.u32 %v23493_v22, 16  ;;  %v11989_v0 = vshll.u32 %v23493_v22, 16  ;;  %v11995_v49 = vshll.u32 %v23495_v1, 16  ;;  %v11999_v12 = vshrl.u32 %v23495_v1, 16  ;;  %v20216_v10 = vld [vmem:[%s21220_s18 + $0x4c0] ss:$8 sps:$4 sm:$0xff]   ;;  %vm23509_vm7 = vmor %vm9156_vm12, %vm9157_vm13 }
 0x493   : > { %12700 = vmatprep.subr.bf16.mxu0 %v20171_v59  ;;  %v12005_v24 = vshll.u32 %v11939_v45, 16  ;;  %v20217_v34 = vld [vmem:[%s21220_s18 + $0xd4] ss:$8 sps:$4 sm:$0xff]   ;;  %v20221_v28 = vld [vmem:[%s21220_s18 + $0xd0] ss:$8 sps:$4 sm:$0xff]   ;;  %v23515_v21 = vld [vmem:[#allocation3 + $0x38] sm:$0xff] }
 0x494   : > { %v11988_v40 = vrot.slane %v11986_v30, 4  ;;  %v11991_v48 = vrot.slane %v11989_v0, 5  ;;  %v11997_v16 = vrot.slane %v11995_v49, 5  ;;  %v12001_v33 = vrot.slane %v11999_v12, 4  ;;  %v20219_v31 = vld [vmem:[%s21220_s18 + $0x4d4] ss:$8 sps:$4 sm:$0xff]   ;;  %vm23732_vm2 = vmor %vm10345_vm10, %vm10346_vm11 }
 0x495   : > { %8862 = vmatpush1.bf16.msra.mxu1 %v20173_v19  ;;  %v12007_v4 = vrot.slane %v12005_v24, 5  ;;  %v20222_v41 = vld [vmem:[%s21220_s18 + $0x4d0] ss:$8 sps:$4 sm:$0xff]   ;;  %v23513_v44 = vld [vmem:[#allocation3 + $0x30] sm:$0xff]  ;;  %v12019_v25 = vshll.u32 %v23515_v21, 16  ;;  %v12023_v60 = vshrl.u32 %v23515_v21, 16 }
 0x496   : > { %12701 = vmatpush1.bf16.msra.mxu0 %v20174_v42  ;;  %8863 = vmatprep.subr.bf16.mxu1 %v20175_v2  ;;  %v11992_v29 = vor.u32 %v11991_v48, %v11988_v40  ;;  %v12002_v58 = vor.u32 %v12001_v33, %v11997_v16  ;;  %v11942_v8 = vld [vmem:[#allocation3 + $0x40] sm:$0x11]  ;;  %v12010_v61 = vshrl.u32 %v23513_v44, 16  ;;  %v12013_v57 = vshll.u32 %v23513_v44, 16  ;;  %v20227_v42 = vld [vmem:[%s21220_s18 + $0xe0] ss:$8 sps:$4 sm:$0xff]  }
 0x497   : > { %12702 = vmatprep.subr.bf16.mxu0 %v20177_v17  ;;  %v20223_v20 = vld [vmem:[%s21220_s18 + $0xe4] ss:$8 sps:$4 sm:$0xff]   ;;  %v20241_v40 = vld [vmem:[%s21220_s18 + $0x500] ss:$8 sps:$4 sm:$0xff]   ;;  %v20246_v48 = vld [vmem:[%s21220_s18 + $0x514] ss:$8 sps:$4 sm:$0xff]  }
 0x498   : > { %v11993_v39 = vrot.slane %v11992_v29, 4  ;;  %v12003_v11 = vrot.slane %v12002_v58, 4  ;;  %v20225_v37 = vld [vmem:[%s21220_s18 + $0x4e4] ss:$8 sps:$4 sm:$0xff]   ;;  %v12012_v19 = vrot.slane %v12010_v61, 4  ;;  %v12015_v17 = vrot.slane %v12013_v57, 5 }
 0x499   : > { %8864 = vmatpush1.bf16.msra.mxu1 %v20179_v47  ;;  %v12021_v47 = vrot.slane %v12019_v25, 5  ;;  %v20243_v30 = vld [vmem:[%s21220_s18 + $0x504] ss:$8 sps:$4 sm:$0xff]   ;;  %v20251_v25 = vld [vmem:[%s21220_s18 + $0x114] ss:$8 sps:$4 sm:$0xff]   ;;  %p18548_p3 = scmp.ne.s32.totalorder %s20934_s23, 1 }
 0x49a   : > { %12703 = vmatpush1.bf16.msra.mxu0 %v20180_v54  ;;  %8865 = vmatprep.subr.bf16.mxu1 %v20181_v18  ;;  %v23525_v38 = vsel %vm23509_vm7, %v11993_v39, %v11997_v16  ;;  %v23529_v59 = vsel %vm23509_vm7, %v12003_v11, %v12007_v4  ;;  %v12029_v54 = vshll.u32 %v11942_v8, 16  ;;  %v20228_v18 = vld [vmem:[%s21220_s18 + $0x4e0] ss:$8 sps:$4 sm:$0xff]   ;;  %v20235_v12 = vld [vmem:[#allocation3] ss:$8 sps:$4 sm:$0xff]  }
 0x49b   : > { %12704 = vmatprep.subr.bf16.mxu0 %v20183_v6  ;;  %v18069_v2 = vcombine.high %v23525_v38, %v23529_v59  ;;  %v12025_v6 = vrot.slane %v12023_v60, 4  ;;  %v23550_v24 = vld [vmem:[#allocation3 + $0x60] sm:$0xff]  ;;  %v11948_v8 = vld [vmem:[#allocation3 + $0x70] sm:$0x11] }
 0x49c   : > { %v12061_v58 = vshll.u32 %v23550_v24, 16 }
 0x49d   : > { %8866 = vmatpush1.bf16.msra.mxu1 %v20185_v46  ;;  %v23535_v46 = vld [vmem:[#allocation3 + $0x48] sm:$0xff]  ;;  %12722 = vmatprep.mubr.bf16.mxu0 %v18069_v2  ;;  %v23579_v2 = vld [vmem:[#allocation3 + $0x80] sm:$0xff] }
 0x49e   : > { %12705 = vmatpush1.bf16.msra.mxu0 %v20186_v63  ;;  %8867 = vmatprep.subr.bf16.mxu1 %v20187_v3  ;;  %v20229_v63 = vld [vmem:[%s21220_s18 + $0xf4] ss:$8 sps:$4 sm:$0xff]   ;;  %v12063_v60 = vrot.slane %v12061_v58, 5 }
 0x49f   : > { %12706 = vmatprep.subr.bf16.mxu0 %v20189_v13  ;;  %v20231_v3 = vld [vmem:[%s21220_s18 + $0x4f4] ss:$8 sps:$4 sm:$0xff]   ;;  %v12016_v13 = vor.u32 %v12015_v17, %v12012_v19  ;;  %v20249_v19 = vld [vmem:[%s21220_s18 + $0x110] ss:$8 sps:$4 sm:$0xff]   ;;  %v20254_v17 = vld [vmem:[%s21220_s18 + $0x524] ss:$8 sps:$4 sm:$0xff]  }
 0x4a1   : > { %8868 = vmatpush1.bf16.msra.mxu1 %v20191_v14  ;;  %v23539_v14 = vld [vmem:[#allocation3 + $0x50] sm:$0xff] }
 0x4a2   : > { %12707 = vmatpush1.bf16.msra.mxu0 %v20192_v50  ;;  %8869 = vmatprep.subr.bf16.mxu1 %v20193_v5  ;;  %v12034_v50 = vshrl.u32 %v23535_v46, 16  ;;  %v12026_v5 = vor.u32 %v12025_v6, %v12021_v47 }
 0x4a3   : > { %12708 = vmatprep.subr.bf16.mxu0 %v20195_v56  ;;  %v11945_v56 = vld [vmem:[#allocation3 + $0x58] sm:$0x11] }
 0x4a4   : > { %v12053_v45 = vshll.u32 %v11945_v56, 16  ;;  %v17670_v56 = vcombine.low %v23493_v22, %v23495_v1 }
 0x4a5   : > { %8870 = vmatpush1.bf16.msra.mxu1 %v20197_v36  ;;  %v12037_v36 = vshll.u32 %v23535_v46, 16 }
 0x4a6   : > { %12709 = vmatpush1.bf16.msra.mxu0 %v20198_v55  ;;  %8871 = vmatprep.subr.bf16.mxu1 %v20199_v43  ;;  %v12043_v55 = vshll.u32 %v23539_v14, 16  ;;  %v12047_v43 = vshrl.u32 %v23539_v14, 16  ;;  %v12055_v29 = vrot.slane %v12053_v45, 5  ;;  %v23608_v45 = vld [vmem:[#allocation3 + $0x90] sm:$0xff] }
 0x4a7   : > { %12710 = vmatprep.subr.bf16.mxu0 %v20201_v9  ;;  %v20233_v9 = vld [vmem:[%s21220_s18 + $0xf0] ss:$8 sps:$4 sm:$0xff]  }
 0x4a8   : > { %v12049_v27 = vrot.slane %v12047_v43, 4  ;;  %v20257_v43 = vld [vmem:[%s21220_s18 + $0x534] ss:$8 sps:$4 sm:$0xff]  }
 0x4a9   : > { %8872 = vmatpush1.bf16.msra.mxu1 %v20203_v32  ;;  %v12017_v32 = vrot.slane %v12016_v13, 4 }
 0x4aa   : > { %12711 = vmatpush1.bf16.msra.mxu0 %v20204_v51  ;;  %8873 = vmatprep.subr.bf16.mxu1 %v20205_v52  ;;  %v12031_v51 = vrot.slane %v12029_v54, 5  ;;  %v12036_v52 = vrot.slane %v12034_v50, 4  ;;  %v12091_v50 = vshll.u32 %v23579_v2, 16 }
 0x4ab   : > { %12712 = vmatprep.subr.bf16.mxu0 %v20207_v26  ;;  %v20234_v26 = vld [vmem:[%s21220_s18 + $0x4f0] ss:$8 sps:$4 sm:$0xff]   ;;  %v23558_v16 = vsel %vm23509_vm7, %v12017_v32, %v12021_v47  ;;  %v20260_v32 = vld [vmem:[%s21220_s18 + $0x120] ss:$8 sps:$4 sm:$0xff]  }
 0x4ad   : > { %8874 = vmatpush1.bf16.msra.mxu1 %v20209_v53  ;;  %v12027_v53 = vrot.slane %v12026_v5, 4  ;;  %v12095_v5 = vshrl.u32 %v23579_v2, 16 }
 0x4ae   : > { %12713 = vmatpush1.bf16.msra.mxu0 %v20210_v35  ;;  %8875 = vmatprep.subr.bf16.mxu1 %v20211_v7  ;;  %v12039_v35 = vrot.slane %v12037_v36, 5  ;;  %v12045_v7 = vrot.slane %v12043_v55, 5  ;;  %v20252_v55 = vld [vmem:[%s21220_s18 + $0x520] ss:$8 sps:$4 sm:$0xff]  }
 0x4af   : > { %12714 = vmatprep.subr.bf16.mxu0 %v20213_v15  ;;  %v20240_v15 = vld [vmem:[%s21220_s18 + $0x104] ss:$8 sps:$4 sm:$0xff]   ;;  %v23562_v33 = vsel %vm23509_vm7, %v12027_v53, %v12031_v51 }
 0x4b0   : > { %v12040_v0 = vor.u32 %v12039_v35, %v12036_v52  ;;  %v12050_v49 = vor.u32 %v12049_v27, %v12045_v7  ;;  %v18071_v57 = vcombine.high %v23558_v16, %v23562_v33  ;;  %v18070_v36 = vcombine.low %v23558_v16, %v23562_v33 }
 0x4b1   : > { %8876 = vmatpush1.bf16.msra.mxu1 %v20215_v62  ;;  %v20238_v62 = vld [vmem:[%s21220_s18 + $0x100] ss:$8 sps:$4 sm:$0xff]   ;;  %v23606_v27 = vrot.slane %v12091_v50, 5  ;;  %v20295_v50 = vld [vmem:[%s21220_s18 + $0x154] ss:$8 sps:$4 sm:$0xff]  }
 0x4b2   : > { %12715 = vmatpush1.bf16.msra.mxu0 %v20216_v10  ;;  %8877 = vmatprep.subr.bf16.mxu1 %v20217_v34  ;;  %v18068_v10 = vcombine.low %v23525_v38, %v23529_v59  ;;  %v23564_v34 = vld [vmem:[#allocation3 + $0x68] sm:$0xff]  ;;  %v12041_v39 = vrot.slane %v12040_v0, 4  ;;  %v12051_v11 = vrot.slane %v12050_v49, 4  ;;  %v23575_v38 = vld [vmem:[#allocation3 + $0x78] sm:$0xff] }
 0x4b3   : > { %12716 = vmatprep.subr.bf16.mxu0 %v20219_v31  ;;  %v12058_v31 = vshrl.u32 %v23550_v24, 16  ;;  %v12067_v4 = vshll.u32 %v23564_v34, 16  ;;  %v20244_v59 = vld [vmem:[%s21220_s18 + $0x510] ss:$8 sps:$4 sm:$0xff]   ;;  %v12085_v13 = vshll.u32 %v23575_v38, 16  ;;  %v23612_v49 = vld [vmem:[#allocation3 + $0x98] sm:$0xff] }
 0x4b4   : > { %v23584_v47 = vsel %vm23509_vm7, %v12041_v39, %v12045_v7  ;;  %v23588_v54 = vsel %vm23509_vm7, %v12051_v11, %v12055_v29  ;;  %v20273_v0 = vld [vmem:[%s21220_s18 + $0x134] ss:$8 sps:$4 sm:$0xff]   ;;  %v20271_v29 = vld [vmem:[%s21220_s18 + $0x130] ss:$8 sps:$4 sm:$0xff]   ;;  %v20263_v39 = vld [vmem:[%s21220_s18 + $0x540] ss:$8 sps:$4 sm:$0xff]  }
 0x4b5   : > { %8878 = vmatpush1.bf16.msra.mxu1 %v20221_v28  ;;  %v12071_v28 = vshrl.u32 %v23564_v34, 16  ;;  %v12060_v61 = vrot.slane %v12058_v31, 4  ;;  %v18073_v52 = vcombine.high %v23584_v47, %v23588_v54  ;;  %v12087_v7 = vrot.slane %v12085_v13, 5  ;;  %v20268_v11 = vld [vmem:[%s21220_s18 + $0x554] ss:$8 sps:$4 sm:$0xff]  }
 0x4b6   : > { %12717 = vmatpush1.bf16.msra.mxu0 %v20222_v41  ;;  %8879 = vmatprep.subr.bf16.mxu1 %v20223_v20  ;;  %v17671_v41 = vcombine.high %v23493_v22, %v23495_v1  ;;  %v12069_v20 = vrot.slane %v12067_v4, 5 }
 0x4b7   : > { %12718 = vmatprep.subr.bf16.mxu0 %v20225_v37  ;;  %v12073_v37 = vrot.slane %v12071_v28, 4  ;;  %v12064_v6 = vor.u32 %v12063_v60, %v12060_v61  ;;  %v17672_v28 = vcombine.low %v23513_v44, %v23515_v21  ;;  %v20284_v61 = vld [vmem:[%s21220_s18 + $0x144] ss:$8 sps:$4 sm:$0xff]  }
 0x4b9   : > { %8880 = vmatpush1.bf16.msra.mxu1 %v20227_v42  ;;  %v12077_v42 = vshll.u32 %v11948_v8, 16  ;;  %v12065_v22 = vrot.slane %v12064_v6, 4  ;;  %v17675_v8 = vcombine.high %v23535_v46, %v23539_v14  ;;  %v20282_v6 = vld [vmem:[%s21220_s18 + $0x140] ss:$8 sps:$4 sm:$0xff]  }
 0x4ba   : > { %12719 = vmatpush1.bf16.msra.mxu0 %v20228_v18  ;;  %8881 = vmatprep.subr.bf16.mxu1 %v20229_v63  ;;  %v20262_v18 = vld [vmem:[%s21220_s18 + $0x124] ss:$8 sps:$4 sm:$0xff]   ;;  %v12082_v63 = vshrl.u32 %v23575_v38, 16 }
 0x4bb   : > { %12720 = vmatprep.subr.bf16.mxu0 %v20231_v3  ;;  %v12074_v3 = vor.u32 %v12073_v37, %v12069_v20  ;;  %v12079_v51 = vrot.slane %v12077_v42, 5  ;;  %v23621_v33 = vsel %vm23509_vm7, %v12065_v22, %v12069_v20  ;;  %v11954_v37 = vld [vmem:[#allocation3 + $0xa0] sm:$0x11]  ;;  %v20279_v22 = vld [vmem:[%s21220_s18 + $0x574] ss:$8 sps:$4 sm:$0xff]  }
 0x4bc   : > { %v12084_v53 = vrot.slane %v12082_v63, 4  ;;  %v12125_v13 = vshll.u32 %v11954_v37, 16 }
 0x4bd   : > { %8882 = vmatpush1.bf16.msra.mxu1 %v20233_v9  ;;  %v17673_v9 = vcombine.high %v23513_v44, %v23515_v21  ;;  %v12075_v35 = vrot.slane %v12074_v3, 4 }
 0x4be   : > { %12721 = vmatpush1.bf16.msra.mxu0 %v20234_v26  ;;  %9864 = vmatprep.subr.bf16.mxu1 %v20240_v15  ;;  %v11951_v26 = vld [vmem:[#allocation3 + $0x88] sm:$0x11]  ;;  %v12097_v15 = vrot.slane %v12095_v5, 4  ;;  %v12088_v58 = vor.u32 %v12087_v7, %v12084_v53  ;;  %v12127_v7 = vrot.slane %v12125_v13, 5 }
 0x4bf   : > { %13604 = vmatprep.subr.bf16.mxu0 %v20243_v30  ;;  %v20255_v30 = vld [vmem:[%s21220_s18 + $0x530] ss:$8 sps:$4 sm:$0xff]   ;;  %v12101_v16 = vshll.u32 %v11951_v26, 16  ;;  %v23625_v31 = vsel %vm23509_vm7, %v12075_v35, %v12079_v51  ;;  %v17677_v26 = vcombine.high %v23550_v24, %v23564_v34 }
 0x4c0   : > { %8884 = vmatmul.mubr.bf16.vlgmr.msra.gmra.mrb[0].mxu1 %v20235_v12  ;;  %v12106_v12 = vshrl.u32 %v23608_v45, 16  ;;  %v12098_v4 = vor.u32 %v12097_v15, %v23606_v27  ;;  %v18075_v44 = vcombine.high %v23621_v33, %v23625_v31  ;;  %v18074_v51 = vcombine.low %v23621_v33, %v23625_v31  ;;  %v11957_v15 = vld [vmem:[#allocation3 + $0xb8] sm:$0x11]  ;;  %v20288_v13 = vld [vmem:[%s21220_s18 + $0x590] ss:$8 sps:$4 sm:$0xff]  }
 0x4c1   : > { %12723 = vmatmul.mubr.bf16.vlgmr.msra.gmra.mrb[0].mxu0 %v18068_v10  ;;  %9865 = vmatpush1.bf16.msra.mxu1 %v20238_v62  ;;  %v12109_v62 = vshll.u32 %v23608_v45, 16  ;;  %v12115_v10 = vshll.u32 %v23612_v49, 16  ;;  %v20287_v31 = vld [vmem:[%s21220_s18 + $0x584] ss:$8 sps:$4 sm:$0xff]  }
 0x4c2   : > { %13605 = vmatpush1.bf16.msra.mxu0 %v20241_v40  ;;  %8893 = vmatprep.mubr.bf16.mxu1 %v17671_v41  ;;  %v12119_v40 = vshrl.u32 %v23612_v49, 16  ;;  %v18072_v41 = vcombine.low %v23584_v47, %v23588_v54  ;;  %v12099_v42 = vrot.slane %v12098_v4, 4  ;;  %v23642_v47 = vld [vmem:[#allocation3 + $0xb0] sm:$0xff]  ;;  %v20266_v54 = vld [vmem:[%s21220_s18 + $0x550] ss:$8 sps:$4 sm:$0xff]  }
 0x4c3   : > { %13606 = vmatprep.subr.bf16.mxu0 %v20246_v48  ;;  %12732 = vmatprep.mubr.bf16.mxu0 %v18071_v57  ;;  %v20265_v48 = vld [vmem:[%s21220_s18 + $0x544] ss:$8 sps:$4 sm:$0xff]   ;;  %v12108_v57 = vrot.slane %v12106_v12, 4  ;;  %v12117_v60 = vrot.slane %v12115_v10, 5 }
 0x4c4   : > { %9866 = vmatprep.subr.bf16.mxu1 %v20251_v25  ;;  %v12111_v25 = vrot.slane %v12109_v62, 5  ;;  %v12121_v20 = vrot.slane %v12119_v40, 4  ;;  %v20306_v10 = vld [vmem:[%s21220_s18 + $0x164] ss:$8 sps:$4 sm:$0xff]  }
 0x4c5   : > { %9867 = vmatpush1.bf16.msra.mxu1 %v20249_v19  ;;  %v12089_v19 = vrot.slane %v12088_v58, 4  ;;  %v23673_v40 = vld [vmem:[#allocation3 + $0xc0] sm:$0xff] }
 0x4c6   : > { %13607 = vmatpush1.bf16.msra.mxu0 %v20244_v59  ;;  %9868 = vmatprep.subr.bf16.mxu1 %v20262_v18  ;;  %v23640_v59 = vld [vmem:[#allocation3 + $0xa8] sm:$0xff]  ;;  %v20276_v18 = vld [vmem:[%s21220_s18 + $0x564] ss:$8 sps:$4 sm:$0xff]   ;;  %v12112_v63 = vor.u32 %v12111_v25, %v12108_v57  ;;  %v12122_v3 = vor.u32 %v12121_v20, %v12117_v60  ;;  %v17676_v57 = vcombine.low %v23550_v24, %v23564_v34 }
 0x4c7   : > { %13608 = vmatprep.subr.bf16.mxu0 %v20254_v17  ;;  %v12103_v17 = vrot.slane %v12101_v16, 5  ;;  %v12130_v5 = vshrl.u32 %v23640_v59, 16  ;;  %v20277_v16 = vld [vmem:[%s21220_s18 + $0x570] ss:$8 sps:$4 sm:$0xff]   ;;  %v20290_v20 = vld [vmem:[%s21220_s18 + $0x594] ss:$8 sps:$4 sm:$0xff]  }
 0x4c8   : > { %8894 = vmatmul.mubr.bf16.gmra.mrb[4].mxu1 %v17670_v56  ;;  %v12133_v56 = vshll.u32 %v23640_v59, 16  ;;  %v12113_v53 = vrot.slane %v12112_v63, 4  ;;  %v12123_v35 = vrot.slane %v12122_v3, 4  ;;  %v20317_v3 = vld [vmem:[%s21220_s18 + $0x174] ss:$8 sps:$4 sm:$0xff]  }
 0x4c9   : > { %12733 = vmatmul.mubr.bf16.gmra.mrb[4].mxu0 %v18070_v36  ;;  %8903 = vmatprep.mubr.bf16.mxu1 %v17673_v9  ;;  %v12139_v36 = vshll.u32 %v23642_v47, 16  ;;  %v23659_v9 = vsel %vm23509_vm7, %v12099_v42, %v12103_v17  ;;  %v11960_v17 = vld [vmem:[#allocation3 + $0xd0] sm:$0x11] }
 0x4ca   : > { %13609 = vmatpush1.bf16.msra.mxu0 %v20252_v55  ;;  %12742 = vmatprep.mubr.bf16.mxu0 %v18073_v52  ;;  %v12143_v55 = vshrl.u32 %v23642_v47, 16  ;;  %v20274_v52 = vld [vmem:[%s21220_s18 + $0x560] ss:$8 sps:$4 sm:$0xff]   ;;  %v23680_v33 = vsel %vm23509_vm7, %v12113_v53, %v12117_v60  ;;  %v20301_v53 = vld [vmem:[%s21220_s18 + $0x5b4] ss:$8 sps:$4 sm:$0xff]  }
 0x4cb   : > { %13610 = vmatprep.subr.bf16.mxu0 %v20257_v43  ;;  %9869 = vmatpush1.bf16.msra.mxu1 %v20260_v32  ;;  %v23655_v43 = vsel %vm23509_vm7, %v12089_v19, %v23606_v27  ;;  %v17674_v32 = vcombine.low %v23535_v46, %v23539_v14  ;;  %v20293_v27 = vld [vmem:[%s21220_s18 + $0x150] ss:$8 sps:$4 sm:$0xff]   ;;  %v12141_v12 = vrot.slane %v12139_v36, 5  ;;  %v20285_v60 = vld [vmem:[%s21220_s18 + $0x580] ss:$8 sps:$4 sm:$0xff]   ;;  %v12173_v36 = vshll.u32 %v11960_v17, 16 }
 0x4cc   : > { %9870 = vmatprep.subr.bf16.mxu1 %v20273_v0  ;;  %v18077_v46 = vcombine.high %v23655_v43, %v23659_v9  ;;  %v12135_v0 = vrot.slane %v12133_v56, 5  ;;  %v12145_v62 = vrot.slane %v12143_v55, 4  ;;  %v18076_v25 = vcombine.low %v23655_v43, %v23659_v9  ;;  %v20298_v56 = vld [vmem:[%s21220_s18 + $0x5a4] ss:$8 sps:$4 sm:$0xff]  }
 0x4cd   : > { %v17682_v17 = vcombine.low %v23640_v59, %v23642_v47 }
 0x4ce   : > { %13611 = vmatpush1.bf16.msra.mxu0 %v20255_v30  ;;  %v12132_v30 = vrot.slane %v12130_v5, 4  ;;  %v12146_v4 = vor.u32 %v12145_v62, %v12141_v12  ;;  %v20328_v5 = vld [vmem:[%s21220_s18 + $0x184] ss:$8 sps:$4 sm:$0xff]  }
 0x4cf   : > { %13612 = vmatprep.subr.bf16.mxu0 %v20265_v48  ;;  %9871 = vmatpush1.bf16.msra.mxu1 %v20271_v29  ;;  %v23675_v48 = vld [vmem:[#allocation3 + $0xc8] sm:$0xff]  ;;  %v12128_v29 = vsel %vm23509_vm7, %v12123_v35, %v12127_v7 }
 0x4d0   : > { %8904 = vmatmul.mubr.bf16.gmra.mrb[8].mxu1 %v17672_v28  ;;  %9872 = vmatprep.subr.bf16.mxu1 %v20284_v61  ;;  %v12136_v58 = vor.u32 %v12135_v0, %v12132_v30  ;;  %v12149_v28 = vshll.u32 %v11957_v15, 16  ;;  %v12167_v61 = vshrl.u32 %v23675_v48, 16  ;;  %v18079_v37 = vcombine.high %v23680_v33, %v12128_v29  ;;  %v20333_v30 = vld [vmem:[%s21220_s18 + $0x194] ss:$8 sps:$4 sm:$0xff]   ;;  %v20309_v0 = vld [vmem:[%s21220_s18 + $0x5c4] ss:$8 sps:$4 sm:$0xff]  }
 0x4d1   : > { %12743 = vmatmul.mubr.bf16.gmra.mrb[8].mxu0 %v18072_v41  ;;  %8913 = vmatprep.mubr.bf16.mxu1 %v17675_v8  ;;  %v20304_v41 = vld [vmem:[%s21220_s18 + $0x160] ss:$8 sps:$4 sm:$0xff]   ;;  %v12163_v8 = vshll.u32 %v23675_v48, 16  ;;  %v12147_v42 = vrot.slane %v12146_v4, 4  ;;  %v12175_v15 = vrot.slane %v12173_v36, 5 }
 0x4d2   : > { %13613 = vmatpush1.bf16.msra.mxu0 %v20263_v39  ;;  %12752 = vmatprep.mubr.bf16.mxu0 %v18075_v44  ;;  %v12154_v39 = vshrl.u32 %v23673_v40, 16  ;;  %v17679_v44 = vcombine.high %v23575_v38, %v23579_v2  ;;  %v12137_v19 = vrot.slane %v12136_v58, 4  ;;  %v12151_v24 = vrot.slane %v12149_v28, 5  ;;  %v13077_v58 = vld [vmem:[#allocation3 + $0x28] sm:$0x11] }
 0x4d3   : > { %13614 = vmatprep.subr.bf16.mxu0 %v20268_v11  ;;  %9873 = vmatpush1.bf16.msra.mxu1 %v20282_v6  ;;  %v12157_v11 = vshll.u32 %v23673_v40, 16  ;;  %v12165_v6 = vrot.slane %v12163_v8, 5  ;;  %v12169_v63 = vrot.slane %v12167_v61, 4  ;;  %v20307_v4 = vld [vmem:[%s21220_s18 + $0x5c0] ss:$8 sps:$4 sm:$0xff]   ;;  %v17683_v28 = vcombine.high %v23640_v59, %v23642_v47 }
 0x4d4   : > { %9874 = vmatprep.subr.bf16.mxu1 %v20295_v50  ;;  %v20315_v50 = vld [vmem:[%s21220_s18 + $0x170] ss:$8 sps:$4 sm:$0xff]   ;;  %v12142_v55 = vsel %vm23509_vm7, %v12137_v19, %v12141_v12  ;;  %v12152_v43 = vsel %vm23509_vm7, %v12147_v42, %v12151_v24  ;;  %v13176_v8 = vrot.slane %v13077_v58, 5  ;;  %v20341_v61 = vld [vmem:[%s21220_s18 + $0x1a4] ss:$8 sps:$4 sm:$0xff]  }
 0x4d5   : > { %v18081_v35 = vcombine.high %v12142_v55, %v12152_v43  ;;  %v13078_v42 = vld [vmem:[#allocation3 + $0x30] sm:$0xee]  ;;  %v13080_v24 = vld [vmem:[#allocation3 + $0x40] sm:$0x11]  ;;  %v13084_v58 = vld [vmem:[#allocation3 + $0x60] sm:$0xee] }
 0x4d6   : > { %13615 = vmatpush1.bf16.msra.mxu0 %v20266_v54  ;;  %v12156_v54 = vrot.slane %v12154_v39, 4  ;;  %v20321_v59 = vld [vmem:[%s21220_s18 + $0x5f0] ss:$8 sps:$4 sm:$0xff]   ;;  %v20357_v36 = vld [vmem:[%s21220_s18 + $0x1c4] ss:$8 sps:$4 sm:$0xff]  }
 0x4d7   : > { %13616 = vmatprep.subr.bf16.mxu0 %v20276_v18  ;;  %9875 = vmatpush1.bf16.msra.mxu1 %v20293_v27  ;;  %v12159_v18 = vrot.slane %v12157_v11, 5 }
 0x4d8   : > { %8914 = vmatmul.mubr.bf16.gmra.mrb[12].mxu1 %v17674_v32  ;;  %9876 = vmatprep.subr.bf16.mxu1 %v20306_v10  ;;  %v12170_v32 = vor.u32 %v12169_v63, %v12165_v6  ;;  %v13173_v10 = vrot.slane %v23495_v1, 5  ;;  %v20312_v1 = vld [vmem:[%s21220_s18 + $0x5d4] ss:$8 sps:$4 sm:$0xff]  }
 0x4d9   : > { %12753 = vmatmul.mubr.bf16.gmra.mrb[12].mxu0 %v18074_v51  ;;  %8923 = vmatprep.mubr.bf16.mxu1 %v17677_v26  ;;  %v12160_v9 = vor.u32 %v12159_v18, %v12156_v54  ;;  %v17678_v51 = vcombine.low %v23575_v38, %v23579_v2  ;;  %v17681_v26 = vcombine.high %v23608_v45, %v23612_v49  ;;  %v20326_v38 = vld [vmem:[%s21220_s18 + $0x180] ss:$8 sps:$4 sm:$0xff]  }
 0x4da   : > { %13617 = vmatpush1.bf16.msra.mxu0 %v20274_v52  ;;  %12762 = vmatprep.mubr.bf16.mxu0 %v18077_v46  ;;  %v18078_v52 = vcombine.low %v23680_v33, %v12128_v29  ;;  %v12171_v27 = vrot.slane %v12170_v32, 4  ;;  %v20299_v46 = vld [vmem:[%s21220_s18 + $0x5b0] ss:$8 sps:$4 sm:$0xff]   ;;  %v17680_v33 = vcombine.low %v23608_v45, %v23612_v49  ;;  %v13075_v29 = vld [vmem:[#allocation3 + $0x18] sm:$0xee]  ;;  %v13175_v11 = vrot.slane %v13173_v10, 4 }
 0x4db   : > { %13618 = vmatprep.subr.bf16.mxu0 %v20279_v22  ;;  %9877 = vmatpush1.bf16.msra.mxu1 %v20304_v41  ;;  %v20296_v22 = vld [vmem:[%s21220_s18 + $0x5a0] ss:$8 sps:$4 sm:$0xff]   ;;  %v12161_v7 = vrot.slane %v12160_v9, 4  ;;  %v18132_v39 = vrot.slane %v13075_v29, 9  ;;  %v13081_v9 = vld [vmem:[#allocation3 + $0x48] sm:$0xee] }
 0x4dc   : > { %9878 = vmatprep.subr.bf16.mxu1 %v20317_v3  ;;  %v12176_v62 = vsel %vm23509_vm7, %v12171_v27, %v12175_v15  ;;  %v13177_v19 = vsel %vm23732_vm2, %v13175_v11, %v13176_v8  ;;  %v20318_v18 = vld [vmem:[%s21220_s18 + $0x5e0] ss:$8 sps:$4 sm:$0xff]   ;;  %v18133_v3 = vrot.slane %v13078_v42, 9  ;;  %v13187_v32 = vrot.slane %v23539_v14, 5  ;;  %v20342_v29 = vld [vmem:[%s21220_s18 + $0x610] ss:$8 sps:$4 sm:$0xff]  }
 0x4dd   : > { %v12166_v12 = vsel %vm23509_vm7, %v12161_v7, %v12165_v6  ;;  %v20323_v6 = vld [vmem:[%s21220_s18 + $0x5f4] ss:$8 sps:$4 sm:$0xff]   ;;  %v20334_v15 = vld [vmem:[%s21220_s18 + $0x600] ss:$8 sps:$4 sm:$0xff]   ;;  %v18135_v8 = vrot.slane %v13084_v58, 9 }
 0x4de   : > { %13619 = vmatpush1.bf16.msra.mxu0 %v20277_v16  ;;  %v20331_v16 = vld [vmem:[%s21220_s18 + $0x190] ss:$8 sps:$4 sm:$0xff]   ;;  %v18083_v41 = vcombine.high %v12166_v12, %v12176_v62  ;;  %v18082_v54 = vcombine.low %v12166_v12, %v12176_v62  ;;  %v13189_v27 = vrot.slane %v13187_v32, 4  ;;  %v20373_v62 = vld [vmem:[%s21220_s18 + $0x1e4] ss:$8 sps:$4 sm:$0xff]   ;;  %v23793_v42 = vld [vmem:[#allocation3 + $0x110] sm:$0xff] }
 0x4df   : > { %13620 = vmatprep.subr.bf16.mxu0 %v20287_v31  ;;  %9879 = vmatpush1.bf16.msra.mxu1 %v20315_v50  ;;  %v18080_v31 = vcombine.low %v12142_v55, %v12152_v43  ;;  %v13183_v50 = vrot.slane %v13080_v24, 5  ;;  %v23757_v55 = vld [vmem:[#allocation3 + $0xe0] sm:$0xff] }
 0x4e0   : > { %8924 = vmatmul.mubr.bf16.gmra.mrb[16].mxu1 %v17676_v57  ;;  %9880 = vmatprep.subr.bf16.mxu1 %v20328_v5  ;;  %v20310_v57 = vld [vmem:[%s21220_s18 + $0x5d0] ss:$8 sps:$4 sm:$0xff]   ;;  %v20336_v43 = vld [vmem:[%s21220_s18 + $0x604] ss:$8 sps:$4 sm:$0xff]  }
 0x4e1   : > { %12763 = vmatmul.mubr.bf16.gmra.mrb[16].mxu0 %v18076_v25  ;;  %8933 = vmatprep.mubr.bf16.mxu1 %v17679_v44  ;;  %v20339_v25 = vld [vmem:[%s21220_s18 + $0x1a0] ss:$8 sps:$4 sm:$0xff]   ;;  %v13180_v44 = vrot.slane %v23515_v21, 5  ;;  %v17685_v21 = vcombine.high %v23673_v40, %v23675_v48  ;;  %v20347_v5 = vld [vmem:[%s21220_s18 + $0x1b0] ss:$8 sps:$4 sm:$0xff]  }
 0x4e2   : > { %13621 = vmatpush1.bf16.msra.mxu0 %v20285_v60  ;;  %12772 = vmatprep.mubr.bf16.mxu0 %v18079_v37  ;;  %v20349_v60 = vld [vmem:[%s21220_s18 + $0x1b4] ss:$8 sps:$4 sm:$0xff]   ;;  %v13174_v37 = vsel %vm23732_vm2, %v18132_v39, %v13173_v10  ;;  %v20363_v12 = vld [vmem:[%s21220_s18 + $0x1d0] ss:$8 sps:$4 sm:$0xff]   ;;  %v23775_v10 = vld [vmem:[#allocation3 + $0xf8] sm:$0xff] }
 0x4e3   : > { %13622 = vmatprep.subr.bf16.mxu0 %v20290_v20  ;;  %9881 = vmatpush1.bf16.msra.mxu1 %v20326_v38  ;;  %v20320_v20 = vld [vmem:[%s21220_s18 + $0x5e4] ss:$8 sps:$4 sm:$0xff]   ;;  %v18181_v63 = vcombine.high %v13174_v37, %v13177_v19  ;;  %v18134_v38 = vrot.slane %v13081_v9, 9  ;;  %v20366_v9 = vld [vmem:[%s21220_s18 + $0x640] ss:$8 sps:$4 sm:$0xff]  }
 0x4e4   : > { %9882 = vmatprep.subr.bf16.mxu1 %v20333_v30 }
 0x4e6   : > { %13623 = vmatpush1.bf16.msra.mxu0 %v20288_v13  ;;  %v13182_v13 = vrot.slane %v13180_v44, 4 }
 0x4e7   : > { %13624 = vmatprep.subr.bf16.mxu0 %v20298_v56  ;;  %9883 = vmatpush1.bf16.msra.mxu1 %v20331_v16  ;;  %v23754_v56 = vld [vmem:[#allocation3 + $0xd8] sm:$0xff]  ;;  %v13194_v16 = vrot.slane %v23564_v34, 5 }
 0x4e8   : > { %8934 = vmatmul.mubr.bf16.gmra.mrb[20].mxu1 %v17678_v51  ;;  %9884 = vmatprep.subr.bf16.mxu1 %v20341_v61  ;;  %v13181_v51 = vsel %vm23732_vm2, %v18133_v3, %v13180_v44  ;;  %v17687_v14 = vcombine.high %v23754_v56, %v23757_v55  ;;  %v17686_v34 = vcombine.low %v23754_v56, %v23757_v55  ;;  %v20379_v44 = vld [vmem:[%s21220_s18 + $0x1f0] ss:$8 sps:$4 sm:$0xff]   ;;  %v23806_v56 = vld [vmem:[#allocation3 + $0x38] sm:$0xff] }
 0x4e9   : > { %12773 = vmatmul.mubr.bf16.gmra.mrb[20].mxu0 %v18078_v52  ;;  %8943 = vmatprep.mubr.bf16.mxu1 %v17681_v26  ;;  %v13184_v52 = vsel %vm23732_vm2, %v13182_v13, %v13183_v50  ;;  %v20355_v26 = vld [vmem:[%s21220_s18 + $0x1c0] ss:$8 sps:$4 sm:$0xff]   ;;  %v13196_v61 = vrot.slane %v13194_v16, 4  ;;  %v13195_v24 = vsel %vm23732_vm2, %v18135_v8, %v13194_v16 }
 0x4ea   : > { %13625 = vmatpush1.bf16.msra.mxu0 %v20296_v22  ;;  %12782 = vmatprep.mubr.bf16.mxu0 %v18081_v35  ;;  %v13083_v22 = vld [vmem:[#allocation3 + $0x58] sm:$0x11]  ;;  %v17684_v35 = vcombine.low %v23673_v40, %v23675_v48  ;;  %v18183_v7 = vcombine.high %v13181_v51, %v13184_v52  ;;  %v8487_v40 = vld [vmem:[#allocation3 + $0xf0] sm:$0xff] }
 0x4eb   : > { %13626 = vmatprep.subr.bf16.mxu0 %v20301_v53  ;;  %9885 = vmatpush1.bf16.msra.mxu1 %v20339_v25  ;;  %v18180_v53 = vcombine.low %v13174_v37, %v13177_v19  ;;  %v13190_v30 = vrot.slane %v13083_v22, 5  ;;  %v17689_v39 = vcombine.high %v8487_v40, %v23775_v10  ;;  %v20350_v25 = vld [vmem:[%s21220_s18 + $0x620] ss:$8 sps:$4 sm:$0xff]   ;;  %v20387_v37 = vld [vmem:[%s21220_s18 + $0x204] ss:$8 sps:$4 sm:$0xff]   ;;  %v8489_v19 = vld [vmem:[#allocation3 + $0x108] sm:$0xff]  ;;  %v17688_v3 = vcombine.low %v8487_v40, %v23775_v10 }
 0x4ec   : > { %9886 = vmatprep.subr.bf16.mxu1 %v20349_v60  ;;  %v20381_v60 = vld [vmem:[%s21220_s18 + $0x1f4] ss:$8 sps:$4 sm:$0xff]   ;;  %v17691_v50 = vcombine.high %v8489_v19, %v23793_v42  ;;  %v20382_v16 = vld [vmem:[%s21220_s18 + $0x660] ss:$8 sps:$4 sm:$0xff]  }
 0x4ed   : > { %v23812_v22 = vld [vmem:[#allocation3 + $0x128] sm:$0xff] }
 0x4ee   : > { %13627 = vmatpush1.bf16.msra.mxu0 %v20299_v46  ;;  %v20365_v46 = vld [vmem:[%s21220_s18 + $0x1d4] ss:$8 sps:$4 sm:$0xff]  }
 0x4ef   : > { %13628 = vmatprep.subr.bf16.mxu0 %v20309_v0  ;;  %9887 = vmatpush1.bf16.msra.mxu1 %v20347_v5  ;;  %v20344_v0 = vld [vmem:[%s21220_s18 + $0x614] ss:$8 sps:$4 sm:$0xff]  }
 0x4f0   : > { %8944 = vmatmul.mubr.bf16.gmra.mrb[24].mxu1 %v17680_v33  ;;  %9888 = vmatprep.subr.bf16.mxu1 %v20357_v36  ;;  %v13188_v33 = vsel %vm23732_vm2, %v18134_v38, %v13187_v32  ;;  %v17690_v38 = vcombine.low %v8489_v19, %v23793_v42  ;;  %v23844_v19 = vld [vmem:[#allocation3 + $0x150] sm:$0xff] }
 0x4f1   : > { %12783 = vmatmul.mubr.bf16.gmra.mrb[24].mxu0 %v18080_v31  ;;  %8953 = vmatprep.mubr.bf16.mxu1 %v17683_v28  ;;  %v13191_v31 = vsel %vm23732_vm2, %v13189_v27, %v13190_v30  ;;  %v20352_v28 = vld [vmem:[%s21220_s18 + $0x624] ss:$8 sps:$4 sm:$0xff]   ;;  %v20460_v32 = vld [vmem:[%s21220_s18 + $0x2b4] ss:$8 sps:$4 sm:$0xff]  }
 0x4f2   : > { %13629 = vmatpush1.bf16.msra.mxu0 %v20307_v4  ;;  %12792 = vmatprep.mubr.bf16.mxu0 %v18083_v41  ;;  %v13086_v4 = vld [vmem:[#allocation3 + $0x70] sm:$0x11]  ;;  %v18182_v41 = vcombine.low %v13181_v51, %v13184_v52  ;;  %v18185_v11 = vcombine.high %v13188_v33, %v13191_v31  ;;  %v18184_v13 = vcombine.low %v13188_v33, %v13191_v31  ;;  %v8491_v52 = vld [vmem:[#allocation3 + $0x120] sm:$0xff]  ;;  %v23825_v33 = vld [vmem:[#allocation3 + $0x138] sm:$0xff] }
 0x4f3   : > { %13630 = vmatprep.subr.bf16.mxu0 %v20312_v1  ;;  %9889 = vmatpush1.bf16.msra.mxu1 %v20355_v26  ;;  %v20371_v1 = vld [vmem:[%s21220_s18 + $0x1e0] ss:$8 sps:$4 sm:$0xff]   ;;  %v20376_v51 = vld [vmem:[%s21220_s18 + $0x654] ss:$8 sps:$4 sm:$0xff]   ;;  %v13092_v27 = vld [vmem:[#allocation3 + $0xa0] sm:$0x11] }
 0x4f4   : > { %9890 = vmatprep.subr.bf16.mxu1 %v20365_v46  ;;  %v17693_v46 = vcombine.high %v8491_v52, %v23812_v22  ;;  %v13211_v40 = vrot.slane %v13092_v27, 5  ;;  %v23827_v31 = vld [vmem:[#allocation3 + $0x140] sm:$0xff] }
 0x4f5   : > { %v17695_v8 = vcombine.high %v23825_v33, %v23827_v31 }
 0x4f6   : > { %13631 = vmatpush1.bf16.msra.mxu0 %v20310_v57  ;;  %v13197_v57 = vrot.slane %v13086_v4, 5  ;;  %v13093_v4 = vld [vmem:[#allocation3 + $0xa8] sm:$0xee] }
 0x4f7   : > { %13632 = vmatprep.subr.bf16.mxu0 %v20320_v20  ;;  %9891 = vmatpush1.bf16.msra.mxu1 %v20363_v12  ;;  %v20360_v20 = vld [vmem:[%s21220_s18 + $0x634] ss:$8 sps:$4 sm:$0xff]  }
 0x4f8   : > { %8954 = vmatmul.mubr.bf16.gmra.mrb[28].mxu1 %v17682_v17  ;;  %9892 = vmatprep.subr.bf16.mxu1 %v20373_v62  ;;  %v13198_v17 = vsel %vm23732_vm2, %v13196_v61, %v13197_v57  ;;  %v9108_v57 = vld [vmem:[#allocation3] sm:$0xff] }
 0x4f9   : > { %12793 = vmatmul.mubr.bf16.gmra.mrb[28].mxu0 %v18082_v54  ;;  %8963 = vmatprep.mubr.bf16.mxu1 %v17685_v21  ;;  %v13087_v54 = vld [vmem:[#allocation3 + $0x78] sm:$0xee]  ;;  %v20358_v21 = vld [vmem:[%s21220_s18 + $0x630] ss:$8 sps:$4 sm:$0xff]   ;;  %v18187_v5 = vcombine.high %v13195_v24, %v13198_v17  ;;  %v18186_v30 = vcombine.low %v13195_v24, %v13198_v17  ;;  %v9160_v24 = vshrl.u32 %v9108_v57, 16  ;;  %v9163_v17 = vshll.u32 %v9108_v57, 16 }
 0x4fa   : > { %13633 = vmatpush1.bf16.msra.mxu0 %v20318_v18  ;;  %13636 = vmatprep.mubr.bf16.mxu0 %v18181_v63  ;;  %v13201_v18 = vrot.slane %v23579_v2, 5  ;;  %v20368_v63 = vld [vmem:[%s21220_s18 + $0x644] ss:$8 sps:$4 sm:$0xff]   ;;  %v18136_v2 = vrot.slane %v13087_v54, 9 }
 0x4fb   : > { %13634 = vmatprep.subr.bf16.mxu0 %v20323_v6  ;;  %9893 = vmatpush1.bf16.msra.mxu1 %v20371_v1  ;;  %v13089_v6 = vld [vmem:[#allocation3 + $0x88] sm:$0x11] }
 0x4fc   : > { %9894 = vmatprep.subr.bf16.mxu1 %v20381_v60  ;;  %v13203_v36 = vrot.slane %v13201_v18, 4  ;;  %v13202_v26 = vsel %vm23732_vm2, %v18136_v2, %v13201_v18  ;;  %v20388_v1 = vld [vmem:[%s21220_s18 + $0x670] ss:$8 sps:$4 sm:$0xff]   ;;  %v18138_v60 = vrot.slane %v13093_v4, 9 }
 0x4fd   : > { %v20400_v2 = vld [vmem:[%s21220_s18 + $0x690] ss:$8 sps:$4 sm:$0xff]  }
 0x4fe   : > { %13635 = vmatpush1.bf16.msra.mxu0 %v20321_v59  ;;  %v23804_v59 = vld [vmem:[#allocation3 + $0x30] sm:$0xff] }
 0x4ff   : > { %14375 = vmatprep.subr.bf16.mxu0 %v20336_v43  ;;  %9895 = vmatpush1.bf16.msra.mxu1 %v20379_v44  ;;  %v13204_v43 = vrot.slane %v13089_v6, 5  ;;  %v20394_v44 = vld [vmem:[%s21220_s18 + $0x680] ss:$8 sps:$4 sm:$0xff]   ;;  %v13096_v6 = vld [vmem:[#allocation3 + $0xc0] sm:$0xee] }
 0x500   : > { %8964 = vmatmul.mubr.bf16.gmra.mrb[32].mxu1 %v17684_v35  ;;  %10781 = vmatprep.subr.bf16.mxu1 %v20387_v37  ;;  %v13208_v35 = vrot.slane %v23612_v49, 5  ;;  %v20390_v49 = vld [vmem:[%s21220_s18 + $0x674] ss:$8 sps:$4 sm:$0xff]   ;;  %v18139_v27 = vrot.slane %v13096_v6, 9  ;;  %v20418_v6 = vld [vmem:[%s21220_s18 + $0x6c0] ss:$8 sps:$4 sm:$0xff]  }
 0x501   : > { %13637 = vmatmul.mubr.bf16.vlgmr.msra.gmra.mrb[0].mxu0 %v18180_v53  ;;  %8973 = vmatprep.mubr.bf16.mxu1 %v17687_v14  ;;  %v13205_v53 = vsel %vm23732_vm2, %v13203_v36, %v13204_v43  ;;  %v20374_v14 = vld [vmem:[%s21220_s18 + $0x650] ss:$8 sps:$4 sm:$0xff]   ;;  %v20402_v37 = vld [vmem:[%s21220_s18 + $0x694] ss:$8 sps:$4 sm:$0xff]   ;;  %v17694_v36 = vcombine.low %v23825_v33, %v23827_v31 }
 0x502   : > { %13646 = vmatprep.mubr.bf16.mxu0 %v18183_v7  ;;  %14376 = vmatpush1.bf16.msra.mxu0 %v20334_v15  ;;  %v13090_v7 = vld [vmem:[#allocation3 + $0x90] sm:$0xee]  ;;  %v20384_v15 = vld [vmem:[%s21220_s18 + $0x664] ss:$8 sps:$4 sm:$0xff]   ;;  %v13210_v62 = vrot.slane %v13208_v35, 4 }
 0x503   : > { %14377 = vmatprep.subr.bf16.mxu0 %v20344_v0  ;;  %v18189_v0 = vcombine.high %v13202_v26, %v13205_v53  ;;  %v18137_v12 = vrot.slane %v13090_v7, 9  ;;  %v9111_v7 = vld [vmem:[#allocation3 + $0x18] sm:$0xff] }
 0x504   : > { %v13212_v58 = vsel %vm23732_vm2, %v13210_v62, %v13211_v40  ;;  %v20414_v62 = vld [vmem:[%s21220_s18 + $0x6b4] ss:$8 sps:$4 sm:$0xff]   ;;  %v9184_v33 = vshrl.u32 %v9111_v7, 16 }
 0x506   : > { %14378 = vmatpush1.bf16.msra.mxu0 %v20342_v29  ;;  %v23831_v29 = vsel %vm23732_vm2, %v18137_v12, %v13208_v35  ;;  %v13099_v12 = vld [vmem:[#allocation3 + $0xd8] sm:$0xee] }
 0x507   : > { %14379 = vmatprep.subr.bf16.mxu0 %v20352_v28  ;;  %v13215_v28 = vrot.slane %v23642_v47, 5  ;;  %v18191_v61 = vcombine.high %v23831_v29, %v13212_v58  ;;  %v18190_v43 = vcombine.low %v23831_v29, %v13212_v58  ;;  %v9187_v29 = vshll.u32 %v9111_v7, 16 }
 0x508   : > { %8974 = vmatmul.mubr.bf16.gmra.mrb[36].mxu1 %v17686_v34  ;;  %v13095_v34 = vld [vmem:[#allocation3 + $0xb8] sm:$0x11]  ;;  %v18140_v57 = vrot.slane %v13099_v12, 9  ;;  %v9217_v7 = vshll.u32 %v23806_v56, 16 }
 0x509   : > { %13647 = vmatmul.mubr.bf16.gmra.mrb[4].mxu0 %v18182_v41  ;;  %8983 = vmatprep.mubr.bf16.mxu1 %v17689_v39  ;;  %v20396_v41 = vld [vmem:[%s21220_s18 + $0x684] ss:$8 sps:$4 sm:$0xff]   ;;  %v17692_v39 = vcombine.low %v8491_v52, %v23812_v22  ;;  %v13218_v47 = vrot.slane %v13095_v34, 5 }
 0x50a   : > { %13656 = vmatprep.mubr.bf16.mxu0 %v18185_v11  ;;  %14380 = vmatpush1.bf16.msra.mxu0 %v20350_v25  ;;  %v18188_v11 = vcombine.low %v13202_v26, %v13205_v53  ;;  %v9109_v25 = vld [vmem:[#allocation3 + $0x8] sm:$0xff] }
 0x50b   : > { %14381 = vmatprep.subr.bf16.mxu0 %v20360_v20  ;;  %v13217_v20 = vrot.slane %v13215_v28, 4  ;;  %v9169_v54 = vshll.u32 %v9109_v25, 16  ;;  %v9173_v18 = vshrl.u32 %v9109_v25, 16 }
 0x50d   : > { %v9171_v52 = vrot.slane %v9169_v54, 5  ;;  %v9175_v26 = vrot.slane %v9173_v18, 4 }
 0x50e   : > { %14382 = vmatpush1.bf16.msra.mxu0 %v20358_v21  ;;  %v23846_v21 = vld [vmem:[#allocation3 + $0x158] sm:$0xff] }
 0x50f   : > { %14383 = vmatprep.subr.bf16.mxu0 %v20368_v63  ;;  %v13222_v63 = vrot.slane %v23675_v48, 5  ;;  %v20408_v48 = vld [vmem:[%s21220_s18 + $0x6a4] ss:$8 sps:$4 sm:$0xff]   ;;  %v17697_v53 = vcombine.high %v23844_v19, %v23846_v21 }
 0x510   : > { %8984 = vmatmul.mubr.bf16.gmra.mrb[40].mxu1 %v17688_v3  ;;  %v23851_v3 = vsel %vm23732_vm2, %v18138_v60, %v13215_v28  ;;  %v17696_v28 = vcombine.low %v23844_v19, %v23846_v21  ;;  %v20420_v60 = vld [vmem:[%s21220_s18 + $0x6c4] ss:$8 sps:$4 sm:$0xff]  }
 0x511   : > { %13657 = vmatmul.mubr.bf16.gmra.mrb[8].mxu0 %v18184_v13  ;;  %8993 = vmatprep.mubr.bf16.mxu1 %v17691_v50  ;;  %v23855_v13 = vsel %vm23732_vm2, %v13217_v20, %v13218_v47  ;;  %v13098_v50 = vld [vmem:[#allocation3 + $0xd0] sm:$0x11]  ;;  %v23877_v34 = vsel %vm23732_vm2, %v18139_v27, %v13222_v63  ;;  %v9221_v27 = vshrl.u32 %v23806_v56, 16 }
 0x512   : > { %13666 = vmatprep.mubr.bf16.mxu0 %v18187_v5  ;;  %14384 = vmatpush1.bf16.msra.mxu0 %v20366_v9  ;;  %v9110_v5 = vld [vmem:[#allocation3 + $0x10] sm:$0x11]  ;;  %v9162_v9 = vrot.slane %v9160_v24, 4  ;;  %v18193_v35 = vcombine.high %v23851_v3, %v23855_v13 }
 0x513   : > { %14385 = vmatprep.subr.bf16.mxu0 %v20376_v51  ;;  %v9165_v51 = vrot.slane %v9163_v17, 5  ;;  %v9113_v17 = vld [vmem:[#allocation3 + $0x28] sm:$0x11] }
 0x515   : > { %v9166_v40 = vor.u32 %v9165_v51, %v9162_v9  ;;  %v9203_v9 = vshll.u32 %v9113_v17, 16  ;;  %v23916_v51 = vld [vmem:[#allocation3 + $0x50] sm:$0xff]  ;;  %v13107_v17 = vld [vmem:[#allocation3 + $0x118] sm:$0x11] }
 0x516   : > { %14386 = vmatpush1.bf16.msra.mxu0 %v20374_v14  ;;  %v13229_v14 = vrot.slane %v23757_v55, 5  ;;  %v23869_v55 = vld [vmem:[#allocation3 + $0x168] sm:$0xff] }
 0x517   : > { %14387 = vmatprep.subr.bf16.mxu0 %v20384_v15  ;;  %v13224_v15 = vrot.slane %v13222_v63, 4  ;;  %v9167_v20 = vrot.slane %v9166_v40, 4 }
 0x518   : > { %8994 = vmatmul.mubr.bf16.gmra.mrb[44].mxu1 %v17690_v38  ;;  %v13225_v38 = vrot.slane %v13098_v50, 5  ;;  %v23896_v63 = vsel %vm23732_vm2, %v18140_v57, %v13229_v14  ;;  %v13236_v50 = vrot.slane %v23775_v10, 5  ;;  %v24196_v10 = vld [vmem:[#allocation3 + $0x158] sm:$0xff] }
 0x519   : > { %13667 = vmatmul.mubr.bf16.gmra.mrb[12].mxu0 %v18186_v30  ;;  %9003 = vmatprep.mubr.bf16.mxu1 %v17693_v46  ;;  %v9112_v30 = vld [vmem:[#allocation3 + $0x20] sm:$0xff]  ;;  %v20406_v46 = vld [vmem:[%s21220_s18 + $0x6a0] ss:$8 sps:$4 sm:$0xff]  }
 0x51a   : > { %13676 = vmatprep.mubr.bf16.mxu0 %v18189_v0  ;;  %14388 = vmatpush1.bf16.msra.mxu0 %v20382_v16  ;;  %v9179_v0 = vshll.u32 %v9110_v5, 16  ;;  %v9176_v16 = vor.u32 %v9175_v26, %v9171_v52  ;;  %v9193_v58 = vshll.u32 %v9112_v30, 16  ;;  %v9197_v4 = vshrl.u32 %v9112_v30, 16  ;;  %v23905_v5 = vld [vmem:[#allocation3 + $0x48] sm:$0xff] }
 0x51b   : > { %14389 = vmatprep.subr.bf16.mxu0 %v20390_v49  ;;  %v13101_v49 = vld [vmem:[#allocation3 + $0xe8] sm:$0x11]  ;;  %v13238_v12 = vrot.slane %v13236_v50, 4  ;;  %v9232_v57 = vshrl.u32 %v23905_v5, 16 }
 0x51c   : > { %v13232_v25 = vrot.slane %v13101_v49, 5  ;;  %v9177_v47 = vrot.slane %v9176_v16, 4  ;;  %v23891_v54 = vrot.slane %v9193_v58, 5  ;;  %v9199_v18 = vrot.slane %v9197_v4, 4 }
 0x51d   : > { %v9205_v16 = vrot.slane %v9203_v9, 5 }
 0x51e   : > { %14390 = vmatpush1.bf16.msra.mxu0 %v20388_v1  ;;  %v23873_v1 = vld [vmem:[#allocation3 + $0x170] sm:$0xff]  ;;  %v9200_v26 = vor.u32 %v9199_v18, %v23891_v54  ;;  %v13250_v18 = vrot.slane %v23812_v22, 5 }
 0x51f   : > { %14391 = vmatprep.subr.bf16.mxu0 %v20396_v41  ;;  %v23881_v41 = vsel %vm23732_vm2, %v13224_v15, %v13225_v38  ;;  %v17699_v19 = vcombine.high %v23869_v55, %v23873_v1  ;;  %v13243_v15 = vrot.slane %v23793_v42, 5  ;;  %v20424_v38 = vld [vmem:[%s21220_s18 + $0x6d0] ss:$8 sps:$4 sm:$0xff]   ;;  %v17698_v30 = vcombine.low %v23869_v55, %v23873_v1 }
 0x520   : > { %9004 = vmatmul.mubr.bf16.gmra.mrb[48].mxu1 %v17692_v39  ;;  %v13231_v39 = vrot.slane %v13229_v14, 4  ;;  %v18195_v24 = vcombine.high %v23877_v34, %v23881_v41  ;;  %v9201_v55 = vrot.slane %v9200_v26, 4  ;;  %v20444_v14 = vld [vmem:[%s21220_s18 + $0x294] ss:$8 sps:$4 sm:$0xff]  }
 0x521   : > { %13677 = vmatmul.mubr.bf16.gmra.mrb[16].mxu0 %v18188_v11  ;;  %9013 = vmatprep.mubr.bf16.mxu1 %v17695_v8  ;;  %v20412_v11 = vld [vmem:[%s21220_s18 + $0x6b0] ss:$8 sps:$4 sm:$0xff]   ;;  %v18192_v8 = vcombine.low %v23851_v3, %v23855_v13  ;;  %v23902_v13 = vld [vmem:[#allocation3 + $0xf0] sm:$0xee] }
 0x522   : > { %13686 = vmatprep.mubr.bf16.mxu0 %v18191_v61  ;;  %14392 = vmatpush1.bf16.msra.mxu0 %v20394_v44  ;;  %v9181_v61 = vrot.slane %v9179_v0, 5  ;;  %v9186_v44 = vrot.slane %v9184_v33, 4  ;;  %v23900_v3 = vsel %vm23732_vm2, %v13231_v39, %v13232_v25  ;;  %v18141_v49 = vrot.slane %v23902_v13, 9 }
 0x523   : > { %14393 = vmatprep.subr.bf16.mxu0 %v20402_v37  ;;  %v9189_v37 = vrot.slane %v9187_v29, 5  ;;  %v18197_v0 = vcombine.high %v23896_v63, %v23900_v3  ;;  %v9223_v39 = vrot.slane %v9221_v27, 4  ;;  %v9235_v25 = vshll.u32 %v23905_v5, 16  ;;  %v9119_v27 = vld [vmem:[#allocation3 + $0x58] sm:$0x11] }
 0x524   : > { %v23967_v13 = vsel %vm23509_vm7, %v9201_v55, %v9205_v16  ;;  %v23977_v9 = vsel %vm23732_vm2, %v18141_v49, %v13236_v50  ;;  %v13108_v55 = vld [vmem:[#allocation3 + $0x120] sm:$0xee] }
 0x526   : > { %14394 = vmatpush1.bf16.msra.mxu0 %v20400_v2  ;;  %v20426_v2 = vld [vmem:[%s21220_s18 + $0x6d4] ss:$8 sps:$4 sm:$0xff]  }
 0x527   : > { %14395 = vmatprep.subr.bf16.mxu0 %v20408_v48  ;;  %v9190_v48 = vor.u32 %v9189_v37, %v9186_v44  ;;  %v9245_v44 = vshrl.u32 %v23916_v51, 16  ;;  %v18196_v37 = vcombine.low %v23896_v63, %v23900_v3  ;;  %v23970_v3 = vld [vmem:[#allocation3 + $0x80] sm:$0xff] }
 0x528   : > { %9014 = vmatmul.mubr.bf16.gmra.mrb[52].mxu1 %v17694_v36  ;;  %v23910_v36 = vsel %vm23509_vm7, %v9167_v20, %v9171_v52  ;;  %v9211_v52 = vshll.u32 %v23804_v59, 16  ;;  %v13245_v20 = vrot.slane %v13243_v15, 4 }
 0x529   : > { %13687 = vmatmul.mubr.bf16.gmra.mrb[20].mxu0 %v18190_v43  ;;  %9023 = vmatprep.mubr.bf16.mxu1 %v17697_v53  ;;  %v23914_v43 = vsel %vm23509_vm7, %v9177_v47, %v9181_v61  ;;  %v13104_v53 = vld [vmem:[#allocation3 + $0x100] sm:$0x11]  ;;  %v9191_v29 = vrot.slane %v9190_v48, 4  ;;  %v9241_v47 = vshll.u32 %v23916_v51, 16 }
 0x52a   : > { %13696 = vmatprep.mubr.bf16.mxu0 %v18193_v35  ;;  %14396 = vmatpush1.bf16.msra.mxu0 %v20406_v46  ;;  %v9208_v35 = vshrl.u32 %v23804_v59, 16  ;;  %v18194_v46 = vcombine.low %v23877_v34, %v23881_v41  ;;  %v17765_v40 = vcombine.high %v23910_v36, %v23914_v43  ;;  %v13239_v33 = vrot.slane %v13104_v53, 5  ;;  %v23941_v34 = vld [vmem:[#allocation3 + $0x68] sm:$0xff]  ;;  %v9116_v61 = vld [vmem:[#allocation3 + $0x40] sm:$0x11] }
 0x52b   : > { %14397 = vmatprep.subr.bf16.mxu0 %v20414_v62  ;;  %v20432_v62 = vld [vmem:[%s21220_s18 + $0x6e4] ss:$8 sps:$4 sm:$0xff]   ;;  %v9213_v4 = vrot.slane %v9211_v52, 5  ;;  %v23943_v41 = vrot.slane %v9217_v7, 5  ;;  %v9227_v63 = vshll.u32 %v9116_v61, 16  ;;  %v9234_v53 = vrot.slane %v9232_v57, 4 }
 0x52c   : > { %v9210_v58 = vrot.slane %v9208_v35, 4  ;;  %v23981_v26 = vsel %vm23732_vm2, %v13238_v12, %v13239_v33  ;;  %v9237_v35 = vrot.slane %v9235_v25, 5  ;;  %v20448_v52 = vld [vmem:[%s21220_s18 + $0x704] ss:$8 sps:$4 sm:$0xff]   ;;  %v17764_v7 = vcombine.low %v23910_v36, %v23914_v43  ;;  %v13110_v61 = vld [vmem:[#allocation3 + $0x130] sm:$0x11] }
 0x52d   : > { %v9224_v48 = vor.u32 %v9223_v39, %v23943_v41  ;;  %v9229_v33 = vrot.slane %v9227_v63, 5  ;;  %v18198_v36 = vcombine.low %v23977_v9, %v23981_v26  ;;  %v24000_v39 = vld [vmem:[#allocation3 + $0x98] sm:$0xff] }
 0x52e   : > { %14398 = vmatpush1.bf16.msra.mxu0 %v20412_v11  ;;  %v20430_v11 = vld [vmem:[%s21220_s18 + $0x6e0] ss:$8 sps:$4 sm:$0xff]   ;;  %v9238_v43 = vor.u32 %v9237_v35, %v9234_v53  ;;  %v24034_v35 = vld [vmem:[#allocation3 + $0xa8] sm:$0xff] }
 0x52f   : > { %14399 = vmatprep.subr.bf16.mxu0 %v20420_v60  ;;  %v20435_v60 = vld [vmem:[%s21220_s18 + $0x6f4] ss:$8 sps:$4 sm:$0xff]   ;;  %v9225_v49 = vrot.slane %v9224_v48, 4  ;;  %v13257_v48 = vrot.slane %v23827_v31, 5 }
 0x530   : > { %9024 = vmatmul.mubr.bf16.gmra.mrb[56].mxu1 %v17696_v28  ;;  %v23939_v28 = vld [vmem:[#allocation3 + $0x60] sm:$0xff]  ;;  %v9239_v63 = vrot.slane %v9238_v43, 4  ;;  %v13113_v43 = vld [vmem:[#allocation3 + $0x148] sm:$0x11] }
 0x531   : > { %13697 = vmatmul.mubr.bf16.gmra.mrb[24].mxu0 %v18192_v8  ;;  %9033 = vmatprep.mubr.bf16.mxu1 %v17699_v19  ;;  %v23960_v19 = vsel %vm23509_vm7, %v9191_v29, %v23891_v54  ;;  %v20433_v54 = vld [vmem:[%s21220_s18 + $0x6f0] ss:$8 sps:$4 sm:$0xff]   ;;  %v9251_v29 = vshll.u32 %v9119_v27, 16  ;;  %v9256_v57 = vshrl.u32 %v23939_v28, 16  ;;  %v9259_v25 = vshll.u32 %v23939_v28, 16 }
 0x532   : > { %13706 = vmatprep.mubr.bf16.mxu0 %v18195_v24  ;;  %14400 = vmatpush1.bf16.msra.mxu0 %v20418_v6  ;;  %v13105_v24 = vld [vmem:[#allocation3 + $0x108] sm:$0xee]  ;;  %v23963_v6 = vld [vmem:[#allocation3 + $0x78] sm:$0xff]  ;;  %v17767_v50 = vcombine.high %v23960_v19, %v23967_v13 }
 0x533   : > { %14401 = vmatprep.subr.bf16.mxu0 %v20426_v2  ;;  %v9214_v2 = vor.u32 %v9213_v4, %v9210_v58  ;;  %v18142_v12 = vrot.slane %v13105_v24, 9  ;;  %v13252_v58 = vrot.slane %v13250_v18, 4  ;;  %v23998_v4 = vld [vmem:[#allocation3 + $0x90] sm:$0xff]  ;;  %v9265_v24 = vshll.u32 %v23941_v34, 16 }
 0x534   : > { %v9258_v53 = vrot.slane %v9256_v57, 4  ;;  %v9280_v22 = vshrl.u32 %v23963_v6, 16 }
 0x535   : > { %v9215_v16 = vrot.slane %v9214_v2, 4  ;;  %v17766_v2 = vcombine.low %v23960_v19, %v23967_v13  ;;  %v9267_v27 = vrot.slane %v9265_v24, 5  ;;  %v13264_v24 = vrot.slane %v23846_v21, 5 }
 0x536   : > { %14402 = vmatpush1.bf16.msra.mxu0 %v20424_v38  ;;  %v9243_v38 = vrot.slane %v9241_v47, 5  ;;  %v20391_v47 = vld [vmem:[%s21220_s18 + $0x210] ss:$8 sps:$4 sm:$0xff]  }
 0x537   : > { %14403 = vmatprep.subr.bf16.mxu0 %v20432_v62  ;;  %v13246_v62 = vrot.slane %v13107_v17, 5  ;;  %v9269_v17 = vshrl.u32 %v23941_v34, 16  ;;  %v24024_v42 = vsel %vm23509_vm7, %v9215_v16, %v23943_v41  ;;  %v9261_v41 = vrot.slane %v9259_v25, 5  ;;  %v20403_v25 = vld [vmem:[%s21220_s18 + $0x230] ss:$8 sps:$4 sm:$0xff]  }
 0x538   : > { %9034 = vmatmul.mubr.bf16.gmra.mrb[60].mxu1 %v17698_v30  ;;  %v9247_v30 = vrot.slane %v9245_v44, 4  ;;  %v24011_v44 = vsel %vm23732_vm2, %v18142_v12, %v13243_v15  ;;  %v24028_v15 = vsel %vm23509_vm7, %v9225_v49, %v9229_v33  ;;  %v9122_v12 = vld [vmem:[#allocation3 + $0x70] sm:$0x11]  ;;  %v13111_v49 = vld [vmem:[#allocation3 + $0x138] sm:$0xee] }
 0x539   : > { %13707 = vmatmul.mubr.bf16.gmra.mrb[28].mxu0 %v18194_v46  ;;  %9896 = vmatprep.mubr.bf16.mxu1 %v17765_v40  ;;  %v20385_v46 = vld [vmem:[%s21220_s18 + $0x200] ss:$8 sps:$4 sm:$0xff]   ;;  %v18199_v40 = vcombine.high %v23977_v9, %v23981_v26  ;;  %v18143_v9 = vrot.slane %v13108_v55, 9  ;;  %v13253_v26 = vrot.slane %v13110_v61, 5  ;;  %v24068_v61 = vld [vmem:[#allocation3 + $0xc8] sm:$0xff] }
 0x53a   : > { %13716 = vmatprep.mubr.bf16.mxu0 %v18197_v0  ;;  %14404 = vmatpush1.bf16.msra.mxu0 %v20430_v11  ;;  %v20393_v0 = vld [vmem:[%s21220_s18 + $0x214] ss:$8 sps:$4 sm:$0xff]   ;;  %v9248_v11 = vor.u32 %v9247_v30, %v9243_v38  ;;  %v9271_v30 = vrot.slane %v9269_v17, 4 }
 0x53b   : > { %14405 = vmatprep.subr.bf16.mxu0 %v20435_v60  ;;  %v24056_v16 = vsel %vm23732_vm2, %v13252_v58, %v13253_v26  ;;  %v9275_v58 = vshll.u32 %v9122_v12, 16  ;;  %v13260_v26 = vrot.slane %v13113_v43, 5  ;;  %v20429_v17 = vld [vmem:[%s21220_s18 + $0x274] ss:$8 sps:$4 sm:$0xff]   ;;  %v20438_v60 = vld [vmem:[%s21220_s18 + $0x280] ss:$8 sps:$4 sm:$0xff]  }
 0x53c   : > { %v9249_v13 = vrot.slane %v9248_v11, 4  ;;  %v9272_v55 = vor.u32 %v9271_v30, %v9267_v27  ;;  %v9293_v11 = vshrl.u32 %v23970_v3, 16 }
 0x53e   : > { %14406 = vmatpush1.bf16.msra.mxu0 %v20433_v54  ;;  %v9253_v54 = vrot.slane %v9251_v29, 5  ;;  %v9283_v29 = vshll.u32 %v23963_v6, 16 }
 0x53f   : > { %15513 = vmatprep.subr.bf16.mxu0 %v20448_v52  ;;  %v24036_v52 = vld [vmem:[#allocation3 + $0xb0] sm:$0xff] }
 0x540   : > { %9897 = vmatmul.mubr.bf16.vlgmr.msra.gmra.mrb[0].mxu1 %v17764_v7  ;;  %v17769_v7 = vcombine.high %v24024_v42, %v24028_v15  ;;  %v24060_v33 = vsel %vm23509_vm7, %v9249_v13, %v9253_v54  ;;  %v9125_v54 = vld [vmem:[#allocation3 + $0x88] sm:$0x11]  ;;  %v9282_v13 = vrot.slane %v9280_v22, 4 }
 0x541   : > { %13717 = vmatmul.mubr.bf16.gmra.mrb[32].mxu0 %v18196_v37  ;;  %10782 = vmatpush1.bf16.msra.mxu1 %v20385_v46  ;;  %v24015_v37 = vsel %vm23732_vm2, %v13245_v20, %v13246_v62  ;;  %v20399_v20 = vld [vmem:[%s21220_s18 + $0x224] ss:$8 sps:$4 sm:$0xff]   ;;  %v24046_v62 = vsel %vm23509_vm7, %v9239_v63, %v9243_v38  ;;  %v9262_v38 = vor.u32 %v9261_v41, %v9258_v53  ;;  %v9285_v53 = vrot.slane %v9283_v29, 5  ;;  %v13114_v29 = vld [vmem:[#allocation3 + $0x150] sm:$0xee] }
 0x542   : > { %9906 = vmatprep.mubr.bf16.mxu1 %v17767_v50  ;;  %13726 = vmatprep.mubr.bf16.mxu0 %v18199_v40  ;;  %v18201_v19 = vcombine.high %v24011_v44, %v24015_v37  ;;  %v20397_v50 = vld [vmem:[%s21220_s18 + $0x220] ss:$8 sps:$4 sm:$0xff]   ;;  %v24052_v40 = vsel %vm23732_vm2, %v18143_v9, %v13250_v18  ;;  %v24064_v18 = vld [vmem:[#allocation3 + $0xc0] sm:$0xff]  ;;  %v18200_v57 = vcombine.low %v24011_v44, %v24015_v37  ;;  %v18144_v44 = vrot.slane %v13111_v49, 9 }
 0x543   : > { %10783 = vmatprep.subr.bf16.mxu1 %v20393_v0  ;;  %v20405_v0 = vld [vmem:[%s21220_s18 + $0x234] ss:$8 sps:$4 sm:$0xff]   ;;  %v18203_v63 = vcombine.high %v24052_v40, %v24056_v16  ;;  %v20411_v37 = vld [vmem:[%s21220_s18 + $0x244] ss:$8 sps:$4 sm:$0xff]   ;;  %v9263_v9 = vrot.slane %v9262_v38, 4  ;;  %v9273_v41 = vrot.slane %v9272_v55, 4 }
 0x544   : > { %v9299_v12 = vshll.u32 %v9125_v54, 16  ;;  %v13266_v49 = vrot.slane %v13264_v24, 4  ;;  %v20417_v38 = vld [vmem:[%s21220_s18 + $0x254] ss:$8 sps:$4 sm:$0xff]   ;;  %v13271_v55 = vrot.slane %v23873_v1, 5  ;;  %v24144_v46 = vld [vmem:[#allocation3 + $0x120] sm:$0xff] }
 0x545   : > { %10784 = vmatpush1.bf16.msra.mxu1 %v20391_v47  ;;  %v13259_v47 = vrot.slane %v13257_v48, 4  ;;  %v24103_v22 = vsel %vm23509_vm7, %v9263_v9, %v9267_v27  ;;  %v9304_v27 = vshrl.u32 %v23998_v4, 16  ;;  %v18145_v9 = vrot.slane %v13114_v29, 9  ;;  %v24189_v29 = vld [vmem:[#allocation3 + $0x188] sm:$0xff] }
 0x546   : > { %10785 = vmatprep.subr.bf16.mxu1 %v20399_v20  ;;  %v17771_v20 = vcombine.high %v24046_v62, %v24060_v33  ;;  %v9301_v54 = vrot.slane %v9299_v12, 5 }
 0x547   : > { %v24107_v31 = vsel %vm23732_vm2, %v13259_v47, %v13260_v26  ;;  %v20415_v47 = vld [vmem:[%s21220_s18 + $0x250] ss:$8 sps:$4 sm:$0xff]   ;;  %v20423_v26 = vld [vmem:[%s21220_s18 + $0x264] ss:$8 sps:$4 sm:$0xff]  }
 0x548   : > { %9907 = vmatmul.mubr.bf16.gmra.mrb[4].mxu1 %v17766_v2  ;;  %v17768_v2 = vcombine.low %v24024_v42, %v24028_v15  ;;  %v9295_v42 = vrot.slane %v9293_v11, 4  ;;  %v24086_v15 = vld [vmem:[#allocation3 + $0xd8] sm:$0xff]  ;;  %v13116_v11 = vld [vmem:[#allocation3 + $0x160] sm:$0x11] }
 0x549   : > { %13727 = vmatmul.mubr.bf16.gmra.mrb[36].mxu0 %v18198_v36  ;;  %9916 = vmatprep.mubr.bf16.mxu1 %v17769_v7  ;;  %v9289_v36 = vshll.u32 %v23970_v3, 16  ;;  %v9277_v7 = vrot.slane %v9275_v58, 5 }
 0x54a   : > { %13736 = vmatprep.mubr.bf16.mxu0 %v18201_v19  ;;  %10786 = vmatpush1.bf16.msra.mxu1 %v20397_v50  ;;  %v20409_v19 = vld [vmem:[%s21220_s18 + $0x240] ss:$8 sps:$4 sm:$0xff]   ;;  %v24088_v50 = vld [vmem:[#allocation3 + $0xe0] sm:$0xff] }
 0x54b   : > { %10787 = vmatprep.subr.bf16.mxu1 %v20405_v0  ;;  %v9291_v30 = vrot.slane %v9289_v36, 5  ;;  %v24094_v0 = vsel %vm23732_vm2, %v18144_v44, %v13257_v48  ;;  %v9286_v48 = vor.u32 %v9285_v53, %v9282_v13  ;;  %v24112_v58 = vsel %vm23509_vm7, %v9273_v41, %v9277_v7  ;;  %v24123_v44 = vld [vmem:[#allocation3 + $0xf8] sm:$0xff]  ;;  %v9128_v41 = vld [vmem:[#allocation3 + $0xa0] sm:$0x11]  ;;  %v24134_v7 = vld [vmem:[#allocation3 + $0x108] sm:$0xff] }
 0x54c   : > { %v13267_v53 = vrot.slane %v13116_v11, 5  ;;  %v24154_v11 = vld [vmem:[#allocation3 + $0x128] sm:$0xff]  ;;  %v9323_v21 = vshll.u32 %v9128_v41, 16 }
 0x54d   : > { %v9296_v36 = vor.u32 %v9295_v42, %v9291_v30  ;;  %v9287_v13 = vrot.slane %v9286_v48, 4  ;;  %v9306_v42 = vrot.slane %v9304_v27, 4  ;;  %v24150_v48 = vsel %vm23732_vm2, %v18145_v9, %v13264_v24  ;;  %v13117_v24 = vld [vmem:[#allocation3 + $0x168] sm:$0xee]  ;;  %v24174_v9 = vld [vmem:[#allocation3 + $0x140] sm:$0xff] }
 0x54e   : > { %10788 = vmatpush1.bf16.msra.mxu1 %v20403_v25  ;;  %v18202_v25 = vcombine.low %v24052_v40, %v24056_v16  ;;  %v17773_v16 = vcombine.high %v24103_v22, %v24112_v58  ;;  %v18146_v41 = vrot.slane %v13117_v24, 9 }
 0x54f   : > { %10789 = vmatprep.subr.bf16.mxu1 %v20411_v37  ;;  %v17770_v37 = vcombine.low %v24046_v62, %v24060_v33  ;;  %v24136_v62 = vld [vmem:[#allocation3 + $0x110] sm:$0xff]  ;;  %v9297_v33 = vrot.slane %v9296_v36, 4  ;;  %v13273_v36 = vrot.slane %v13271_v55, 4  ;;  %v24158_v27 = vsel %vm23509_vm7, %v9287_v13, %v9291_v30 }
 0x550   : > { %9917 = vmatmul.mubr.bf16.gmra.mrb[8].mxu1 %v17768_v2  ;;  %v9313_v2 = vshll.u32 %v24000_v39, 16  ;;  %v9337_v13 = vshll.u32 %v24036_v52, 16 }
 0x551   : > { %13737 = vmatmul.mubr.bf16.gmra.mrb[40].mxu0 %v18200_v57  ;;  %9926 = vmatprep.mubr.bf16.mxu1 %v17771_v20  ;;  %v9307_v57 = vshll.u32 %v23998_v4, 16  ;;  %v9317_v20 = vshrl.u32 %v24000_v39, 16  ;;  %v24170_v30 = vsel %vm23509_vm7, %v9297_v33, %v9301_v54  ;;  %v9131_v33 = vld [vmem:[#allocation3 + $0xb8] sm:$0x11]  ;;  %v24192_v54 = vld [vmem:[#allocation3 + $0x150] sm:$0xff] }
 0x552   : > { %13746 = vmatprep.mubr.bf16.mxu0 %v18203_v63  ;;  %10790 = vmatpush1.bf16.msra.mxu1 %v20409_v19  ;;  %v24121_v63 = vld [vmem:[#allocation3 + $0xf0] sm:$0xff]  ;;  %v18205_v19 = vcombine.high %v24094_v0, %v24107_v31  ;;  %v24141_v40 = vrot.slane %v9313_v2, 5  ;;  %v24164_v2 = vld [vmem:[#allocation3 + $0x138] sm:$0xff] }
 0x553   : > { %10791 = vmatprep.subr.bf16.mxu1 %v20417_v38  ;;  %v9309_v12 = vrot.slane %v9307_v57, 5  ;;  %v20421_v38 = vld [vmem:[%s21220_s18 + $0x260] ss:$8 sps:$4 sm:$0xff]   ;;  %v9319_v43 = vrot.slane %v9317_v20, 4  ;;  %v24162_v57 = vsel %vm23732_vm2, %v13266_v49, %v13267_v53  ;;  %v9328_v49 = vshrl.u32 %v24034_v35, 16 }
 0x554   : > { %v18204_v53 = vcombine.low %v24094_v0, %v24107_v31  ;;  %v17775_v0 = vcombine.high %v24158_v27, %v24170_v30 }
 0x556   : > { %10792 = vmatpush1.bf16.msra.mxu1 %v20415_v47  ;;  %v13119_v47 = vld [vmem:[#allocation3 + $0x178] sm:$0x11] }
 0x557   : > { %10793 = vmatprep.subr.bf16.mxu1 %v20423_v26  ;;  %v9320_v26 = vor.u32 %v9319_v43, %v24141_v40  ;;  %v17772_v43 = vcombine.low %v24103_v22, %v24112_v58  ;;  %v13274_v20 = vrot.slane %v13119_v47, 5  ;;  %v9339_v58 = vrot.slane %v9337_v13, 5 }
 0x558   : > { %9927 = vmatmul.mubr.bf16.gmra.mrb[12].mxu1 %v17770_v37  ;;  %v9331_v37 = vshll.u32 %v24034_v35, 16  ;;  %v9347_v47 = vshll.u32 %v9131_v33, 16  ;;  %v13278_v13 = vrot.slane %v24189_v29, 5  ;;  %v9365_v33 = vshrl.u32 %v24068_v61, 16 }
 0x559   : > { %13747 = vmatmul.mubr.bf16.gmra.mrb[44].mxu0 %v18202_v25  ;;  %9936 = vmatprep.mubr.bf16.mxu1 %v17773_v16  ;;  %v9310_v25 = vor.u32 %v9309_v12, %v9306_v42  ;;  %v9341_v16 = vshrl.u32 %v24036_v52, 16  ;;  %v20440_v42 = vld [vmem:[%s21220_s18 + $0x284] ss:$8 sps:$4 sm:$0xff]   ;;  %v18207_v12 = vcombine.high %v24150_v48, %v24162_v57  ;;  %v9321_v22 = vrot.slane %v9320_v26, 4  ;;  %v13122_v26 = vld [vmem:[#allocation3 + $0x190] sm:$0x11] }
 0x55a   : > { %13756 = vmatprep.mubr.bf16.mxu0 %v18205_v19  ;;  %10794 = vmatpush1.bf16.msra.mxu1 %v20421_v38  ;;  %v20427_v19 = vld [vmem:[%s21220_s18 + $0x270] ss:$8 sps:$4 sm:$0xff]   ;;  %v9325_v38 = vrot.slane %v9323_v21, 5  ;;  %v9333_v24 = vrot.slane %v9331_v37, 5 }
 0x55b   : > { %10795 = vmatprep.subr.bf16.mxu1 %v20429_v17  ;;  %v9311_v31 = vrot.slane %v9310_v25, 4  ;;  %v9330_v17 = vrot.slane %v9328_v49, 4  ;;  %v9343_v8 = vrot.slane %v9341_v16, 4  ;;  %v24205_v25 = vsel %vm23732_vm2, %v18146_v41, %v13271_v55  ;;  %v13120_v37 = vld [vmem:[#allocation3 + $0x180] sm:$0xee] }
 0x55c   : > { %v24209_v49 = vsel %vm23732_vm2, %v13273_v36, %v13274_v20  ;;  %v9355_v55 = vshll.u32 %v24064_v18, 16  ;;  %v20452_v41 = vld [vmem:[%s21220_s18 + $0x2a4] ss:$8 sps:$4 sm:$0xff]   ;;  %v24223_v36 = vsel %vm23509_vm7, %v9321_v22, %v9325_v38  ;;  %v9361_v20 = vshll.u32 %v24068_v61, 16  ;;  %v24233_v38 = vld [vmem:[#allocation3 + $0x170] sm:$0xff] }
 0x55d   : > { %v24215_v16 = vsel %vm23509_vm7, %v9311_v31, %v24141_v40  ;;  %v9334_v1 = vor.u32 %v9333_v24, %v9330_v17  ;;  %v9344_v29 = vor.u32 %v9343_v8, %v9339_v58  ;;  %v17774_v40 = vcombine.low %v24158_v27, %v24170_v30  ;;  %v20450_v24 = vld [vmem:[%s21220_s18 + $0x2a0] ss:$8 sps:$4 sm:$0xff]  }
 0x55e   : > { %10796 = vmatpush1.bf16.msra.mxu1 %v20427_v19  ;;  %v9352_v19 = vshrl.u32 %v24064_v18, 16  ;;  %v18209_v8 = vcombine.high %v24205_v25, %v24209_v49  ;;  %v18147_v31 = vrot.slane %v13120_v37, 9  ;;  %v13280_v17 = vrot.slane %v13278_v13, 4 }
 0x55f   : > { %10797 = vmatprep.subr.bf16.mxu1 %v20440_v42  ;;  %v18206_v42 = vcombine.low %v24150_v48, %v24162_v57  ;;  %v17777_v27 = vcombine.high %v24215_v16, %v24223_v36  ;;  %v9335_v30 = vrot.slane %v9334_v1, 4  ;;  %v9357_v57 = vrot.slane %v9355_v55, 5 }
 0x560   : > { %9937 = vmatmul.mubr.bf16.gmra.mrb[16].mxu1 %v17772_v43  ;;  %v9349_v43 = vrot.slane %v9347_v47, 5  ;;  %v9354_v48 = vrot.slane %v9352_v19, 4  ;;  %v9345_v22 = vrot.slane %v9344_v29, 4  ;;  %v9367_v47 = vrot.slane %v9365_v33, 4 }
 0x561   : > { %13757 = vmatmul.mubr.bf16.gmra.mrb[48].mxu0 %v18204_v53  ;;  %9946 = vmatprep.mubr.bf16.mxu1 %v17775_v0  ;;  %v20442_v53 = vld [vmem:[%s21220_s18 + $0x290] ss:$8 sps:$4 sm:$0xff]   ;;  %v24245_v37 = vsel %vm23732_vm2, %v18147_v31, %v13278_v13  ;;  %v9376_v1 = vshrl.u32 %v24086_v15, 16  ;;  %v9340_v29 = vsel %vm23509_vm7, %v9335_v30, %v9339_v58  ;;  %v9389_v33 = vshrl.u32 %v24088_v50, 16 }
 0x562   : > { %13766 = vmatprep.mubr.bf16.mxu0 %v18207_v12  ;;  %10798 = vmatpush1.bf16.msra.mxu1 %v20438_v60  ;;  %v9134_v12 = vld [vmem:[#allocation3 + $0xd0] sm:$0x11]  ;;  %v24231_v0 = vld [vmem:[#allocation3 + $0x168] sm:$0xff]  ;;  %v13281_v60 = vrot.slane %v13122_v26, 5  ;;  %v9358_v55 = vor.u32 %v9357_v57, %v9354_v48  ;;  %v9350_v13 = vsel %vm23509_vm7, %v9345_v22, %v9349_v43 }
 0x563   : > { %10799 = vmatprep.subr.bf16.mxu1 %v20444_v14  ;;  %v9363_v14 = vrot.slane %v9361_v20, 5  ;;  %v18302_v21 = vcombine.low %v24231_v0, %v24233_v38  ;;  %v9371_v26 = vshll.u32 %v9134_v12, 16  ;;  %v18208_v12 = vcombine.low %v24205_v25, %v24209_v49  ;;  %v9137_v43 = vld [vmem:[#allocation3 + $0xe8] sm:$0x11]  ;;  %v20466_v22 = vld [vmem:[%s21220_s18 + $0x2c0] ss:$8 sps:$4 sm:$0xff]  }
 0x564   : > { %v24250_v19 = vsel %vm23732_vm2, %v13280_v17, %v13281_v60  ;;  %v9378_v17 = vrot.slane %v9376_v1, 4  ;;  %v17779_v60 = vcombine.high %v9340_v29, %v9350_v13  ;;  %v9391_v57 = vrot.slane %v9389_v33, 4 }
 0x565   : > { %v9368_v20 = vor.u32 %v9367_v47, %v9363_v14  ;;  %v18211_v58 = vcombine.high %v24245_v37, %v24250_v19  ;;  %v9373_v31 = vrot.slane %v9371_v26, 5  ;;  %v9400_v25 = vshrl.u32 %v24121_v63, 16 }
 0x566   : > { %10800 = vmatpush1.bf16.msra.mxu1 %v20442_v53  ;;  %v9379_v53 = vshll.u32 %v24086_v15, 16  ;;  %v9403_v49 = vshll.u32 %v24121_v63, 16  ;;  %v9395_v47 = vshll.u32 %v9137_v43, 16  ;;  %v17778_v33 = vcombine.low %v9340_v29, %v9350_v13  ;;  %v20492_v29 = vld [vmem:[%s21220_s18 + $0x2f4] ss:$8 sps:$4 sm:$0xff]  }
 0x567   : > { %10801 = vmatprep.subr.bf16.mxu1 %v20452_v41  ;;  %v9385_v41 = vshll.u32 %v24088_v50, 16  ;;  %v9369_v48 = vrot.slane %v9368_v20, 4  ;;  %v20484_v20 = vld [vmem:[%s21220_s18 + $0x2e4] ss:$8 sps:$4 sm:$0xff]   ;;  %v9427_v13 = vshll.u32 %v24134_v7, 16 }
 0x568   : > { %9947 = vmatmul.mubr.bf16.gmra.mrb[20].mxu1 %v17774_v40  ;;  %v20458_v40 = vld [vmem:[%s21220_s18 + $0x2b0] ss:$8 sps:$4 sm:$0xff]   ;;  %v9397_v43 = vrot.slane %v9395_v47, 5 }
 0x569   : > { %13767 = vmatmul.mubr.bf16.gmra.mrb[52].mxu0 %v18206_v42  ;;  %9956 = vmatprep.mubr.bf16.mxu1 %v17777_v27  ;;  %v20468_v42 = vld [vmem:[%s21220_s18 + $0x2c4] ss:$8 sps:$4 sm:$0xff]   ;;  %v9359_v27 = vrot.slane %v9358_v55, 4  ;;  %v9387_v30 = vrot.slane %v9385_v41, 5  ;;  %v9374_v26 = vsel %vm23509_vm7, %v9369_v48, %v9373_v31  ;;  %v9409_v55 = vshll.u32 %v24123_v44, 16 }
 0x56a   : > { %13776 = vmatprep.mubr.bf16.mxu0 %v18209_v8  ;;  %10802 = vmatpush1.bf16.msra.mxu1 %v20450_v24  ;;  %v17776_v8 = vcombine.low %v24215_v16, %v24223_v36  ;;  %v9381_v24 = vrot.slane %v9379_v53, 5  ;;  %v9413_v53 = vshrl.u32 %v24123_v44, 16  ;;  %v20474_v41 = vld [vmem:[%s21220_s18 + $0x2d0] ss:$8 sps:$4 sm:$0xff]   ;;  %v20482_v48 = vld [vmem:[%s21220_s18 + $0x2e0] ss:$8 sps:$4 sm:$0xff]  }
 0x56b   : > { %10803 = vmatprep.subr.bf16.mxu1 %v20460_v32  ;;  %v20476_v32 = vld [vmem:[%s21220_s18 + $0x2d4] ss:$8 sps:$4 sm:$0xff]   ;;  %v9364_v16 = vsel %vm23509_vm7, %v9359_v27, %v9363_v14  ;;  %v9392_v1 = vor.u32 %v9391_v57, %v9387_v30  ;;  %v9402_v14 = vrot.slane %v9400_v25, 4  ;;  %v9411_v27 = vrot.slane %v9409_v55, 5  ;;  %v9140_v57 = vld [vmem:[#allocation3 + $0x100] sm:$0x11] }
 0x56c   : > { %v9382_v36 = vor.u32 %v9381_v24, %v9378_v17  ;;  %v9415_v24 = vrot.slane %v9413_v53, 4  ;;  %v9419_v47 = vshll.u32 %v9140_v57, 16  ;;  %v9143_v55 = vld [vmem:[#allocation3 + $0x118] sm:$0x11]  ;;  %v9448_v57 = vshrl.u32 %v24144_v46, 16 }
 0x56d   : > { %v20500_v53 = vld [vmem:[%s21220_s18 + $0x304] ss:$8 sps:$4 sm:$0xff]  }
 0x56e   : > { %10804 = vmatpush1.bf16.msra.mxu1 %v20458_v40  ;;  %v18210_v40 = vcombine.low %v24245_v37, %v24250_v19  ;;  %v9383_v17 = vrot.slane %v9382_v36, 4  ;;  %v9424_v19 = vshrl.u32 %v24134_v7, 16  ;;  %v9416_v36 = vor.u32 %v9415_v24, %v9411_v27 }
 0x56f   : > { %10805 = vmatprep.subr.bf16.mxu1 %v20468_v42  ;;  %v9405_v42 = vrot.slane %v9403_v49, 5 }
 0x570   : > { %9957 = vmatmul.mubr.bf16.gmra.mrb[24].mxu1 %v17776_v8  ;;  %v20671_v8 = vld [vmem:[#allocation3 + $0x30] sm:$0xff]  ;;  %v9388_v25 = vsel %vm23509_vm7, %v9383_v17, %v9387_v30 }
 0x571   : > { %13777 = vmatmul.mubr.bf16.gmra.mrb[56].mxu0 %v18208_v12  ;;  %9966 = vmatprep.mubr.bf16.mxu1 %v17779_v60  ;;  %v17781_v12 = vcombine.high %v9364_v16, %v9374_v26  ;;  %v9393_v60 = vrot.slane %v9392_v1, 4  ;;  %v9406_v37 = vor.u32 %v9405_v42, %v9402_v14  ;;  %v20490_v1 = vld [vmem:[%s21220_s18 + $0x2f0] ss:$8 sps:$4 sm:$0xff]   ;;  %v9426_v14 = vrot.slane %v9424_v19, 4  ;;  %v20464_v19 = vld [vmem:[%s21220_s18 + $0x724] ss:$8 sps:$4 sm:$0xff]  }
 0x572   : > { %13786 = vmatprep.mubr.bf16.mxu0 %v18211_v58  ;;  %10806 = vmatpush1.bf16.msra.mxu1 %v20466_v22  ;;  %v20672_v58 = vld [vmem:[#allocation3 + $0x38] sm:$0xff]  ;;  %v9433_v22 = vshll.u32 %v24136_v62, 16  ;;  %v9429_v42 = vrot.slane %v9427_v13, 5 }
 0x573   : > { %10807 = vmatprep.subr.bf16.mxu1 %v20476_v32  ;;  %v18277_v31 = vcombine.high %v20671_v8, %v20672_v58  ;;  %v9437_v32 = vshrl.u32 %v24136_v62, 16  ;;  %v9398_v49 = vsel %vm23509_vm7, %v9393_v60, %v9397_v43  ;;  %v9417_v58 = vrot.slane %v9416_v36, 4  ;;  %v20456_v43 = vld [vmem:[%s21220_s18 + $0x714] ss:$8 sps:$4 sm:$0xff]   ;;  %v20454_v60 = vld [vmem:[%s21220_s18 + $0x710] ss:$8 sps:$4 sm:$0xff]  }
 0x574   : > { %v17783_v30 = vcombine.high %v9388_v25, %v9398_v49  ;;  %v9430_v24 = vor.u32 %v9429_v42, %v9426_v14  ;;  %v17782_v13 = vcombine.low %v9388_v25, %v9398_v49  ;;  %v26104_v25 = vcombine.low %v23905_v5, %v23916_v51 }
 0x575   : > { %v9439_v8 = vrot.slane %v9437_v32, 4  ;;  %v9472_v49 = vshrl.u32 %v24164_v2, 16  ;;  %v9475_v14 = vshll.u32 %v24164_v2, 16  ;;  %v9481_v42 = vshll.u32 %v24174_v9, 16 }
 0x576   : > { %10808 = vmatpush1.bf16.msra.mxu1 %v20474_v41  ;;  %v17780_v41 = vcombine.low %v9364_v16, %v9374_v26  ;;  %v26103_v16 = vcombine.low %v23804_v59, %v23806_v56  ;;  %v9443_v26 = vshll.u32 %v9143_v55, 16  ;;  %v9451_v59 = vshll.u32 %v24144_v46, 16  ;;  %v9146_v55 = vld [vmem:[#allocation3 + $0x130] sm:$0x11] }
 0x577   : > { %10809 = vmatprep.subr.bf16.mxu1 %v20484_v20  ;;  %v18279_v20 = vcombine.high %v23905_v5, %v23916_v51  ;;  %v9457_v56 = vshll.u32 %v24154_v11, 16  ;;  %v9431_v36 = vrot.slane %v9430_v24, 4  ;;  %v9477_v24 = vrot.slane %v9475_v14, 5 }
 0x578   : > { %9967 = vmatmul.mubr.bf16.gmra.mrb[28].mxu1 %v17778_v33  ;;  %v20446_v33 = vld [vmem:[%s21220_s18 + $0x700] ss:$8 sps:$4 sm:$0xff]   ;;  %v18285_v14 = vcombine.high %v23998_v4, %v24000_v39 }
 0x579   : > { %13787 = vmatmul.mubr.bf16.gmra.mrb[60].mxu0 %v18210_v40  ;;  %9976 = vmatprep.mubr.bf16.mxu1 %v17781_v12  ;;  %v9407_v40 = vrot.slane %v9406_v37, 4  ;;  %v9435_v12 = vrot.slane %v9433_v22, 5  ;;  %v9461_v37 = vshrl.u32 %v24154_v11, 16  ;;  %v20462_v22 = vld [vmem:[%s21220_s18 + $0x720] ss:$8 sps:$4 sm:$0xff]  }
 0x57a   : > { %14407 = vmatprep.mubr.bf16.mxu0 %v18277_v31  ;;  %10810 = vmatpush1.bf16.msra.mxu1 %v20482_v48  ;;  %v9421_v31 = vrot.slane %v9419_v47, 5 }
 0x57b   : > { %10811 = vmatprep.subr.bf16.mxu1 %v20492_v29  ;;  %v9412_v17 = vsel %vm23509_vm7, %v9407_v40, %v9411_v27  ;;  %v9440_v48 = vor.u32 %v9439_v8, %v9435_v12  ;;  %v18281_v27 = vcombine.high %v23939_v28, %v23941_v34  ;;  %v20472_v40 = vld [vmem:[%s21220_s18 + $0x734] ss:$8 sps:$4 sm:$0xff]   ;;  %v9485_v8 = vshrl.u32 %v24174_v9, 16 }
 0x57c   : > { %v9422_v29 = vsel %vm23509_vm7, %v9417_v58, %v9421_v31  ;;  %v9436_v58 = vsel %vm23509_vm7, %v9431_v36, %v9435_v12  ;;  %v9483_v12 = vrot.slane %v9481_v42, 5  ;;  %v20488_v36 = vld [vmem:[%s21220_s18 + $0x754] ss:$8 sps:$4 sm:$0xff]  }
 0x57d   : > { %v17785_v32 = vcombine.high %v9412_v17, %v9422_v29  ;;  %v9441_v47 = vrot.slane %v9440_v48, 4 }
 0x57e   : > { %10812 = vmatpush1.bf16.msra.mxu1 %v20490_v1  ;;  %v9445_v1 = vrot.slane %v9443_v26, 5  ;;  %v17784_v26 = vcombine.low %v9412_v17, %v9422_v29  ;;  %v26105_v17 = vcombine.low %v23939_v28, %v23941_v34  ;;  %v9505_v28 = vshll.u32 %v24196_v10, 16 }
 0x57f   : > { %11552 = vmatprep.subr.bf16.mxu1 %v20500_v53  ;;  %v9450_v53 = vrot.slane %v9448_v57, 4  ;;  %v20673_v57 = vld [vmem:[#allocation3 + $0x78] sm:$0xff]  ;;  %v9509_v34 = vshrl.u32 %v24196_v10, 16 }
 0x580   : > { %9977 = vmatmul.mubr.bf16.gmra.mrb[32].mxu1 %v17780_v41  ;;  %v9453_v41 = vrot.slane %v9451_v59, 5  ;;  %v9446_v31 = vsel %vm23509_vm7, %v9441_v47, %v9445_v1  ;;  %v20674_v59 = vld [vmem:[#allocation3 + $0x80] sm:$0xff] }
 0x581   : > { %14408 = vmatmul.mubr.bf16.vlgmr.msra.gmra.mrb[0].mxu0 %v26103_v16  ;;  %9986 = vmatprep.mubr.bf16.mxu1 %v17783_v30  ;;  %v9467_v30 = vshll.u32 %v9146_v55, 16  ;;  %v20480_v16 = vld [vmem:[%s21220_s18 + $0x744] ss:$8 sps:$4 sm:$0xff]   ;;  %v17787_v48 = vcombine.high %v9436_v58, %v9446_v31  ;;  %v9496_v55 = vshrl.u32 %v24192_v54, 16 }
 0x582   : > { %14417 = vmatprep.mubr.bf16.mxu0 %v18279_v20  ;;  %15514 = vmatpush1.bf16.msra.mxu0 %v20446_v33  ;;  %v9459_v20 = vrot.slane %v9457_v56, 5  ;;  %v9463_v33 = vrot.slane %v9461_v37, 4  ;;  %v9454_v5 = vor.u32 %v9453_v41, %v9450_v53  ;;  %v18283_v56 = vcombine.high %v20673_v57, %v20674_v59  ;;  %v9149_v37 = vld [vmem:[#allocation3 + $0x148] sm:$0x11] }
 0x583   : > { %15515 = vmatprep.subr.bf16.mxu0 %v20456_v43  ;;  %v20470_v43 = vld [vmem:[%s21220_s18 + $0x730] ss:$8 sps:$4 sm:$0xff]   ;;  %v9491_v47 = vshll.u32 %v9149_v37, 16  ;;  %v9499_v53 = vshll.u32 %v24192_v54, 16 }
 0x584   : > { %v9464_v51 = vor.u32 %v9463_v33, %v9459_v20 }
 0x585   : > { %v9493_v42 = vrot.slane %v9491_v47, 5 }
 0x586   : > { %15516 = vmatpush1.bf16.msra.mxu0 %v20454_v60  ;;  %v9474_v60 = vrot.slane %v9472_v49, 4  ;;  %v17786_v49 = vcombine.low %v9436_v58, %v9446_v31  ;;  %v26106_v58 = vcombine.low %v23963_v6, %v23970_v3  ;;  %v9533_v6 = vshrl.u32 %v24233_v38, 16  ;;  %v20502_v3 = vld [vmem:[%s21220_s18 + $0x770] ss:$8 sps:$4 sm:$0xff]  }
 0x587   : > { %15517 = vmatprep.subr.bf16.mxu0 %v20464_v19  ;;  %v9487_v19 = vrot.slane %v9485_v8, 4 }
 0x588   : > { %9987 = vmatmul.mubr.bf16.gmra.mrb[36].mxu1 %v17782_v13  ;;  %v9455_v13 = vrot.slane %v9454_v5, 4  ;;  %v9478_v29 = vor.u32 %v9477_v24, %v9474_v60  ;;  %v9498_v5 = vrot.slane %v9496_v55, 4  ;;  %v20494_v60 = vld [vmem:[%s21220_s18 + $0x760] ss:$8 sps:$4 sm:$0xff]   ;;  %v20504_v24 = vld [vmem:[%s21220_s18 + $0x774] ss:$8 sps:$4 sm:$0xff]  }
 0x589   : > { %14418 = vmatmul.mubr.bf16.gmra.mrb[4].mxu0 %v26104_v25  ;;  %9996 = vmatprep.mubr.bf16.mxu1 %v17785_v32  ;;  %v20478_v32 = vld [vmem:[%s21220_s18 + $0x740] ss:$8 sps:$4 sm:$0xff]   ;;  %v9488_v1 = vor.u32 %v9487_v19, %v9483_v12  ;;  %v20496_v25 = vld [vmem:[%s21220_s18 + $0x764] ss:$8 sps:$4 sm:$0xff]   ;;  %v9523_v19 = vshll.u32 %v24231_v0, 16 }
 0x58a   : > { %14427 = vmatprep.mubr.bf16.mxu0 %v18281_v27  ;;  %15518 = vmatpush1.bf16.msra.mxu0 %v20462_v22  ;;  %v9465_v27 = vrot.slane %v9464_v51, 4  ;;  %v9469_v22 = vrot.slane %v9467_v30, 5  ;;  %v9460_v41 = vsel %vm23509_vm7, %v9455_v13, %v9459_v20  ;;  %v9479_v30 = vrot.slane %v9478_v29, 4 }
 0x58b   : > { %15519 = vmatprep.subr.bf16.mxu0 %v20472_v40  ;;  %v20486_v40 = vld [vmem:[%s21220_s18 + $0x750] ss:$8 sps:$4 sm:$0xff]   ;;  %v9489_v8 = vrot.slane %v9488_v1, 4  ;;  %v9501_v51 = vrot.slane %v9499_v53, 5  ;;  %v9529_v13 = vshll.u32 %v24233_v38, 16  ;;  %v9525_v1 = vrot.slane %v9523_v19, 5 }
 0x58c   : > { %v9470_v33 = vsel %vm23509_vm7, %v9465_v27, %v9469_v22  ;;  %v9484_v31 = vsel %vm23509_vm7, %v9479_v30, %v9483_v12  ;;  %v20512_v12 = vld [vmem:[%s21220_s18 + $0x784] ss:$8 sps:$4 sm:$0xff]   ;;  %v18287_v22 = vcombine.high %v24034_v35, %v24036_v52  ;;  %v9535_v53 = vrot.slane %v9533_v6, 4 }
 0x58d   : > { %v17789_v20 = vcombine.high %v9460_v41, %v9470_v33  ;;  %v9502_v57 = vor.u32 %v9501_v51, %v9498_v5  ;;  %v17788_v27 = vcombine.low %v9460_v41, %v9470_v33  ;;  %v9531_v55 = vrot.slane %v9529_v13, 5 }
 0x58e   : > { %15520 = vmatpush1.bf16.msra.mxu0 %v20470_v43  ;;  %v9152_v43 = vld [vmem:[#allocation3 + $0x160] sm:$0x11]  ;;  %v26107_v41 = vcombine.low %v23998_v4, %v24000_v39  ;;  %v18289_v39 = vcombine.high %v24064_v18, %v24068_v61 }
 0x58f   : > { %15521 = vmatprep.subr.bf16.mxu0 %v20480_v16  ;;  %v9507_v16 = vrot.slane %v9505_v28, 5  ;;  %v9515_v59 = vshll.u32 %v9152_v43, 16  ;;  %v20510_v28 = vld [vmem:[%s21220_s18 + $0x780] ss:$8 sps:$4 sm:$0xff]  }
 0x590   : > { %9997 = vmatmul.mubr.bf16.gmra.mrb[40].mxu1 %v17784_v26  ;;  %v9511_v26 = vrot.slane %v9509_v34, 4  ;;  %v9155_v34 = vld [vmem:[#allocation3 + $0x178] sm:$0x11] }
 0x591   : > { %14428 = vmatmul.mubr.bf16.gmra.mrb[8].mxu0 %v26105_v17  ;;  %10006 = vmatprep.mubr.bf16.mxu1 %v17787_v48  ;;  %v9494_v48 = vsel %vm23509_vm7, %v9489_v8, %v9493_v42  ;;  %v9517_v17 = vrot.slane %v9515_v59, 5  ;;  %v9539_v30 = vshll.u32 %v9155_v34, 16  ;;  %v20518_v42 = vld [vmem:[%s21220_s18 + $0x790] ss:$8 sps:$4 sm:$0xff]  }
 0x592   : > { %14437 = vmatprep.mubr.bf16.mxu0 %v18283_v56  ;;  %15522 = vmatpush1.bf16.msra.mxu0 %v20478_v32  ;;  %v9520_v56 = vshrl.u32 %v24231_v0, 16  ;;  %v9512_v37 = vor.u32 %v9511_v26, %v9507_v16  ;;  %v17791_v32 = vcombine.high %v9484_v31, %v9494_v48  ;;  %v17790_v8 = vcombine.low %v9484_v31, %v9494_v48  ;;  %v10250_v26 = vld [vmem:[#allocation3 + $0x8] sm:$0xff]  ;;  %v10249_v59 = vld [vmem:[#allocation3] sm:$0xee] }
 0x593   : > { %15523 = vmatprep.subr.bf16.mxu0 %v20488_v36  ;;  %v9503_v36 = vrot.slane %v9502_v57, 4  ;;  %v9541_v43 = vrot.slane %v9539_v30, 5  ;;  %v10350_v48 = vrot.slane %v10250_v26, 5  ;;  %v20534_v57 = vld [vmem:[%s21220_s18 + $0x7b0] ss:$8 sps:$4 sm:$0xff]   ;;  %v17828_v13 = vrot.slane %v10249_v59, 9 }
 0x594   : > { %v9522_v29 = vrot.slane %v9520_v56, 4  ;;  %v9513_v47 = vrot.slane %v9512_v37, 4  ;;  %v10251_v56 = vld [vmem:[#allocation3 + $0x10] sm:$0x11]  ;;  %v20544_v37 = vld [vmem:[%s21220_s18 + $0x7c4] ss:$8 sps:$4 sm:$0xff]  }
 0x595   : > { %v9508_v33 = vsel %vm23509_vm7, %v9503_v36, %v9507_v16  ;;  %v20526_v16 = vld [vmem:[%s21220_s18 + $0x7a0] ss:$8 sps:$4 sm:$0xff]   ;;  %v10352_v6 = vrot.slane %v10350_v48, 4  ;;  %v10351_v36 = vsel %vm23732_vm2, %v17828_v13, %v10350_v48  ;;  %v20506_v48 = vld [vmem:[%s21220_s18 + $0x310] ss:$8 sps:$4 sm:$0xff]  }
 0x596   : > { %15524 = vmatpush1.bf16.msra.mxu0 %v20486_v40  ;;  %v20520_v40 = vld [vmem:[%s21220_s18 + $0x794] ss:$8 sps:$4 sm:$0xff]  }
 0x597   : > { %15525 = vmatprep.subr.bf16.mxu0 %v20496_v25  ;;  %v9518_v25 = vsel %vm23509_vm7, %v9513_v47, %v9517_v17  ;;  %v20551_v47 = vld [vmem:[%s21220_s18 + $0x7d0] ss:$8 sps:$4 sm:$0xff]  }
 0x598   : > { %10007 = vmatmul.mubr.bf16.gmra.mrb[44].mxu1 %v17786_v49  ;;  %v9526_v49 = vor.u32 %v9525_v1, %v9522_v29  ;;  %v17793_v4 = vcombine.high %v9508_v33, %v9518_v25  ;;  %v17792_v19 = vcombine.low %v9508_v33, %v9518_v25  ;;  %v10252_v1 = vld [vmem:[#allocation3 + $0x18] sm:$0xee] }
 0x599   : > { %14438 = vmatmul.mubr.bf16.gmra.mrb[12].mxu0 %v26106_v58  ;;  %10016 = vmatprep.mubr.bf16.mxu1 %v17789_v20  ;;  %v20528_v20 = vld [vmem:[%s21220_s18 + $0x7a4] ss:$8 sps:$4 sm:$0xff]   ;;  %v17829_v34 = vrot.slane %v10252_v1, 9  ;;  %v20560_v33 = vld [vmem:[%s21220_s18 + $0x7e0] ss:$8 sps:$4 sm:$0xff]  }
 0x59a   : > { %14447 = vmatprep.mubr.bf16.mxu0 %v18285_v14  ;;  %15526 = vmatpush1.bf16.msra.mxu0 %v20494_v60  ;;  %v9536_v14 = vor.u32 %v9535_v53, %v9531_v55  ;;  %v9527_v5 = vrot.slane %v9526_v49, 4  ;;  %v20536_v60 = vld [vmem:[%s21220_s18 + $0x7b4] ss:$8 sps:$4 sm:$0xff]   ;;  %v20562_v53 = vld [vmem:[%s21220_s18 + $0x7e4] ss:$8 sps:$4 sm:$0xff]  }
 0x59b   : > { %15527 = vmatprep.subr.bf16.mxu0 %v20504_v24  ;;  %v26108_v24 = vcombine.low %v24034_v35, %v24036_v52  ;;  %v18291_v52 = vcombine.high %v24086_v15, %v24088_v50  ;;  %v24401_v25 = vld [vmem:[#allocation3 + $0x38] sm:$0xff]  ;;  %v20565_v49 = vld [vmem:[%s21220_s18 + $0x7f4] ss:$8 sps:$4 sm:$0xff]  }
 0x59c   : > { %v9537_v51 = vrot.slane %v9536_v14, 4  ;;  %v9532_v58 = vsel %vm23509_vm7, %v9527_v5, %v9531_v55  ;;  %v10254_v55 = vld [vmem:[#allocation3 + $0x28] sm:$0x11]  ;;  %v26110_v14 = vcombine.low %v24086_v15, %v24088_v50  ;;  %v20574_v5 = vld [vmem:[%s21220_s18 + $0x804] ss:$8 sps:$4 sm:$0xff]  }
 0x59d   : > { %v20498_v50 = vld [vmem:[%s21220_s18 + $0x300] ss:$8 sps:$4 sm:$0xff]  }
 0x59e   : > { %15528 = vmatpush1.bf16.msra.mxu0 %v20502_v3  ;;  %v9542_v31 = vsel %vm23509_vm7, %v9537_v51, %v9541_v43  ;;  %v10353_v3 = vrot.slane %v10251_v56, 5  ;;  %v18295_v43 = vcombine.high %v24134_v7, %v24136_v62  ;;  %v20516_v56 = vld [vmem:[%s21220_s18 + $0x324] ss:$8 sps:$4 sm:$0xff]  }
 0x59f   : > { %15529 = vmatprep.subr.bf16.mxu0 %v20512_v12  ;;  %v17795_v35 = vcombine.high %v9532_v58, %v9542_v31  ;;  %v20542_v12 = vld [vmem:[%s21220_s18 + $0x7c0] ss:$8 sps:$4 sm:$0xff]  }
 0x5a0   : > { %10017 = vmatmul.mubr.bf16.gmra.mrb[48].mxu1 %v17788_v27  ;;  %v10253_v27 = vld [vmem:[#allocation3 + $0x20] sm:$0xff]  ;;  %v10354_v17 = vsel %vm23732_vm2, %v10352_v6, %v10353_v3  ;;  %v20514_v6 = vld [vmem:[%s21220_s18 + $0x320] ss:$8 sps:$4 sm:$0xff]  }
 0x5a1   : > { %14448 = vmatmul.mubr.bf16.gmra.mrb[16].mxu0 %v26107_v41  ;;  %10026 = vmatprep.mubr.bf16.mxu1 %v17791_v32  ;;  %v26109_v32 = vcombine.low %v24064_v18, %v24068_v61  ;;  %v10357_v29 = vrot.slane %v10253_v27, 5  ;;  %v17877_v18 = vcombine.high %v10351_v36, %v10354_v17  ;;  %v18293_v61 = vcombine.high %v24121_v63, %v24123_v44 }
 0x5a2   : > { %14457 = vmatprep.mubr.bf16.mxu0 %v18287_v22  ;;  %15530 = vmatpush1.bf16.msra.mxu0 %v20510_v28  ;;  %v20553_v22 = vld [vmem:[%s21220_s18 + $0x7d4] ss:$8 sps:$4 sm:$0xff]   ;;  %v17794_v28 = vcombine.low %v9532_v58, %v9542_v31  ;;  %v10360_v41 = vrot.slane %v10254_v55, 5  ;;  %v17876_v15 = vcombine.low %v10351_v36, %v10354_v17  ;;  %v26111_v31 = vcombine.low %v24121_v63, %v24123_v44  ;;  %v10261_v55 = vld [vmem:[#allocation3 + $0x60] sm:$0xee] }
 0x5a3   : > { %15531 = vmatprep.subr.bf16.mxu0 %v20520_v40  ;;  %v10359_v40 = vrot.slane %v10357_v29, 4  ;;  %v10358_v30 = vsel %vm23732_vm2, %v17829_v34, %v10357_v29  ;;  %v24418_v58 = vld [vmem:[#allocation3 + $0x50] sm:$0xff]  ;;  %v26112_v36 = vcombine.low %v24134_v7, %v24136_v62 }
 0x5a6   : > { %15532 = vmatpush1.bf16.msra.mxu0 %v20518_v42  ;;  %v10361_v42 = vsel %vm23732_vm2, %v10359_v40, %v10360_v41  ;;  %v17832_v40 = vrot.slane %v10261_v55, 9 }
 0x5a7   : > { %15533 = vmatprep.subr.bf16.mxu0 %v20528_v20  ;;  %v10364_v20 = vrot.slane %v24401_v25, 5  ;;  %v17879_v51 = vcombine.high %v10358_v30, %v10361_v42  ;;  %v17878_v63 = vcombine.low %v10358_v30, %v10361_v42  ;;  %v20540_v30 = vld [vmem:[%s21220_s18 + $0x354] ss:$8 sps:$4 sm:$0xff]   ;;  %v26113_v42 = vcombine.low %v24144_v46, %v24154_v11 }
 0x5a8   : > { %10027 = vmatmul.mubr.bf16.gmra.mrb[52].mxu1 %v17790_v8  ;;  %v20563_v8 = vld [vmem:[%s21220_s18 + $0x7f0] ss:$8 sps:$4 sm:$0xff]  }
 0x5a9   : > { %14458 = vmatmul.mubr.bf16.gmra.mrb[20].mxu0 %v26108_v24  ;;  %10036 = vmatprep.mubr.bf16.mxu1 %v17793_v4  ;;  %v10255_v4 = vld [vmem:[#allocation3 + $0x30] sm:$0xee] }
 0x5aa   : > { %14467 = vmatprep.mubr.bf16.mxu0 %v18289_v39  ;;  %15534 = vmatpush1.bf16.msra.mxu0 %v20526_v16  ;;  %v10257_v39 = vld [vmem:[#allocation3 + $0x40] sm:$0x11]  ;;  %v20508_v16 = vld [vmem:[%s21220_s18 + $0x314] ss:$8 sps:$4 sm:$0xff]   ;;  %v17830_v26 = vrot.slane %v10255_v4, 9 }
 0x5ab   : > { %15535 = vmatprep.subr.bf16.mxu0 %v20536_v60  ;;  %v10366_v60 = vrot.slane %v10364_v20, 4  ;;  %v10367_v24 = vrot.slane %v10257_v39, 5  ;;  %v20538_v39 = vld [vmem:[%s21220_s18 + $0x350] ss:$8 sps:$4 sm:$0xff]  }
 0x5ad   : > { %v10368_v59 = vsel %vm23732_vm2, %v10366_v60, %v10367_v24  ;;  %v20547_v24 = vld [vmem:[%s21220_s18 + $0x360] ss:$8 sps:$4 sm:$0xff]  }
 0x5ae   : > { %15536 = vmatpush1.bf16.msra.mxu0 %v20534_v57  ;;  %v10365_v57 = vsel %vm23732_vm2, %v17830_v26, %v10364_v20 }
 0x5af   : > { %15537 = vmatprep.subr.bf16.mxu0 %v20544_v37  ;;  %v10371_v37 = vrot.slane %v24418_v58, 5  ;;  %v17881_v44 = vcombine.high %v10365_v57, %v10368_v59  ;;  %v17880_v7 = vcombine.low %v10365_v57, %v10368_v59  ;;  %v26114_v57 = vcombine.low %v24164_v2, %v24174_v9 }
 0x5b0   : > { %10037 = vmatmul.mubr.bf16.gmra.mrb[56].mxu1 %v17792_v19  ;;  %v10258_v19 = vld [vmem:[#allocation3 + $0x48] sm:$0xee] }
 0x5b1   : > { %14468 = vmatmul.mubr.bf16.gmra.mrb[24].mxu0 %v26109_v32  ;;  %10046 = vmatprep.mubr.bf16.mxu1 %v17795_v35  ;;  %v10260_v35 = vld [vmem:[#allocation3 + $0x58] sm:$0x11]  ;;  %v17831_v3 = vrot.slane %v10258_v19, 9  ;;  %v24433_v32 = vld [vmem:[#allocation3 + $0x68] sm:$0xff] }
 0x5b2   : > { %14477 = vmatprep.mubr.bf16.mxu0 %v18291_v52  ;;  %15538 = vmatpush1.bf16.msra.mxu0 %v20542_v12  ;;  %v20675_v52 = vld [vmem:[#allocation3 + $0x120] sm:$0xff]  ;;  %v10373_v12 = vrot.slane %v10371_v37, 4  ;;  %v10374_v27 = vrot.slane %v10260_v35, 5  ;;  %v10378_v1 = vrot.slane %v24433_v32, 5  ;;  %v10267_v35 = vld [vmem:[#allocation3 + $0x90] sm:$0xee] }
 0x5b3   : > { %15539 = vmatprep.subr.bf16.mxu0 %v20553_v22  ;;  %v18297_v13 = vcombine.high %v20675_v52, %v24154_v11  ;;  %v20524_v22 = vld [vmem:[%s21220_s18 + $0x334] ss:$8 sps:$4 sm:$0xff]   ;;  %v10372_v17 = vsel %vm23732_vm2, %v17831_v3, %v10371_v37  ;;  %v20556_v19 = vld [vmem:[%s21220_s18 + $0x370] ss:$8 sps:$4 sm:$0xff]   ;;  %v18303_v52 = vcombine.high %v24231_v0, %v24233_v38  ;;  %v17834_v3 = vrot.slane %v10267_v35, 9 }
 0x5b4   : > { %v10375_v29 = vsel %vm23732_vm2, %v10373_v12, %v10374_v27  ;;  %v10380_v41 = vrot.slane %v10378_v1, 4  ;;  %v10379_v20 = vsel %vm23732_vm2, %v17832_v40, %v10378_v1 }
 0x5b5   : > { %v17883_v62 = vcombine.high %v10372_v17, %v10375_v29  ;;  %v17882_v46 = vcombine.low %v10372_v17, %v10375_v29  ;;  %v26115_v17 = vcombine.low %v24192_v54, %v24196_v10  ;;  %v10270_v29 = vld [vmem:[#allocation3 + $0xa8] sm:$0xee] }
 0x5b6   : > { %15540 = vmatpush1.bf16.msra.mxu0 %v20551_v47  ;;  %v20522_v47 = vld [vmem:[%s21220_s18 + $0x330] ss:$8 sps:$4 sm:$0xff]  }
 0x5b7   : > { %15541 = vmatprep.subr.bf16.mxu0 %v20562_v53  ;;  %v10263_v53 = vld [vmem:[#allocation3 + $0x70] sm:$0x11]  ;;  %v20569_v54 = vld [vmem:[%s21220_s18 + $0x390] ss:$8 sps:$4 sm:$0xff]  }
 0x5b8   : > { %10047 = vmatmul.mubr.bf16.gmra.mrb[60].mxu1 %v17794_v28  ;;  %v20532_v28 = vld [vmem:[%s21220_s18 + $0x344] ss:$8 sps:$4 sm:$0xff]  }
 0x5b9   : > { %14478 = vmatmul.mubr.bf16.gmra.mrb[28].mxu0 %v26110_v14  ;;  %10813 = vmatprep.mubr.bf16.mxu1 %v17877_v18  ;;  %v20676_v18 = vld [vmem:[#allocation3 + $0x138] sm:$0xff]  ;;  %v24446_v14 = vld [vmem:[#allocation3 + $0x80] sm:$0xff] }
 0x5ba   : > { %14487 = vmatprep.mubr.bf16.mxu0 %v18293_v61  ;;  %15542 = vmatpush1.bf16.msra.mxu0 %v20560_v33  ;;  %v20677_v61 = vld [vmem:[#allocation3 + $0x140] sm:$0xff]  ;;  %v10381_v33 = vrot.slane %v10263_v53, 5  ;;  %v10385_v4 = vrot.slane %v24446_v14, 5  ;;  %v10272_v53 = vld [vmem:[#allocation3 + $0xb8] sm:$0x11] }
 0x5bb   : > { %15543 = vmatprep.subr.bf16.mxu0 %v20565_v49  ;;  %v18299_v34 = vcombine.high %v20676_v18, %v20677_v61  ;;  %v20530_v49 = vld [vmem:[%s21220_s18 + $0x340] ss:$8 sps:$4 sm:$0xff]   ;;  %v17835_v61 = vrot.slane %v10270_v29, 9 }
 0x5bc   : > { %v10387_v26 = vrot.slane %v10385_v4, 4  ;;  %v14765_v29 = vld [vmem:[#allocation3 + $0x58] sm:$0x11] }
 0x5be   : > { %15544 = vmatpush1.bf16.msra.mxu0 %v20563_v8  ;;  %v10382_v8 = vsel %vm23732_vm2, %v10380_v41, %v10381_v33  ;;  %v10402_v41 = vrot.slane %v10272_v53, 5  ;;  %v14866_v53 = vshll.u32 %v24433_v32, 16 }
 0x5bf   : > { %16427 = vmatprep.subr.bf16.mxu0 %v20574_v5  ;;  %v10264_v5 = vld [vmem:[#allocation3 + $0x78] sm:$0xee]  ;;  %v17885_v11 = vcombine.high %v10379_v20, %v10382_v8  ;;  %v17884_v2 = vcombine.low %v10379_v20, %v10382_v8 }
 0x5c0   : > { %10814 = vmatmul.mubr.bf16.vlgmr.msra.gmra.mrb[0].mxu1 %v17876_v15  ;;  %v10266_v15 = vld [vmem:[#allocation3 + $0x88] sm:$0x11] }
 0x5c1   : > { %14488 = vmatmul.mubr.bf16.gmra.mrb[32].mxu0 %v26111_v31  ;;  %11553 = vmatpush1.bf16.msra.mxu1 %v20498_v50  ;;  %v20549_v50 = vld [vmem:[%s21220_s18 + $0x364] ss:$8 sps:$4 sm:$0xff]   ;;  %v10388_v60 = vrot.slane %v10266_v15, 5  ;;  %v20583_v15 = vld [vmem:[%s21220_s18 + $0x3b4] ss:$8 sps:$4 sm:$0xff]  }
 0x5c2   : > { %10823 = vmatprep.mubr.bf16.mxu1 %v17879_v51  ;;  %14497 = vmatprep.mubr.bf16.mxu0 %v18295_v43  ;;  %v20678_v51 = vld [vmem:[#allocation3 + $0x150] sm:$0xff]  ;;  %v24461_v31 = vld [vmem:[#allocation3 + $0x98] sm:$0xff] }
 0x5c3   : > { %11554 = vmatprep.subr.bf16.mxu1 %v20508_v16  ;;  %v18301_v43 = vcombine.high %v20678_v51, %v24196_v10  ;;  %v17833_v16 = vrot.slane %v10264_v5, 9  ;;  %v10392_v37 = vrot.slane %v24461_v31, 5  ;;  %v20575_v5 = vld [vmem:[%s21220_s18 + $0x3a0] ss:$8 sps:$4 sm:$0xff]  }
 0x5c5   : > { %11555 = vmatpush1.bf16.msra.mxu1 %v20506_v48  ;;  %v20558_v48 = vld [vmem:[%s21220_s18 + $0x374] ss:$8 sps:$4 sm:$0xff]   ;;  %v10386_v59 = vsel %vm23732_vm2, %v17833_v16, %v10385_v4  ;;  %v10394_v12 = vrot.slane %v10392_v37, 4  ;;  %v14762_v4 = vld [vmem:[#allocation3 + $0x40] sm:$0x11] }
 0x5c6   : > { %11556 = vmatprep.subr.bf16.mxu1 %v20516_v56  ;;  %v10389_v56 = vsel %vm23732_vm2, %v10387_v26, %v10388_v60  ;;  %v14828_v0 = vshll.u32 %v14762_v4, 16  ;;  %v14842_v60 = vshll.u32 %v24418_v58, 16 }
 0x5c7   : > { %v17887_v9 = vcombine.high %v10386_v59, %v10389_v56  ;;  %v17886_v18 = vcombine.low %v10386_v59, %v10389_v56  ;;  %v20589_v59 = vld [vmem:[%s21220_s18 + $0x3c4] ss:$8 sps:$4 sm:$0xff]  }
 0x5c8   : > { %10824 = vmatmul.mubr.bf16.gmra.mrb[4].mxu1 %v17878_v63  ;;  %v10269_v63 = vld [vmem:[#allocation3 + $0xa0] sm:$0x11] }
 0x5c9   : > { %14498 = vmatmul.mubr.bf16.gmra.mrb[36].mxu0 %v26112_v36  ;;  %10833 = vmatprep.mubr.bf16.mxu1 %v17881_v44  ;;  %v20568_v44 = vld [vmem:[%s21220_s18 + $0x384] ss:$8 sps:$4 sm:$0xff]   ;;  %v10395_v27 = vrot.slane %v10269_v63, 5  ;;  %v20571_v36 = vld [vmem:[%s21220_s18 + $0x394] ss:$8 sps:$4 sm:$0xff]  }
 0x5ca   : > { %14507 = vmatprep.mubr.bf16.mxu0 %v18297_v13  ;;  %11557 = vmatpush1.bf16.msra.mxu1 %v20514_v6  ;;  %v24476_v13 = vld [vmem:[#allocation3 + $0xb0] sm:$0xff]  ;;  %v20550_v56 = vld [vmem:[#allocation3 + $0x180] ss:$8 sps:$4 sm:$0xff]  }
 0x5cb   : > { %11558 = vmatprep.subr.bf16.mxu1 %v20524_v22  ;;  %v24478_v6 = vld [vmem:[#allocation3 + $0x30] sm:$0xff]  ;;  %v24496_v10 = vsel %vm23732_vm2, %v10394_v12, %v10395_v27  ;;  %v24532_v12 = vld [vmem:[#allocation3 + $0xe0] sm:$0xff] }
 0x5cc   : > { %v20566_v22 = vld [vmem:[%s21220_s18 + $0x380] ss:$8 sps:$4 sm:$0xff]   ;;  %v14809_v1 = vshrl.u32 %v24478_v6, 16  ;;  %v14812_v55 = vshll.u32 %v24478_v6, 16 }
 0x5ce   : > { %11559 = vmatpush1.bf16.msra.mxu1 %v20522_v47  ;;  %v10399_v47 = vrot.slane %v24476_v13, 5  ;;  %v14811_v33 = vrot.slane %v14809_v1, 4 }
 0x5cf   : > { %11560 = vmatprep.subr.bf16.mxu1 %v20532_v28  ;;  %v14818_v28 = vshll.u32 %v24401_v25, 16 }
 0x5d0   : > { %10834 = vmatmul.mubr.bf16.gmra.mrb[8].mxu1 %v17880_v7  ;;  %v14822_v7 = vshrl.u32 %v24401_v25, 16  ;;  %v10401_v40 = vrot.slane %v10399_v47, 4  ;;  %v14814_v25 = vrot.slane %v14812_v55, 5  ;;  %v20595_v55 = vld [vmem:[%s21220_s18 + $0x3d4] ss:$8 sps:$4 sm:$0xff]  }
 0x5d1   : > { %14508 = vmatmul.mubr.bf16.gmra.mrb[40].mxu0 %v26113_v42  ;;  %10843 = vmatprep.mubr.bf16.mxu1 %v17883_v62  ;;  %v24492_v62 = vsel %vm23732_vm2, %v17834_v3, %v10392_v37  ;;  %v24502_v42 = vld [vmem:[#allocation3 + $0xc8] sm:$0xff]  ;;  %v14820_v20 = vrot.slane %v14818_v28, 5  ;;  %v14870_v28 = vshrl.u32 %v24433_v32, 16 }
 0x5d2   : > { %14517 = vmatprep.mubr.bf16.mxu0 %v18299_v34  ;;  %11561 = vmatpush1.bf16.msra.mxu1 %v20530_v49  ;;  %v20577_v34 = vld [vmem:[%s21220_s18 + $0x3a4] ss:$8 sps:$4 sm:$0xff]   ;;  %v17889_v49 = vcombine.high %v24492_v62, %v24496_v10  ;;  %v14824_v8 = vrot.slane %v14822_v7, 4  ;;  %v14815_v51 = vor.u32 %v14814_v25, %v14811_v33  ;;  %v10406_v16 = vrot.slane %v24502_v42, 5  ;;  %v20593_v33 = vld [vmem:[%s21220_s18 + $0x3d0] ss:$8 sps:$4 sm:$0xff]  }
 0x5d3   : > { %11562 = vmatprep.subr.bf16.mxu1 %v20540_v30  ;;  %v20545_v30 = vld [vmem:[#allocation3 + $0x184] ss:$8 sps:$4 sm:$0xff]  }
 0x5d4   : > { %v14825_v26 = vor.u32 %v14824_v8, %v14820_v20  ;;  %v14816_v63 = vrot.slane %v14815_v51, 4  ;;  %v20559_v8 = vld [vmem:[#allocation3 + $0x198] ss:$8 sps:$4 sm:$0xff]  }
 0x5d6   : > { %11563 = vmatpush1.bf16.msra.mxu1 %v20538_v39  ;;  %v24504_v39 = vld [vmem:[#allocation3 + $0x48] sm:$0xff] }
 0x5d7   : > { %11564 = vmatprep.subr.bf16.mxu1 %v20549_v50  ;;  %v24513_v50 = vsel %vm23732_vm2, %v17835_v61, %v10399_v47  ;;  %v14836_v38 = vshll.u32 %v24504_v39, 16  ;;  %v10278_v61 = vld [vmem:[#allocation3 + $0xe8] sm:$0x11] }
 0x5d8   : > { %10844 = vmatmul.mubr.bf16.gmra.mrb[12].mxu1 %v17882_v46  ;;  %v24517_v46 = vsel %vm23732_vm2, %v10401_v40, %v10402_v41  ;;  %v14852_v41 = vshll.u32 %v14765_v29, 16  ;;  %v20605_v29 = vld [vmem:[%s21220_s18 + $0x3f0] ss:$8 sps:$4 sm:$0xff]  }
 0x5d9   : > { %14518 = vmatmul.mubr.bf16.gmra.mrb[44].mxu0 %v26114_v57  ;;  %10853 = vmatprep.mubr.bf16.mxu1 %v17885_v11  ;;  %v10273_v11 = vld [vmem:[#allocation3 + $0xc0] sm:$0xee]  ;;  %v17888_v57 = vcombine.low %v24492_v62, %v24496_v10  ;;  %v17891_v37 = vcombine.high %v24513_v50, %v24517_v46  ;;  %v14838_v27 = vrot.slane %v14836_v38, 5  ;;  %v24552_v10 = vsel %vm23509_vm7, %v14816_v63, %v14820_v20 }
 0x5da   : > { %14527 = vmatprep.mubr.bf16.mxu0 %v18301_v43  ;;  %11565 = vmatpush1.bf16.msra.mxu1 %v20547_v24  ;;  %v10275_v43 = vld [vmem:[#allocation3 + $0xd0] sm:$0x11]  ;;  %v14846_v24 = vshrl.u32 %v24418_v58, 16  ;;  %v10408_v58 = vrot.slane %v10406_v16, 4  ;;  %v17890_v20 = vcombine.low %v24513_v50, %v24517_v46  ;;  %v14854_v38 = vrot.slane %v14852_v41, 5 }
 0x5db   : > { %11566 = vmatprep.subr.bf16.mxu1 %v20558_v48  ;;  %v20581_v48 = vld [vmem:[%s21220_s18 + $0x3b0] ss:$8 sps:$4 sm:$0xff]   ;;  %v10409_v35 = vrot.slane %v10275_v43, 5 }
 0x5dd   : > { %v24548_v62 = vsel %vm23732_vm2, %v10408_v58, %v10409_v35 }
 0x5de   : > { %11567 = vmatpush1.bf16.msra.mxu1 %v20556_v19  ;;  %v17836_v19 = vrot.slane %v10273_v11, 9  ;;  %v14872_v11 = vrot.slane %v14870_v28, 4 }
 0x5df   : > { %11568 = vmatprep.subr.bf16.mxu1 %v20568_v44  ;;  %v24530_v44 = vld [vmem:[#allocation3 + $0x60] sm:$0xff] }
 0x5e0   : > { %10854 = vmatmul.mubr.bf16.gmra.mrb[16].mxu1 %v17884_v2  ;;  %v20554_v2 = vld [vmem:[#allocation3 + $0x19c] ss:$8 sps:$4 sm:$0xff]   ;;  %v14857_v47 = vshrl.u32 %v24530_v44, 16  ;;  %v14860_v1 = vshll.u32 %v24530_v44, 16  ;;  %v24544_v7 = vsel %vm23732_vm2, %v17836_v19, %v10406_v16 }
 0x5e1   : > { %14528 = vmatmul.mubr.bf16.gmra.mrb[48].mxu0 %v26115_v17  ;;  %10863 = vmatprep.mubr.bf16.mxu1 %v17887_v9  ;;  %v14826_v9 = vrot.slane %v14825_v26, 4  ;;  %v20587_v17 = vld [vmem:[%s21220_s18 + $0x3c0] ss:$8 sps:$4 sm:$0xff]   ;;  %v17893_v4 = vcombine.high %v24544_v7, %v24548_v62  ;;  %v10416_v26 = vrot.slane %v10278_v61, 5 }
 0x5e2   : > { %14537 = vmatprep.mubr.bf16.mxu0 %v18303_v52  ;;  %11569 = vmatpush1.bf16.msra.mxu1 %v20566_v22  ;;  %v14830_v52 = vrot.slane %v14828_v0, 5  ;;  %v24534_v22 = vrot.slane %v14842_v60, 5  ;;  %v14859_v25 = vrot.slane %v14857_v47, 4  ;;  %v14768_v0 = vld [vmem:[#allocation3 + $0x70] sm:$0x11] }
 0x5e3   : > { %11570 = vmatprep.subr.bf16.mxu1 %v20571_v36  ;;  %v14848_v36 = vrot.slane %v14846_v24, 4  ;;  %v20599_v60 = vld [vmem:[%s21220_s18 + $0x3e0] ss:$8 sps:$4 sm:$0xff]   ;;  %v17892_v24 = vcombine.low %v24544_v7, %v24548_v62  ;;  %v14876_v35 = vshll.u32 %v14768_v0, 16 }
 0x5e4   : > { %v24557_v32 = vsel %vm23509_vm7, %v14826_v9, %v14830_v52 }
 0x5e5   : > { %v14849_v40 = vor.u32 %v14848_v36, %v24534_v22  ;;  %v18373_v51 = vcombine.high %v24552_v10, %v24557_v32  ;;  %v18372_v58 = vcombine.low %v24552_v10, %v24557_v32  ;;  %v14890_v36 = vshll.u32 %v24446_v14, 16  ;;  %v14771_v32 = vld [vmem:[#allocation3 + $0x88] sm:$0x11] }
 0x5e6   : > { %11571 = vmatpush1.bf16.msra.mxu1 %v20569_v54  ;;  %v10276_v54 = vld [vmem:[#allocation3 + $0xd8] sm:$0xee] }
 0x5e7   : > { %11572 = vmatprep.subr.bf16.mxu1 %v20577_v34  ;;  %v17837_v43 = vrot.slane %v10276_v54, 9  ;;  %v14850_v46 = vrot.slane %v14849_v40, 4  ;;  %v14892_v61 = vrot.slane %v14890_v36, 5  ;;  %v24608_v40 = vld [vmem:[#allocation3 + $0x90] sm:$0xff]  ;;  %v14774_v36 = vld [vmem:[#allocation3 + $0xa0] sm:$0x11] }
 0x5e8   : > { %10864 = vmatmul.mubr.bf16.gmra.mrb[20].mxu1 %v17886_v18  ;;  %v10413_v18 = vrot.slane %v24532_v12, 5 }
 0x5e9   : > { %14538 = vmatmul.mubr.bf16.gmra.mrb[52].mxu0 %v18302_v21  ;;  %10873 = vmatprep.mubr.bf16.mxu1 %v17889_v49  ;;  %v14833_v21 = vshrl.u32 %v24504_v39, 16  ;;  %v14862_v49 = vrot.slane %v14860_v1, 5 }
 0x5ea   : > { %14547 = vmatprep.mubr.bf16.mxu0 %v20545_v30  ;;  %11573 = vmatpush1.bf16.msra.mxu1 %v20575_v5  ;;  %v20601_v30 = vld [vmem:[%s21220_s18 + $0x3e4] ss:$8 sps:$4 sm:$0xff]   ;;  %v10415_v16 = vrot.slane %v10413_v18, 4  ;;  %v24583_v9 = vsel %vm23732_vm2, %v17837_v43, %v10413_v18  ;;  %v24606_v18 = vld [vmem:[#allocation3 + $0x110] sm:$0xff]  ;;  %v14905_v43 = vshrl.u32 %v24608_v40, 16 }
 0x5eb   : > { %11574 = vmatprep.subr.bf16.mxu1 %v20583_v15  ;;  %v14835_v3 = vrot.slane %v14833_v21, 4  ;;  %v24566_v5 = vld [vmem:[#allocation3 + $0xf8] sm:$0xff]  ;;  %v14868_v15 = vrot.slane %v14866_v53, 5 }
 0x5ec   : > { %v24570_v21 = vld [vmem:[#allocation3 + $0x78] sm:$0xff]  ;;  %v24587_v52 = vsel %vm23732_vm2, %v10415_v16, %v10416_v26  ;;  %v14908_v16 = vshll.u32 %v24608_v40, 16  ;;  %v20578_v26 = vld [vmem:[%s21220_s18 + $0x810] ss:$8 sps:$4 sm:$0xff]  }
 0x5ed   : > { %v14839_v34 = vor.u32 %v14838_v27, %v14835_v3  ;;  %v14873_v19 = vor.u32 %v14872_v11, %v14868_v15  ;;  %v14881_v63 = vshrl.u32 %v24570_v21, 16  ;;  %v24596_v27 = vsel %vm23509_vm7, %v14850_v46, %v14854_v38 }
 0x5ee   : > { %11575 = vmatpush1.bf16.msra.mxu1 %v20581_v48  ;;  %v10279_v48 = vld [vmem:[#allocation3 + $0xf0] sm:$0xee]  ;;  %v17895_v10 = vcombine.high %v24583_v9, %v24587_v52  ;;  %v10427_v11 = vrot.slane %v24606_v18, 5  ;;  %v14918_v46 = vshrl.u32 %v24461_v31, 16  ;;  %v17894_v38 = vcombine.low %v24583_v9, %v24587_v52  ;;  %v24646_v52 = vld [vmem:[#allocation3 + $0x128] sm:$0xff] }
 0x5ef   : > { %11576 = vmatprep.subr.bf16.mxu1 %v20589_v59  ;;  %v14840_v50 = vrot.slane %v14839_v34, 4  ;;  %v14863_v59 = vor.u32 %v14862_v49, %v14859_v25  ;;  %v17838_v47 = vrot.slane %v10279_v48, 9  ;;  %v14874_v28 = vrot.slane %v14873_v19, 4  ;;  %v20580_v25 = vld [vmem:[%s21220_s18 + $0x814] ss:$8 sps:$4 sm:$0xff]  }
 0x5f0   : > { %10874 = vmatmul.mubr.bf16.gmra.mrb[24].mxu1 %v17888_v57  ;;  %v10420_v57 = vrot.slane %v24566_v5, 5  ;;  %v14883_v7 = vrot.slane %v14881_v63, 4  ;;  %v20679_v49 = vld [vmem:[%s21220_s18 + $0x404] ss:$8 sps:$4 sm:$0xff]   ;;  %v10429_v19 = vrot.slane %v10427_v11, 4  ;;  %v14907_v63 = vrot.slane %v14905_v43, 4 }
 0x5f1   : > { %14548 = vmatmul.mubr.bf16.gmra.mrb[56].mxu0 %v20550_v56  ;;  %10883 = vmatprep.mubr.bf16.mxu1 %v17891_v37  ;;  %v20607_v56 = vld [vmem:[%s21220_s18 + $0x3f4] ss:$8 sps:$4 sm:$0xff]   ;;  %v10281_v37 = vld [vmem:[#allocation3 + $0x100] sm:$0x11]  ;;  %v24592_v3 = vsel %vm23509_vm7, %v14840_v50, %v24534_v22  ;;  %v14864_v53 = vrot.slane %v14863_v59, 4  ;;  %v14878_v22 = vrot.slane %v14876_v35, 5 }
 0x5f2   : > { %14557 = vmatprep.mubr.bf16.mxu0 %v20554_v2  ;;  %11577 = vmatpush1.bf16.msra.mxu1 %v20587_v17  ;;  %v14884_v2 = vshll.u32 %v24570_v21, 16  ;;  %v14894_v17 = vshrl.u32 %v24446_v14, 16  ;;  %v10422_v1 = vrot.slane %v10420_v57, 4  ;;  %v18375_v54 = vcombine.high %v24592_v3, %v24596_v27  ;;  %v20572_v14 = vld [vmem:[%s21220_s18 + $0x800] ss:$8 sps:$4 sm:$0xff]  }
 0x5f3   : > { %11578 = vmatprep.subr.bf16.mxu1 %v20595_v55  ;;  %v10423_v55 = vrot.slane %v10281_v37, 5  ;;  %v24612_v41 = vsel %vm23732_vm2, %v17838_v47, %v10420_v57  ;;  %v14914_v50 = vshll.u32 %v24461_v31, 16  ;;  %v20586_v48 = vld [vmem:[%s21220_s18 + $0x824] ss:$8 sps:$4 sm:$0xff]   ;;  %v24643_v31 = vld [vmem:[#allocation3 + $0xa8] sm:$0xff] }
 0x5f4   : > { %v14886_v62 = vrot.slane %v14884_v2, 5  ;;  %v14896_v34 = vrot.slane %v14894_v17, 4  ;;  %v14910_v2 = vrot.slane %v14908_v16, 5  ;;  %v20584_v9 = vld [vmem:[%s21220_s18 + $0x820] ss:$8 sps:$4 sm:$0xff]   ;;  %v14932_v47 = vshll.u32 %v24643_v31, 16 }
 0x5f5   : > { %v20592_v17 = vld [vmem:[%s21220_s18 + $0x834] ss:$8 sps:$4 sm:$0xff]  }
 0x5f6   : > { %11579 = vmatpush1.bf16.msra.mxu1 %v20593_v33  ;;  %v24616_v33 = vsel %vm23509_vm7, %v14864_v53, %v14868_v15  ;;  %v10284_v15 = vld [vmem:[#allocation3 + $0x118] sm:$0x11]  ;;  %v14897_v0 = vor.u32 %v14896_v34, %v14892_v61  ;;  %v14942_v53 = vshrl.u32 %v24476_v13, 16  ;;  %v20590_v34 = vld [vmem:[%s21220_s18 + $0x830] ss:$8 sps:$4 sm:$0xff]  }
 0x5f7   : > { %11580 = vmatprep.subr.bf16.mxu1 %v20601_v30  ;;  %v24622_v30 = vsel %vm23732_vm2, %v10422_v1, %v10423_v55  ;;  %v14938_v55 = vshll.u32 %v24476_v13, 16  ;;  %v10434_v13 = vrot.slane %v24646_v52, 5 }
 0x5f8   : > { %10884 = vmatmul.mubr.bf16.gmra.mrb[28].mxu1 %v17890_v20  ;;  %v24626_v20 = vsel %vm23509_vm7, %v14874_v28, %v14878_v22 }
 0x5f9   : > { %14558 = vmatmul.mubr.bf16.gmra.mrb[60].mxu0 %v20559_v8  ;;  %10893 = vmatprep.mubr.bf16.mxu1 %v17893_v4  ;;  %v10282_v8 = vld [vmem:[#allocation3 + $0x108] sm:$0xee]  ;;  %v14887_v4 = vor.u32 %v14886_v62, %v14883_v7  ;;  %v18377_v57 = vcombine.high %v24616_v33, %v24626_v20  ;;  %v10285_v7 = vld [vmem:[#allocation3 + $0x120] sm:$0xee]  ;;  %v14911_v62 = vor.u32 %v14910_v2, %v14907_v63 }
 0x5fa   : > { %15545 = vmatprep.mubr.bf16.mxu0 %v18373_v51  ;;  %11581 = vmatpush1.bf16.msra.mxu1 %v20599_v60  ;;  %v14900_v51 = vshll.u32 %v14771_v32, 16  ;;  %v18374_v60 = vcombine.low %v24592_v3, %v24596_v27  ;;  %v17839_v59 = vrot.slane %v10282_v8, 9  ;;  %v24648_v3 = vrot.slane %v14914_v50, 5  ;;  %v20598_v8 = vld [vmem:[%s21220_s18 + $0x844] ss:$8 sps:$4 sm:$0xff]  }
 0x5fb   : > { %11582 = vmatprep.subr.bf16.mxu1 %v20607_v56  ;;  %v10430_v56 = vrot.slane %v10284_v15, 5  ;;  %v14888_v37 = vrot.slane %v14887_v4, 4  ;;  %v14920_v27 = vrot.slane %v14918_v46, 4  ;;  %v14924_v32 = vshll.u32 %v14774_v36, 16  ;;  %v24679_v15 = vld [vmem:[#allocation3 + $0x140] sm:$0xff] }
 0x5fc   : > { %v14902_v35 = vrot.slane %v14900_v51, 5  ;;  %v24655_v1 = vsel %vm23732_vm2, %v17839_v59, %v10427_v11  ;;  %v18376_v4 = vcombine.low %v24616_v33, %v24626_v20  ;;  %v14940_v11 = vrot.slane %v14938_v55, 5  ;;  %v14777_v50 = vld [vmem:[#allocation3 + $0xb8] sm:$0x11]  ;;  %v24685_v46 = vld [vmem:[#allocation3 + $0xc0] sm:$0xff] }
 0x5fd   : > { %v24661_v28 = vsel %vm23732_vm2, %v10429_v19, %v10430_v56  ;;  %v24665_v22 = vsel %vm23509_vm7, %v14888_v37, %v14892_v61  ;;  %v17896_v61 = vcombine.low %v24612_v41, %v24622_v30  ;;  %v14944_v51 = vrot.slane %v14942_v53, 4  ;;  %v20596_v20 = vld [vmem:[%s21220_s18 + $0x840] ss:$8 sps:$4 sm:$0xff]   ;;  %v10290_v59 = vld [vmem:[#allocation3 + $0x148] sm:$0x11] }
 0x5fe   : > { %11583 = vmatpush1.bf16.msra.mxu1 %v20605_v29  ;;  %v14929_v29 = vshrl.u32 %v24643_v31, 16  ;;  %v17899_v43 = vcombine.high %v24655_v1, %v24661_v28  ;;  %v14926_v33 = vrot.slane %v14924_v32, 5  ;;  %v14948_v37 = vshll.u32 %v14777_v50, 16 }
 0x5ff   : > { %19263 = vmatprep.subr.bf16.mxu1 %v20679_v49  ;;  %v14934_v49 = vrot.slane %v14932_v47, 5  ;;  %v14945_v56 = vor.u32 %v14944_v51, %v14940_v11  ;;  %v14953_v19 = vshrl.u32 %v24685_v46, 16  ;;  %v17898_v63 = vcombine.low %v24655_v1, %v24661_v28  ;;  %v20602_v47 = vld [vmem:[%s21220_s18 + $0x850] ss:$8 sps:$4 sm:$0xff]   ;;  %v20610_v28 = vld [vmem:[%s21220_s18 + $0x864] ss:$8 sps:$4 sm:$0xff]  }
 0x600   : > { %10894 = vmatmul.mubr.bf16.gmra.mrb[32].mxu1 %v17892_v24  ;;  %v17897_v24 = vcombine.high %v24612_v41, %v24622_v30  ;;  %v10436_v41 = vrot.slane %v10434_v13, 4  ;;  %v14912_v30 = vrot.slane %v14911_v62, 4  ;;  %v10444_v55 = vrot.slane %v10290_v59, 5 }
 0x601   : > { %15546 = vmatmul.mubr.bf16.vlgmr.msra.gmra.mrb[0].mxu0 %v18372_v58  ;;  %10903 = vmatprep.mubr.bf16.mxu1 %v17895_v10  ;;  %v14898_v58 = vrot.slane %v14897_v0, 4  ;;  %v14955_v62 = vrot.slane %v14953_v19, 4 }
 0x602   : > { %15555 = vmatprep.mubr.bf16.mxu0 %v18375_v54  ;;  %16428 = vmatpush1.bf16.msra.mxu0 %v20572_v14  ;;  %v10287_v54 = vld [vmem:[#allocation3 + $0x130] sm:$0x11]  ;;  %v14921_v14 = vor.u32 %v14920_v27, %v24648_v3 }
 0x603   : > { %16429 = vmatprep.subr.bf16.mxu0 %v20580_v25  ;;  %v24669_v10 = vsel %vm23509_vm7, %v14898_v58, %v14902_v35  ;;  %v14931_v25 = vrot.slane %v14929_v29, 4  ;;  %v10437_v0 = vrot.slane %v10287_v54, 5  ;;  %v14956_v35 = vshll.u32 %v24685_v46, 16 }
 0x604   : > { %v18379_v16 = vcombine.high %v24665_v22, %v24669_v10  ;;  %v18378_v2 = vcombine.low %v24665_v22, %v24669_v10  ;;  %v14962_v58 = vshll.u32 %v24502_v42, 16  ;;  %v14946_v22 = vrot.slane %v14945_v56, 4  ;;  %v20621_v56 = vld [vmem:[%s21220_s18 + $0x884] ss:$8 sps:$4 sm:$0xff]  }
 0x605   : > { %v24704_v36 = vsel %vm23732_vm2, %v10436_v41, %v10437_v0  ;;  %v14958_v10 = vrot.slane %v14956_v35, 5 }
 0x606   : > { %16430 = vmatpush1.bf16.msra.mxu0 %v20578_v26  ;;  %v17840_v26 = vrot.slane %v10285_v7, 9  ;;  %v14950_v7 = vrot.slane %v14948_v37, 5 }
 0x607   : > { %16431 = vmatprep.subr.bf16.mxu0 %v20586_v48  ;;  %v14935_v48 = vor.u32 %v14934_v49, %v14931_v25  ;;  %v24723_v25 = vld [vmem:[#allocation3 + $0xd8] sm:$0xff]  ;;  %v14959_v0 = vor.u32 %v14958_v10, %v14955_v62 }
 0x608   : > { %10904 = vmatmul.mubr.bf16.gmra.mrb[36].mxu1 %v17894_v38  ;;  %v14922_v38 = vrot.slane %v14921_v14, 4  ;;  %v24700_v27 = vsel %vm23732_vm2, %v17840_v26, %v10434_v13  ;;  %v24721_v13 = vld [vmem:[#allocation3 + $0x158] sm:$0xff]  ;;  %v14964_v14 = vrot.slane %v14962_v58, 5 }
 0x609   : > { %15556 = vmatmul.mubr.bf16.gmra.mrb[4].mxu0 %v18374_v60  ;;  %10913 = vmatprep.mubr.bf16.mxu1 %v17897_v24  ;;  %v10288_v60 = vld [vmem:[#allocation3 + $0x138] sm:$0xee]  ;;  %v10441_v24 = vrot.slane %v24679_v15, 5  ;;  %v14936_v53 = vrot.slane %v14935_v48, 4  ;;  %v10448_v26 = vrot.slane %v24721_v13, 5  ;;  %v14960_v35 = vrot.slane %v14959_v0, 4 }
 0x60a   : > { %15565 = vmatprep.mubr.bf16.mxu0 %v18377_v57  ;;  %16432 = vmatpush1.bf16.msra.mxu0 %v20584_v9  ;;  %v20604_v57 = vld [vmem:[%s21220_s18 + $0x854] ss:$8 sps:$4 sm:$0xff]   ;;  %v14966_v9 = vshrl.u32 %v24502_v42, 16  ;;  %v24713_v29 = vsel %vm23509_vm7, %v14922_v38, %v14926_v33  ;;  %v17841_v42 = vrot.slane %v10288_v60, 9  ;;  %v20608_v49 = vld [vmem:[%s21220_s18 + $0x860] ss:$8 sps:$4 sm:$0xff]  }
 0x60b   : > { %16433 = vmatprep.subr.bf16.mxu0 %v20592_v17  ;;  %v24709_v17 = vsel %vm23509_vm7, %v14912_v30, %v24648_v3  ;;  %v10443_v1 = vrot.slane %v10441_v24, 4  ;;  %v17901_v3 = vcombine.high %v24700_v27, %v24704_v36  ;;  %v14977_v30 = vshrl.u32 %v24723_v25, 16  ;;  %v20614_v60 = vld [vmem:[%s21220_s18 + $0x870] ss:$8 sps:$4 sm:$0xff]  }
 0x60c   : > { %v18381_v54 = vcombine.high %v24709_v17, %v24713_v29  ;;  %v14968_v32 = vrot.slane %v14966_v9, 4  ;;  %v14980_v38 = vshll.u32 %v24723_v25, 16  ;;  %v14986_v33 = vshll.u32 %v24532_v12, 16  ;;  %v24760_v9 = vld [vmem:[#allocation3 + $0x170] sm:$0xff] }
 0x60d   : > { %v24737_v51 = vsel %vm23732_vm2, %v10443_v1, %v10444_v55  ;;  %v18380_v48 = vcombine.low %v24709_v17, %v24713_v29  ;;  %v10450_v19 = vrot.slane %v10448_v26, 4  ;;  %v14783_v17 = vld [vmem:[#allocation3 + $0xe8] sm:$0x11]  ;;  %v24780_v10 = vsel %vm23509_vm7, %v14960_v35, %v14964_v14 }
 0x60e   : > { %16434 = vmatpush1.bf16.msra.mxu0 %v20590_v34  ;;  %v14780_v34 = vld [vmem:[#allocation3 + $0xd0] sm:$0x11]  ;;  %v14969_v50 = vor.u32 %v14968_v32, %v14964_v14  ;;  %v24762_v29 = vrot.slane %v14986_v33, 5  ;;  %v10296_v32 = vld [vmem:[#allocation3 + $0x178] sm:$0x11] }
 0x60f   : > { %16435 = vmatprep.subr.bf16.mxu0 %v20598_v8  ;;  %v24728_v8 = vsel %vm23732_vm2, %v17841_v42, %v10441_v24  ;;  %v14972_v41 = vshll.u32 %v14780_v34, 16  ;;  %v17900_v24 = vcombine.low %v24700_v27, %v24704_v36  ;;  %v14979_v27 = vrot.slane %v14977_v30, 4  ;;  %v20619_v42 = vld [vmem:[%s21220_s18 + $0x880] ss:$8 sps:$4 sm:$0xff]   ;;  %v20631_v14 = vld [vmem:[%s21220_s18 + $0x8a4] ss:$8 sps:$4 sm:$0xff]  }
 0x610   : > { %10914 = vmatmul.mubr.bf16.gmra.mrb[40].mxu1 %v17896_v61  ;;  %v24732_v61 = vsel %vm23509_vm7, %v14936_v53, %v14940_v11  ;;  %v10293_v11 = vld [vmem:[#allocation3 + $0x160] sm:$0x11]  ;;  %v14982_v36 = vrot.slane %v14980_v38, 5  ;;  %v15010_v53 = vshll.u32 %v24566_v5, 16  ;;  %v10455_v34 = vrot.slane %v24760_v9, 5 }
 0x611   : > { %15566 = vmatmul.mubr.bf16.gmra.mrb[8].mxu0 %v18376_v4  ;;  %10923 = vmatprep.mubr.bf16.mxu1 %v17899_v43  ;;  %v20616_v4 = vld [vmem:[%s21220_s18 + $0x874] ss:$8 sps:$4 sm:$0xff]   ;;  %v24741_v43 = vsel %vm23509_vm7, %v14946_v22, %v14950_v7  ;;  %v14974_v58 = vrot.slane %v14972_v41, 5  ;;  %v17902_v41 = vcombine.low %v24728_v8, %v24737_v51  ;;  %v14786_v38 = vld [vmem:[#allocation3 + $0x100] sm:$0x11] }
 0x612   : > { %15575 = vmatprep.mubr.bf16.mxu0 %v18379_v16  ;;  %16436 = vmatpush1.bf16.msra.mxu0 %v20596_v20  ;;  %v10291_v16 = vld [vmem:[#allocation3 + $0x150] sm:$0xee]  ;;  %v14990_v20 = vshrl.u32 %v24532_v12, 16  ;;  %v18383_v59 = vcombine.high %v24732_v61, %v24741_v43  ;;  %v10451_v12 = vrot.slane %v10293_v11, 5  ;;  %v15012_v11 = vrot.slane %v15010_v53, 5 }
 0x613   : > { %16437 = vmatprep.subr.bf16.mxu0 %v20604_v57  ;;  %v17903_v57 = vcombine.high %v24728_v8, %v24737_v51  ;;  %v17842_v37 = vrot.slane %v10291_v16, 9  ;;  %v20626_v22 = vld [vmem:[%s21220_s18 + $0x894] ss:$8 sps:$4 sm:$0xff]   ;;  %v20624_v16 = vld [vmem:[%s21220_s18 + $0x890] ss:$8 sps:$4 sm:$0xff]   ;;  %v18382_v30 = vcombine.low %v24732_v61, %v24741_v43 }
 0x614   : > { %v24776_v62 = vsel %vm23732_vm2, %v10450_v19, %v10451_v12  ;;  %v20629_v51 = vld [vmem:[%s21220_s18 + $0x8a0] ss:$8 sps:$4 sm:$0xff]   ;;  %v20636_v19 = vld [vmem:[%s21220_s18 + $0x8b4] ss:$8 sps:$4 sm:$0xff]  }
 0x615   : > { %v24772_v7 = vsel %vm23732_vm2, %v17842_v37, %v10448_v26  ;;  %v15020_v37 = vshll.u32 %v14786_v38, 16  ;;  %v20644_v38 = vld [vmem:[%s21220_s18 + $0x8d0] ss:$8 sps:$4 sm:$0xff]  }
 0x616   : > { %16438 = vmatpush1.bf16.msra.mxu0 %v20602_v47  ;;  %v14992_v47 = vrot.slane %v14990_v20, 4  ;;  %v17905_v33 = vcombine.high %v24772_v7, %v24776_v62 }
 0x617   : > { %16439 = vmatprep.subr.bf16.mxu0 %v20610_v28  ;;  %v15014_v28 = vshrl.u32 %v24566_v5, 16  ;;  %v10294_v5 = vld [vmem:[#allocation3 + $0x168] sm:$0xee] }
 0x618   : > { %10924 = vmatmul.mubr.bf16.gmra.mrb[44].mxu1 %v17898_v63  ;;  %v24758_v63 = vld [vmem:[#allocation3 + $0xf0] sm:$0xff] }
 0x619   : > { %15576 = vmatmul.mubr.bf16.gmra.mrb[12].mxu0 %v18378_v2  ;;  %10933 = vmatprep.mubr.bf16.mxu1 %v17901_v3  ;;  %v14970_v2 = vrot.slane %v14969_v50, 4  ;;  %v15001_v1 = vshrl.u32 %v24758_v63, 16  ;;  %v15004_v55 = vshll.u32 %v24758_v63, 16  ;;  %v14983_v3 = vor.u32 %v14982_v36, %v14979_v27 }
 0x61a   : > { %15585 = vmatprep.mubr.bf16.mxu0 %v18381_v54  ;;  %16440 = vmatpush1.bf16.msra.mxu0 %v20608_v49  ;;  %v14993_v49 = vor.u32 %v14992_v47, %v24762_v29  ;;  %v15016_v50 = vrot.slane %v15014_v28, 4  ;;  %v17904_v27 = vcombine.low %v24772_v7, %v24776_v62  ;;  %v15022_v28 = vrot.slane %v15020_v37, 5 }
 0x61b   : > { %16441 = vmatprep.subr.bf16.mxu0 %v20616_v4  ;;  %v24784_v54 = vsel %vm23509_vm7, %v14970_v2, %v14974_v58  ;;  %v14996_v4 = vshll.u32 %v14783_v17, 16  ;;  %v15003_v26 = vrot.slane %v15001_v1, 4  ;;  %v15006_v0 = vrot.slane %v15004_v55, 5 }
 0x61c   : > { %v18385_v20 = vcombine.high %v24780_v10, %v24784_v54  ;;  %v15017_v43 = vor.u32 %v15016_v50, %v15012_v11  ;;  %v15034_v2 = vshll.u32 %v24606_v18, 16  ;;  %v15038_v58 = vshrl.u32 %v24606_v18, 16  ;;  %v20634_v18 = vld [vmem:[%s21220_s18 + $0x8b0] ss:$8 sps:$4 sm:$0xff]  }
 0x61d   : > { %v14998_v8 = vrot.slane %v14996_v4, 5  ;;  %v15007_v61 = vor.u32 %v15006_v0, %v15003_v26  ;;  %v18384_v1 = vcombine.low %v24780_v10, %v24784_v54  ;;  %v20639_v4 = vld [vmem:[%s21220_s18 + $0x8c0] ss:$8 sps:$4 sm:$0xff]   ;;  %v20646_v54 = vld [vmem:[%s21220_s18 + $0x8d4] ss:$8 sps:$4 sm:$0xff]  }
 0x61e   : > { %16442 = vmatpush1.bf16.msra.mxu0 %v20614_v60  ;;  %v17843_v60 = vrot.slane %v10294_v5, 9  ;;  %v15018_v53 = vrot.slane %v15017_v43, 4  ;;  %v15036_v5 = vrot.slane %v15034_v2, 5  ;;  %v20654_v2 = vld [vmem:[%s21220_s18 + $0x8f4] ss:$8 sps:$4 sm:$0xff]  }
 0x61f   : > { %16443 = vmatprep.subr.bf16.mxu0 %v20621_v56  ;;  %v14994_v56 = vrot.slane %v14993_v49, 4  ;;  %v24823_v55 = vrot.slane %v15007_v61, 4  ;;  %v24826_v49 = vld [vmem:[#allocation3 + $0x120] sm:$0xff] }
 0x620   : > { %10934 = vmatmul.mubr.bf16.gmra.mrb[48].mxu1 %v17900_v24  ;;  %v10458_v24 = vrot.slane %v10296_v32, 5  ;;  %v10456_v36 = vsel %vm23732_vm2, %v17843_v60, %v10455_v34  ;;  %v20651_v60 = vld [vmem:[%s21220_s18 + $0x8e4] ss:$8 sps:$4 sm:$0xff]  }
 0x621   : > { %15586 = vmatmul.mubr.bf16.gmra.mrb[16].mxu0 %v18380_v48  ;;  %10943 = vmatprep.mubr.bf16.mxu1 %v17903_v57  ;;  %v24798_v48 = vld [vmem:[#allocation3 + $0x108] sm:$0xff]  ;;  %v10457_v57 = vrot.slane %v10455_v34, 4  ;;  %v14789_v34 = vld [vmem:[#allocation3 + $0x118] sm:$0x11]  ;;  %v24832_v10 = vsel %vm23509_vm7, %v24823_v55, %v15012_v11  ;;  %v15052_v11 = vshll.u32 %v24826_v49, 16 }
 0x622   : > { %15595 = vmatprep.mubr.bf16.mxu0 %v18383_v59  ;;  %16444 = vmatpush1.bf16.msra.mxu0 %v20619_v42  ;;  %v24800_v59 = vrot.slane %v14983_v3, 4  ;;  %v15025_v12 = vshrl.u32 %v24798_v48, 16  ;;  %v15028_v35 = vshll.u32 %v24798_v48, 16  ;;  %v14999_v42 = vsel %vm23509_vm7, %v14994_v56, %v14998_v8 }
 0x623   : > { %16445 = vmatprep.subr.bf16.mxu0 %v20626_v22  ;;  %v10459_v17 = vsel %vm23732_vm2, %v10457_v57, %v10458_v24  ;;  %v20641_v22 = vld [vmem:[%s21220_s18 + $0x8c4] ss:$8 sps:$4 sm:$0xff]   ;;  %v15044_v50 = vshll.u32 %v14789_v34, 16  ;;  %v15054_v43 = vrot.slane %v15052_v11, 5  ;;  %v15110_v11 = vshrl.u32 %v24721_v13, 16 }
 0x624   : > { %v14989_v47 = vsel %vm23509_vm7, %v24800_v59, %v24762_v29  ;;  %v15027_v7 = vrot.slane %v15025_v12, 4  ;;  %v15030_v62 = vrot.slane %v15028_v35, 5  ;;  %v15040_v29 = vrot.slane %v15038_v58, 4  ;;  %v20649_v12 = vld [vmem:[%s21220_s18 + $0x8e0] ss:$8 sps:$4 sm:$0xff]  }
 0x625   : > { %v17907_v3 = vcombine.high %v10456_v36, %v10459_v17  ;;  %v18387_v32 = vcombine.high %v14989_v47, %v14999_v42  ;;  %v15046_v8 = vrot.slane %v15044_v50, 5  ;;  %v24850_v35 = vld [vmem:[#allocation3 + $0x138] sm:$0xff] }
 0x626   : > { %16446 = vmatpush1.bf16.msra.mxu0 %v20624_v16  ;;  %v24837_v16 = vsel %vm23509_vm7, %v15018_v53, %v15022_v28  ;;  %v15031_v26 = vor.u32 %v15030_v62, %v15027_v7  ;;  %v15041_v0 = vor.u32 %v15040_v29, %v15036_v5  ;;  %v15082_v53 = vshll.u32 %v24679_v15, 16  ;;  %v20611_v7 = vld [vmem:[#allocation3 + $0x18] ss:$8 sps:$4 sm:$0xff]   ;;  %v24873_v29 = vld [vmem:[#allocation3 + $0x150] sm:$0xff] }
 0x627   : > { %16447 = vmatprep.subr.bf16.mxu0 %v20631_v14  ;;  %v15049_v14 = vshrl.u32 %v24826_v49, 16  ;;  %v18389_v24 = vcombine.high %v24832_v10, %v24837_v16  ;;  %v15086_v28 = vshrl.u32 %v24679_v15, 16  ;;  %v18388_v62 = vcombine.low %v24832_v10, %v24837_v16  ;;  %v14795_v10 = vld [vmem:[#allocation3 + $0x148] sm:$0x11] }
 0x628   : > { %10944 = vmatmul.mubr.bf16.gmra.mrb[52].mxu1 %v17902_v41  ;;  %v15058_v41 = vshll.u32 %v24646_v52, 16  ;;  %v24847_v57 = vrot.slane %v15031_v26, 4  ;;  %v15042_v56 = vrot.slane %v15041_v0, 4  ;;  %v15084_v26 = vrot.slane %v15082_v53, 5 }
 0x629   : > { %15596 = vmatmul.mubr.bf16.gmra.mrb[20].mxu0 %v18382_v30  ;;  %10953 = vmatprep.mubr.bf16.mxu1 %v17905_v33  ;;  %v15062_v30 = vshrl.u32 %v24646_v52, 16  ;;  %v17906_v33 = vcombine.low %v10456_v36, %v10459_v17  ;;  %v15051_v61 = vrot.slane %v15049_v14, 4  ;;  %v15088_v0 = vrot.slane %v15086_v28, 4 }
 0x62a   : > { %15605 = vmatprep.mubr.bf16.mxu0 %v18385_v20  ;;  %16448 = vmatpush1.bf16.msra.mxu0 %v20629_v51  ;;  %v18386_v20 = vcombine.low %v14989_v47, %v14999_v42  ;;  %v20613_v51 = vld [vmem:[#allocation3 + $0x1c] ss:$8 sps:$4 sm:$0xff]   ;;  %v15060_v37 = vrot.slane %v15058_v41, 5  ;;  %v24856_v58 = vsel %vm23509_vm7, %v24847_v57, %v15036_v5  ;;  %v24862_v36 = vsel %vm23509_vm7, %v15042_v56, %v15046_v8 }
 0x62b   : > { %16449 = vmatprep.subr.bf16.mxu0 %v20636_v19  ;;  %v15064_v52 = vrot.slane %v15062_v30, 4  ;;  %v14792_v19 = vld [vmem:[#allocation3 + $0x130] sm:$0x11]  ;;  %v15055_v17 = vor.u32 %v15054_v43, %v15051_v61  ;;  %v15097_v16 = vshrl.u32 %v24873_v29, 16  ;;  %v15100_v50 = vshll.u32 %v24873_v29, 16 }
 0x62c   : > { %v15068_v42 = vshll.u32 %v14792_v19, 16  ;;  %v15106_v14 = vshll.u32 %v24721_v13, 16  ;;  %v20680_v41 = vld [vmem:[%s21220_s18 + $0x400] ss:$8 sps:$4 sm:$0xff]   ;;  %v15092_v56 = vshll.u32 %v14795_v10, 16  ;;  %v15112_v43 = vrot.slane %v15110_v11, 4 }
 0x62d   : > { %v15065_v47 = vor.u32 %v15064_v52, %v15060_v37  ;;  %v15099_v8 = vrot.slane %v15097_v16, 4  ;;  %v18390_v52 = vcombine.low %v24856_v58, %v24862_v36  ;;  %v14798_v19 = vld [vmem:[#allocation3 + $0x160] sm:$0x11] }
 0x62e   : > { %16450 = vmatpush1.bf16.msra.mxu0 %v20634_v18  ;;  %v15073_v18 = vshrl.u32 %v24850_v35, 16  ;;  %v15070_v15 = vrot.slane %v15068_v42, 5  ;;  %v15108_v61 = vrot.slane %v15106_v14, 5  ;;  %v20683_v42 = vld [vmem:[%s21220_s18 + $0x424] ss:$8 sps:$4 sm:$0xff]  }
 0x62f   : > { %16451 = vmatprep.subr.bf16.mxu0 %v20641_v22  ;;  %v20652_v22 = vld [vmem:[%s21220_s18 + $0x8f0] ss:$8 sps:$4 sm:$0xff]   ;;  %v15066_v34 = vrot.slane %v15065_v47, 4 }
 0x630   : > { %10954 = vmatmul.mubr.bf16.gmra.mrb[56].mxu1 %v17904_v27  ;;  %v24858_v27 = vld [vmem:[#allocation3 + $0x38] sm:$0xff]  ;;  %v24902_v47 = vld [vmem:[#allocation3 + $0x168] sm:$0xff]  ;;  %v15113_v28 = vor.u32 %v15112_v43, %v15108_v61 }
 0x631   : > { %15606 = vmatmul.mubr.bf16.gmra.mrb[24].mxu0 %v18384_v1  ;;  %10963 = vmatprep.mubr.bf16.mxu1 %v17907_v3  ;;  %v15076_v1 = vshll.u32 %v24850_v35, 16  ;;  %v17975_v5 = vcombine.high %v24478_v6, %v24858_v27  ;;  %v18391_v3 = vcombine.high %v24856_v58, %v24862_v36  ;;  %v15116_v58 = vshll.u32 %v14798_v19, 16 }
 0x632   : > { %15615 = vmatprep.mubr.bf16.mxu0 %v18387_v32  ;;  %16452 = vmatpush1.bf16.msra.mxu0 %v20639_v4  ;;  %v24877_v32 = vrot.slane %v15055_v17, 4  ;;  %v15075_v4 = vrot.slane %v15073_v18, 4  ;;  %v15121_v36 = vshrl.u32 %v24902_v47, 16 }
 0x633   : > { %16453 = vmatprep.subr.bf16.mxu0 %v20646_v54  ;;  %v15078_v54 = vrot.slane %v15076_v1, 5  ;;  %v15118_v16 = vrot.slane %v15116_v58, 5 }
 0x634   : > { %v24887_v30 = vsel %vm23509_vm7, %v24877_v32, %v15060_v37  ;;  %v17974_v37 = vcombine.low %v24478_v6, %v24858_v27  ;;  %v15094_v6 = vrot.slane %v15092_v56, 5  ;;  %v24928_v56 = vld [vmem:[#allocation3 + $0x180] sm:$0xff] }
 0x636   : > { %16454 = vmatpush1.bf16.msra.mxu0 %v20644_v38  ;;  %v20681_v38 = vld [vmem:[%s21220_s18 + $0x414] ss:$8 sps:$4 sm:$0xff]  }
 0x637   : > { %16455 = vmatprep.subr.bf16.mxu0 %v20651_v60  ;;  %v15079_v60 = vor.u32 %v15078_v54, %v15075_v4 }
 0x638   : > { %10964 = vmatmul.mubr.bf16.gmra.mrb[60].mxu1 %v17906_v33  ;;  %v24890_v33 = vld [vmem:[#allocation3 + $0x50] sm:$0xff] }
 0x639   : > { %15616 = vmatmul.mubr.bf16.gmra.mrb[28].mxu0 %v18386_v20  ;;  %11584 = vmatprep.mubr.bf16.mxu1 %v20613_v51  ;;  %v15071_v20 = vsel %vm23509_vm7, %v15066_v34, %v15070_v15  ;;  %v15102_v51 = vrot.slane %v15100_v50, 5  ;;  %v24905_v18 = vrot.slane %v15079_v60, 4  ;;  %v24914_v34 = vld [vmem:[#allocation3 + $0x68] sm:$0xff]  ;;  %v15123_v50 = vrot.slane %v15121_v36, 4  ;;  %v14801_v60 = vld [vmem:[#allocation3 + $0x178] sm:$0x11] }
 0x63a   : > { %15625 = vmatprep.mubr.bf16.mxu0 %v18389_v24  ;;  %16456 = vmatpush1.bf16.msra.mxu0 %v20649_v12  ;;  %v15089_v24 = vor.u32 %v15088_v0, %v15084_v26  ;;  %v20682_v12 = vld [vmem:[%s21220_s18 + $0x410] ss:$8 sps:$4 sm:$0xff]   ;;  %v18393_v17 = vcombine.high %v24887_v30, %v15071_v20  ;;  %v18392_v54 = vcombine.low %v24887_v30, %v15071_v20  ;;  %v20685_v0 = vld [vmem:[%s21220_s18 + $0x434] ss:$8 sps:$4 sm:$0xff]   ;;  %v15140_v19 = vshll.u32 %v14801_v60, 16 }
 0x63b   : > { %16457 = vmatprep.subr.bf16.mxu0 %v20654_v2  ;;  %v17977_v2 = vcombine.high %v24504_v39, %v24890_v33  ;;  %v15103_v53 = vor.u32 %v15102_v51, %v15099_v8  ;;  %v15085_v15 = vsel %vm23509_vm7, %v24905_v18, %v15084_v26  ;;  %v24930_v30 = vld [vmem:[#allocation3 + $0x188] sm:$0xff]  ;;  %v20687_v8 = vld [vmem:[%s21220_s18 + $0x444] ss:$8 sps:$4 sm:$0xff]   ;;  %v20692_v60 = vld [vmem:[%s21220_s18 + $0x460] ss:$8 sps:$4 sm:$0xff]  }
 0x63c   : > { %v15090_v1 = vrot.slane %v15089_v24, 4  ;;  %v20686_v24 = vld [vmem:[%s21220_s18 + $0x430] ss:$8 sps:$4 sm:$0xff]  }
 0x63d   : > { %v24923_v10 = vrot.slane %v15103_v53, 4  ;;  %v24938_v51 = vld [vmem:[#allocation3 + $0x80] sm:$0xff] }
 0x63e   : > { %16458 = vmatpush1.bf16.msra.mxu0 %v20652_v22  ;;  %v15124_v22 = vshll.u32 %v24902_v47, 16  ;;  %v15095_v4 = vsel %vm23509_vm7, %v15090_v1, %v15094_v6  ;;  %v17978_v1 = vcombine.low %v24530_v44, %v24914_v34  ;;  %v17981_v53 = vcombine.high %v24570_v21, %v24938_v51 }
 0x63f   : > { %v18395_v26 = vcombine.high %v15085_v15, %v15095_v4  ;;  %v24935_v20 = vsel %vm23509_vm7, %v24923_v10, %v15108_v61  ;;  %v15145_v61 = vshrl.u32 %v24928_v56, 16  ;;  %v18394_v6 = vcombine.low %v15085_v15, %v15095_v4  ;;  %v20691_v15 = vld [vmem:[%s21220_s18 + $0x464] ss:$8 sps:$4 sm:$0xff]  }
 0x640   : > { %11585 = vmatmul.mubr.bf16.vlgmr.msra.gmra.mrb[0].mxu1 %v20611_v7  ;;  %v15130_v7 = vshll.u32 %v24760_v9, 16  ;;  %v15126_v14 = vrot.slane %v15124_v22, 5  ;;  %v14805_v4 = vld [vmem:[#allocation3 + $0x198] sm:$0xff] }
 0x641   : > { %15626 = vmatmul.mubr.bf16.gmra.mrb[32].mxu0 %v18388_v62  ;;  %19279 = vmatpush1.bf16.msra.mxu1 %v20680_v41  ;;  %v15134_v62 = vshrl.u32 %v24760_v9, 16 }
 0x642   : > { %11594 = vmatprep.mubr.bf16.mxu1 %v17975_v5  ;;  %15635 = vmatprep.mubr.bf16.mxu0 %v18391_v3  ;;  %v17976_v5 = vcombine.low %v24504_v39, %v24890_v33  ;;  %v20684_v3 = vld [vmem:[%s21220_s18 + $0x420] ss:$8 sps:$4 sm:$0xff]   ;;  %v15114_v39 = vrot.slane %v15113_v28, 4  ;;  %v15132_v11 = vrot.slane %v15130_v7, 5  ;;  %v20689_v28 = vld [vmem:[%s21220_s18 + $0x454] ss:$8 sps:$4 sm:$0xff]  }
 0x643   : > { %19264 = vmatprep.subr.bf16.mxu1 %v20681_v38  ;;  %v15136_v41 = vrot.slane %v15134_v62, 4  ;;  %v17979_v38 = vcombine.high %v24530_v44, %v24914_v34  ;;  %v15142_v7 = vrot.slane %v15140_v19, 5  ;;  %v15147_v62 = vrot.slane %v15145_v61, 4  ;;  %v14804_v44 = vld [vmem:[#allocation3 + $0x190] sm:$0x11] }
 0x644   : > { %v24942_v43 = vsel %vm23509_vm7, %v15114_v39, %v15118_v16  ;;  %v24960_v39 = vld [vmem:[#allocation3 + $0x1a0] sm:$0xff]  ;;  %v17980_v19 = vcombine.low %v24570_v21, %v24938_v51  ;;  %v14807_v21 = vld [vmem:[#allocation3 + $0x1a8] sm:$0x11] }
 0x645   : > { %19280 = vmatpush1.bf16.msra.mxu1 %v20682_v12  ;;  %v15148_v12 = vshll.u32 %v24928_v56, 16  ;;  %v18397_v58 = vcombine.high %v24935_v20, %v24942_v43  ;;  %v18396_v61 = vcombine.low %v24935_v20, %v24942_v43  ;;  %v24987_v43 = vld [vmem:[#allocation3 + $0xb0] sm:$0xff] }
 0x646   : > { %19265 = vmatprep.subr.bf16.mxu1 %v20683_v42  ;;  %v20688_v42 = vld [vmem:[%s21220_s18 + $0x440] ss:$8 sps:$4 sm:$0xff]  }
 0x648   : > { %11595 = vmatmul.mubr.bf16.gmra.mrb[4].mxu1 %v17974_v37  ;;  %v15127_v37 = vor.u32 %v15126_v14, %v15123_v50  ;;  %v24965_v50 = vld [vmem:[#allocation3 + $0x98] sm:$0xff] }
 0x649   : > { %15636 = vmatmul.mubr.bf16.gmra.mrb[36].mxu0 %v18390_v52  ;;  %11604 = vmatprep.mubr.bf16.mxu1 %v17977_v2  ;;  %v15137_v52 = vor.u32 %v15136_v41, %v15132_v11  ;;  %v15154_v2 = vshll.u32 %v24930_v30, 16 }
 0x64a   : > { %15645 = vmatprep.mubr.bf16.mxu0 %v18393_v17  ;;  %19281 = vmatpush1.bf16.msra.mxu1 %v20684_v3  ;;  %v15158_v17 = vshrl.u32 %v24930_v30, 16  ;;  %v24956_v36 = vrot.slane %v15127_v37, 4  ;;  %v15178_v37 = vshll.u32 %v24960_v39, 16 }
 0x64b   : > { %19266 = vmatprep.subr.bf16.mxu1 %v20685_v0  ;;  %v15138_v22 = vrot.slane %v15137_v52, 4  ;;  %v15156_v3 = vrot.slane %v15154_v2, 5  ;;  %v20690_v0 = vld [vmem:[%s21220_s18 + $0x450] ss:$8 sps:$4 sm:$0xff]   ;;  %v15182_v52 = vshrl.u32 %v24960_v39, 16 }
 0x64c   : > { %v15133_v16 = vsel %vm23509_vm7, %v24956_v36, %v15132_v11  ;;  %v20693_v11 = vld [vmem:[%s21220_s18 + $0x474] ss:$8 sps:$4 sm:$0xff]  }
 0x64d   : > { %v15143_v14 = vsel %vm23509_vm7, %v15138_v22, %v15142_v7  ;;  %v20694_v22 = vld [vmem:[%s21220_s18 + $0x470] ss:$8 sps:$4 sm:$0xff]   ;;  %v20695_v7 = vld [vmem:[%s21220_s18 + $0x484] ss:$8 sps:$4 sm:$0xff]  }
 0x64e   : > { %19282 = vmatpush1.bf16.msra.mxu1 %v20686_v24  ;;  %v15169_v24 = vshrl.u32 %v14805_v4, 16  ;;  %v18399_v2 = vcombine.high %v15133_v16, %v15143_v14 }
 0x64f   : > { %19267 = vmatprep.subr.bf16.mxu1 %v20687_v8  ;;  %v15172_v8 = vshll.u32 %v14805_v4, 16  ;;  %v17982_v4 = vcombine.low %v24608_v40, %v24965_v50 }
 0x650   : > { %11605 = vmatmul.mubr.bf16.gmra.mrb[8].mxu1 %v17976_v5  ;;  %v15150_v5 = vrot.slane %v15148_v12, 5  ;;  %v17983_v12 = vcombine.high %v24608_v40, %v24965_v50  ;;  %v25001_v40 = vld [vmem:[#allocation3 + $0xc8] sm:$0xff] }
 0x651   : > { %15646 = vmatmul.mubr.bf16.gmra.mrb[40].mxu0 %v18392_v54  ;;  %11614 = vmatprep.mubr.bf16.mxu1 %v17979_v38  ;;  %v15160_v54 = vrot.slane %v15158_v17, 4 }
 0x652   : > { %15655 = vmatprep.mubr.bf16.mxu0 %v18395_v26  ;;  %19283 = vmatpush1.bf16.msra.mxu1 %v20688_v42  ;;  %v15151_v41 = vor.u32 %v15150_v5, %v15147_v62  ;;  %v15164_v26 = vshll.u32 %v14804_v44, 16  ;;  %v20696_v44 = vld [vmem:[%s21220_s18 + $0x480] ss:$8 sps:$4 sm:$0xff]  }
 0x653   : > { %19268 = vmatprep.subr.bf16.mxu1 %v20689_v28  ;;  %v15161_v38 = vor.u32 %v15160_v54, %v15156_v3  ;;  %v15180_v28 = vrot.slane %v15178_v37, 5  ;;  %v20699_v37 = vld [vmem:[%s21220_s18 + $0x4a4] ss:$8 sps:$4 sm:$0xff]  }
 0x654   : > { %v15152_v17 = vrot.slane %v15151_v41, 4  ;;  %v17985_v41 = vcombine.high %v24643_v31, %v24987_v43 }
 0x655   : > { %v24979_v42 = vrot.slane %v15161_v38, 4 }
 0x656   : > { %19284 = vmatpush1.bf16.msra.mxu1 %v20690_v0  ;;  %v24985_v20 = vsel %vm23509_vm7, %v15152_v17, %v15156_v3  ;;  %v15188_v0 = vshll.u32 %v14807_v21, 16  ;;  %v18398_v3 = vcombine.low %v15133_v16, %v15143_v14 }
 0x657   : > { %19269 = vmatprep.subr.bf16.mxu1 %v20691_v15  ;;  %v20697_v15 = vld [vmem:[%s21220_s18 + $0x494] ss:$8 sps:$4 sm:$0xff]  }
 0x658   : > { %11615 = vmatmul.mubr.bf16.gmra.mrb[12].mxu1 %v17978_v1  ;;  %v15166_v1 = vrot.slane %v15164_v26, 5 }
 0x659   : > { %15656 = vmatmul.mubr.bf16.gmra.mrb[44].mxu0 %v18394_v6  ;;  %11624 = vmatprep.mubr.bf16.mxu1 %v17981_v53  ;;  %v15171_v6 = vrot.slane %v15169_v24, 4  ;;  %v15174_v53 = vrot.slane %v15172_v8, 5  ;;  %v15190_v24 = vrot.slane %v15188_v0, 5  ;;  %v20698_v8 = vld [vmem:[%s21220_s18 + $0x490] ss:$8 sps:$4 sm:$0xff]  }
 0x65a   : > { %15665 = vmatprep.mubr.bf16.mxu0 %v18397_v58  ;;  %19285 = vmatpush1.bf16.msra.mxu1 %v20692_v60  ;;  %v15184_v58 = vrot.slane %v15182_v52, 4  ;;  %v15167_v62 = vsel %vm23509_vm7, %v24979_v42, %v15166_v1  ;;  %v15996_v52 = vrot.slane %v24858_v27, 5  ;;  %v17987_v1 = vcombine.high %v24685_v46, %v25001_v40  ;;  %v15903_v0 = vld [vmem:[#allocation3 + $0x58] sm:$0x11] }
 0x65b   : > { %19270 = vmatprep.subr.bf16.mxu1 %v20693_v11  ;;  %v15175_v5 = vor.u32 %v15174_v53, %v15171_v6  ;;  %v18401_v38 = vcombine.high %v24985_v20, %v15167_v62  ;;  %v20700_v11 = vld [vmem:[%s21220_s18 + $0x4a0] ss:$8 sps:$4 sm:$0xff]   ;;  %v18400_v17 = vcombine.low %v24985_v20, %v15167_v62  ;;  %v16003_v62 = vrot.slane %v24890_v33, 5  ;;  %v20706_v33 = vld [vmem:[%s21220_s18 + $0x4d0] ss:$8 sps:$4 sm:$0xff]  }
 0x65c   : > { %v15185_v54 = vor.u32 %v15184_v58, %v15180_v28  ;;  %v20702_v58 = vld [vmem:[%s21220_s18 + $0x4b0] ss:$8 sps:$4 sm:$0xff]  }
 0x65d   : > { %v15176_v26 = vrot.slane %v15175_v5, 4  ;;  %v20704_v5 = vld [vmem:[%s21220_s18 + $0x4c0] ss:$8 sps:$4 sm:$0xff]  }
 0x65e   : > { %19286 = vmatpush1.bf16.msra.mxu1 %v20694_v22  ;;  %v15186_v60 = vrot.slane %v15185_v54, 4  ;;  %v20703_v22 = vld [vmem:[%s21220_s18 + $0x4c4] ss:$8 sps:$4 sm:$0xff]   ;;  %v15901_v54 = vld [vmem:[#allocation3 + $0x48] sm:$0xee] }
 0x65f   : > { %19271 = vmatprep.subr.bf16.mxu1 %v20695_v7  ;;  %v15181_v16 = vsel %vm23509_vm7, %v15176_v26, %v15180_v28  ;;  %v15998_v28 = vrot.slane %v15996_v52, 4  ;;  %v16005_v26 = vrot.slane %v16003_v62, 4 }
 0x660   : > { %11625 = vmatmul.mubr.bf16.gmra.mrb[16].mxu1 %v17980_v19  ;;  %v15191_v14 = vsel %vm23509_vm7, %v15186_v60, %v15190_v24  ;;  %v15898_v19 = vld [vmem:[#allocation3 + $0x30] sm:$0xee]  ;;  %v16006_v60 = vrot.slane %v15903_v0, 5  ;;  %v20707_v24 = vld [vmem:[%s21220_s18 + $0x4e4] ss:$8 sps:$4 sm:$0xff]  }
 0x661   : > { %15666 = vmatmul.mubr.bf16.gmra.mrb[48].mxu0 %v18396_v61  ;;  %11634 = vmatprep.mubr.bf16.mxu1 %v17983_v12  ;;  %v15900_v61 = vld [vmem:[#allocation3 + $0x40] sm:$0x11]  ;;  %v20701_v12 = vld [vmem:[%s21220_s18 + $0x4b4] ss:$8 sps:$4 sm:$0xff]   ;;  %v18403_v6 = vcombine.high %v15181_v16, %v15191_v14  ;;  %v18436_v53 = vrot.slane %v15898_v19, 9 }
 0x662   : > { %15675 = vmatprep.mubr.bf16.mxu0 %v18399_v2  ;;  %19287 = vmatpush1.bf16.msra.mxu1 %v20696_v44  ;;  %v17984_v2 = vcombine.low %v24643_v31, %v24987_v43  ;;  %v15999_v27 = vrot.slane %v15900_v61, 5  ;;  %v25017_v31 = vld [vmem:[#allocation3 + $0xe0] sm:$0xff]  ;;  %v20705_v44 = vld [vmem:[%s21220_s18 + $0x4d4] ss:$8 sps:$4 sm:$0xff]  }
 0x663   : > { %19272 = vmatprep.subr.bf16.mxu1 %v20697_v15  ;;  %v15997_v21 = vsel %vm23732_vm2, %v18436_v53, %v15996_v52  ;;  %v17986_v15 = vcombine.low %v24685_v46, %v25001_v40  ;;  %v15904_v52 = vld [vmem:[#allocation3 + $0x60] sm:$0xee]  ;;  %v20709_v19 = vld [vmem:[%s21220_s18 + $0x4f4] ss:$8 sps:$4 sm:$0xff]  }
 0x664   : > { %v16000_v7 = vsel %vm23732_vm2, %v15998_v28, %v15999_v27  ;;  %v20710_v28 = vld [vmem:[%s21220_s18 + $0x4f0] ss:$8 sps:$4 sm:$0xff]  }
 0x665   : > { %v18484_v61 = vcombine.low %v15997_v21, %v16000_v7 }
 0x666   : > { %19288 = vmatpush1.bf16.msra.mxu1 %v20698_v8  ;;  %v25032_v8 = vld [vmem:[#allocation3 + $0xf8] sm:$0xff] }
 0x667   : > { %19273 = vmatprep.subr.bf16.mxu1 %v20699_v37  ;;  %v16007_v37 = vsel %vm23732_vm2, %v16005_v26, %v16006_v60 }
 0x668   : > { %11635 = vmatmul.mubr.bf16.gmra.mrb[20].mxu1 %v17982_v4  ;;  %v18402_v4 = vcombine.low %v15181_v16, %v15191_v14  ;;  %v16010_v16 = vrot.slane %v24914_v34, 5  ;;  %v20708_v14 = vld [vmem:[%s21220_s18 + $0x4e0] ss:$8 sps:$4 sm:$0xff]  }
 0x669   : > { %15676 = vmatmul.mubr.bf16.gmra.mrb[52].mxu0 %v18398_v3  ;;  %11644 = vmatprep.mubr.bf16.mxu1 %v17985_v41  ;;  %v17989_v3 = vcombine.high %v24723_v25, %v25017_v31  ;;  %v18485_v41 = vcombine.high %v15997_v21, %v16000_v7  ;;  %v25046_v34 = vld [vmem:[#allocation3 + $0x110] sm:$0xff]  ;;  %v15909_v21 = vld [vmem:[#allocation3 + $0x88] sm:$0x11]  ;;  %v17990_v7 = vcombine.low %v24758_v63, %v25032_v8 }
 0x66a   : > { %15685 = vmatprep.mubr.bf16.mxu0 %v18401_v38  ;;  %19289 = vmatpush1.bf16.msra.mxu1 %v20700_v11  ;;  %v18437_v38 = vrot.slane %v15901_v54, 9  ;;  %v15906_v11 = vld [vmem:[#allocation3 + $0x70] sm:$0x11]  ;;  %v17992_v26 = vcombine.low %v24798_v48, %v25046_v34 }
 0x66b   : > { %19274 = vmatprep.subr.bf16.mxu1 %v20701_v12  ;;  %v17988_v12 = vcombine.low %v24723_v25, %v25017_v31  ;;  %v16013_v53 = vrot.slane %v15906_v11, 5  ;;  %v15913_v11 = vld [vmem:[#allocation3 + $0xa8] sm:$0xee] }
 0x66c   : > { %v16004_v46 = vsel %vm23732_vm2, %v18437_v38, %v16003_v62  ;;  %v15912_v38 = vld [vmem:[#allocation3 + $0xa0] sm:$0x11] }
 0x66d   : > { %v18486_v62 = vcombine.low %v16004_v46, %v16007_v37 }
 0x66e   : > { %19290 = vmatpush1.bf16.msra.mxu1 %v20702_v58  ;;  %v16017_v58 = vrot.slane %v24938_v51, 5 }
 0x66f   : > { %19275 = vmatprep.subr.bf16.mxu1 %v20703_v22  ;;  %v15907_v22 = vld [vmem:[#allocation3 + $0x78] sm:$0xee] }
 0x670   : > { %11645 = vmatmul.mubr.bf16.gmra.mrb[24].mxu1 %v17984_v2  ;;  %v17991_v2 = vcombine.high %v24758_v63, %v25032_v8  ;;  %v18439_v0 = vrot.slane %v15907_v22, 9 }
 0x671   : > { %15686 = vmatmul.mubr.bf16.gmra.mrb[56].mxu0 %v18400_v17  ;;  %11654 = vmatprep.mubr.bf16.mxu1 %v17987_v1  ;;  %v18487_v17 = vcombine.high %v16004_v46, %v16007_v37  ;;  %v18438_v1 = vrot.slane %v15904_v52, 9  ;;  %v16031_v52 = vrot.slane %v24987_v43, 5 }
 0x672   : > { %15695 = vmatprep.mubr.bf16.mxu0 %v18403_v6  ;;  %19291 = vmatpush1.bf16.msra.mxu1 %v20704_v5  ;;  %v16012_v6 = vrot.slane %v16010_v16, 4  ;;  %v17993_v5 = vcombine.high %v24798_v48, %v25046_v34  ;;  %v16018_v51 = vsel %vm23732_vm2, %v18439_v0, %v16017_v58  ;;  %v12187_v0 = vshll.u32 %v25017_v31, 16 }
 0x673   : > { %19276 = vmatprep.subr.bf16.mxu1 %v20705_v44  ;;  %v16011_v27 = vsel %vm23732_vm2, %v18438_v1, %v16010_v16  ;;  %v16019_v44 = vrot.slane %v16017_v58, 4  ;;  %v16027_v16 = vrot.slane %v15912_v38, 5  ;;  %v18441_v1 = vrot.slane %v15913_v11, 9  ;;  %v15924_v11 = vld [vmem:[#allocation3 + $0x100] sm:$0x11] }
 0x674   : > { %v16014_v25 = vsel %vm23732_vm2, %v16012_v6, %v16013_v53  ;;  %v16033_v6 = vrot.slane %v16031_v52, 4  ;;  %v17998_v38 = vcombine.low %v24873_v29, %v24721_v13 }
 0x675   : > { %v18489_v54 = vcombine.high %v16011_v27, %v16014_v25  ;;  %v18488_v60 = vcombine.low %v16011_v27, %v16014_v25  ;;  %v16032_v43 = vsel %vm23732_vm2, %v18441_v1, %v16031_v52  ;;  %v15916_v27 = vld [vmem:[#allocation3 + $0xc0] sm:$0xee]  ;;  %v15918_v25 = vld [vmem:[#allocation3 + $0xd0] sm:$0x11]  ;;  %v15922_v52 = vld [vmem:[#allocation3 + $0xf0] sm:$0xee] }
 0x676   : > { %19292 = vmatpush1.bf16.msra.mxu1 %v20706_v33 }
 0x677   : > { %19277 = vmatprep.subr.bf16.mxu1 %v20707_v24 }
 0x678   : > { %11655 = vmatmul.mubr.bf16.gmra.mrb[28].mxu1 %v17986_v15  ;;  %v16020_v15 = vrot.slane %v15909_v21, 5  ;;  %v17999_v21 = vcombine.high %v24873_v29, %v24721_v13  ;;  %v12211_v13 = vshll.u32 %v25032_v8, 16  ;;  %v12215_v29 = vshrl.u32 %v25032_v8, 16 }
 0x679   : > { %15696 = vmatmul.mubr.bf16.gmra.mrb[60].mxu0 %v18402_v4  ;;  %11664 = vmatprep.mubr.bf16.mxu1 %v17989_v3  ;;  %v25057_v4 = vld [vmem:[#allocation3 + $0x128] sm:$0xff]  ;;  %v16024_v3 = vrot.slane %v24965_v50, 5 }
 0x67a   : > { %16459 = vmatprep.mubr.bf16.mxu0 %v18485_v41  ;;  %19293 = vmatpush1.bf16.msra.mxu1 %v20708_v14  ;;  %v16021_v63 = vsel %vm23732_vm2, %v16019_v44, %v16020_v15  ;;  %v15910_v41 = vld [vmem:[#allocation3 + $0x90] sm:$0xee]  ;;  %v17995_v33 = vcombine.high %v24826_v49, %v25057_v4  ;;  %v25068_v14 = vld [vmem:[#allocation3 + $0x140] sm:$0xff]  ;;  %v12191_v44 = vshrl.u32 %v25017_v31, 16  ;;  %v16045_v15 = vrot.slane %v25017_v31, 5 }
 0x67b   : > { %19278 = vmatprep.subr.bf16.mxu1 %v20709_v19  ;;  %v18491_v24 = vcombine.high %v16018_v51, %v16021_v63  ;;  %v18440_v46 = vrot.slane %v15910_v41, 9  ;;  %v16026_v37 = vrot.slane %v16024_v3, 4  ;;  %v15915_v19 = vld [vmem:[#allocation3 + $0xb8] sm:$0x11]  ;;  %v17996_v58 = vcombine.low %v24850_v35, %v25068_v14 }
 0x67c   : > { %v16034_v53 = vrot.slane %v15915_v19, 5  ;;  %v12193_v41 = vrot.slane %v12191_v44, 4  ;;  %v18002_v44 = vcombine.low %v24928_v56, %v24930_v30 }
 0x67d   : > { %v16025_v50 = vsel %vm23732_vm2, %v18440_v46, %v16024_v3  ;;  %v16028_v48 = vsel %vm23732_vm2, %v16026_v37, %v16027_v16  ;;  %v12189_v3 = vrot.slane %v12187_v0, 5  ;;  %v16047_v37 = vrot.slane %v16045_v15, 4  ;;  %v15927_v0 = vld [vmem:[#allocation3 + $0x118] sm:$0x11] }
 0x67e   : > { %19294 = vmatpush1.bf16.msra.mxu1 %v20710_v28  ;;  %v16035_v28 = vsel %vm23732_vm2, %v16033_v6, %v16034_v53  ;;  %v18492_v22 = vcombine.low %v16025_v50, %v16028_v48  ;;  %v18444_v6 = vrot.slane %v15922_v52, 9  ;;  %v15928_v52 = vld [vmem:[#allocation3 + $0x120] sm:$0xee] }
 0x680   : > { %11665 = vmatmul.mubr.bf16.gmra.mrb[32].mxu1 %v17988_v12  ;;  %v18490_v12 = vcombine.low %v16018_v51, %v16021_v63  ;;  %v15919_v51 = vld [vmem:[#allocation3 + $0xd8] sm:$0xee]  ;;  %v15921_v63 = vld [vmem:[#allocation3 + $0xe8] sm:$0x11] }
 0x681   : > { %16460 = vmatmul.mubr.bf16.vlgmr.msra.gmra.mrb[0].mxu0 %v18484_v61  ;;  %11674 = vmatprep.mubr.bf16.mxu1 %v17991_v2  ;;  %v17994_v61 = vcombine.low %v24826_v49, %v25057_v4  ;;  %v17997_v2 = vcombine.high %v24850_v35, %v25068_v14  ;;  %v16038_v49 = vrot.slane %v25001_v40, 5  ;;  %v18443_v46 = vrot.slane %v15919_v51, 9 }
 0x682   : > { %16469 = vmatprep.mubr.bf16.mxu0 %v18487_v17  ;;  %v18493_v17 = vcombine.high %v16025_v50, %v16028_v48  ;;  %v16048_v16 = vrot.slane %v15921_v63, 5  ;;  %v12194_v50 = vor.u32 %v12193_v41, %v12189_v3  ;;  %v16052_v48 = vrot.slane %v25032_v8, 5 }
 0x683   : > { %v16046_v19 = vsel %vm23732_vm2, %v18443_v46, %v16045_v15  ;;  %v12213_v8 = vrot.slane %v12211_v13, 5 }
 0x684   : > { %v16054_v53 = vrot.slane %v16052_v48, 4 }
 0x688   : > { %11675 = vmatmul.mubr.bf16.gmra.mrb[36].mxu1 %v17990_v7  ;;  %v18495_v7 = vcombine.high %v16032_v43, %v16035_v28 }
 0x689   : > { %16470 = vmatmul.mubr.bf16.gmra.mrb[4].mxu0 %v18486_v62  ;;  %11684 = vmatprep.mubr.bf16.mxu1 %v17993_v5  ;;  %v18442_v62 = vrot.slane %v15916_v27, 9  ;;  %v16040_v5 = vrot.slane %v16038_v49, 4  ;;  %v12217_v27 = vrot.slane %v12215_v29, 4 }
 0x68a   : > { %16479 = vmatprep.mubr.bf16.mxu0 %v18489_v54  ;;  %v16041_v54 = vrot.slane %v15918_v25, 5  ;;  %v11966_v25 = vld [vmem:[#allocation3 + $0x100] sm:$0x11] }
 0x68b   : > { %v16039_v40 = vsel %vm23732_vm2, %v18442_v62, %v16038_v49  ;;  %v12235_v62 = vshll.u32 %v25046_v34, 16 }
 0x68c   : > { %v16042_v35 = vsel %vm23732_vm2, %v16040_v5, %v16041_v54  ;;  %v12239_v5 = vshrl.u32 %v25046_v34, 16  ;;  %v15925_v54 = vld [vmem:[#allocation3 + $0x108] sm:$0xee] }
 0x68e   : > { %v12241_v41 = vrot.slane %v12239_v5, 4 }
 0x690   : > { %11685 = vmatmul.mubr.bf16.gmra.mrb[40].mxu1 %v17992_v26  ;;  %v18494_v26 = vcombine.low %v16032_v43, %v16035_v28  ;;  %v16055_v43 = vrot.slane %v15924_v11, 5  ;;  %v18003_v28 = vcombine.high %v24928_v56, %v24930_v30  ;;  %v12214_v56 = vsel %vm23509_vm7, %v24823_v55, %v12213_v8  ;;  %v15930_v11 = vld [vmem:[#allocation3 + $0x130] sm:$0x11] }
 0x691   : > { %16480 = vmatmul.mubr.bf16.gmra.mrb[8].mxu0 %v18488_v60  ;;  %11694 = vmatprep.mubr.bf16.mxu1 %v17995_v33  ;;  %v18001_v60 = vcombine.high %v24902_v47, %v24760_v9  ;;  %v18497_v33 = vcombine.high %v16039_v40, %v16042_v35 }
 0x692   : > { %16489 = vmatprep.mubr.bf16.mxu0 %v18491_v24  ;;  %v11963_v24 = vld [vmem:[#allocation3 + $0xe8] sm:$0x11] }
 0x693   : > { %v12197_v31 = vshll.u32 %v11963_v24, 16  ;;  %v12259_v24 = vshll.u32 %v25057_v4, 16 }
 0x695   : > { %v12199_v1 = vrot.slane %v12197_v31, 5  ;;  %v12261_v13 = vrot.slane %v12259_v24, 5 }
 0x698   : > { %11695 = vmatmul.mubr.bf16.gmra.mrb[44].mxu1 %v17994_v61  ;;  %v16049_v61 = vsel %vm23732_vm2, %v16047_v37, %v16048_v16 }
 0x699   : > { %16490 = vmatmul.mubr.bf16.gmra.mrb[12].mxu0 %v18490_v12  ;;  %11704 = vmatprep.mubr.bf16.mxu1 %v17997_v2  ;;  %v18000_v12 = vcombine.low %v24902_v47, %v24760_v9  ;;  %v18496_v2 = vcombine.low %v16039_v40, %v16042_v35  ;;  %v18499_v49 = vcombine.high %v16046_v19, %v16049_v61 }
 0x69a   : > { %16499 = vmatprep.mubr.bf16.mxu0 %v18493_v17  ;;  %v12195_v17 = vrot.slane %v12194_v50, 4  ;;  %v16053_v47 = vsel %vm23732_vm2, %v18444_v6, %v16052_v48  ;;  %v18498_v40 = vcombine.low %v16046_v19, %v16049_v61  ;;  %v16066_v48 = vrot.slane %v25057_v4, 5 }
 0x69b   : > { %v18446_v6 = vrot.slane %v15928_v52, 9 }
 0x69c   : > { %v12200_v9 = vsel %vm23509_vm7, %v12195_v17, %v12199_v1  ;;  %v11972_v17 = vld [vmem:[#allocation3 + $0x130] sm:$0x11] }
 0x6a0   : > { %11705 = vmatmul.mubr.bf16.gmra.mrb[48].mxu1 %v17996_v58  ;;  %v12190_v58 = vsel %vm23509_vm7, %v24800_v59, %v12189_v3  ;;  %v16059_v59 = vrot.slane %v25046_v34, 5  ;;  %v12237_v3 = vrot.slane %v12235_v62, 5  ;;  %v12263_v34 = vshrl.u32 %v25057_v4, 16 }
 0x6a1   : > { %16500 = vmatmul.mubr.bf16.gmra.mrb[16].mxu0 %v18492_v22  ;;  %11714 = vmatprep.mubr.bf16.mxu1 %v17999_v21  ;;  %v16056_v22 = vsel %vm23732_vm2, %v16054_v53, %v16055_v43  ;;  %v12218_v21 = vor.u32 %v12217_v27, %v12213_v8  ;;  %v18085_v35 = vcombine.high %v12190_v58, %v12200_v9  ;;  %v16068_v53 = vrot.slane %v16066_v48, 4  ;;  %v15931_v8 = vld [vmem:[#allocation3 + $0x138] sm:$0xee]  ;;  %v15933_v27 = vld [vmem:[#allocation3 + $0x148] sm:$0x11] }
 0x6a2   : > { %16509 = vmatprep.mubr.bf16.mxu0 %v18495_v7  ;;  %v12221_v7 = vshll.u32 %v11966_v25, 16  ;;  %v18501_v15 = vcombine.high %v16053_v47, %v16056_v22  ;;  %v12242_v37 = vor.u32 %v12241_v41, %v12237_v3  ;;  %v12265_v29 = vrot.slane %v12263_v34, 4 }
 0x6a3   : > { %v12219_v51 = vrot.slane %v12218_v21, 4  ;;  %v18084_v19 = vcombine.low %v12190_v58, %v12200_v9  ;;  %v18500_v61 = vcombine.low %v16053_v47, %v16056_v22  ;;  %v16069_v43 = vrot.slane %v15930_v11, 5 }
 0x6a4   : > { %v12223_v63 = vrot.slane %v12221_v7, 5  ;;  %v16073_v4 = vrot.slane %v25068_v14, 5  ;;  %v12283_v25 = vshll.u32 %v25068_v14, 16  ;;  %v12287_v58 = vshrl.u32 %v25068_v14, 16 }
 0x6a5   : > { %v12238_v9 = vsel %vm23509_vm7, %v24847_v57, %v12237_v3  ;;  %v16067_v22 = vsel %vm23732_vm2, %v18446_v6, %v16066_v48  ;;  %v16070_v21 = vsel %vm23732_vm2, %v16068_v53, %v16069_v43  ;;  %v16076_v14 = vrot.slane %v15933_v27, 5 }
 0x6a6   : > { %v12224_v46 = vsel %vm23509_vm7, %v12219_v51, %v12223_v63  ;;  %v12289_v57 = vrot.slane %v12287_v58, 4  ;;  %v12262_v51 = vsel %vm23509_vm7, %v24877_v32, %v12261_v13  ;;  %v15935_v63 = vld [vmem:[#allocation3 + $0x158] sm:$0xff]  ;;  %v15934_v32 = vld [vmem:[#allocation3 + $0x150] sm:$0xee] }
 0x6a7   : > { %v18087_v55 = vcombine.high %v12214_v56, %v12224_v46  ;;  %v18086_v7 = vcombine.low %v12214_v56, %v12224_v46  ;;  %v12311_v24 = vshrl.u32 %v15935_v63, 16  ;;  %v16080_v34 = vrot.slane %v15935_v63, 5  ;;  %v15936_v56 = vld [vmem:[#allocation3 + $0x160] sm:$0x11] }
 0x6a8   : > { %11715 = vmatmul.mubr.bf16.gmra.mrb[52].mxu1 %v17998_v38  ;;  %v18445_v38 = vrot.slane %v15925_v54, 9  ;;  %v18447_v54 = vrot.slane %v15931_v8, 9  ;;  %v15939_v8 = vld [vmem:[#allocation3 + $0x178] sm:$0x11] }
 0x6a9   : > { %16510 = vmatmul.mubr.bf16.gmra.mrb[20].mxu0 %v18494_v26  ;;  %11724 = vmatprep.mubr.bf16.mxu1 %v18001_v60  ;;  %v16061_v26 = vrot.slane %v16059_v59, 4  ;;  %v16062_v60 = vrot.slane %v15927_v0, 5  ;;  %v16075_v0 = vrot.slane %v16073_v4, 4  ;;  %v12313_v11 = vrot.slane %v12311_v24, 4 }
 0x6aa   : > { %16519 = vmatprep.mubr.bf16.mxu0 %v18497_v33  ;;  %v11969_v33 = vld [vmem:[#allocation3 + $0x118] sm:$0x11]  ;;  %v16060_v16 = vsel %vm23732_vm2, %v18445_v38, %v16059_v59  ;;  %v16074_v41 = vsel %vm23732_vm2, %v18447_v54, %v16073_v4  ;;  %v15937_v4 = vld [vmem:[#allocation3 + $0x168] sm:$0xee] }
 0x6ab   : > { %v16063_v50 = vsel %vm23732_vm2, %v16061_v26, %v16062_v60  ;;  %v12245_v31 = vshll.u32 %v11969_v33, 16  ;;  %v16077_v38 = vsel %vm23732_vm2, %v16075_v0, %v16076_v14  ;;  %v12307_v33 = vshll.u32 %v15935_v63, 16 }
 0x6ac   : > { %v18502_v62 = vcombine.low %v16060_v16, %v16063_v50 }
 0x6ad   : > { %v12247_v1 = vrot.slane %v12245_v31, 5  ;;  %v12309_v52 = vrot.slane %v12307_v33, 5 }
 0x6af   : > { %v12310_v54 = vsel %vm23509_vm7, %v24923_v10, %v12309_v52 }
 0x6b0   : > { %11725 = vmatmul.mubr.bf16.gmra.mrb[56].mxu1 %v18000_v12  ;;  %v18503_v12 = vcombine.high %v16060_v16, %v16063_v50  ;;  %v18507_v50 = vcombine.high %v16074_v41, %v16077_v38 }
 0x6b1   : > { %16520 = vmatmul.mubr.bf16.gmra.mrb[24].mxu0 %v18496_v2  ;;  %11734 = vmatprep.mubr.bf16.mxu1 %v18003_v28  ;;  %v12243_v2 = vrot.slane %v12242_v37, 4  ;;  %v12266_v28 = vor.u32 %v12265_v29, %v12261_v13  ;;  %v18504_v37 = vcombine.low %v16067_v22, %v16070_v21  ;;  %v18448_v13 = vrot.slane %v15934_v32, 9 }
 0x6b2   : > { %16529 = vmatprep.mubr.bf16.mxu0 %v18499_v49  ;;  %v12269_v49 = vshll.u32 %v11972_v17, 16  ;;  %v16082_v29 = vrot.slane %v16080_v34, 4  ;;  %v12314_v17 = vor.u32 %v12313_v11, %v12309_v52 }
 0x6b3   : > { %v12248_v47 = vsel %vm23509_vm7, %v12243_v2, %v12247_v1  ;;  %v12267_v5 = vrot.slane %v12266_v28, 4  ;;  %v16081_v53 = vsel %vm23732_vm2, %v18448_v13, %v16080_v34  ;;  %v11984_v34 = vld [vmem:[#allocation3 + $0x190] sm:$0x11] }
 0x6b4   : > { %v12271_v59 = vrot.slane %v12269_v49, 5  ;;  %v18088_v46 = vcombine.low %v12238_v9, %v12248_v47 }
 0x6b6   : > { %v12272_v3 = vsel %vm23509_vm7, %v12267_v5, %v12271_v59  ;;  %v16090_v5 = vrot.slane %v15939_v8, 5  ;;  %v11981_v59 = vld [vmem:[#allocation3 + $0x178] sm:$0x11] }
 0x6b7   : > { %v18091_v16 = vcombine.high %v12262_v51, %v12272_v3  ;;  %v18090_v27 = vcombine.low %v12262_v51, %v12272_v3  ;;  %v12341_v14 = vshll.u32 %v11981_v59, 16  ;;  %v15942_v51 = vld [vmem:[#allocation3 + $0x190] sm:$0x11] }
 0x6b8   : > { %11735 = vmatmul.mubr.bf16.gmra.mrb[60].mxu1 %v18002_v44  ;;  %v18089_v44 = vcombine.high %v12238_v9, %v12248_v47  ;;  %v12315_v9 = vrot.slane %v12314_v17, 4  ;;  %v16097_v24 = vrot.slane %v15942_v51, 5  ;;  %v16877_v51 = vlaneseq }
 0x6b9   : > { %16530 = vmatmul.mubr.bf16.gmra.mrb[28].mxu0 %v18498_v40  ;;  %12802 = vmatprep.mubr.bf16.mxu1 %v18085_v35  ;;  %v18505_v40 = vcombine.high %v16067_v22, %v16070_v21  ;;  %v12285_v35 = vrot.slane %v12283_v25, 5 }
 0x6ba   : > { %16539 = vmatprep.mubr.bf16.mxu0 %v18501_v15  ;;  %v11975_v15 = vld [vmem:[#allocation3 + $0x148] sm:$0x11] }
 0x6bb   : > { %v12290_v26 = vor.u32 %v12289_v57, %v12285_v35  ;;  %v12293_v60 = vshll.u32 %v11975_v15, 16  ;;  %v16094_v57 = vrot.slane %v24930_v30, 5  ;;  %v15940_v15 = vld [vmem:[#allocation3 + $0x180] sm:$0xee] }
 0x6bd   : > { %v12291_v31 = vrot.slane %v12290_v26, 4  ;;  %v12295_v48 = vrot.slane %v12293_v60, 5  ;;  %v12343_v26 = vrot.slane %v12341_v14, 5  ;;  %v18450_v60 = vrot.slane %v15940_v15, 9 }
 0x6be   : > { %v16096_v33 = vrot.slane %v16094_v57, 4 }
 0x6bf   : > { %v12296_v2 = vsel %vm23509_vm7, %v12291_v31, %v12295_v48  ;;  %v15945_v31 = vld [vmem:[#allocation3 + $0x1a8] sm:$0x11] }
 0x6c0   : > { %12803 = vmatmul.mubr.bf16.vlgmr.msra.gmra.mrb[32].mxu1 %v18084_v19  ;;  %v16083_v19 = vrot.slane %v15936_v56, 5  ;;  %v16095_v56 = vsel %vm23732_vm2, %v18450_v60, %v16094_v57 }
 0x6c1   : > { %16540 = vmatmul.mubr.bf16.gmra.mrb[32].mxu0 %v18500_v61  ;;  %12812 = vmatprep.mubr.bf16.mxu1 %v18087_v55  ;;  %v11978_v61 = vld [vmem:[#allocation3 + $0x160] sm:$0x11]  ;;  %v15938_v55 = vld [vmem:[#allocation3 + $0x170] sm:$0xff] }
 0x6c2   : > { %16549 = vmatprep.mubr.bf16.mxu0 %v18503_v12  ;;  %v12286_v12 = vsel %vm23509_vm7, %v24905_v18, %v12285_v35  ;;  %v12331_v1 = vshll.u32 %v15938_v55, 16  ;;  %v12335_v6 = vshrl.u32 %v15938_v55, 16  ;;  %v16084_v43 = vsel %vm23732_vm2, %v16082_v29, %v16083_v19 }
 0x6c3   : > { %v12317_v28 = vshll.u32 %v11978_v61, 16  ;;  %v16087_v49 = vrot.slane %v15938_v55, 5  ;;  %v18506_v18 = vcombine.low %v16074_v41, %v16077_v38  ;;  %v18093_v25 = vcombine.high %v12286_v12, %v12296_v2 }
 0x6c4   : > { %v18509_v58 = vcombine.high %v16081_v53, %v16084_v43  ;;  %v12333_v47 = vrot.slane %v12331_v1, 5  ;;  %v12337_v22 = vrot.slane %v12335_v6, 4  ;;  %v18092_v63 = vcombine.low %v12286_v12, %v12296_v2 }
 0x6c5   : > { %v12319_v21 = vrot.slane %v12317_v28, 5  ;;  %v18508_v3 = vcombine.low %v16081_v53, %v16084_v43  ;;  %v16104_v61 = vrot.slane %v15945_v31, 5 }
 0x6c6   : > { %v12338_v0 = vor.u32 %v12337_v22, %v12333_v47  ;;  %v12334_v30 = vsel %vm23509_vm7, %v24956_v36, %v12333_v47 }
 0x6c8   : > { %12813 = vmatmul.mubr.bf16.gmra.mrb[36].mxu1 %v18086_v7  ;;  %v18449_v7 = vrot.slane %v15937_v4, 9  ;;  %v12339_v10 = vrot.slane %v12338_v0, 4 }
 0x6c9   : > { %16550 = vmatmul.mubr.bf16.gmra.mrb[36].mxu0 %v18502_v62  ;;  %12822 = vmatprep.mubr.bf16.mxu1 %v18089_v44  ;;  %v16089_v62 = vrot.slane %v16087_v49, 4  ;;  %v12320_v44 = vsel %vm23509_vm7, %v12315_v9, %v12319_v21 }
 0x6ca   : > { %16559 = vmatprep.mubr.bf16.mxu0 %v18505_v40  ;;  %v16088_v40 = vsel %vm23732_vm2, %v18449_v7, %v16087_v49  ;;  %v18095_v41 = vcombine.high %v12310_v54, %v12320_v44  ;;  %v12344_v32 = vsel %vm23509_vm7, %v12339_v10, %v12343_v26  ;;  %v18094_v48 = vcombine.low %v12310_v54, %v12320_v44 }
 0x6cb   : > { %v16091_v35 = vsel %vm23732_vm2, %v16089_v62, %v16090_v5  ;;  %v18097_v11 = vcombine.high %v12334_v30, %v12344_v32  ;;  %v18096_v2 = vcombine.low %v12334_v30, %v12344_v32 }
 0x6cc   : > { %v18511_v38 = vcombine.high %v16088_v40, %v16091_v35  ;;  %v18510_v52 = vcombine.low %v16088_v40, %v16091_v35 }
 0x6d0   : > { %12823 = vmatmul.mubr.bf16.gmra.mrb[40].mxu1 %v18088_v46  ;;  %v16098_v46 = vsel %vm23732_vm2, %v16096_v33, %v16097_v24  ;;  %v26116_v33 = vld [vmem:[#allocation23_spill] sm:$0xff] }
 0x6d1   : > { %16560 = vmatmul.mubr.bf16.gmra.mrb[40].mxu0 %v18504_v37  ;;  %12832 = vmatprep.mubr.bf16.mxu1 %v18091_v16  ;;  %v12365_v37 = vshll.u32 %v11984_v34, 16  ;;  %v16101_v16 = vrot.slane %v24960_v39, 5  ;;  %v18513_v13 = vcombine.high %v16095_v56, %v16098_v46  ;;  %v18512_v17 = vcombine.low %v16095_v56, %v16098_v46 }
 0x6d2   : > { %16569 = vmatprep.mubr.bf16.mxu0 %v18507_v50  ;;  %v15943_v50 = vld [vmem:[#allocation3 + $0x198] sm:$0xee] }
 0x6d3   : > { %v12367_v29 = vrot.slane %v12365_v37, 5  ;;  %v18451_v36 = vrot.slane %v15943_v50, 9  ;;  %v16103_v19 = vrot.slane %v16101_v16, 4 }
 0x6d5   : > { %v12368_v55 = vsel %vm23509_vm7, %v24979_v42, %v12367_v29  ;;  %v16102_v39 = vsel %vm23732_vm2, %v18451_v36, %v16101_v16  ;;  %v16105_v12 = vsel %vm23732_vm2, %v16103_v19, %v16104_v61 }
 0x6d6   : > { %v18099_v1 = vcombine.high %v24985_v20, %v12368_v55  ;;  %v18515_v6 = vcombine.high %v16102_v39, %v16105_v12  ;;  %v18098_v53 = vcombine.low %v24985_v20, %v12368_v55  ;;  %v18514_v43 = vcombine.low %v16102_v39, %v16105_v12 }
 0x6d8   : > { %12833 = vmatmul.mubr.bf16.gmra.mrb[44].mxu1 %v18090_v27 }
 0x6d9   : > { %16570 = vmatmul.mubr.bf16.gmra.mrb[44].mxu0 %v18506_v18  ;;  %12842 = vmatprep.mubr.bf16.mxu1 %v18093_v25 }
 0x6da   : > { %16579 = vmatprep.mubr.bf16.mxu0 %v18509_v58 }
 0x6e0   : > { %12843 = vmatmul.mubr.bf16.gmra.mrb[48].mxu1 %v18092_v63  ;;  %v16878_v63 = vshrl.u32 %v16877_v51, 7 }
 0x6e1   : > { %16580 = vmatmul.mubr.bf16.gmra.mrb[48].mxu0 %v18508_v3  ;;  %12852 = vmatprep.mubr.bf16.mxu1 %v18095_v41 }
 0x6e2   : > { %16589 = vmatprep.mubr.bf16.mxu0 %v18511_v38  ;;  %v16879_v26 = vsub.s32 0, %v16878_v63  ;;  %v16883_v60 = vsub.s32 1, %v16878_v63 }
 0x6e4   : > { %v25244_v24 = vrot.slane %v26116_v33, %v16879_v26  ;;  %v25247_v30 = vrot.slane %v26116_v33, %v16883_v60 }
 0x6e8   : > { %12853 = vmatmul.mubr.bf16.gmra.mrb[52].mxu1 %v18094_v48 }
 0x6e9   : > { %16590 = vmatmul.mubr.bf16.gmra.mrb[52].mxu0 %v18510_v52  ;;  %12862 = vmatprep.mubr.bf16.mxu1 %v18097_v11 }
 0x6ea   : > { %16599 = vmatprep.mubr.bf16.mxu0 %v18513_v13 }
 0x6f0   : > { %12863 = vmatmul.mubr.bf16.gmra.mrb[56].mxu1 %v18096_v2 }
 0x6f1   : > { %16600 = vmatmul.mubr.bf16.gmra.mrb[56].mxu0 %v18512_v17  ;;  %12872 = vmatprep.mubr.bf16.mxu1 %v18099_v1 }
 0x6f2   : > { %16609 = vmatprep.mubr.bf16.mxu0 %v18515_v6 }
 0x6f8   : > { %12873 = vmatmul.mubr.bf16.gmra.mrb[60].mxu1 %v18098_v53 }
 0x6f9   : > { %16610 = vmatmul.mubr.bf16.gmra.mrb[60].mxu0 %v18514_v43 }
 0x713   : > { %v11586_v23 = vpop.f32.mrb[0].mxu1 }
 0x714   : > { %v11588_v42 = vpop.f32.mrb[1].mxu1 }
 0x715   : > { %v11590_v28 = vpop.f32.mrb[2].mxu1 }
 0x716   : > { %v11592_v49 = vpop.f32.mrb[3].mxu1 }
 0x71b   : > { %v11596_v45 = vpop.f32.mrb[4].mxu1 }
 0x71c   : > { %v11598_v4 = vpop.f32.mrb[5].mxu1 }
 0x71d   : > { %v11600_v8 = vpop.f32.mrb[6].mxu1 }
 0x71e   : > { %v11602_v27 = vpop.f32.mrb[7].mxu1 }
 0x723   : > { %v25195_v18 = vpop.f32.mrb[8].mxu1 }
 0x724   : > { %v25197_v25 = vpop.f32.mrb[9].mxu1 }
 0x725   : > { %v25199_v58 = vpop.f32.mrb[10].mxu1 }
 0x726   : > { %v25201_v9 = vpop.f32.mrb[11].mxu1 }
 0x72b   : > { %v25203_v20 = vpop.f32.mrb[12].mxu1 }
 0x72c   : > { %v25205_v47 = vpop.f32.mrb[13].mxu1 }
 0x72d   : > { %v25207_v22 = vpop.f32.mrb[14].mxu1 }
 0x72e   : > { %v25209_v21 = vpop.f32.mrb[15].mxu1 }
 0x733   : > { %v25211_v7 = vpop.f32.mrb[16].mxu1 }
 0x734   : > { %v25213_v62 = vpop.f32.mrb[17].mxu1 }
 0x735   : > { %v25215_v5 = vpop.f32.mrb[18].mxu1 }
 0x736   : > { %v25217_v59 = vpop.f32.mrb[19].mxu1 }
 0x73b   : > { %v25219_v54 = vpop.f32.mrb[20].mxu1 }
 0x73c   : > { %v25221_v0 = vpop.f32.mrb[21].mxu1 }
 0x73d   : > { %v25223_v14 = vpop.f32.mrb[22].mxu1 }
 0x73e   : > { %v25225_v44 = vpop.f32.mrb[23].mxu1 }
 0x743   : > { %v25227_v40 = vpop.f32.mrb[24].mxu1 }
 0x744   : > { %v25229_v35 = vpop.f32.mrb[25].mxu1 }
 0x745   : > { %v25231_v57 = vpop.f32.mrb[26].mxu1 }
 0x746   : > { %v25233_v15 = vpop.f32.mrb[27].mxu1 }
 0x74b   : > { %v25235_v3 = vpop.f32.mrb[28].mxu1 }
 0x74c   : > { %v25237_v41 = vpop.f32.mrb[29].mxu1 }
 0x74d   : > { %v25239_v38 = vpop.f32.mrb[30].mxu1 }
 0x74e   : > { %v25241_v10 = vpop.f32.mrb[31].mxu1 }
 0x754   : > { %v16461_v34 = vpop.f32.mrb[0].mxu0 }
 0x755   : > { %v19297_v32 = vadd.f32 %v16461_v34, %v11586_v23  ;;  %v16463_v56 = vpop.f32.mrb[1].mxu0 }
 0x756   : > { %v19300_v46 = vadd.f32 %v16463_v56, %v11588_v42  ;;  %v16465_v37 = vpop.f32.mrb[2].mxu0 }
 0x757   : > { %v25250_v16 = vadd.f32 %v19297_v32, %v25244_v24  ;;  %v19303_v50 = vadd.f32 %v16465_v37, %v11590_v28  ;;  %v16467_v31 = vpop.f32.mrb[3].mxu0 }
 0x758   : > { %v25253_v48 = vadd.f32 %v19300_v46, %v25247_v30  ;;  %v19306_v52 = vadd.f32 %v16467_v31, %v11592_v49 }
 0x759   : > { %v25257_v13 = vadd.f32 %v19303_v50, %v25244_v24 }
 0x75a   : > { %v25261_v36 = vadd.f32 %v19306_v52, %v25247_v30 }
 0x75c   : > { %v16471_v55 = vpop.f32.mrb[4].mxu0 }
 0x75d   : > { %v19309_v39 = vadd.f32 %v16471_v55, %v11596_v45  ;;  %v16473_v12 = vpop.f32.mrb[5].mxu0 }
 0x75e   : > { %v19312_v2 = vadd.f32 %v16473_v12, %v11598_v4  ;;  %v16475_v17 = vpop.f32.mrb[6].mxu0 }
 0x75f   : > { %v25266_v1 = vadd.f32 %v19309_v39, %v25244_v24  ;;  %v19315_v6 = vadd.f32 %v16475_v17, %v11600_v8  ;;  %v16477_v53 = vpop.f32.mrb[7].mxu0 }
 0x760   : > { %v25269_v43 = vadd.f32 %v19312_v2, %v25247_v30  ;;  %v19318_v23 = vadd.f32 %v16477_v53, %v11602_v27 }
 0x761   : > { %v25273_v28 = vadd.f32 %v19315_v6, %v25244_v24 }
 0x762   : > { %v25277_v45 = vadd.f32 %v19318_v23, %v25247_v30 }
 0x764   : > { %v16481_v8 = vpop.f32.mrb[8].mxu0 }
 0x765   : > { %v19321_v63 = vadd.f32 %v16481_v8, %v25195_v18  ;;  %v16483_v26 = vpop.f32.mrb[9].mxu0 }
 0x766   : > { %v19324_v27 = vadd.f32 %v16483_v26, %v25197_v25  ;;  %v16485_v60 = vpop.f32.mrb[10].mxu0 }
 0x767   : > { %v25284_v33 = vadd.f32 %v19321_v63, %v25244_v24  ;;  %v19327_v34 = vadd.f32 %v16485_v60, %v25199_v58  ;;  %v16487_v32 = vpop.f32.mrb[11].mxu0 }
 0x768   : > { %v25288_v56 = vadd.f32 %v19324_v27, %v25247_v30  ;;  %v19330_v46 = vadd.f32 %v16487_v32, %v25201_v9 }
 0x769   : > { %v25293_v50 = vadd.f32 %v19327_v34, %v25244_v24 }
 0x76a   : > { %v25297_v25 = vadd.f32 %v19330_v46, %v25247_v30 }
 0x76c   : > { %v16491_v52 = vpop.f32.mrb[12].mxu0 }
 0x76d   : > { %v19333_v55 = vadd.f32 %v16491_v52, %v25203_v20  ;;  %v16493_v39 = vpop.f32.mrb[13].mxu0 }
 0x76e   : > { %v19336_v9 = vadd.f32 %v16493_v39, %v25205_v47  ;;  %v16495_v12 = vpop.f32.mrb[14].mxu0 }
 0x76f   : > { %v25304_v2 = vadd.f32 %v19333_v55, %v25244_v24  ;;  %v19339_v17 = vadd.f32 %v16495_v12, %v25207_v22  ;;  %v16497_v6 = vpop.f32.mrb[15].mxu0 }
 0x770   : > { %v25308_v53 = vadd.f32 %v19336_v9, %v25247_v30  ;;  %v19342_v23 = vadd.f32 %v16497_v6, %v25209_v21 }
 0x771   : > { %v25313_v63 = vadd.f32 %v19339_v17, %v25244_v24 }
 0x772   : > { %v25317_v47 = vadd.f32 %v19342_v23, %v25247_v30 }
 0x774   : > { %v16501_v27 = vpop.f32.mrb[16].mxu0 }
 0x775   : > { %v19345_v60 = vadd.f32 %v16501_v27, %v25211_v7  ;;  %v16503_v34 = vpop.f32.mrb[17].mxu0 }
 0x776   : > { %v19348_v21 = vadd.f32 %v16503_v34, %v25213_v62  ;;  %v16505_v32 = vpop.f32.mrb[18].mxu0 }
 0x777   : > { %v25324_v46 = vadd.f32 %v19345_v60, %v25244_v24  ;;  %v19351_v52 = vadd.f32 %v16505_v32, %v25215_v5  ;;  %v16507_v55 = vpop.f32.mrb[19].mxu0 }
 0x778   : > { %v25328_v39 = vadd.f32 %v19348_v21, %v25247_v30  ;;  %v19354_v9 = vadd.f32 %v16507_v55, %v25217_v59 }
 0x779   : > { %v25333_v17 = vadd.f32 %v19351_v52, %v25244_v24 }
 0x77a   : > { %v25337_v62 = vadd.f32 %v19354_v9, %v25247_v30 }
 0x77c   : > { %v16511_v23 = vpop.f32.mrb[20].mxu0 }
 0x77d   : > { %v19357_v27 = vadd.f32 %v16511_v23, %v25219_v54  ;;  %v16513_v60 = vpop.f32.mrb[21].mxu0 }
 0x77e   : > { %v19360_v59 = vadd.f32 %v16513_v60, %v25221_v0  ;;  %v16515_v34 = vpop.f32.mrb[22].mxu0 }
 0x77f   : > { %v25344_v21 = vadd.f32 %v19357_v27, %v25244_v24  ;;  %v19363_v32 = vadd.f32 %v16515_v34, %v25223_v14  ;;  %v16517_v52 = vpop.f32.mrb[23].mxu0 }
 0x780   : > { %v25348_v55 = vadd.f32 %v19360_v59, %v25247_v30  ;;  %v19366_v9 = vadd.f32 %v16517_v52, %v25225_v44 }
 0x781   : > { %v25353_v6 = vadd.f32 %v19363_v32, %v25244_v24 }
 0x782   : > { %v25357_v0 = vadd.f32 %v19366_v9, %v25247_v30 }
 0x784   : > { %v16521_v27 = vpop.f32.mrb[24].mxu0 }
 0x785   : > { %v19369_v60 = vadd.f32 %v16521_v27, %v25227_v40  ;;  %v16523_v59 = vpop.f32.mrb[25].mxu0 }
 0x786   : > { %v19372_v44 = vadd.f32 %v16523_v59, %v25229_v35  ;;  %v16525_v34 = vpop.f32.mrb[26].mxu0 }
 0x787   : > { %v25364_v52 = vadd.f32 %v19369_v60, %v25244_v24  ;;  %v19375_v32 = vadd.f32 %v16525_v34, %v25231_v57  ;;  %v16527_v54 = vpop.f32.mrb[27].mxu0 }
 0x788   : > { %v25368_v9 = vadd.f32 %v19372_v44, %v25247_v30  ;;  %v19378_v23 = vadd.f32 %v16527_v54, %v25233_v15 }
 0x789   : > { %v25373_v5 = vadd.f32 %v19375_v32, %v25244_v24 }
 0x78a   : > { %v25377_v35 = vadd.f32 %v19378_v23, %v25247_v30 }
 0x78c   : > { %v16531_v60 = vpop.f32.mrb[28].mxu0 }
 0x78d   : > { %v19381_v59 = vadd.f32 %v16531_v60, %v25235_v3  ;;  %v16533_v44 = vpop.f32.mrb[29].mxu0 }
 0x78e   : > { %v19384_v15 = vadd.f32 %v16533_v44, %v25237_v41  ;;  %v16535_v54 = vpop.f32.mrb[30].mxu0 }
 0x78f   : > { %v25384_v34 = vadd.f32 %v19381_v59, %v25244_v24  ;;  %v19387_v32 = vadd.f32 %v16535_v54, %v25239_v38  ;;  %v16537_v40 = vpop.f32.mrb[31].mxu0 }
 0x790   : > { %v25388_v23 = vadd.f32 %v19384_v15, %v25247_v30  ;;  %v19390_v27 = vadd.f32 %v16537_v40, %v25241_v10 }
 0x791   : > { %v25393_v14 = vadd.f32 %v19387_v32, %v25244_v24 }
 0x792   : > { %v25397_v41 = vadd.f32 %v19390_v27, %v25247_v30 }
 0x793   : > { %v12804_v59 = vpop.f32.mrb[32].mxu1 }
 0x794   : > { %v16541_v44 = vpop.f32.mrb[32].mxu0  ;;  %v12806_v54 = vpop.f32.mrb[33].mxu1 }
 0x795   : > { %v19393_v15 = vadd.f32 %v16541_v44, %v12804_v59  ;;  %v16543_v7 = vpop.f32.mrb[33].mxu0  ;;  %v12808_v40 = vpop.f32.mrb[34].mxu1 }
 0x796   : > { %v19396_v10 = vadd.f32 %v16543_v7, %v12806_v54  ;;  %v16545_v57 = vpop.f32.mrb[34].mxu0  ;;  %v12810_v3 = vpop.f32.mrb[35].mxu1 }
 0x797   : > { %v25402_v32 = vadd.f32 %v19393_v15, %v25244_v24  ;;  %v19399_v12 = vadd.f32 %v16545_v57, %v12808_v40  ;;  %v16547_v22 = vpop.f32.mrb[35].mxu0 }
 0x798   : > { %v25405_v27 = vadd.f32 %v19396_v10, %v25247_v30  ;;  %v19402_v60 = vadd.f32 %v16547_v22, %v12810_v3 }
 0x799   : > { %v25409_v26 = vadd.f32 %v19399_v12, %v25244_v24 }
 0x79a   : > { %v25413_v7 = vadd.f32 %v19402_v60, %v25247_v30 }
 0x79b   : > { %v12814_v15 = vpop.f32.mrb[36].mxu1 }
 0x79c   : > { %v16551_v54 = vpop.f32.mrb[36].mxu0  ;;  %v12816_v10 = vpop.f32.mrb[37].mxu1 }
 0x79d   : > { %v19405_v40 = vadd.f32 %v16551_v54, %v12814_v15  ;;  %v16553_v20 = vpop.f32.mrb[37].mxu0  ;;  %v12818_v3 = vpop.f32.mrb[38].mxu1 }
 0x79e   : > { %v19408_v22 = vadd.f32 %v16553_v20, %v12816_v10  ;;  %v16555_v38 = vpop.f32.mrb[38].mxu0  ;;  %v12820_v59 = vpop.f32.mrb[39].mxu1 }
 0x79f   : > { %v25418_v12 = vadd.f32 %v19405_v40, %v25244_v24  ;;  %v19411_v8 = vadd.f32 %v16555_v38, %v12818_v3  ;;  %v16557_v58 = vpop.f32.mrb[39].mxu0 }
 0x7a0   : > { %v25421_v60 = vadd.f32 %v19408_v22, %v25247_v30  ;;  %v19414_v44 = vadd.f32 %v16557_v58, %v12820_v59 }
 0x7a1   : > { %v25425_v31 = vadd.f32 %v19411_v8, %v25244_v24 }
 0x7a2   : > { %v25429_v20 = vadd.f32 %v19414_v44, %v25247_v30 }
 0x7a3   : > { %v12824_v40 = vpop.f32.mrb[40].mxu1 }
 0x7a4   : > { %v16561_v10 = vpop.f32.mrb[40].mxu0  ;;  %v12826_v22 = vpop.f32.mrb[41].mxu1 }
 0x7a5   : > { %v19417_v3 = vadd.f32 %v16561_v10, %v12824_v40  ;;  %v16563_v18 = vpop.f32.mrb[41].mxu0  ;;  %v12828_v59 = vpop.f32.mrb[42].mxu1 }
 0x7a6   : > { %v19420_v58 = vadd.f32 %v16563_v18, %v12826_v22  ;;  %v16565_v57 = vpop.f32.mrb[42].mxu0  ;;  %v12830_v15 = vpop.f32.mrb[43].mxu1 }
 0x7a7   : > { %v25434_v8 = vadd.f32 %v19417_v3, %v25244_v24  ;;  %v19423_v37 = vadd.f32 %v16565_v57, %v12828_v59  ;;  %v16567_v51 = vpop.f32.mrb[43].mxu0 }
 0x7a8   : > { %v25437_v44 = vadd.f32 %v19420_v58, %v25247_v30  ;;  %v19426_v54 = vadd.f32 %v16567_v51, %v12830_v15 }
 0x7a9   : > { %v25441_v4 = vadd.f32 %v19423_v37, %v25244_v24 }
 0x7aa   : > { %v25445_v18 = vadd.f32 %v19426_v54, %v25247_v30 }
 0x7ab   : > { %v12834_v3 = vpop.f32.mrb[44].mxu1 }
 0x7ac   : > { %v16571_v22 = vpop.f32.mrb[44].mxu0  ;;  %v12836_v58 = vpop.f32.mrb[45].mxu1 }
 0x7ad   : > { %v19429_v59 = vadd.f32 %v16571_v22, %v12834_v3  ;;  %v16573_v49 = vpop.f32.mrb[45].mxu0  ;;  %v12838_v15 = vpop.f32.mrb[46].mxu1 }
 0x7ae   : > { %v19432_v51 = vadd.f32 %v16573_v49, %v12836_v58  ;;  %v16575_v38 = vpop.f32.mrb[46].mxu0  ;;  %v12840_v40 = vpop.f32.mrb[47].mxu1 }
 0x7af   : > { %v25450_v37 = vadd.f32 %v19429_v59, %v25244_v24  ;;  %v19435_v42 = vadd.f32 %v16575_v38, %v12838_v15  ;;  %v16577_v61 = vpop.f32.mrb[47].mxu0 }
 0x7b0   : > { %v25453_v54 = vadd.f32 %v19432_v51, %v25247_v30  ;;  %v19438_v10 = vadd.f32 %v16577_v61, %v12840_v40 }
 0x7b1   : > { %v25457_v19 = vadd.f32 %v19435_v42, %v25244_v24 }
 0x7b2   : > { %26117 = vst [vmem:[#allocation45_spill] sm:$0xff] %v25453_v54  ;;  %v25461_v49 = vadd.f32 %v19438_v10, %v25247_v30 }
 0x7b3   : > { %26118 = vst [vmem:[#allocation46_spill] sm:$0xff] %v25457_v19  ;;  %v12844_v59 = vpop.f32.mrb[48].mxu1 }
 0x7b4   : > { %26119 = vst [vmem:[#allocation47_spill] sm:$0xff] %v25461_v49  ;;  %v16581_v58 = vpop.f32.mrb[48].mxu0  ;;  %v12846_v51 = vpop.f32.mrb[49].mxu1 }
 0x7b5   : > { %v19441_v15 = vadd.f32 %v16581_v58, %v12844_v59  ;;  %v16583_v29 = vpop.f32.mrb[49].mxu0  ;;  %v12848_v40 = vpop.f32.mrb[50].mxu1 }
 0x7b6   : > { %v19444_v61 = vadd.f32 %v16583_v29, %v12846_v51  ;;  %v16585_v57 = vpop.f32.mrb[50].mxu0  ;;  %v12850_v3 = vpop.f32.mrb[51].mxu1 }
 0x7b7   : > { %v25466_v42 = vadd.f32 %v19441_v15, %v25244_v24  ;;  %v19447_v11 = vadd.f32 %v16585_v57, %v12848_v40  ;;  %v16587_v54 = vpop.f32.mrb[51].mxu0 }
 0x7b8   : > { %v25469_v10 = vadd.f32 %v19444_v61, %v25247_v30  ;;  %v19450_v22 = vadd.f32 %v16587_v54, %v12850_v3 }
 0x7b9   : > { %26120 = vst [vmem:[#allocation48_spill] sm:$0xff] %v25466_v42  ;;  %v25473_v49 = vadd.f32 %v19447_v11, %v25244_v24 }
 0x7ba   : > { %26121 = vst [vmem:[#allocation49_spill] sm:$0xff] %v25469_v10  ;;  %v25477_v29 = vadd.f32 %v19450_v22, %v25247_v30 }
 0x7bb   : > { %26122 = vst [vmem:[#allocation50_spill] sm:$0xff] %v25473_v49  ;;  %v12854_v15 = vpop.f32.mrb[52].mxu1 }
 0x7bc   : > { %26123 = vst [vmem:[#allocation51_spill] sm:$0xff] %v25477_v29  ;;  %v16591_v51 = vpop.f32.mrb[52].mxu0  ;;  %v12856_v61 = vpop.f32.mrb[53].mxu1 }
 0x7bd   : > { %v19453_v40 = vadd.f32 %v16591_v51, %v12854_v15  ;;  %v16593_v19 = vpop.f32.mrb[53].mxu0  ;;  %v12858_v3 = vpop.f32.mrb[54].mxu1 }
 0x7be   : > { %v19456_v54 = vadd.f32 %v16593_v19, %v12856_v61  ;;  %v16595_v38 = vpop.f32.mrb[54].mxu0  ;;  %v12860_v59 = vpop.f32.mrb[55].mxu1 }
 0x7bf   : > { %v25482_v11 = vadd.f32 %v19453_v40, %v25244_v24  ;;  %v19459_v42 = vadd.f32 %v16595_v38, %v12858_v3  ;;  %v16597_v10 = vpop.f32.mrb[55].mxu0 }
 0x7c0   : > { %v25485_v22 = vadd.f32 %v19456_v54, %v25247_v30  ;;  %v19462_v58 = vadd.f32 %v16597_v10, %v12860_v59 }
 0x7c1   : > { %26124 = vst [vmem:[#allocation52_spill] sm:$0xff] %v25482_v11  ;;  %v25489_v29 = vadd.f32 %v19459_v42, %v25244_v24 }
 0x7c2   : > { %26125 = vst [vmem:[#allocation53_spill] sm:$0xff] %v25485_v22  ;;  %v25493_v19 = vadd.f32 %v19462_v58, %v25247_v30 }
 0x7c3   : > { %26126 = vst [vmem:[#allocation54_spill] sm:$0xff] %v25489_v29  ;;  %v12864_v40 = vpop.f32.mrb[56].mxu1 }
 0x7c4   : > { %26127 = vst [vmem:[#allocation55_spill] sm:$0xff] %v25493_v19  ;;  %v16601_v61 = vpop.f32.mrb[56].mxu0  ;;  %v12866_v54 = vpop.f32.mrb[57].mxu1 }
 0x7c5   : > { %v19465_v3 = vadd.f32 %v16601_v61, %v12864_v40  ;;  %v16603_v49 = vpop.f32.mrb[57].mxu0  ;;  %v12868_v59 = vpop.f32.mrb[58].mxu1 }
 0x7c6   : > { %v19468_v10 = vadd.f32 %v16603_v49, %v12866_v54  ;;  %v16605_v57 = vpop.f32.mrb[58].mxu0  ;;  %v12870_v15 = vpop.f32.mrb[59].mxu1 }
 0x7c7   : > { %v25498_v42 = vadd.f32 %v19465_v3, %v25244_v24  ;;  %v19471_v11 = vadd.f32 %v16605_v57, %v12868_v59  ;;  %v16607_v22 = vpop.f32.mrb[59].mxu0 }
 0x7c8   : > { %v25501_v58 = vadd.f32 %v19468_v10, %v25247_v30  ;;  %v19474_v51 = vadd.f32 %v16607_v22, %v12870_v15 }
 0x7c9   : > { %26128 = vst [vmem:[#allocation56_spill] sm:$0xff] %v25498_v42  ;;  %v25505_v19 = vadd.f32 %v19471_v11, %v25244_v24 }
 0x7ca   : > { %26129 = vst [vmem:[#allocation57_spill] sm:$0xff] %v25501_v58  ;;  %v25509_v49 = vadd.f32 %v19474_v51, %v25247_v30 }
 0x7cb   : > { %v12874_v3 = vpop.f32.mrb[60].mxu1 }
 0x7cc   : > { %26130 = vst [vmem:[#allocation58_spill] sm:$0xff] %v25509_v49  ;;  %v16611_v54 = vpop.f32.mrb[60].mxu0  ;;  %v12876_v10 = vpop.f32.mrb[61].mxu1 }
 0x7cd   : > { %v19477_v59 = vadd.f32 %v16611_v54, %v12874_v3  ;;  %v16613_v29 = vpop.f32.mrb[61].mxu0  ;;  %v12878_v15 = vpop.f32.mrb[62].mxu1 }
 0x7ce   : > { %v19480_v22 = vadd.f32 %v16613_v29, %v12876_v10  ;;  %v16615_v38 = vpop.f32.mrb[62].mxu0  ;;  %v12880_v40 = vpop.f32.mrb[63].mxu1  ;;  %17018 = sbr.rel (%p18548_p3) target bundleno = 2033 (0x7f1), region = 68  ;;  %v26180_v10 = vld [vmem:[#allocation47_spill] sm:$0xff] (!%p18548_p3) }
 0x7cf   : > { %v25514_v11 = vadd.f32 %v19477_v59, %v25244_v24  ;;  %v19483_v42 = vadd.f32 %v16615_v38, %v12878_v15  ;;  %v16617_v58 = vpop.f32.mrb[63].mxu0  ;;  %v26131_v59 = vmax.f32 (!%p18548_p3), %v25250_v16, 0.0  ;;  %v26134_v16 = vmax.f32 (!%p18548_p3), %v25261_v36, 0.0  ;;  %v26184_v15 = vld [vmem:[#allocation49_spill] sm:$0xff] (!%p18548_p3) }
 0x7d0   : > { %v25517_v51 = vadd.f32 %v19480_v22, %v25247_v30  ;;  %v19486_v61 = vadd.f32 %v16617_v58, %v12880_v40  ;;  %v26136_v58 = vmax.f32 (!%p18548_p3), %v25269_v43, 0.0  ;;  %v26139_v36 = vmax.f32 (!%p18548_p3), %v25284_v33, 0.0  ;;  %v26176_v40 = vld [vmem:[#allocation45_spill] sm:$0xff] (!%p18548_p3)  ;;  %v26182_v22 = vld [vmem:[#allocation48_spill] sm:$0xff] (!%p18548_p3) }
 0x7d1   : > { %v17011_v57 = vmax.f32 %v25514_v11, 0.0  ;;  %v25521_v49 = vadd.f32 %v19483_v42, %v25244_v24  ;;  %17019 = vst [vmem:[%s21243_s4] sm:$0xff] (!%p18548_p3), %v26131_v59  ;;  %v26132_v24 = vmax.f32 (!%p18548_p3), %v25253_v48, 0.0  ;;  %17022 = vst [vmem:[%s21243_s4 + $0x18] sm:$0xff] (!%p18548_p3), %v26134_v16  ;;  %v26135_v42 = vmax.f32 (!%p18548_p3), %v25266_v1, 0.0  ;;  %v26186_v59 = vld [vmem:[#allocation50_spill] sm:$0xff] (!%p18548_p3) }
 0x7d2   : > { %v17012_v3 = vmax.f32 %v25517_v51, 0.0  ;;  %v25525_v29 = vadd.f32 %v19486_v61, %v25247_v30  ;;  %v26133_v30 = vmax.f32 (!%p18548_p3), %v25257_v13, 0.0  ;;  %17024 = vst [vmem:[%s21243_s4 + $0x28] sm:$0xff] (!%p18548_p3), %v26136_v58  ;;  %v26137_v48 = vmax.f32 (!%p18548_p3), %v25273_v28, 0.0  ;;  %17027 = vst [vmem:[%s21243_s4 + $0x40] sm:$0xff] (!%p18548_p3), %v26139_v36  ;;  %v26178_v61 = vld [vmem:[#allocation46_spill] sm:$0xff] (!%p18548_p3) }
 0x7d3   : > { %v17013_v54 = vmax.f32 %v25521_v49, 0.0  ;;  %17020 = vst [vmem:[%s21243_s4 + $0x8] sm:$0xff] (!%p18548_p3), %v26132_v24  ;;  %17023 = vst [vmem:[%s21243_s4 + $0x20] sm:$0xff] (!%p18548_p3), %v26135_v42  ;;  %v26138_v13 = vmax.f32 (!%p18548_p3), %v25277_v45, 0.0  ;;  %v26140_v1 = vmax.f32 (!%p18548_p3), %v25288_v56, 0.0  ;;  %v26141_v43 = vmax.f32 (!%p18548_p3), %v25293_v50, 0.0 }
 0x7d4   : > { %v17014_v38 = vmax.f32 %v25525_v29, 0.0  ;;  %17021 = vst [vmem:[%s21243_s4 + $0x10] sm:$0xff] (!%p18548_p3), %v26133_v30  ;;  %17025 = vst [vmem:[%s21243_s4 + $0x30] sm:$0xff] (!%p18548_p3), %v26137_v48  ;;  %v26142_v28 = vmax.f32 (!%p18548_p3), %v25297_v25, 0.0  ;;  %v26143_v45 = vmax.f32 (!%p18548_p3), %v25304_v2, 0.0  ;;  %v26144_v33 = vmax.f32 (!%p18548_p3), %v25308_v53, 0.0 }
 0x7d5   : > { %17026 = vst [vmem:[%s21243_s4 + $0x38] sm:$0xff] %v26138_v13  ;;  %17028 = vst [vmem:[%s21243_s4 + $0x48] sm:$0xff] %v26140_v1  ;;  %v26145_v56 = vmax.f32 %v25313_v63, 0.0  ;;  %v26146_v50 = vmax.f32 %v25317_v47, 0.0  ;;  %v26147_v25 = vmax.f32 %v25324_v46, 0.0  ;;  %v26148_v2 = vmax.f32 %v25328_v39, 0.0 }
 0x7d6   : > { %17029 = vst [vmem:[%s21243_s4 + $0x50] sm:$0xff] %v26141_v43  ;;  %17030 = vst [vmem:[%s21243_s4 + $0x58] sm:$0xff] %v26142_v28  ;;  %v26149_v53 = vmax.f32 %v25333_v17, 0.0  ;;  %v26150_v63 = vmax.f32 %v25337_v62, 0.0  ;;  %v26151_v47 = vmax.f32 %v25344_v21, 0.0  ;;  %v26152_v46 = vmax.f32 %v25348_v55, 0.0 }
 0x7d7   : > { %17031 = vst [vmem:[%s21243_s4 + $0x60] sm:$0xff] %v26143_v45  ;;  %17032 = vst [vmem:[%s21243_s4 + $0x68] sm:$0xff] %v26144_v33  ;;  %v26153_v39 = vmax.f32 %v25353_v6, 0.0  ;;  %v26154_v17 = vmax.f32 %v25357_v0, 0.0  ;;  %v26155_v62 = vmax.f32 %v25364_v52, 0.0  ;;  %v26156_v21 = vmax.f32 %v25368_v9, 0.0 }
 0x7d8   : > { %17033 = vst [vmem:[%s21243_s4 + $0x70] sm:$0xff] %v26145_v56  ;;  %17034 = vst [vmem:[%s21243_s4 + $0x78] sm:$0xff] %v26146_v50  ;;  %v26157_v55 = vmax.f32 %v25373_v5, 0.0  ;;  %v26158_v6 = vmax.f32 %v25377_v35, 0.0  ;;  %v26159_v0 = vmax.f32 %v25384_v34, 0.0  ;;  %v26160_v52 = vmax.f32 %v25388_v23, 0.0 }
 0x7d9   : > { %17035 = vst [vmem:[%s21243_s4 + $0x80] sm:$0xff] %v26147_v25  ;;  %17036 = vst [vmem:[%s21243_s4 + $0x88] sm:$0xff] %v26148_v2  ;;  %v26161_v9 = vmax.f32 %v25393_v14, 0.0  ;;  %v26162_v5 = vmax.f32 %v25397_v41, 0.0  ;;  %v26163_v35 = vmax.f32 %v25402_v32, 0.0  ;;  %v26164_v34 = vmax.f32 %v25405_v27, 0.0 }
 0x7da   : > { %17037 = vst [vmem:[%s21243_s4 + $0x90] sm:$0xff] %v26149_v53  ;;  %17038 = vst [vmem:[%s21243_s4 + $0x98] sm:$0xff] %v26150_v63  ;;  %v26165_v23 = vmax.f32 %v25409_v26, 0.0  ;;  %v26166_v14 = vmax.f32 %v25413_v7, 0.0  ;;  %v26167_v41 = vmax.f32 %v25418_v12, 0.0  ;;  %v26168_v32 = vmax.f32 %v25421_v60, 0.0 }
 0x7db   : > { %17039 = vst [vmem:[%s21243_s4 + $0xa0] sm:$0xff] %v26151_v47  ;;  %17040 = vst [vmem:[%s21243_s4 + $0xa8] sm:$0xff] %v26152_v46  ;;  %v26169_v27 = vmax.f32 %v25425_v31, 0.0  ;;  %v26170_v26 = vmax.f32 %v25429_v20, 0.0  ;;  %v26171_v7 = vmax.f32 %v25434_v8, 0.0  ;;  %v26172_v12 = vmax.f32 %v25437_v44, 0.0 }
 0x7dc   : > { %17041 = vst [vmem:[%s21243_s4 + $0xb0] sm:$0xff] %v26153_v39  ;;  %17042 = vst [vmem:[%s21243_s4 + $0xb8] sm:$0xff] %v26154_v17  ;;  %v26173_v60 = vmax.f32 %v25441_v4, 0.0  ;;  %v26174_v31 = vmax.f32 %v25445_v18, 0.0  ;;  %v26175_v20 = vmax.f32 %v25450_v37, 0.0  ;;  %v26177_v8 = vmax.f32 %v26176_v40, 0.0 }
 0x7dd   : > { %17043 = vst [vmem:[%s21243_s4 + $0xc0] sm:$0xff] %v26155_v62  ;;  %17044 = vst [vmem:[%s21243_s4 + $0xc8] sm:$0xff] %v26156_v21  ;;  %v26179_v44 = vmax.f32 %v26178_v61, 0.0  ;;  %v26181_v4 = vmax.f32 %v26180_v10, 0.0  ;;  %v26183_v18 = vmax.f32 %v26182_v22, 0.0  ;;  %v26185_v37 = vmax.f32 %v26184_v15, 0.0 }
 0x7de   : > { %17045 = vst [vmem:[%s21243_s4 + $0xd0] sm:$0xff] %v26157_v55  ;;  %17046 = vst [vmem:[%s21243_s4 + $0xd8] sm:$0xff] %v26158_v6  ;;  %v26187_v24 = vmax.f32 %v26186_v59, 0.0  ;;  %v26188_v30 = vld [vmem:[#allocation51_spill] sm:$0xff]  ;;  %v26190_v42 = vld [vmem:[#allocation52_spill] sm:$0xff]  ;;  %v26202_v25 = vmax.f32 %v25505_v19, 0.0 }
 0x7df   : > { %17047 = vst [vmem:[%s21243_s4 + $0xe0] sm:$0xff] %v26159_v0  ;;  %17048 = vst [vmem:[%s21243_s4 + $0xe8] sm:$0xff] %v26160_v52  ;;  %v26189_v16 = vmax.f32 %v26188_v30, 0.0  ;;  %v26191_v58 = vmax.f32 %v26190_v42, 0.0  ;;  %v26192_v48 = vld [vmem:[#allocation53_spill] sm:$0xff]  ;;  %v26194_v36 = vld [vmem:[#allocation54_spill] sm:$0xff] }
 0x7e0   : > { %17049 = vst [vmem:[%s21243_s4 + $0xf0] sm:$0xff] %v26161_v9  ;;  %17050 = vst [vmem:[%s21243_s4 + $0xf8] sm:$0xff] %v26162_v5  ;;  %v26193_v13 = vmax.f32 %v26192_v48, 0.0  ;;  %v26195_v1 = vmax.f32 %v26194_v36, 0.0  ;;  %v26196_v43 = vld [vmem:[#allocation55_spill] sm:$0xff]  ;;  %v26198_v45 = vld [vmem:[#allocation56_spill] sm:$0xff] }
 0x7e1   : > { %17051 = vst [vmem:[%s21243_s4 + $0x100] sm:$0xff] %v26163_v35  ;;  %17052 = vst [vmem:[%s21243_s4 + $0x108] sm:$0xff] %v26164_v34  ;;  %v26197_v28 = vmax.f32 %v26196_v43, 0.0  ;;  %v26199_v33 = vmax.f32 %v26198_v45, 0.0  ;;  %v26200_v56 = vld [vmem:[#allocation57_spill] sm:$0xff]  ;;  %v26203_v2 = vld [vmem:[#allocation58_spill] sm:$0xff] }
 0x7e2   : > { %17053 = vst [vmem:[%s21243_s4 + $0x110] sm:$0xff] %v26165_v23  ;;  %17054 = vst [vmem:[%s21243_s4 + $0x118] sm:$0xff] %v26166_v14  ;;  %v26201_v50 = vmax.f32 %v26200_v56, 0.0  ;;  %v26204_v53 = vmax.f32 %v26203_v2, 0.0 }
 0x7e3   : > { %17055 = vst [vmem:[%s21243_s4 + $0x120] sm:$0xff] %v26167_v41  ;;  %17056 = vst [vmem:[%s21243_s4 + $0x128] sm:$0xff] %v26168_v32 }
 0x7e4   : > { %17057 = vst [vmem:[%s21243_s4 + $0x130] sm:$0xff] %v26169_v27  ;;  %17058 = vst [vmem:[%s21243_s4 + $0x138] sm:$0xff] %v26170_v26 }
 0x7e5   : > { %17059 = vst [vmem:[%s21243_s4 + $0x140] sm:$0xff] %v26171_v7  ;;  %17060 = vst [vmem:[%s21243_s4 + $0x148] sm:$0xff] %v26172_v12 }
 0x7e6   : > { %17061 = vst [vmem:[%s21243_s4 + $0x150] sm:$0xff] %v26173_v60  ;;  %17062 = vst [vmem:[%s21243_s4 + $0x158] sm:$0xff] %v26174_v31 }
 0x7e7   : > { %17063 = vst [vmem:[%s21243_s4 + $0x160] sm:$0xff] %v26175_v20  ;;  %17064 = vst [vmem:[%s21243_s4 + $0x168] sm:$0xff] %v26177_v8 }
 0x7e8   : > { %17065 = vst [vmem:[%s21243_s4 + $0x170] sm:$0xff] %v26179_v44  ;;  %17066 = vst [vmem:[%s21243_s4 + $0x178] sm:$0xff] %v26181_v4 }
 0x7e9   : > { %17067 = vst [vmem:[%s21243_s4 + $0x180] sm:$0xff] %v26183_v18  ;;  %17068 = vst [vmem:[%s21243_s4 + $0x188] sm:$0xff] %v26185_v37 }
 0x7ea   : > { %17069 = vst [vmem:[%s21243_s4 + $0x190] sm:$0xff] %v26187_v24  ;;  %17070 = vst [vmem:[%s21243_s4 + $0x198] sm:$0xff] %v26189_v16 }
 0x7eb   : > { %17071 = vst [vmem:[%s21243_s4 + $0x1a0] sm:$0xff] %v26191_v58  ;;  %17072 = vst [vmem:[%s21243_s4 + $0x1a8] sm:$0xff] %v26193_v13 }
 0x7ec   : > { %17073 = vst [vmem:[%s21243_s4 + $0x1b0] sm:$0xff] %v26195_v1  ;;  %17074 = vst [vmem:[%s21243_s4 + $0x1b8] sm:$0xff] %v26197_v28 }
 0x7ed   : > { %17075 = vst [vmem:[%s21243_s4 + $0x1c0] sm:$0xff] %v26199_v33  ;;  %17076 = vst [vmem:[%s21243_s4 + $0x1c8] sm:$0xff] %v26201_v50 }
 0x7ee   : > { %17077 = vst [vmem:[%s21243_s4 + $0x1d0] sm:$0xff] %v26202_v25  ;;  %17078 = vst [vmem:[%s21243_s4 + $0x1d8] sm:$0xff] %v26204_v53 }
 0x7ef   : > { %17079 = vst [vmem:[%s21243_s4 + $0x1e0] sm:$0xff] %v17011_v57  ;;  %17080 = vst [vmem:[%s21243_s4 + $0x1e8] sm:$0xff] %v17012_v3 }
 0x7f0   : > { %17081 = vst [vmem:[%s21243_s4 + $0x1f0] sm:$0xff] %v17013_v54  ;;  %17082 = vst [vmem:[%s21243_s4 + $0x1f8] sm:$0xff] %v17014_v38 }
 0x7f1 PF: > { %s18620_s23 = sshll.u32 %s20938_s24, 13  ;;  %s26205_s5 = sld [smem:[#allocation60_spill]] }
 0x7f2   : > { %s17097_s6 = sshll.u32 %s21243_s4, 4  ;;  %s25733_s7 = scalar_lea.sflag [#allocation8], %s299_s13  ;;  %s25729_s6 = int_to_ptr.vmem [resolvable:$true] %s17097_s6 }
 0x7f3   : > { %s20799_s26 = scalar_lea.vmem %s25729_s6, 8192  ;;  %p26206_p2 = scmp.ne.s32.totalorder %s25880_s9, 0 }
 0x7f4   : > { %p20800_p6 = scmp.ne.s32.totalorder %s25729_s6, %s20799_s26  ;;  %s20960_s24 = smov [#allocation12]  }
 0x7f5   : > { %s20803_s15 = sshll.u32 %s20960_s24, 4  ;;  %s20804_s15 = int_to_ptr.vmem [resolvable:$false] %s20803_s15 }
 0x7f6   : > { %p20801_p13 = pnand %p20800_p6, %p26206_p2  ;;  %s20805_s17 = scalar_lea.vmem %s20804_s15, 16384 }
 0x7f7   : > { %s25726_s11 = scalar_lea.hbm %s26205_s5, %s18620_s23  ;;  %p20806_p10 = scmp.lt.s32.totalorder %s25729_s6, %s20804_s15 }
 0x7f8   : > { %p20802_p9 = pneg %p20801_p13  ;;  %p20807_p11 = scmp.lt.s32.totalorder %s20805_s17, %s20799_s26 }
 0x7fa   : > { %p20808_p1 = por %p20807_p11, %p20806_p10 }
 0x7fc   : > { %p20809_p5 = pnand %p20808_p1, %p20802_p9 }
 0x7fe   : > { %20812 = shalt.err (!%p20809_p5)
}
 0x7ff   : > { %s20813_s13 = scalar_lea.hbm %s25726_s11, 8192  ;;  %s20817_s8 = scalar_lea.hbm %s26205_s5, 16384 }
 0x800   : > { %p20814_p8 = scmp.ne.s32.totalorder %s25726_s11, %s20813_s13  ;;  %p20818_p12 = scmp.lt.u32.totalorder %s25726_s11, %s26205_s5 }
 0x801   : > { %p20819_p0 = scmp.lt.u32.totalorder %s20817_s8, %s20813_s13  ;;  %p20821_p6 = scmp.lt.u32.totalorder %s20813_s13, %s25726_s11 }
 0x802   : > { %p20815_p7 = pnand %p20814_p8, %p26206_p2 }
 0x803   : > { %p20820_p3 = por %p20819_p0, %p20818_p12 }
 0x804   : > { %p20816_p4 = pneg %p20815_p7 }
 0x805   : > { %p20822_p13 = por %p20821_p6, %p20820_p3 }
 0x807   : > { %p20823_p9 = pnand %p20822_p13, %p20816_p4 }
 0x809   : > { %20826 = shalt.err (!%p20823_p9)
}
 0x80a   : > { %s20961_s12 = smov 256   ;;  %s20962_s14 = smov 16  }
 0x80b   : > { %19946 = dma.vmem_to_hbm [thread:$0]  (%p26206_p2), %s25729_s6, 8192, %s25726_s11, %s25733_s7, %s20961_s12, %s20961_s12, %s20962_s14  }
 0x80c PF: > { %s26207_s23 = sld [smem:[#allocation17_spill]]  ;;  %s26208_s18 = sld [smem:[#allocation22_spill]] }
 0x80d   : > { %p19966_p10 = scmp.ge.s32.totalorder %s20950_s27, 2 }
 0x812   : > { %s17112_s10 = sand.u32 1, %s26207_s23   ;;  %p26209_p11 = scmp.ne.s32.totalorder %s26208_s18, 0 }
 0x813   : > { %s17113_s26 = scalar_lea.sflag [#allocation8], %s17112_s10 }
 0x814   : > { %p19960_p1 = pnand %p19966_p10, %p26209_p11 }
 0x816   : > { %20896 = dma.done.wait (!%p19960_p1), %s17113_s26, 8192  }
 0x817   : > { %20898 = vsyncadd (!%p19960_p1), %s17113_s26, 4294959104  ;;  %s21_s27 = sadd.s32 1, %s20950_s27   ;;  %s26211_s9 = sld [smem:[#allocation18_spill]] }
 0x818   : > { %p25762_p5 = scmp.ge.s32.totalorder %s21_s27, 6   ;;  %s26212_s17 = sld [smem:[#allocation21_spill]] }
 0x819   : > { %s26213_s11 = sld [smem:[#allocation19_spill]]  ;;  %s26214_s26 = sld [smem:[#allocation20_spill]] }
 0x81a   : > { %s26216_s15 = smov %s20906_s16  ;;  %s26218_s18 = smov %s20918_s19 }
 0x81b   : > { %s26219_s19 = smov %s20922_s20  ;;  %s26220_s20 = smov %s21167_s30 }
 0x81c   : > { %s26221_s21 = smov %s20930_s22  ;;  %s25787_s22 = smov 0  }
 0x81d   : > { %s26217_s16 = smov %s26211_s9  ;;  %s26222_s23 = smov %s20942_s25 }
 0x81e   : > { %s26224_s25 = smov %s26226_s28  ;;  %20 = sbr.rel (!%p25762_p5) target bundleno = 14 (0xe), region = 143 }
 0x81f   : > { %s26223_s24 = smov %s26213_s11 }
 0x825   :  { %17118 = vsyncpa [#allocation7], 1 }
 0x826   :  { %17120 = vsyncpa [#allocation7 + $0x1], 1 }
 0x827   :  { %17121 = vsyncpa [#allocation10], 1 }
 0x828   :  { %17123 = vsyncpa [#allocation10 + $0x1], 1 }
 0x829   :  { %17124 = vsyncpa [#allocation8], 1 }
 0x82a   :  { %17126 = vsyncpa [#allocation8 + $0x1], 1 }

</bundles_post_ra>
